<compile_context>
chip_gen: v7x
topology: tpu7x:2x2x1
jax: 0.10.0
libtpu: 0.0.40
codegen_flags: <defaults>
</compile_context>

<pallas_src>
import math

import jax
import jax.numpy as jnp
from jax import lax
from jax.experimental import pallas as pl
from jax.experimental.pallas import tpu as pltpu


def _round_up(x, m):
    return (x + m - 1) // m * m


# ----------------------------------------------------------------------------
# Pallas kernel: fused Key+Value 3x3 conv as 9 shifted matmuls (direct conv)
# ----------------------------------------------------------------------------
def _kv_conv_kernel(x_ref, w_ref, bk_ref, bv_ref, key_ref, val_ref, acc_ref):
    """One grid step == one image.

    x_ref  : (1, H+2, W+2, Cin)   bf16  spatially padded NHWC image
    w_ref  : (9, Cin, Cout_p)     bf16  fused Key|Value weights (VMEM-resident)
    bk_ref : (1, Ck_p)            f32   Key bias (lane-padded)
    bv_ref : (1, Cv_p)            f32   Value bias (lane-padded)
    key_ref: (1, H*W, Ck_p)       f32
    val_ref: (1, H*W, Cv_p)       f32
    acc_ref: (H*W, Cout_p)        f32   VMEM accumulator scratch
    """
    _, hp2, wp2, cin = x_ref.shape
    h, w = hp2 - 2, wp2 - 2
    ck_p = key_ref.shape[-1]

    # 3x3 taps, statically unrolled: each tap is a shifted rectangular window of
    # the padded image.  The overlapping re-reads are VMEM-local; HBM saw the
    # image exactly once.  (W is a sublane multiple in the test; odd W would
    # just trigger a Mosaic relayout on the (H,W)->(H*W) collapse.)
    for di in range(3):
        for dj in range(3):
            a = x_ref[0, di:di + h, dj:dj + w, :].reshape(h * w, cin)
            contrib = jnp.dot(a, w_ref[di * 3 + dj],
                              preferred_element_type=jnp.float32)
            if di == 0 and dj == 0:
                acc_ref[...] = contrib
            else:
                acc_ref[...] += contrib

    # Split the fused accumulator at a 128-lane boundary into the two outputs
    # (no post-kernel slice/copy of a fused slab in the wrapper).
    key_ref[0] = (acc_ref[:, :ck_p] + bk_ref[...]).astype(key_ref.dtype)
    val_ref[0] = (acc_ref[:, ck_p:] + bv_ref[...]).astype(val_ref.dtype)


def _kv_pallas(x_pad, w_fused, bk_p, bv_p):
    """x_pad (N,H+2,W+2,Cin) bf16, w_fused (9,Cin,Cout_p) bf16, biases (1,C*_p) f32."""
    n, hp2, wp2, cin = x_pad.shape
    h, w = hp2 - 2, wp2 - 2
    hw = h * w
    ntaps, _, cout_p = w_fused.shape
    ck_p = bk_p.shape[-1]
    cv_p = bv_p.shape[-1]

    # VMEM budget: double-buffered inputs + double-buffered outputs + accumulator.
    # (Weights are fetched once thanks to the constant index_map, but Pallas still
    # allocates two buffers for the spec.)  Headroom added; capped for v7x (64 MiB).
    blk_bytes = (2 * (hp2 * wp2 * cin * 2            # x block, bf16
                      + ntaps * cin * cout_p * 2     # weights, bf16
                      + (ck_p + cv_p) * 4)           # biases, f32
                 + 2 * hw * (ck_p + cv_p) * 4        # two f32 output blocks
                 + hw * cout_p * 4)                  # f32 accumulator
    vmem_limit = int(min(max(blk_bytes + blk_bytes // 4 + (4 << 20), 32 << 20),
                         96 << 20))

    cost = pl.CostEstimate(
        flops=2 * n * hw * ntaps * cin * cout_p,
        transcendentals=0,
        bytes_accessed=(x_pad.size * 2 + w_fused.size * 2
                        + (ck_p + cv_p) * 4 + n * hw * (ck_p + cv_p) * 4))

    # TODO(synk): for batch=1 on v7x (2 TensorCores) add a second grid axis over
    # output-row chunks so both cores get work; batch>=2 already parallelizes.
    key_f, val_f = pl.pallas_call(
        _kv_conv_kernel,
        out_shape=(jax.ShapeDtypeStruct((n, hw, ck_p), jnp.float32),
                   jax.ShapeDtypeStruct((n, hw, cv_p), jnp.float32)),
        grid_spec=pltpu.PrefetchScalarGridSpec(
            num_scalar_prefetch=0,
            grid=(n,),
            in_specs=[
                pl.BlockSpec((1, hp2, wp2, cin), lambda i: (i, 0, 0, 0)),
                # Constant index_map -> weight slab DMA'd once, stays resident.
                pl.BlockSpec((ntaps, cin, cout_p), lambda i: (0, 0, 0)),
                pl.BlockSpec((1, ck_p), lambda i: (0, 0)),
                pl.BlockSpec((1, cv_p), lambda i: (0, 0)),
            ],
            out_specs=[
                pl.BlockSpec((1, hw, ck_p), lambda i: (i, 0, 0)),
                pl.BlockSpec((1, hw, cv_p), lambda i: (i, 0, 0)),
            ],
            scratch_shapes=[pltpu.VMEM((hw, cout_p), jnp.float32)],
        ),
        compiler_params=pltpu.CompilerParams(
            dimension_semantics=("parallel",),
            vmem_limit_bytes=vmem_limit),
        cost_estimate=cost,
    )(x_pad, w_fused, bk_p, bv_p)
    return key_f, val_f


# ----------------------------------------------------------------------------
# Forward wrapper (layout glue only) and one-time parameter packing
# ----------------------------------------------------------------------------
def key_value_forward(params, x):
    """KeyValue.forward: x (N,Cin,H,W) -> (key (N,keydim,H,W), value (N,valdim,H,W))."""
    w_fused = params['w']            # (9, Cin, Ck_p + Cv_p) bf16, packed once
    b_key = params['b_key']          # (keydim,) f32
    b_val = params['b_value']        # (valdim,) f32
    keydim, valdim = b_key.shape[0], b_val.shape[0]
    ck_p, cv_p = _round_up(keydim, 128), _round_up(valdim, 128)

    n, _, h, w = x.shape
    # Layout glue (no compute): NCHW->NHWC + bf16 cast + 1-pixel spatial pad.
    x_nhwc = jnp.transpose(x, (0, 2, 3, 1)).astype(jnp.bfloat16)
    x_pad = jnp.pad(x_nhwc, ((0, 0), (1, 1), (1, 1), (0, 0)))

    bk_p = jnp.pad(b_key.astype(jnp.float32), (0, ck_p - keydim)).reshape(1, ck_p)
    bv_p = jnp.pad(b_val.astype(jnp.float32), (0, cv_p - valdim)).reshape(1, cv_p)

    key_f, val_f = _kv_pallas(x_pad, w_fused, bk_p, bv_p)

    if ck_p != keydim:
        key_f = key_f[..., :keydim]
    if cv_p != valdim:
        val_f = val_f[..., :valdim]
    # TODO(synk): if the consumer tolerates NHWC, return key_f/val_f reshaped to
    # (N,H,W,C) directly and skip the two NHWC->NCHW transpose passes below.
    key = jnp.transpose(key_f.reshape(n, h, w, keydim), (0, 3, 1, 2))
    value = jnp.transpose(val_f.reshape(n, h, w, valdim), (0, 3, 1, 2))
    return key, value


key_value = jax.jit(key_value_forward)


def init_key_value_params(rng, indim, keydim, valdim):
    """PyTorch Conv2d default-style init, HWIO layout, f32 (reference params)."""
    fan_in = 3 * 3 * indim
    bound = 1.0 / math.sqrt(fan_in)
    k1, k2, k3, k4 = jax.random.split(rng, 4)

    def conv(kw_, kb_, cout):
        wgt = jax.random.uniform(kw_, (3, 3, indim, cout), jnp.float32, -bound, bound)
        b = jax.random.uniform(kb_, (cout,), jnp.float32, -bound, bound)
        return {'w': wgt, 'b': b}

    return {'Key': conv(k1, k2, keydim), 'Value': conv(k3, k4, valdim)}


def pack_key_value_params(raw):
    """One-time packing: fuse Key|Value weights along Cout (each lane-padded to a
    128 multiple), reshape to (9, Cin, Cout_p), cast to bf16."""
    wk, bk = raw['Key']['w'], raw['Key']['b']        # (3,3,Cin,keydim)
    wv, bv = raw['Value']['w'], raw['Value']['b']    # (3,3,Cin,valdim)
    keydim, valdim = wk.shape[-1], wv.shape[-1]
    cin = wk.shape[2]
    ck_p, cv_p = _round_up(keydim, 128), _round_up(valdim, 128)
    wk_p = jnp.pad(wk, ((0, 0), (0, 0), (0, 0), (0, ck_p - keydim)))
    wv_p = jnp.pad(wv, ((0, 0), (0, 0), (0, 0), (0, cv_p - valdim)))
    w = jnp.concatenate([wk_p, wv_p], axis=-1)       # (3,3,Cin,Cout_p)
    w = w.reshape(9, cin, ck_p + cv_p).astype(jnp.bfloat16)
    return {'w': w,
            'b_key': bk.astype(jnp.float32),
            'b_value': bv.astype(jnp.float32)}


# ----------------------------------------------------------------------------
if __name__ == "__main__":
    rng = jax.random.PRNGKey(0)
    kp, kx = jax.random.split(rng)

    # Small shapes consistent with the module (real STM uses Cin=1024, key=128, val=512).
    N, Cin, H, W = 2, 256, 16, 16
    keydim, valdim = 64, 192

    raw = init_key_value_params(kp, Cin, keydim, valdim)
    params = pack_key_value_params(raw)
    x = jax.random.normal(kx, (N, Cin, H, W), jnp.float32)

    key_out, val_out = key_value(params, x)
    key_out = jax.block_until_ready(key_out)
    val_out = jax.block_until_ready(val_out)

    assert key_out.shape == (N, keydim, H, W), key_out.shape
    assert val_out.shape == (N, valdim, H, W), val_out.shape
    assert bool(jnp.all(jnp.isfinite(key_out)))
    assert bool(jnp.all(jnp.isfinite(val_out)))

    # Reference check against XLA conv (loose tolerance: bf16 matmul operands,
    # f32 accumulation).
    def ref_conv(wgt, b):
        y = lax.conv_general_dilated(x, wgt, (1, 1), ((1, 1), (1, 1)),
                                     dimension_numbers=('NCHW', 'HWIO', 'NCHW'))
        return y + b[None, :, None, None]

    ref_k = ref_conv(raw['Key']['w'], raw['Key']['b'])
    ref_v = ref_conv(raw['Value']['w'], raw['Value']['b'])
    assert float(jnp.max(jnp.abs(key_out - ref_k))) < 1e-1
    assert float(jnp.max(jnp.abs(val_out - ref_v))) < 1e-1

    print("KERNEL_OK")
</pallas_src>

<mosaic_0001>
module attributes {stable_mosaic.version = 11 : i64} {
  func.func @_kv_conv_kernel(%arg0: i32, %arg1: memref<1x18x18x256xbf16, #tpu.memory_space<vmem>>, %arg2: memref<9x256x384xbf16, #tpu.memory_space<vmem>>, %arg3: memref<1x128xf32, #tpu.memory_space<vmem>>, %arg4: memref<1x256xf32, #tpu.memory_space<vmem>>, %arg5: memref<1x256x128xf32, #tpu.memory_space<vmem>>, %arg6: memref<1x256x256xf32, #tpu.memory_space<vmem>>, %arg7: memref<256x384xf32, #tpu.memory_space<vmem>>) attributes {dimension_semantics = [#tpu.dimension_semantics<parallel>], iteration_bounds = array<i64: 2>, scalar_prefetch = 0 : i64, scratch_operands = 1 : i64, tpu.core_type = #tpu.core_type<tc>, window_params = [{transform_indices = @transform_0, window_bounds = array<i64: 1, 18, 18, 256>}, {pipeline_mode = #tpu.pipeline_mode<synchronous>, transform_indices = @transform_1, window_bounds = array<i64: 9, 256, 384>}, {pipeline_mode = #tpu.pipeline_mode<synchronous>, transform_indices = @transform_2, window_bounds = array<i64: 1, 128>}, {pipeline_mode = #tpu.pipeline_mode<synchronous>, transform_indices = @transform_3, window_bounds = array<i64: 1, 256>}, {transform_indices = @transform_4, window_bounds = array<i64: 1, 256, 128>}, {transform_indices = @transform_5, window_bounds = array<i64: 1, 256, 256>}]} {
    %c0 = arith.constant 0 : index
    %c0_0 = arith.constant 0 : index
    %c0_1 = arith.constant 0 : index
    %c0_2 = arith.constant 0 : index
    %0 = vector.load %arg1[%c0, %c0_0, %c0_1, %c0_2] : memref<1x18x18x256xbf16, #tpu.memory_space<vmem>>, vector<1x16x16x256xbf16>
    %1 = vector.shape_cast %0 : vector<1x16x16x256xbf16> to vector<16x16x256xbf16>
    %2 = vector.shape_cast %1 : vector<16x16x256xbf16> to vector<256x256xbf16>
    %c0_3 = arith.constant 0 : index
    %c0_4 = arith.constant 0 : index
    %c0_5 = arith.constant 0 : index
    %3 = vector.load %arg2[%c0_3, %c0_4, %c0_5] : memref<9x256x384xbf16, #tpu.memory_space<vmem>>, vector<1x256x384xbf16>
    %4 = vector.shape_cast %3 : vector<1x256x384xbf16> to vector<256x384xbf16>
    %cst = arith.constant dense<0.000000e+00> : vector<256x384xf32>
    %5 = tpu.matmul %2, %4, %cst {dimension_numbers = #tpu.dot_dimension_numbers<[1], [0], [0], [1], [0, 0, 1, 1], [], []>} : vector<256x256xbf16>, vector<256x384xbf16>, vector<256x384xf32> -> vector<256x384xf32>
    %c0_6 = arith.constant 0 : index
    %c0_7 = arith.constant 0 : index
    %6 = vector.load %arg7[%c0_6, %c0_7] : memref<256x384xf32, #tpu.memory_space<vmem>>, vector<256x384xf32>
    tpu.vector_store %arg7[%c0_6, %c0_7], %5 {strides = array<i32>} : memref<256x384xf32, #tpu.memory_space<vmem>>, vector<256x384xf32>,
    %c0_8 = arith.constant 0 : index
    %c0_9 = arith.constant 0 : index
    %c1 = arith.constant 1 : index
    %c0_10 = arith.constant 0 : index
    %7 = vector.load %arg1[%c0_8, %c0_9, %c1, %c0_10] : memref<1x18x18x256xbf16, #tpu.memory_space<vmem>>, vector<1x16x16x256xbf16>
    %8 = vector.shape_cast %7 : vector<1x16x16x256xbf16> to vector<16x16x256xbf16>
    %9 = vector.shape_cast %8 : vector<16x16x256xbf16> to vector<256x256xbf16>
    %c1_11 = arith.constant 1 : index
    %c0_12 = arith.constant 0 : index
    %c0_13 = arith.constant 0 : index
    %10 = vector.load %arg2[%c1_11, %c0_12, %c0_13] : memref<9x256x384xbf16, #tpu.memory_space<vmem>>, vector<1x256x384xbf16>
    %11 = vector.shape_cast %10 : vector<1x256x384xbf16> to vector<256x384xbf16>
    %cst_14 = arith.constant dense<0.000000e+00> : vector<256x384xf32>
    %12 = tpu.matmul %9, %11, %cst_14 {dimension_numbers = #tpu.dot_dimension_numbers<[1], [0], [0], [1], [0, 0, 1, 1], [], []>} : vector<256x256xbf16>, vector<256x384xbf16>, vector<256x384xf32> -> vector<256x384xf32>
    %c0_15 = arith.constant 0 : index
    %c0_16 = arith.constant 0 : index
    %13 = vector.load %arg7[%c0_15, %c0_16] : memref<256x384xf32, #tpu.memory_space<vmem>>, vector<256x384xf32>
    %14 = arith.addf %13, %12 : vector<256x384xf32>
    %c0_17 = arith.constant 0 : index
    %c0_18 = arith.constant 0 : index
    %15 = vector.load %arg7[%c0_17, %c0_18] : memref<256x384xf32, #tpu.memory_space<vmem>>, vector<256x384xf32>
    tpu.vector_store %arg7[%c0_17, %c0_18], %14 {strides = array<i32>} : memref<256x384xf32, #tpu.memory_space<vmem>>, vector<256x384xf32>,
    %c0_19 = arith.constant 0 : index
    %c0_20 = arith.constant 0 : index
    %c2 = arith.constant 2 : index
    %c0_21 = arith.constant 0 : index
    %16 = vector.load %arg1[%c0_19, %c0_20, %c2, %c0_21] : memref<1x18x18x256xbf16, #tpu.memory_space<vmem>>, vector<1x16x16x256xbf16>
    %17 = vector.shape_cast %16 : vector<1x16x16x256xbf16> to vector<16x16x256xbf16>
    %18 = vector.shape_cast %17 : vector<16x16x256xbf16> to vector<256x256xbf16>
    %c2_22 = arith.constant 2 : index
    %c0_23 = arith.constant 0 : index
    %c0_24 = arith.constant 0 : index
    %19 = vector.load %arg2[%c2_22, %c0_23, %c0_24] : memref<9x256x384xbf16, #tpu.memory_space<vmem>>, vector<1x256x384xbf16>
    %20 = vector.shape_cast %19 : vector<1x256x384xbf16> to vector<256x384xbf16>
    %cst_25 = arith.constant dense<0.000000e+00> : vector<256x384xf32>
    %21 = tpu.matmul %18, %20, %cst_25 {dimension_numbers = #tpu.dot_dimension_numbers<[1], [0], [0], [1], [0, 0, 1, 1], [], []>} : vector<256x256xbf16>, vector<256x384xbf16>, vector<256x384xf32> -> vector<256x384xf32>
    %c0_26 = arith.constant 0 : index
    %c0_27 = arith.constant 0 : index
    %22 = vector.load %arg7[%c0_26, %c0_27] : memref<256x384xf32, #tpu.memory_space<vmem>>, vector<256x384xf32>
    %23 = arith.addf %22, %21 : vector<256x384xf32>
    %c0_28 = arith.constant 0 : index
    %c0_29 = arith.constant 0 : index
    %24 = vector.load %arg7[%c0_28, %c0_29] : memref<256x384xf32, #tpu.memory_space<vmem>>, vector<256x384xf32>
    tpu.vector_store %arg7[%c0_28, %c0_29], %23 {strides = array<i32>} : memref<256x384xf32, #tpu.memory_space<vmem>>, vector<256x384xf32>,
    %c0_30 = arith.constant 0 : index
    %c1_31 = arith.constant 1 : index
    %c0_32 = arith.constant 0 : index
    %c0_33 = arith.constant 0 : index
    %25 = vector.load %arg1[%c0_30, %c1_31, %c0_32, %c0_33] : memref<1x18x18x256xbf16, #tpu.memory_space<vmem>>, vector<1x16x16x256xbf16>
    %26 = vector.shape_cast %25 : vector<1x16x16x256xbf16> to vector<16x16x256xbf16>
    %27 = vector.shape_cast %26 : vector<16x16x256xbf16> to vector<256x256xbf16>
    %c3 = arith.constant 3 : index
    %c0_34 = arith.constant 0 : index
    %c0_35 = arith.constant 0 : index
    %28 = vector.load %arg2[%c3, %c0_34, %c0_35] : memref<9x256x384xbf16, #tpu.memory_space<vmem>>, vector<1x256x384xbf16>
    %29 = vector.shape_cast %28 : vector<1x256x384xbf16> to vector<256x384xbf16>
    %cst_36 = arith.constant dense<0.000000e+00> : vector<256x384xf32>
    %30 = tpu.matmul %27, %29, %cst_36 {dimension_numbers = #tpu.dot_dimension_numbers<[1], [0], [0], [1], [0, 0, 1, 1], [], []>} : vector<256x256xbf16>, vector<256x384xbf16>, vector<256x384xf32> -> vector<256x384xf32>
    %c0_37 = arith.constant 0 : index
    %c0_38 = arith.constant 0 : index
    %31 = vector.load %arg7[%c0_37, %c0_38] : memref<256x384xf32, #tpu.memory_space<vmem>>, vector<256x384xf32>
    %32 = arith.addf %31, %30 : vector<256x384xf32>
    %c0_39 = arith.constant 0 : index
    %c0_40 = arith.constant 0 : index
    %33 = vector.load %arg7[%c0_39, %c0_40] : memref<256x384xf32, #tpu.memory_space<vmem>>, vector<256x384xf32>
    tpu.vector_store %arg7[%c0_39, %c0_40], %32 {strides = array<i32>} : memref<256x384xf32, #tpu.memory_space<vmem>>, vector<256x384xf32>,
    %c0_41 = arith.constant 0 : index
    %c1_42 = arith.constant 1 : index
    %c1_43 = arith.constant 1 : index
    %c0_44 = arith.constant 0 : index
    %34 = vector.load %arg1[%c0_41, %c1_42, %c1_43, %c0_44] : memref<1x18x18x256xbf16, #tpu.memory_space<vmem>>, vector<1x16x16x256xbf16>
    %35 = vector.shape_cast %34 : vector<1x16x16x256xbf16> to vector<16x16x256xbf16>
    %36 = vector.shape_cast %35 : vector<16x16x256xbf16> to vector<256x256xbf16>
    %c4 = arith.constant 4 : index
    %c0_45 = arith.constant 0 : index
    %c0_46 = arith.constant 0 : index
    %37 = vector.load %arg2[%c4, %c0_45, %c0_46] : memref<9x256x384xbf16, #tpu.memory_space<vmem>>, vector<1x256x384xbf16>
    %38 = vector.shape_cast %37 : vector<1x256x384xbf16> to vector<256x384xbf16>
    %cst_47 = arith.constant dense<0.000000e+00> : vector<256x384xf32>
    %39 = tpu.matmul %36, %38, %cst_47 {dimension_numbers = #tpu.dot_dimension_numbers<[1], [0], [0], [1], [0, 0, 1, 1], [], []>} : vector<256x256xbf16>, vector<256x384xbf16>, vector<256x384xf32> -> vector<256x384xf32>
    %c0_48 = arith.constant 0 : index
    %c0_49 = arith.constant 0 : index
    %40 = vector.load %arg7[%c0_48, %c0_49] : memref<256x384xf32, #tpu.memory_space<vmem>>, vector<256x384xf32>
    %41 = arith.addf %40, %39 : vector<256x384xf32>
    %c0_50 = arith.constant 0 : index
    %c0_51 = arith.constant 0 : index
    %42 = vector.load %arg7[%c0_50, %c0_51] : memref<256x384xf32, #tpu.memory_space<vmem>>, vector<256x384xf32>
    tpu.vector_store %arg7[%c0_50, %c0_51], %41 {strides = array<i32>} : memref<256x384xf32, #tpu.memory_space<vmem>>, vector<256x384xf32>,
    %c0_52 = arith.constant 0 : index
    %c1_53 = arith.constant 1 : index
    %c2_54 = arith.constant 2 : index
    %c0_55 = arith.constant 0 : index
    %43 = vector.load %arg1[%c0_52, %c1_53, %c2_54, %c0_55] : memref<1x18x18x256xbf16, #tpu.memory_space<vmem>>, vector<1x16x16x256xbf16>
    %44 = vector.shape_cast %43 : vector<1x16x16x256xbf16> to vector<16x16x256xbf16>
    %45 = vector.shape_cast %44 : vector<16x16x256xbf16> to vector<256x256xbf16>
    %c5 = arith.constant 5 : index
    %c0_56 = arith.constant 0 : index
    %c0_57 = arith.constant 0 : index
    %46 = vector.load %arg2[%c5, %c0_56, %c0_57] : memref<9x256x384xbf16, #tpu.memory_space<vmem>>, vector<1x256x384xbf16>
    %47 = vector.shape_cast %46 : vector<1x256x384xbf16> to vector<256x384xbf16>
    %cst_58 = arith.constant dense<0.000000e+00> : vector<256x384xf32>
    %48 = tpu.matmul %45, %47, %cst_58 {dimension_numbers = #tpu.dot_dimension_numbers<[1], [0], [0], [1], [0, 0, 1, 1], [], []>} : vector<256x256xbf16>, vector<256x384xbf16>, vector<256x384xf32> -> vector<256x384xf32>
    %c0_59 = arith.constant 0 : index
    %c0_60 = arith.constant 0 : index
    %49 = vector.load %arg7[%c0_59, %c0_60] : memref<256x384xf32, #tpu.memory_space<vmem>>, vector<256x384xf32>
    %50 = arith.addf %49, %48 : vector<256x384xf32>
    %c0_61 = arith.constant 0 : index
    %c0_62 = arith.constant 0 : index
    %51 = vector.load %arg7[%c0_61, %c0_62] : memref<256x384xf32, #tpu.memory_space<vmem>>, vector<256x384xf32>
    tpu.vector_store %arg7[%c0_61, %c0_62], %50 {strides = array<i32>} : memref<256x384xf32, #tpu.memory_space<vmem>>, vector<256x384xf32>,
    %c0_63 = arith.constant 0 : index
    %c2_64 = arith.constant 2 : index
    %c0_65 = arith.constant 0 : index
    %c0_66 = arith.constant 0 : index
    %52 = vector.load %arg1[%c0_63, %c2_64, %c0_65, %c0_66] : memref<1x18x18x256xbf16, #tpu.memory_space<vmem>>, vector<1x16x16x256xbf16>
    %53 = vector.shape_cast %52 : vector<1x16x16x256xbf16> to vector<16x16x256xbf16>
    %54 = vector.shape_cast %53 : vector<16x16x256xbf16> to vector<256x256xbf16>
    %c6 = arith.constant 6 : index
    %c0_67 = arith.constant 0 : index
    %c0_68 = arith.constant 0 : index
    %55 = vector.load %arg2[%c6, %c0_67, %c0_68] : memref<9x256x384xbf16, #tpu.memory_space<vmem>>, vector<1x256x384xbf16>
    %56 = vector.shape_cast %55 : vector<1x256x384xbf16> to vector<256x384xbf16>
    %cst_69 = arith.constant dense<0.000000e+00> : vector<256x384xf32>
    %57 = tpu.matmul %54, %56, %cst_69 {dimension_numbers = #tpu.dot_dimension_numbers<[1], [0], [0], [1], [0, 0, 1, 1], [], []>} : vector<256x256xbf16>, vector<256x384xbf16>, vector<256x384xf32> -> vector<256x384xf32>
    %c0_70 = arith.constant 0 : index
    %c0_71 = arith.constant 0 : index
    %58 = vector.load %arg7[%c0_70, %c0_71] : memref<256x384xf32, #tpu.memory_space<vmem>>, vector<256x384xf32>
    %59 = arith.addf %58, %57 : vector<256x384xf32>
    %c0_72 = arith.constant 0 : index
    %c0_73 = arith.constant 0 : index
    %60 = vector.load %arg7[%c0_72, %c0_73] : memref<256x384xf32, #tpu.memory_space<vmem>>, vector<256x384xf32>
    tpu.vector_store %arg7[%c0_72, %c0_73], %59 {strides = array<i32>} : memref<256x384xf32, #tpu.memory_space<vmem>>, vector<256x384xf32>,
    %c0_74 = arith.constant 0 : index
    %c2_75 = arith.constant 2 : index
    %c1_76 = arith.constant 1 : index
    %c0_77 = arith.constant 0 : index
    %61 = vector.load %arg1[%c0_74, %c2_75, %c1_76, %c0_77] : memref<1x18x18x256xbf16, #tpu.memory_space<vmem>>, vector<1x16x16x256xbf16>
    %62 = vector.shape_cast %61 : vector<1x16x16x256xbf16> to vector<16x16x256xbf16>
    %63 = vector.shape_cast %62 : vector<16x16x256xbf16> to vector<256x256xbf16>
    %c7 = arith.constant 7 : index
    %c0_78 = arith.constant 0 : index
    %c0_79 = arith.constant 0 : index
    %64 = vector.load %arg2[%c7, %c0_78, %c0_79] : memref<9x256x384xbf16, #tpu.memory_space<vmem>>, vector<1x256x384xbf16>
    %65 = vector.shape_cast %64 : vector<1x256x384xbf16> to vector<256x384xbf16>
    %cst_80 = arith.constant dense<0.000000e+00> : vector<256x384xf32>
    %66 = tpu.matmul %63, %65, %cst_80 {dimension_numbers = #tpu.dot_dimension_numbers<[1], [0], [0], [1], [0, 0, 1, 1], [], []>} : vector<256x256xbf16>, vector<256x384xbf16>, vector<256x384xf32> -> vector<256x384xf32>
    %c0_81 = arith.constant 0 : index
    %c0_82 = arith.constant 0 : index
    %67 = vector.load %arg7[%c0_81, %c0_82] : memref<256x384xf32, #tpu.memory_space<vmem>>, vector<256x384xf32>
    %68 = arith.addf %67, %66 : vector<256x384xf32>
    %c0_83 = arith.constant 0 : index
    %c0_84 = arith.constant 0 : index
    %69 = vector.load %arg7[%c0_83, %c0_84] : memref<256x384xf32, #tpu.memory_space<vmem>>, vector<256x384xf32>
    tpu.vector_store %arg7[%c0_83, %c0_84], %68 {strides = array<i32>} : memref<256x384xf32, #tpu.memory_space<vmem>>, vector<256x384xf32>,
    %c0_85 = arith.constant 0 : index
    %c2_86 = arith.constant 2 : index
    %c2_87 = arith.constant 2 : index
    %c0_88 = arith.constant 0 : index
    %70 = vector.load %arg1[%c0_85, %c2_86, %c2_87, %c0_88] : memref<1x18x18x256xbf16, #tpu.memory_space<vmem>>, vector<1x16x16x256xbf16>
    %71 = vector.shape_cast %70 : vector<1x16x16x256xbf16> to vector<16x16x256xbf16>
    %72 = vector.shape_cast %71 : vector<16x16x256xbf16> to vector<256x256xbf16>
    %c8 = arith.constant 8 : index
    %c0_89 = arith.constant 0 : index
    %c0_90 = arith.constant 0 : index
    %73 = vector.load %arg2[%c8, %c0_89, %c0_90] : memref<9x256x384xbf16, #tpu.memory_space<vmem>>, vector<1x256x384xbf16>
    %74 = vector.shape_cast %73 : vector<1x256x384xbf16> to vector<256x384xbf16>
    %cst_91 = arith.constant dense<0.000000e+00> : vector<256x384xf32>
    %75 = tpu.matmul %72, %74, %cst_91 {dimension_numbers = #tpu.dot_dimension_numbers<[1], [0], [0], [1], [0, 0, 1, 1], [], []>} : vector<256x256xbf16>, vector<256x384xbf16>, vector<256x384xf32> -> vector<256x384xf32>
    %c0_92 = arith.constant 0 : index
    %c0_93 = arith.constant 0 : index
    %76 = vector.load %arg7[%c0_92, %c0_93] : memref<256x384xf32, #tpu.memory_space<vmem>>, vector<256x384xf32>
    %77 = arith.addf %76, %75 : vector<256x384xf32>
    %c0_94 = arith.constant 0 : index
    %c0_95 = arith.constant 0 : index
    %78 = vector.load %arg7[%c0_94, %c0_95] : memref<256x384xf32, #tpu.memory_space<vmem>>, vector<256x384xf32>
    tpu.vector_store %arg7[%c0_94, %c0_95], %77 {strides = array<i32>} : memref<256x384xf32, #tpu.memory_space<vmem>>, vector<256x384xf32>,
    %c0_96 = arith.constant 0 : index
    %c0_97 = arith.constant 0 : index
    %79 = vector.load %arg7[%c0_96, %c0_97] : memref<256x384xf32, #tpu.memory_space<vmem>>, vector<256x128xf32>
    %c0_98 = arith.constant 0 : index
    %c0_99 = arith.constant 0 : index
    %80 = vector.load %arg3[%c0_98, %c0_99] : memref<1x128xf32, #tpu.memory_space<vmem>>, vector<1x128xf32>
    %81 = vector.broadcast %80 : vector<1x128xf32> to vector<256x128xf32>
    %82 = arith.addf %79, %81 : vector<256x128xf32>
    %c0_100 = arith.constant 0 : index
    %c0_101 = arith.constant 0 : index
    %c0_102 = arith.constant 0 : index
    %83 = vector.load %arg5[%c0_100, %c0_101, %c0_102] : memref<1x256x128xf32, #tpu.memory_space<vmem>>, vector<1x256x128xf32>
    %84 = vector.shape_cast %83 : vector<1x256x128xf32> to vector<256x128xf32>
    %85 = vector.shape_cast %82 : vector<256x128xf32> to vector<1x256x128xf32>
    tpu.vector_store %arg5[%c0_100, %c0_101, %c0_102], %85 {strides = array<i32>} : memref<1x256x128xf32, #tpu.memory_space<vmem>>, vector<1x256x128xf32>,
    %c0_103 = arith.constant 0 : index
    %c128 = arith.constant 128 : index
    %86 = vector.load %arg7[%c0_103, %c128] : memref<256x384xf32, #tpu.memory_space<vmem>>, vector<256x256xf32>
    %c0_104 = arith.constant 0 : index
    %c0_105 = arith.constant 0 : index
    %87 = vector.load %arg4[%c0_104, %c0_105] : memref<1x256xf32, #tpu.memory_space<vmem>>, vector<1x256xf32>
    %88 = vector.broadcast %87 : vector<1x256xf32> to vector<256x256xf32>
    %89 = arith.addf %86, %88 : vector<256x256xf32>
    %c0_106 = arith.constant 0 : index
    %c0_107 = arith.constant 0 : index
    %c0_108 = arith.constant 0 : index
    %90 = vector.load %arg6[%c0_106, %c0_107, %c0_108] : memref<1x256x256xf32, #tpu.memory_space<vmem>>, vector<1x256x256xf32>
    %91 = vector.shape_cast %90 : vector<1x256x256xf32> to vector<256x256xf32>
    %92 = vector.shape_cast %89 : vector<256x256xf32> to vector<1x256x256xf32>
    tpu.vector_store %arg6[%c0_106, %c0_107, %c0_108], %92 {strides = array<i32>} : memref<1x256x256xf32, #tpu.memory_space<vmem>>, vector<1x256x256xf32>,
    return
  }
  func.func @transform_0(%arg0: i32) -> (i32, i32, i32, i32) {
    %c0_i32 = arith.constant 0 : i32
    %c0_i32_0 = arith.constant 0 : i32
    %c0_i32_1 = arith.constant 0 : i32
    %c0_i32_2 = arith.constant 0 : i32
    return %arg0, %c0_i32, %c0_i32_0, %c0_i32_1 : i32, i32, i32, i32
  }
  func.func @transform_1(%arg0: i32) -> (i32, i32, i32) {
    %c0_i32 = arith.constant 0 : i32
    %c0_i32_0 = arith.constant 0 : i32
    %c0_i32_1 = arith.constant 0 : i32
    %c0_i32_2 = arith.constant 0 : i32
    return %c0_i32, %c0_i32_0, %c0_i32_1 : i32, i32, i32
  }
  func.func @transform_2(%arg0: i32) -> (i32, i32) {
    %c0_i32 = arith.constant 0 : i32
    %c0_i32_0 = arith.constant 0 : i32
    %c0_i32_1 = arith.constant 0 : i32
    return %c0_i32, %c0_i32_0 : i32, i32
  }
  func.func @transform_3(%arg0: i32) -> (i32, i32) {
    %c0_i32 = arith.constant 0 : i32
    %c0_i32_0 = arith.constant 0 : i32
    %c0_i32_1 = arith.constant 0 : i32
    return %c0_i32, %c0_i32_0 : i32, i32
  }
  func.func @transform_4(%arg0: i32) -> (i32, i32, i32) {
    %c0_i32 = arith.constant 0 : i32
    %c0_i32_0 = arith.constant 0 : i32
    %c0_i32_1 = arith.constant 0 : i32
    return %arg0, %c0_i32, %c0_i32_0 : i32, i32, i32
  }
  func.func @transform_5(%arg0: i32) -> (i32, i32, i32) {
    %c0_i32 = arith.constant 0 : i32
    %c0_i32_0 = arith.constant 0 : i32
    %c0_i32_1 = arith.constant 0 : i32
    return %arg0, %c0_i32, %c0_i32_0 : i32, i32, i32
  }
}

</mosaic_0001>

<bundles_post_ra>
// kernel: key_value_forward.1
= control target key start
LH: loop header
LB: loop body
LE: loop exit
PB: predicated region body
PF: predicated region fallthrough
CT: control target
= control target key end

     0   :  { %11 = vsyncpa [#allocation4], 0  ;;  %s19374_s0 = inlined_call_operand.vmem [shape: bf16[2,18,18,256], index: 0, kind: input, shape index: {}]   ;;  %s19375_s1 = inlined_call_operand.hbm [shape: bf16[9,256,384], index: 1, kind: input, shape index: {}]   ;;  %s19376_s2 = inlined_call_operand.vmem [shape: f32[1,128], index: 2, kind: input, shape index: {}]   ;;  %s19377_s3 = inlined_call_operand.vmem [shape: f32[1,256], index: 3, kind: input, shape index: {}]   ;;  %s19378_s4 = inlined_call_operand.hbm [shape: f32[2,256,128], index: 4, kind: output, shape index: {0}]   ;;  %s19379_s5 = inlined_call_operand.hbm [shape: f32[2,256,256], index: 5, kind: output, shape index: {1}]  }
   0x1   :  { %12 = vsyncpa [#allocation5], 0 }
   0x2   :  { %14 = vsyncpa [#allocation5 + $0x1], 0 }
   0x3   :  { %15 = vsyncpa [#allocation8], 0 }
   0x4   :  { %17 = vsyncpa [#allocation8 + $0x1], 0  ;;  %s15916_s18 = smov 0   ;;  %s15918_s19 = smov 0  }
   0x5   :  { %s15920_s20 = smov 0   ;;  %s15922_s21 = smov 0  }
   0x6 LB: > { %s15937_s22 = sadd.s32 4294967295, %s15875_s21   ;;  %s12444_s23 = sadd.s32 4294967294, %s15875_s21   ;;  %s15875_s21 = sphi %s15922_s21, %s19543_s21   ;;  %s15871_s20 = sphi %s15920_s20, %s19542_s20   ;;  %s15867_s19 = sphi %s15918_s19, %s19541_s19   ;;  %s15863_s18 = sphi %s15916_s18, %s19540_s18  }
   0x7   : > { %s15941_s24 = sadd.s32 1, %s15875_s21   ;;  %s119_s25 = sadd.s32 1, %s15871_s20 }
   0x8   : > { %s116_s26 = ssub.s32 %s15875_s21, %s15941_s24  ;;  %p129_p0 = scmp.ne.s32.totalorder %s15871_s20, %s15867_s19 }
   0x9   : > { %p117_p1 = scmp.eq.s32.totalorder %s116_s26, 0  ;;  %p130_p2 = scmp.eq.s32.totalorder %s15937_s22, 1 }
   0xa   : > { %p135_p3 = scmp.ne.s32.totalorder %s15867_s19, %s15863_s18  ;;  %p136_p4 = scmp.eq.s32.totalorder %s12444_s23, 1 }
   0xb   : > { %s15952_s27 = scalar_select %p117_p1, %s15871_s20, %s119_s25  }
   0xc   : > { %p15954_p5 = por %p130_p2, %p129_p0  ;;  %p15958_p6 = por %p136_p4, %p135_p3 }
   0xd   : > { %p12445_p7 = scmp.ge.s32.totalorder %s15875_s21, 1  ;;  %p169_p8 = scmp.lt.s32.totalorder %s15875_s21, 3 }
   0xe   : > { %s19423_s28 = scalar_select %p15954_p5, 1, 0 }
   0xf   : > { %s19424_s29 = scalar_select %p15958_p6, 1, 0 }
  0x10   : > { %p19380_p9 = scmp.eq.s32.totalorder %s15937_s22, 0  ;;  %p15965_p10 = pnand %p12445_p7, %p169_p8 }
  0x11   : > { %s15877_s6 = smov [#allocation3]   ;;  %s15749_s11 = scalar_lea.hbm %s19375_s1, 55296 }
  0x12   : > { %s19425_s30 = scalar_select %p15965_p10, 1, 0 }
  0x13   : > { %s181_s7 = sshll.u32 %s15877_s6, 4  ;;  %p15017_p11 = pneg %p15965_p10  ;;  %s182_s7 = int_to_ptr.vmem [resolvable:$true] %s181_s7 }
  0x14   : > { %p15750_p13 = scmp.ne.s32.totalorder %s19375_s1, %s15749_s11  ;;  %p15756_p3 = scmp.lt.u32.totalorder %s15749_s11, %s19375_s1 }
  0x15   : > { %p15973_p12 = pnand %p19380_p9, %p15017_p11 }
  0x17   : > { %p15751_p0 = pneg %p15973_p12 }
  0x19   : > { %p15752_p1 = pnand %p15751_p0, %p15750_p13 }
  0x1b   : > { %p15753_p2 = pneg %p15752_p1 }
  0x1d   : > { %p15758_p4 = pnand %p15756_p3, %p15753_p2 }
  0x1f   : > { %15761 = shalt.err (!%p15758_p4)
}
  0x20   : > { %s15762_s16 = scalar_lea.vmem %s182_s7, 55296  ;;  %p15770_p9 = scmp.lt.s32.totalorder %s182_s7, %s182_s7 }
  0x21   : > { %p15763_p7 = scmp.ne.s32.totalorder %s182_s7, %s15762_s16  ;;  %p15771_p6 = scmp.lt.s32.totalorder %s15762_s16, %s15762_s16 }
  0x23   : > { %p15765_p8 = pnand %p15763_p7, %p15751_p0  ;;  %p15772_p5 = por %p15771_p6, %p15770_p9 }
  0x25   : > { %p15766_p11 = pneg %p15765_p8 }
  0x27   : > { %p15773_p10 = pnand %p15772_p5, %p15766_p11 }
  0x29   : > { %15776 = shalt.err (!%p15773_p10)
}
  0x2a   : > { %s15878_s17 = smov 192   ;;  %s15879_s23 = smov 12  }
  0x2b   : > { %15020 = dma.hbm_to_vmem [thread:$0]  (!%p15973_p12), %s19375_s1, 55296, %s182_s7, [#allocation4], %s15878_s17, %s15878_s17, %s15879_s23  }
  0x2c   : > { %p19427_p13 = scmp.ne.s32.totalorder %s19425_s30, 0 }
  0x2e   : > { %211 = sbr.rel (%p19427_p13) target bundleno = 1521 (0x5f1), region = 36 }
  0x35   : > { %p19428_p1 = scmp.eq.s32.totalorder %s15937_s22, 0 }
  0x37   : > { %15850 = dma.done.wait (%p19428_p1), [#allocation4], 55296   ;;  %p19429_p0 = pmov %p19428_p1 }
  0x38   : > { %v15070_v0 = vld [vmem:[#allocation3 + $0x4] ss:$12 sps:$4 sm:$0xff]   ;;  %v15072_v1 = vld [vmem:[#allocation3 + $0xc8] ss:$12 sps:$4 sm:$0xff]   ;;  %v15073_v2 = vld [vmem:[#allocation3] ss:$12 sps:$4 sm:$0xff]  }
  0x39   : > { %15852 = vsyncadd (%p19429_p0), [#allocation4], 4294912000  ;;  %762 = vmatprep.subr.bf16.mxu0 %v15070_v0  ;;  %13488 = vmatprep.subr.bf16.mxu1 %v15072_v1  ;;  %v15074_v3 = vld [vmem:[#allocation3 + $0x8] ss:$12 sps:$4 sm:$0xff]   ;;  %v15077_v5 = vld [vmem:[#allocation3 + $0xe0] ss:$12 sps:$4 sm:$0xff]  }
  0x3a   : > { %763 = vmatpush1.bf16.msra.mxu0 %v15073_v2  ;;  %v15075_v4 = vld [vmem:[#allocation3 + $0x1c] ss:$12 sps:$4 sm:$0xff]   ;;  %13489 = vmatpush3.bf16.msra.mxu1 %v15074_v3  ;;  %v15078_v6 = vld [vmem:[#allocation3 + $0x18] ss:$12 sps:$4 sm:$0xff]   ;;  %v15079_v7 = vld [vmem:[#allocation3 + $0x20] ss:$12 sps:$4 sm:$0xff]  }
  0x3b   : > { %764 = vmatprep.subr.bf16.mxu0 %v15075_v4  ;;  %13490 = vmatprep.subr.bf16.mxu1 %v15077_v5  ;;  %v15080_v8 = vld [vmem:[#allocation3 + $0x34] ss:$12 sps:$4 sm:$0xff]   ;;  %p244_p5 = scmp.lt.s32.totalorder %s15937_s22, 1  ;;  %v15082_v9 = vld [vmem:[#allocation3 + $0xf8] ss:$12 sps:$4 sm:$0xff]   ;;  %vm2834_vm3 = vcmask 1042432  }
  0x3c   : > { %v15083_v10 = vld [vmem:[#allocation3 + $0x30] ss:$12 sps:$4 sm:$0xff]   ;;  %v15084_v11 = vld [vmem:[#allocation3 + $0x38] ss:$12 sps:$4 sm:$0xff]   ;;  %v15088_v14 = vld [vmem:[#allocation3 + $0x48] ss:$12 sps:$4 sm:$0xff]  }
  0x3d   : > { %v15085_v12 = vld [vmem:[#allocation3 + $0x4c] ss:$12 sps:$4 sm:$0xff]   ;;  %v15087_v13 = vld [vmem:[#allocation3 + $0x110] ss:$12 sps:$4 sm:$0xff]   ;;  %s245_s30 = scalar_select %p244_p5, %s15937_s22, 1  ;;  %vm2835_vm4 = vcmask 1046532  }
  0x3e   : > { %765 = vmatpush1.bf16.msra.mxu0 %v15078_v6  ;;  %13491 = vmatpush3.bf16.msra.mxu1 %v15079_v7  ;;  %v15089_v15 = vld [vmem:[#allocation3 + $0x50] ss:$12 sps:$4 sm:$0xff]   ;;  %v15092_v17 = vld [vmem:[#allocation3 + $0x128] ss:$12 sps:$4 sm:$0xff]   ;;  %v15093_v18 = vld [vmem:[#allocation3 + $0x60] ss:$12 sps:$4 sm:$0xff]  }
  0x3f   : > { %766 = vmatprep.subr.bf16.mxu0 %v15080_v8  ;;  %13492 = vmatprep.subr.bf16.mxu1 %v15082_v9  ;;  %v15090_v16 = vld [vmem:[#allocation3 + $0x64] ss:$12 sps:$4 sm:$0xff]   ;;  %v15094_v19 = vld [vmem:[#allocation3 + $0x68] ss:$12 sps:$4 sm:$0xff]   ;;  %v15097_v21 = vld [vmem:[#allocation3 + $0x140] ss:$12 sps:$4 sm:$0xff]  }
  0x40   : > { %v15095_v20 = vld [vmem:[#allocation3 + $0x7c] ss:$12 sps:$4 sm:$0xff]   ;;  %s15008_s6 = smul.u32 432, %s245_s30  ;;  %v15098_v22 = vld [vmem:[#allocation3 + $0x78] ss:$12 sps:$4 sm:$0xff]   ;;  %vm16533_vm5 = vmor %vm2834_vm3, %vm2835_vm4  ;;  %s19047_s10 = sand.u32 1, %s15867_s19  }
  0x41   : > { %v15099_v23 = vld [vmem:[#allocation3 + $0x80] ss:$12 sps:$4 sm:$0xff]   ;;  %v15102_v25 = vld [vmem:[#allocation3 + $0x158] ss:$12 sps:$4 sm:$0xff]   ;;  %v15103_v26 = vld [vmem:[#allocation3 + $0x90] ss:$12 sps:$4 sm:$0xff]  }
  0x42   : > { %767 = vmatpush1.bf16.msra.mxu0 %v15083_v10  ;;  %13493 = vmatpush3.bf16.msra.mxu1 %v15084_v11  ;;  %v15100_v24 = vld [vmem:[#allocation3 + $0x94] ss:$12 sps:$4 sm:$0xff]   ;;  %s16006_s9 = scalar_lea.vmem %s19374_s0, %s15008_s6  ;;  %v15104_v27 = vld [vmem:[#allocation3 + $0x98] ss:$12 sps:$4 sm:$0xff]   ;;  %v15107_v29 = vld [vmem:[#allocation3 + $0x170] ss:$12 sps:$4 sm:$0xff]  }
  0x43   : > { %768 = vmatprep.subr.bf16.mxu0 %v15085_v12  ;;  %13494 = vmatprep.subr.bf16.mxu1 %v15087_v13  ;;  %v15105_v28 = vld [vmem:[#allocation3 + $0xac] ss:$12 sps:$4 sm:$0xff]   ;;  %v16012_v31 = vld [vmem:[%s16006_s9 + $0x8] sm:$0xff]  ;;  %v15108_v32 = vld [vmem:[#allocation3 + $0xa8] ss:$12 sps:$4 sm:$0xff]   ;;  %s12451_s13 = sshll.u32 %s19047_s10, 9 }
  0x44   : > { %v16009_v30 = vld [vmem:[%s16006_s9] sm:$0xff]  ;;  %v15112_v35 = vld [vmem:[#allocation3 + $0xc4] ss:$12 sps:$4 sm:$0xff]   ;;  %v15114_v39 = vld [vmem:[#allocation3 + $0xc0] ss:$12 sps:$4 sm:$0xff]   ;;  %v1273_v56 = vshll.u32 %v16012_v31, 16 }
  0x45   : > { %v12454_v33 = vcombine.high %v16009_v30, %v16012_v31  ;;  %v15109_v34 = vld [vmem:[#allocation3 + $0xb0] ss:$12 sps:$4 sm:$0xff]   ;;  %v16022_v38 = vcombine.low %v16009_v30, %v16012_v31  ;;  %v15117_v42 = vld [vmem:[#allocation3 + $0xd8] ss:$12 sps:$4 sm:$0xff]   ;;  %v15119_v43 = vld [vmem:[#allocation3 + $0xf4] ss:$12 sps:$4 sm:$0xff]  }
  0x46   : > { %769 = vmatpush1.bf16.msra.mxu0 %v15088_v14  ;;  %13495 = vmatpush3.bf16.msra.mxu1 %v15089_v15  ;;  %v252_v36 = vld [vmem:[%s16006_s9 + $0x18] sm:$0xff]  ;;  %v16018_v37 = vld [vmem:[%s16006_s9 + $0x20] sm:$0xff]  ;;  %v16030_v44 = vld [vmem:[%s16006_s9 + $0x30] sm:$0xff]  ;;  %v1264_v52 = vshrl.u32 %v16009_v30, 16  ;;  %v1267_v53 = vshll.u32 %v16009_v30, 16  ;;  %v1277_v59 = vshrl.u32 %v16012_v31, 16 }
  0x47   : > { %770 = vmatprep.subr.bf16.mxu0 %v15090_v16  ;;  %13496 = vmatprep.subr.bf16.mxu1 %v15092_v17  ;;  %v15115_v40 = vld [vmem:[#allocation3 + $0xdc] ss:$12 sps:$4 sm:$0xff]   ;;  %v16025_v41 = vcombine.high %v252_v36, %v16018_v37  ;;  %v16033_v45 = vld [vmem:[%s16006_s9 + $0x38] sm:$0xff]  ;;  %v16036_v47 = vcombine.low %v252_v36, %v16018_v37  ;;  %v15123_v48 = vld [vmem:[#allocation3 + $0x10c] ss:$12 sps:$4 sm:$0xff]   ;;  %v1288_v60 = vshrl.u32 %v252_v36, 16 }
  0x48   : > { %987 = vmatprep.mubr.bf16.mxu1 %v12454_v33  ;;  %794 = vmatprep.mubr.bf16.mxu0 %v12454_v33  ;;  %v15122_v46 = vld [vmem:[#allocation3 + $0xf0] ss:$12 sps:$4 sm:$0xff]   ;;  %v15141_v49 = vld [vmem:[#allocation3 + $0x248] ss:$12 sps:$4 sm:$0xff]   ;;  %v16040_v50 = vcombine.high %v16030_v44, %v16033_v45  ;;  %v16048_v57 = vld [vmem:[%s16006_s9 + $0x48] sm:$0xff]  ;;  %v1291_v61 = vshll.u32 %v252_v36, 16  ;;  %v16056_v0 = vcombine.low %v16030_v44, %v16033_v45 }
  0x49   : > { %v15143_v51 = vld [vmem:[#allocation3 + $0x188] ss:$12 sps:$4 sm:$0xff]   ;;  %v15127_v55 = vld [vmem:[#allocation3 + $0x124] ss:$12 sps:$4 sm:$0xff]   ;;  %v15154_v62 = vld [vmem:[#allocation3 + $0x260] ss:$12 sps:$4 sm:$0xff]  }
  0x4a   : > { %771 = vmatpush1.bf16.msra.mxu0 %v15093_v18  ;;  %13497 = vmatpush3.bf16.msra.mxu1 %v15094_v19  ;;  %v15125_v54 = vld [vmem:[#allocation3 + $0x108] ss:$12 sps:$4 sm:$0xff]   ;;  %v15155_v63 = vld [vmem:[#allocation3 + $0x1a0] ss:$12 sps:$4 sm:$0xff]   ;;  %v1266_v4 = vrot.slane %v1264_v52, 4  ;;  %v1269_v5 = vrot.slane %v1267_v53, 5 }
  0x4b   : > { %772 = vmatprep.subr.bf16.mxu0 %v15095_v20  ;;  %13498 = vmatprep.subr.bf16.mxu1 %v15097_v21  ;;  %v16051_v58 = vld [vmem:[%s16006_s9 + $0x50] sm:$0xff]  ;;  %v16062_v6 = vrot.slane %v1273_v56, 5  ;;  %v1279_v7 = vrot.slane %v1277_v59, 4  ;;  %v1290_v8 = vrot.slane %v1288_v60, 4  ;;  %v15133_v9 = vld [vmem:[#allocation3 + $0x138] ss:$12 sps:$4 sm:$0xff]  }
  0x4c   : > { %v15130_v1 = vld [vmem:[#allocation3 + $0x120] ss:$12 sps:$4 sm:$0xff]   ;;  %v15131_v2 = vld [vmem:[#allocation3 + $0x13c] ss:$12 sps:$4 sm:$0xff]   ;;  %v16060_v3 = vcombine.high %v16048_v57, %v16051_v58  ;;  %v1293_v11 = vrot.slane %v1291_v61, 5  ;;  %v16072_v16 = vcombine.low %v16048_v57, %v16051_v58  ;;  %v1270_v18 = vor.u32 %v1269_v5, %v1266_v4  ;;  %s19058_s14 = scalar_lea.vmem [#allocation7], %s12451_s13 }
  0x4d   : > { %v15135_v10 = vld [vmem:[#allocation3 + $0x154] ss:$12 sps:$4 sm:$0xff]   ;;  %v15166_v12 = vld [vmem:[#allocation3 + $0x278] ss:$12 sps:$4 sm:$0xff]   ;;  %v15138_v17 = vld [vmem:[#allocation3 + $0x150] ss:$12 sps:$4 sm:$0xff]   ;;  %v1280_v19 = vor.u32 %v1279_v7, %v16062_v6 }
  0x4e   : > { %773 = vmatpush1.bf16.msra.mxu0 %v15098_v22  ;;  %13499 = vmatpush3.bf16.msra.mxu1 %v15099_v23  ;;  %v15167_v13 = vld [vmem:[#allocation3 + $0x1b8] ss:$12 sps:$4 sm:$0xff]   ;;  %v1294_v22 = vor.u32 %v1293_v11, %v1290_v8  ;;  %v1297_v23 = vshll.u32 %v16018_v37, 16  ;;  %v15153_v53 = vld [vmem:[#allocation3 + $0x19c] ss:$12 sps:$4 sm:$0xff]   ;;  %v1325_v56 = vshrl.u32 %v16033_v45, 16 }
  0x4f   : > { %774 = vmatprep.subr.bf16.mxu0 %v15100_v24  ;;  %13500 = vmatprep.subr.bf16.mxu1 %v15102_v25  ;;  %v258_v14 = vld [vmem:[%s16006_s9 + $0x60] sm:$0xff]  ;;  %v16068_v15 = vld [vmem:[%s16006_s9 + $0x68] sm:$0xff]  ;;  %v1301_v24 = vshrl.u32 %v16018_v37, 16  ;;  %v1312_v37 = vshrl.u32 %v16030_v44, 16  ;;  %v1345_v5 = vshll.u32 %v16051_v58, 16  ;;  %v1349_v7 = vshrl.u32 %v16051_v58, 16 }
  0x50   : > { %v15139_v20 = vld [vmem:[#allocation3 + $0x16c] ss:$12 sps:$4 sm:$0xff]   ;;  %v16076_v21 = vcombine.high %v258_v14, %v16068_v15  ;;  %v15178_v25 = vld [vmem:[#allocation3 + $0x290] ss:$12 sps:$4 sm:$0xff]   ;;  %v16086_v31 = vrot.slane %v1294_v22, 4  ;;  %s12450_s15 = sshll.u32 %s19047_s10, 8 }
  0x51   : > { %v15148_v30 = vld [vmem:[#allocation3 + $0x184] ss:$12 sps:$4 sm:$0xff]   ;;  %v1303_v33 = vrot.slane %v1301_v24, 4  ;;  %v16092_v36 = vld [vmem:[%s16006_s9 + $0x80] sm:$0xff]  ;;  %vm1260_vm0 = vsmask.f32 3328 }
  0x52   : > { %775 = vmatpush1.bf16.msra.mxu0 %v15103_v26  ;;  %13501 = vmatpush3.bf16.msra.mxu1 %v15104_v27  ;;  %v15179_v26 = vld [vmem:[#allocation3 + $0x1d0] ss:$12 sps:$4 sm:$0xff]   ;;  %v15142_v27 = vld [vmem:[#allocation3 + $0x168] ss:$12 sps:$4 sm:$0xff]   ;;  %vm1261_vm1 = vsmask.f32 7440 }
  0x53   : > { %776 = vmatprep.subr.bf16.mxu0 %v15105_v28  ;;  %13502 = vmatprep.subr.bf16.mxu1 %v15107_v29  ;;  %v16081_v28 = vrot.slane %v1270_v18, 4  ;;  %v16083_v29 = vrot.slane %v1280_v19, 4  ;;  %v15203_v11 = vld [vmem:[#allocation3 + $0x200] ss:$12 sps:$4 sm:$0xff]   ;;  %v15158_v18 = vld [vmem:[#allocation3 + $0x1b0] ss:$12 sps:$4 sm:$0xff]   ;;  %vm16156_vm2 = vmor %vm1260_vm0, %vm1261_vm1 }
  0x54   : > { %v15165_v22 = vld [vmem:[#allocation3 + $0x1cc] ss:$12 sps:$4 sm:$0xff]   ;;  %v1327_v24 = vrot.slane %v1325_v56, 4  ;;  %v15218_v56 = vld [vmem:[#allocation3 + $0x2f0] ss:$12 sps:$4 sm:$0xff]   ;;  %s19091_s23 = scalar_lea.vmem [#allocation6], %s12450_s15 }
  0x55   : > { %s13486_s25 = sshll.u32 %s15937_s22, 12  ;;  %s12322_s26 = sshll.u32 %s19091_s23, 4  ;;  %s19293_s26 = int_to_ptr.vmem [resolvable:$true] %s12322_s26 }
  0x56   : > { %777 = vmatpush1.bf16.msra.mxu0 %v15108_v32  ;;  %13503 = vmatpush3.bf16.msra.mxu1 %v15109_v34  ;;  %v16088_v32 = vrot.slane %v1297_v23, 5  ;;  %v15146_v34 = vld [vmem:[#allocation3 + $0x180] ss:$12 sps:$4 sm:$0xff]   ;;  %s13487_s30 = sshll.u32 %s15937_s22, 13  ;;  %s12338_s6 = sshll.u32 %s19058_s14, 4  ;;  %s19303_s6 = int_to_ptr.vmem [resolvable:$true] %s12338_s6 }
  0x57   : > { %778 = vmatprep.subr.bf16.mxu0 %v15112_v35  ;;  %13600 = vmatprep.subr.bf16.mxu1 %v15141_v49  ;;  %v260_v35 = vld [vmem:[%s16006_s9 + $0x78] sm:$0xff]  ;;  %v16100_v49 = vcombine.low %v258_v14, %v16068_v15  ;;  %s19301_s12 = scalar_lea.hbm %s19379_s5, %s13487_s30  ;;  %s12304_s13 = scalar_lea.sflag [#allocation5], %s19047_s10 }
  0x58   : > { %v16103_v52 = vcombine.high %v260_v35, %v16092_v36  ;;  %v1384_v61 = vshrl.u32 %v260_v35, 16  ;;  %v1387_v4 = vshll.u32 %v260_v35, 16  ;;  %s15777_s15 = scalar_lea.vmem %s19293_s26, 4096  ;;  %p19538_p9 = scmp.ne.s32.totalorder %s19423_s28, 0 }
  0x59   : > { %988 = vmatmul.mubr.bf16.vlgmr.msra.gmra.mrb[0].mxu1 %v16022_v38  ;;  %p15778_p6 = scmp.ne.s32.totalorder %s19293_s26, %s15777_s15  ;;  %s15880_s16 = smov [#allocation6]  }
  0x5a   : > { %779 = vmatpush1.bf16.msra.mxu0 %v15114_v39  ;;  %995 = vmatprep.mubr.bf16.mxu1 %v16025_v41  ;;  %v1315_v39 = vshll.u32 %v16030_v44, 16  ;;  %v15191_v44 = vld [vmem:[#allocation3 + $0x1e8] ss:$12 sps:$4 sm:$0xff]   ;;  %v1386_v8 = vrot.slane %v1384_v61, 4  ;;  %v19430_v61 = vmov 0  ;;  %s15781_s17 = sshll.u32 %s15880_s16, 4  ;;  %s15782_s17 = int_to_ptr.vmem [resolvable:$false] %s15781_s17 }
  0x5b   : > { %780 = vmatprep.subr.bf16.mxu0 %v15115_v40  ;;  %13601 = vmatpush3.bf16.msra.mxu1 %v15143_v51  ;;  %v1321_v40 = vshll.u32 %v16033_v45, 16  ;;  %v15190_v51 = vld [vmem:[#allocation3 + $0x2a8] ss:$12 sps:$4 sm:$0xff]   ;;  %v1304_v45 = vor.u32 %v1303_v33, %v16088_v32  ;;  %v19431_v61 = vsel %vm16156_vm2, 4294967295, %v19430_v61  ;;  %p15779_p10 = pnand %p15778_p6, %p19538_p9  ;;  %p15784_p2 = scmp.lt.s32.totalorder %s19293_s26, %s15782_s17 }
  0x5c   : > { %13602 = vmatprep.subr.bf16.mxu1 %v15154_v62  ;;  %v16109_v62 = vld [vmem:[%s16006_s9 + $0x90] sm:$0xff]  ;;  %19432 = vst [vmem:[#allocation12_spill] sm:$0xff] %v19431_v61 }
  0x5d   : > { %v16127_v19 = vrot.slane %v1304_v45, 4  ;;  %v15163_v33 = vld [vmem:[#allocation3 + $0x1c8] ss:$12 sps:$4 sm:$0xff]   ;;  %v1276_v45 = vsel %vm16156_vm2, %v16081_v28, %v16062_v6  ;;  %p15780_p12 = pneg %p15779_p10 }
  0x5e   : > { %781 = vmatpush1.bf16.msra.mxu0 %v15117_v42  ;;  %v1336_v42 = vshrl.u32 %v16048_v57, 16 }
  0x5f   : > { %782 = vmatprep.subr.bf16.mxu0 %v15119_v43  ;;  %13603 = vmatpush3.bf16.msra.mxu1 %v15155_v63  ;;  %v1339_v43 = vshll.u32 %v16048_v57, 16  ;;  %v15151_v57 = vld [vmem:[#allocation3 + $0x198] ss:$12 sps:$4 sm:$0xff]   ;;  %v16112_v63 = vld [vmem:[%s16006_s9 + $0x98] sm:$0xff] }
  0x60   : > { %13604 = vmatprep.subr.bf16.mxu1 %v15166_v12  ;;  %v1338_v59 = vrot.slane %v1336_v42, 4  ;;  %v16125_v58 = vcombine.high %v16109_v62, %v16112_v63 }
  0x61   : > { %996 = vmatmul.mubr.bf16.gmra.mrb[4].mxu1 %v16036_v47  ;;  %v1341_v60 = vrot.slane %v1339_v43, 5 }
  0x62   : > { %783 = vmatpush1.bf16.msra.mxu0 %v15122_v46  ;;  %1003 = vmatprep.mubr.bf16.mxu1 %v16040_v50  ;;  %v1360_v46 = vshrl.u32 %v258_v14, 16 }
  0x63   : > { %784 = vmatprep.subr.bf16.mxu0 %v15123_v48  ;;  %13605 = vmatpush3.bf16.msra.mxu1 %v15167_v13  ;;  %v1363_v48 = vshll.u32 %v258_v14, 16  ;;  %v1342_v12 = vor.u32 %v1341_v60, %v1338_v59  ;;  %v16120_v13 = vcombine.low %v260_v35, %v16092_v36  ;;  %v1369_v14 = vshll.u32 %v16068_v15, 16  ;;  %v1214_v60 = vld [vmem:[%s16006_s9 + $0x10] sm:$0x11] }
  0x64   : > { %13606 = vmatprep.subr.bf16.mxu1 %v15178_v25  ;;  %v1347_v35 = vrot.slane %v1345_v5, 5  ;;  %v1283_v5 = vshll.u32 %v1214_v60, 16  ;;  %v15187_v60 = vld [vmem:[#allocation3 + $0x228] ss:$12 sps:$4 sm:$0xff]  }
  0x65   : > { %v16140_v43 = vrot.slane %v1369_v14, 5  ;;  %v1220_v14 = vld [vmem:[%s16006_s9 + $0x40] sm:$0x11] }
  0x66   : > { %785 = vmatpush1.bf16.msra.mxu0 %v15125_v54  ;;  %v1314_v54 = vrot.slane %v1312_v37, 4  ;;  %v1351_v37 = vrot.slane %v1349_v7, 4  ;;  %v1300_v7 = vsel %vm16156_vm2, %v16086_v31, %v16088_v32  ;;  %v1285_v32 = vrot.slane %v1283_v5, 5 }
  0x67   : > { %786 = vmatprep.subr.bf16.mxu0 %v15127_v55  ;;  %13607 = vmatpush3.bf16.msra.mxu1 %v15179_v26  ;;  %v1317_v55 = vrot.slane %v1315_v39, 5  ;;  %v1408_v26 = vshrl.u32 %v16109_v62, 16  ;;  %v1373_v39 = vshrl.u32 %v16068_v15, 16  ;;  %v15216_v15 = vld [vmem:[#allocation3 + $0x2d8] ss:$12 sps:$4 sm:$0xff]  }
  0x68   : > { %13608 = vmatprep.subr.bf16.mxu1 %v15190_v51  ;;  %v1352_v59 = vor.u32 %v1351_v37, %v1347_v35 }
  0x69   : > { %1004 = vmatmul.mubr.bf16.gmra.mrb[8].mxu1 %v16056_v0  ;;  %v1410_v51 = vrot.slane %v1408_v26, 4  ;;  %v15182_v26 = vld [vmem:[#allocation3 + $0x210] ss:$12 sps:$4 sm:$0xff]  }
  0x6a   : > { %787 = vmatpush1.bf16.msra.mxu0 %v15130_v1  ;;  %1011 = vmatprep.mubr.bf16.mxu1 %v16060_v3  ;;  %v1362_v1 = vrot.slane %v1360_v46, 4  ;;  %v1411_v46 = vshll.u32 %v16109_v62, 16 }
  0x6b   : > { %788 = vmatprep.subr.bf16.mxu0 %v15131_v2  ;;  %13609 = vmatpush3.bf16.msra.mxu1 %v15191_v44  ;;  %v1365_v2 = vrot.slane %v1363_v48, 5  ;;  %v15170_v44 = vld [vmem:[#allocation3 + $0x1e0] ss:$12 sps:$4 sm:$0xff]  }
  0x6e   : > { %789 = vmatpush1.bf16.msra.mxu0 %v15133_v9  ;;  %v15202_v9 = vld [vmem:[#allocation3 + $0x2c0] ss:$12 sps:$4 sm:$0xff]  }
  0x6f   : > { %790 = vmatprep.subr.bf16.mxu0 %v15135_v10  ;;  %v1318_v10 = vor.u32 %v1317_v55, %v1314_v54  ;;  %13610 = vmatprep.subr.bf16.mxu1 %v15202_v9  ;;  %v15177_v55 = vld [vmem:[#allocation3 + $0x1fc] ss:$12 sps:$4 sm:$0xff]  }
  0x70   : > { %13611 = vmatpush3.bf16.msra.mxu1 %v15203_v11 }
  0x71   : > { %1012 = vmatmul.mubr.bf16.gmra.mrb[12].mxu1 %v16072_v16  ;;  %v1319_v23 = vrot.slane %v1318_v10, 4  ;;  %13612 = vmatprep.subr.bf16.mxu1 %v15216_v15  ;;  %v15232_v15 = vld [vmem:[#allocation3 + $0x3c8] ss:$12 sps:$4 sm:$0xff]  }
  0x72   : > { %791 = vmatpush1.bf16.msra.mxu0 %v15138_v17  ;;  %1019 = vmatprep.mubr.bf16.mxu1 %v16076_v21  ;;  %v1389_v17 = vrot.slane %v1387_v4, 5  ;;  %v1413_v4 = vrot.slane %v1411_v46, 5 }
  0x73   : > { %792 = vmatprep.subr.bf16.mxu0 %v15139_v20  ;;  %v1323_v20 = vrot.slane %v1321_v40, 5  ;;  %v15172_v40 = vld [vmem:[#allocation3 + $0x1e4] ss:$12 sps:$4 sm:$0xff]  }
  0x74   : > { %v1390_v25 = vor.u32 %v1389_v17, %v1386_v8  ;;  %v1414_v31 = vor.u32 %v1413_v4, %v1410_v51  ;;  %v1353_v17 = vrot.slane %v1352_v59, 4  ;;  %v16238_v59 = vld [vmem:[%s16006_s9 + $0xd8] sm:$0xff] }
  0x75   : > { %v1324_v8 = vsel %vm16156_vm2, %v1319_v23, %v1323_v20 }
  0x76   : > { %793 = vmatpush1.bf16.msra.mxu0 %v15142_v27  ;;  %v16132_v27 = vld [vmem:[%s16006_s9 + $0xa8] sm:$0xff]  ;;  %v1391_v48 = vrot.slane %v1390_v25, 4  ;;  %v1415_v37 = vrot.slane %v1414_v31, 4 }
  0x77   : > { %2096 = vmatprep.subr.bf16.mxu0 %v15148_v30  ;;  %v16135_v30 = vld [vmem:[%s16006_s9 + $0xb0] sm:$0xff] }
  0x78   : > { %v16151_v54 = vcombine.high %v16132_v27, %v16135_v30 }
  0x79   : > { %795 = vmatmul.mubr.bf16.vlgmr.msra.gmra.mrb[0].mxu0 %v16022_v38  ;;  %1020 = vmatmul.mubr.bf16.gmra.mrb[16].mxu1 %v16100_v49  ;;  %v15160_v38 = vld [vmem:[#allocation3 + $0x1b4] ss:$12 sps:$4 sm:$0xff]  }
  0x7a   : > { %2097 = vmatpush1.bf16.msra.mxu0 %v15146_v34  ;;  %804 = vmatprep.mubr.bf16.mxu0 %v16025_v41  ;;  %v1366_v41 = vor.u32 %v1365_v2, %v1362_v1  ;;  %v1343_v34 = vrot.slane %v1342_v12, 4  ;;  %v1397_v2 = vshrl.u32 %v16092_v36, 16  ;;  %v16197_v12 = vcombine.low %v16132_v27, %v16135_v30 }
  0x7b   : > { %1027 = vmatprep.mubr.bf16.mxu1 %v16103_v52  ;;  %2098 = vmatprep.subr.bf16.mxu0 %v15153_v53  ;;  %v15217_v53 = vld [vmem:[#allocation3 + $0x218] ss:$12 sps:$4 sm:$0xff]  }
  0x7c   : > { %v1367_v42 = vrot.slane %v1366_v41, 4  ;;  %13613 = vmatpush3.bf16.msra.mxu1 %v15217_v53  ;;  %v1348_v9 = vsel %vm16156_vm2, %v1343_v34, %v1347_v35  ;;  %v15175_v41 = vld [vmem:[#allocation3 + $0x1f8] ss:$12 sps:$4 sm:$0xff]   ;;  %v1399_v25 = vrot.slane %v1397_v2, 4  ;;  %v1223_v35 = vld [vmem:[%s16006_s9 + $0x58] sm:$0x11] }
  0x7d   : > { %13614 = vmatprep.subr.bf16.mxu1 %v15218_v56  ;;  %v1226_v56 = vld [vmem:[%s16006_s9 + $0x70] sm:$0x11]  ;;  %v15196_v2 = vld [vmem:[#allocation3 + $0x244] ss:$12 sps:$4 sm:$0xff]  }
  0x7e   : > { %2099 = vmatpush1.bf16.msra.mxu0 %v15151_v57  ;;  %v1328_v57 = vor.u32 %v1327_v24, %v1323_v20  ;;  %v16182_v6 = vsel %vm16156_vm2, %v1367_v42, %v16140_v43  ;;  %v15184_v20 = vld [vmem:[#allocation3 + $0x214] ss:$12 sps:$4 sm:$0xff]   ;;  %v1331_v24 = vshll.u32 %v1220_v14, 16 }
  0x7f   : > { %2100 = vmatprep.subr.bf16.mxu0 %v15160_v38  ;;  %v15219_v38 = vld [vmem:[#allocation3 + $0x230] ss:$12 sps:$4 sm:$0xff]  }
  0x80   : > { %v1329_v11 = vrot.slane %v1328_v57, 4  ;;  %13615 = vmatpush3.bf16.msra.mxu1 %v15219_v38 }
  0x81   : > { %805 = vmatmul.mubr.bf16.gmra.mrb[4].mxu0 %v16036_v47  ;;  %1028 = vmatmul.mubr.bf16.gmra.mrb[20].mxu1 %v16120_v13  ;;  %v1393_v47 = vshll.u32 %v16092_v36, 16  ;;  %v1217_v36 = vld [vmem:[%s16006_s9 + $0x28] sm:$0x11] }
  0x82   : > { %814 = vmatprep.mubr.bf16.mxu0 %v16040_v50  ;;  %1035 = vmatprep.mubr.bf16.mxu1 %v16125_v58  ;;  %v16147_v50 = vcombine.low %v16109_v62, %v16112_v63  ;;  %v16160_v62 = vrot.slane %v1373_v39, 4  ;;  %v1307_v10 = vshll.u32 %v1217_v36, 16  ;;  %v1417_v39 = vshll.u32 %v16112_v63, 16 }
  0x83   : > { %2101 = vmatpush1.bf16.msra.mxu0 %v15158_v18  ;;  %v16162_v1 = vrot.slane %v1393_v47, 5  ;;  %v1421_v47 = vshrl.u32 %v16112_v63, 16  ;;  %13712 = vmatprep.subr.bf16.mxu1 %v15232_v15 }
  0x84   : > { %2102 = vmatprep.subr.bf16.mxu0 %v15165_v22  ;;  %v1376_v18 = vor.u32 %v16160_v62, %v16140_v43  ;;  %v1286_v22 = vsel %vm16156_vm2, %v16083_v29, %v1285_v32  ;;  %v1309_v23 = vrot.slane %v1307_v10, 5  ;;  %v1333_v43 = vrot.slane %v1331_v24, 5 }
  0x85   : > { %v16187_v28 = vsel %vm16156_vm2, %v1391_v48, %v16162_v1  ;;  %v16210_v34 = vcombine.high %v1276_v45, %v1286_v22  ;;  %v1355_v29 = vshll.u32 %v1223_v35, 16  ;;  %v1400_v53 = vor.u32 %v1399_v25, %v16162_v1  ;;  %v1235_v35 = vld [vmem:[%s16006_s9 + $0xb8] sm:$0x11] }
  0x86   : > { %v1310_v42 = vsel %vm16156_vm2, %v16127_v19, %v1309_v23  ;;  %v1334_v19 = vsel %vm16156_vm2, %v1329_v11, %v1333_v43  ;;  %v1419_v57 = vrot.slane %v1417_v39, 5  ;;  %v1379_v1 = vshll.u32 %v1226_v56, 16  ;;  %v16271_v23 = vld [vmem:[%s16006_s9 + $0xf0] sm:$0xff]  ;;  %v16279_v39 = vld [vmem:[%s16006_s9 + $0xf8] sm:$0xff] }
  0x87   : > { %2103 = vmatpush1.bf16.msra.mxu0 %v15163_v33  ;;  %v16208_v33 = vcombine.low %v1276_v45, %v1286_v22  ;;  %v16222_v48 = vcombine.high %v1300_v7, %v1310_v42  ;;  %v16224_v51 = vcombine.low %v1300_v7, %v1310_v42  ;;  %v16230_v63 = vcombine.high %v1324_v8, %v1334_v19  ;;  %v1229_v45 = vld [vmem:[%s16006_s9 + $0x88] sm:$0x11]  ;;  %v16251_v7 = vld [vmem:[%s16006_s9 + $0xe0] sm:$0xff] }
  0x88   : > { %2104 = vmatprep.subr.bf16.mxu0 %v15172_v40  ;;  %v15189_v40 = vld [vmem:[#allocation3 + $0x22c] ss:$12 sps:$4 sm:$0xff]   ;;  %v1423_v5 = vrot.slane %v1421_v47, 4  ;;  %v1401_v36 = vrot.slane %v1400_v53, 4  ;;  %v1403_v31 = vshll.u32 %v1229_v45, 16  ;;  %v16261_v14 = vcombine.high %v16238_v59, %v16251_v7 }
  0x89   : > { %815 = vmatmul.mubr.bf16.gmra.mrb[8].mxu0 %v16056_v0  ;;  %1036 = vmatmul.mubr.bf16.gmra.mrb[24].mxu1 %v16147_v50  ;;  %v16192_v0 = vld [vmem:[%s16006_s9 + $0xc0] sm:$0xff]  ;;  %v1435_v42 = vshll.u32 %v16132_v27, 16  ;;  %v1441_v43 = vshll.u32 %v16135_v30, 16  ;;  %v16299_v53 = vcombine.high %v16271_v23, %v16279_v39 }
  0x8a   : > { %824 = vmatprep.mubr.bf16.mxu0 %v16060_v3  ;;  %1043 = vmatprep.mubr.bf16.mxu1 %v16151_v54  ;;  %v16203_v3 = vld [vmem:[%s16006_s9 + $0xc8] sm:$0xff]  ;;  %v1424_v32 = vor.u32 %v1423_v5, %v1419_v57  ;;  %v1232_v22 = vld [vmem:[%s16006_s9 + $0xa0] sm:$0x11]  ;;  %v1456_v5 = vshrl.u32 %v16192_v0, 16 }
  0x8b   : > { %2105 = vmatpush1.bf16.msra.mxu0 %v15170_v44  ;;  %v16220_v46 = vcombine.high %v16192_v0, %v16203_v3  ;;  %v1357_v44 = vrot.slane %v1355_v29, 5  ;;  %v16255_v10 = vcombine.low %v16192_v0, %v16203_v3  ;;  %v15199_v29 = vld [vmem:[#allocation3 + $0x258] ss:$12 sps:$4 sm:$0xff]  }
  0x8c   : > { %2106 = vmatprep.subr.bf16.mxu0 %v15177_v55  ;;  %v16232_v55 = vcombine.low %v1324_v8, %v1334_v19  ;;  %v1381_v8 = vrot.slane %v1379_v1, 5  ;;  %v1425_v25 = vrot.slane %v1424_v32, 4  ;;  %v1451_v19 = vshll.u32 %v1235_v35, 16 }
  0x8d   : > { %v1358_v62 = vsel %vm16156_vm2, %v1353_v17, %v1357_v44  ;;  %v15201_v17 = vld [vmem:[#allocation3 + $0x25c] ss:$12 sps:$4 sm:$0xff]   ;;  %v1443_v44 = vrot.slane %v1441_v43, 5 }
  0x8e   : > { %v16243_v4 = vcombine.high %v1348_v9, %v1358_v62  ;;  %v16245_v38 = vcombine.low %v1348_v9, %v1358_v62  ;;  %v15194_v9 = vld [vmem:[#allocation3 + $0x240] ss:$12 sps:$4 sm:$0xff]   ;;  %v1453_v1 = vrot.slane %v1451_v19, 5 }
  0x8f   : > { %2107 = vmatpush1.bf16.msra.mxu0 %v15175_v41  ;;  %v1405_v41 = vrot.slane %v1403_v31, 5  ;;  %v15207_v31 = vld [vmem:[#allocation3 + $0x270] ss:$12 sps:$4 sm:$0xff]   ;;  %v16327_v43 = vld [vmem:[%s16006_s9 + $0x110] sm:$0xff] }
  0x90   : > { %2108 = vmatprep.subr.bf16.mxu0 %v15184_v20 }
  0x91   : > { %825 = vmatmul.mubr.bf16.gmra.mrb[12].mxu0 %v16072_v16  ;;  %1044 = vmatmul.mubr.bf16.gmra.mrb[28].mxu1 %v16197_v12  ;;  %v1377_v16 = vrot.slane %v1376_v18, 4  ;;  %v1406_v24 = vsel %vm16156_vm2, %v1401_v36, %v1405_v41  ;;  %v1465_v36 = vshll.u32 %v16203_v3, 16  ;;  %v15215_v41 = vld [vmem:[#allocation3 + $0x28c] ss:$12 sps:$4 sm:$0xff]  }
  0x92   : > { %834 = vmatprep.mubr.bf16.mxu0 %v16076_v21  ;;  %1051 = vmatprep.mubr.bf16.mxu1 %v16220_v46  ;;  %v1420_v21 = vsel %vm16156_vm2, %v1415_v37, %v1419_v57  ;;  %v1432_v37 = vshrl.u32 %v16132_v27, 16  ;;  %v1437_v27 = vrot.slane %v1435_v42, 5  ;;  %v16324_v42 = vld [vmem:[%s16006_s9 + $0x108] sm:$0xff] }
  0x93   : > { %2109 = vmatpush1.bf16.msra.mxu0 %v15182_v26  ;;  %v1382_v11 = vsel %vm16156_vm2, %v1377_v16, %v1381_v8  ;;  %v1427_v26 = vshll.u32 %v1232_v22, 16  ;;  %v1459_v8 = vshll.u32 %v16192_v0, 16  ;;  %v1458_v22 = vrot.slane %v1456_v5, 4  ;;  %v16351_v5 = vld [vmem:[%s16006_s9 + $0x128] sm:$0xff] }
  0x94   : > { %2110 = vmatprep.subr.bf16.mxu0 %v15189_v40  ;;  %v16264_v18 = vcombine.high %v16182_v6, %v1382_v11  ;;  %v16267_v20 = vcombine.low %v16182_v6, %v1382_v11  ;;  %v16282_v40 = vcombine.high %v16187_v28, %v1406_v24  ;;  %v16285_v6 = vcombine.low %v16187_v28, %v1406_v24 }
  0x95   : > { %v1429_v47 = vrot.slane %v1427_v26, 5  ;;  %v1434_v15 = vrot.slane %v1432_v37, 4  ;;  %v16295_v28 = vcombine.low %v16238_v59, %v16251_v7  ;;  %v1461_v24 = vrot.slane %v1459_v8, 5  ;;  %v1241_v37 = vld [vmem:[%s16006_s9 + $0xe8] sm:$0x11] }
  0x97   : > { %2111 = vmatpush1.bf16.msra.mxu0 %v15187_v60  ;;  %v1430_v56 = vsel %vm16156_vm2, %v1425_v25, %v1429_v47  ;;  %v1438_v16 = vor.u32 %v1437_v27, %v1434_v15  ;;  %v1467_v25 = vrot.slane %v1465_v36, 5  ;;  %v1483_v15 = vshll.u32 %v16238_v59, 16 }
  0x98   : > { %2112 = vmatprep.subr.bf16.mxu0 %v15196_v2  ;;  %v16307_v60 = vcombine.high %v1420_v21, %v1430_v56  ;;  %v16309_v62 = vcombine.low %v1420_v21, %v1430_v56  ;;  %v1238_v2 = vld [vmem:[%s16006_s9 + $0xd0] sm:$0x11]  ;;  %v1480_v21 = vshrl.u32 %v16238_v59, 16 }
  0x99   : > { %835 = vmatmul.mubr.bf16.gmra.mrb[16].mxu0 %v16100_v49  ;;  %1052 = vmatmul.mubr.bf16.gmra.mrb[32].mxu1 %v16255_v10  ;;  %v1445_v49 = vshrl.u32 %v16135_v30, 16  ;;  %v15209_v30 = vld [vmem:[#allocation3 + $0x274] ss:$12 sps:$4 sm:$0xff]   ;;  %v1439_v32 = vrot.slane %v1438_v16, 4  ;;  %v1475_v11 = vshll.u32 %v1238_v2, 16  ;;  %v1499_v16 = vshll.u32 %v1241_v37, 16 }
  0x9a   : > { %844 = vmatprep.mubr.bf16.mxu0 %v16103_v52  ;;  %1059 = vmatprep.mubr.bf16.mxu1 %v16261_v14  ;;  %v16303_v52 = vcombine.low %v16271_v23, %v16279_v39  ;;  %v16345_v2 = vcombine.low %v16324_v42, %v16327_v43 }
  0x9b   : > { %2113 = vmatpush1.bf16.msra.mxu0 %v15194_v9  ;;  %v1447_v57 = vrot.slane %v1445_v49, 4  ;;  %v1469_v9 = vshrl.u32 %v16203_v3, 16  ;;  %v1444_v0 = vsel %vm16156_vm2, %v1439_v32, %v1443_v44  ;;  %v1477_v35 = vrot.slane %v1475_v11, 5 }
  0x9c   : > { %2114 = vmatprep.subr.bf16.mxu0 %v15201_v17  ;;  %v1482_v3 = vrot.slane %v1480_v21, 4  ;;  %v1489_v49 = vshll.u32 %v16251_v7, 16  ;;  %v1501_v11 = vrot.slane %v1499_v16, 5  ;;  %v1244_v21 = vld [vmem:[%s16006_s9 + $0x100] sm:$0x11] }
  0x9d   : > { %v1448_v45 = vor.u32 %v1447_v57, %v1443_v44  ;;  %v1471_v26 = vrot.slane %v1469_v9, 4  ;;  %v1493_v44 = vshrl.u32 %v16251_v7, 16  ;;  %v1485_v57 = vrot.slane %v1483_v15, 5  ;;  %v15220_v7 = vld [vmem:[#allocation3 + $0x2a0] ss:$12 sps:$4 sm:$0xff]  }
  0x9e   : > { %v1491_v59 = vrot.slane %v1489_v49, 5  ;;  %v15228_v49 = vld [vmem:[#allocation3 + $0x2d4] ss:$12 sps:$4 sm:$0xff]  }
  0x9f   : > { %2115 = vmatpush1.bf16.msra.mxu0 %v15199_v29  ;;  %v1449_v17 = vrot.slane %v1448_v45, 4  ;;  %v15213_v29 = vld [vmem:[#allocation3 + $0x288] ss:$12 sps:$4 sm:$0xff]   ;;  %v1472_v27 = vor.u32 %v1471_v26, %v1467_v25  ;;  %v16348_v45 = vld [vmem:[%s16006_s9 + $0x120] sm:$0xff]  ;;  %v1495_v36 = vrot.slane %v1493_v44, 4  ;;  %v1486_v9 = vor.u32 %v1485_v57, %v1482_v3 }
  0xa0   : > { %2116 = vmatprep.subr.bf16.mxu0 %v15209_v30  ;;  %v15222_v30 = vld [vmem:[#allocation3 + $0x2a4] ss:$12 sps:$4 sm:$0xff]   ;;  %v1523_v44 = vshll.u32 %v1244_v21, 16  ;;  %v1531_v57 = vshll.u32 %v16324_v42, 16 }
  0xa1   : > { %845 = vmatmul.mubr.bf16.gmra.mrb[20].mxu0 %v16120_v13  ;;  %1060 = vmatmul.mubr.bf16.gmra.mrb[36].mxu1 %v16295_v28  ;;  %v1454_v47 = vsel %vm16156_vm2, %v1449_v17, %v1453_v1  ;;  %v1462_v13 = vor.u32 %v1461_v24, %v1458_v22  ;;  %v16341_v1 = vcombine.high %v16324_v42, %v16327_v43  ;;  %v1473_v8 = vrot.slane %v1472_v27, 4 }
  0xa2   : > { %854 = vmatprep.mubr.bf16.mxu0 %v16125_v58  ;;  %1067 = vmatprep.mubr.bf16.mxu1 %v16299_v53  ;;  %v16334_v19 = vcombine.high %v1444_v0, %v1454_v47  ;;  %v16336_v58 = vcombine.low %v1444_v0, %v1454_v47  ;;  %v1496_v22 = vor.u32 %v1495_v36, %v1491_v59  ;;  %v1507_v24 = vshll.u32 %v16271_v23, 16  ;;  %v15223_v47 = vld [vmem:[#allocation3 + $0x2b8] ss:$12 sps:$4 sm:$0xff]  }
  0xa3   : > { %2117 = vmatpush1.bf16.msra.mxu0 %v15207_v31  ;;  %v1463_v56 = vrot.slane %v1462_v13, 4  ;;  %v15225_v31 = vld [vmem:[#allocation3 + $0x2bc] ss:$12 sps:$4 sm:$0xff]   ;;  %v1478_v17 = vsel %vm16156_vm2, %v1473_v8, %v1477_v35  ;;  %v1513_v0 = vshll.u32 %v16279_v39, 16  ;;  %v1517_v35 = vshrl.u32 %v16279_v39, 16 }
  0xa4   : > { %2118 = vmatprep.subr.bf16.mxu0 %v15215_v41  ;;  %v1504_v41 = vshrl.u32 %v16271_v23, 16  ;;  %v1509_v13 = vrot.slane %v1507_v24, 5  ;;  %v16371_v23 = vcombine.high %v16348_v45, %v16351_v5 }
  0xa5   : > { %v1468_v32 = vsel %vm16156_vm2, %v1463_v56, %v1467_v25  ;;  %v1487_v25 = vrot.slane %v1486_v9, 4  ;;  %v1515_v15 = vrot.slane %v1513_v0, 5 }
  0xa6   : > { %v16361_v26 = vcombine.high %v1468_v32, %v1478_v17  ;;  %v16363_v37 = vcombine.low %v1468_v32, %v1478_v17  ;;  %v1506_v3 = vrot.slane %v1504_v41, 4  ;;  %v15226_v32 = vld [vmem:[#allocation3 + $0x2d0] ss:$12 sps:$4 sm:$0xff]   ;;  %v1533_v41 = vrot.slane %v1531_v57, 5  ;;  %v15231_v17 = vld [vmem:[#allocation3 + $0x2ec] ss:$12 sps:$4 sm:$0xff]  }
  0xa7   : > { %2119 = vmatpush1.bf16.msra.mxu0 %v15213_v29  ;;  %v1497_v29 = vrot.slane %v1496_v22, 4  ;;  %v1492_v27 = vsel %vm16156_vm2, %v1487_v25, %v1491_v59  ;;  %v1525_v59 = vrot.slane %v1523_v44, 5  ;;  %v1250_v44 = vld [vmem:[%s16006_s9 + $0x130] sm:$0x11]  ;;  %v15236_v57 = vld [vmem:[#allocation3 + $0x304] ss:$12 sps:$4 sm:$0xff]  }
  0xa8   : > { %2120 = vmatprep.subr.bf16.mxu0 %v15222_v30  ;;  %v1528_v30 = vshrl.u32 %v16324_v42, 16  ;;  %v1510_v56 = vor.u32 %v1509_v13, %v1506_v3  ;;  %v1552_v42 = vshrl.u32 %v16348_v45, 16 }
  0xa9   : > { %855 = vmatmul.mubr.bf16.gmra.mrb[24].mxu0 %v16147_v50  ;;  %1068 = vmatmul.mubr.bf16.gmra.mrb[40].mxu1 %v16303_v52  ;;  %v1247_v50 = vld [vmem:[%s16006_s9 + $0x118] sm:$0x11]  ;;  %v1502_v39 = vsel %vm16156_vm2, %v1497_v29, %v1501_v11  ;;  %v1541_v11 = vshrl.u32 %v16327_v43, 16 }
  0xaa   : > { %864 = vmatprep.mubr.bf16.mxu0 %v16151_v54  ;;  %1075 = vmatprep.mubr.bf16.mxu1 %v16341_v1  ;;  %v1519_v54 = vrot.slane %v1517_v35, 4  ;;  %v16381_v16 = vcombine.high %v1492_v27, %v1502_v39  ;;  %v16383_v8 = vcombine.low %v1492_v27, %v1502_v39  ;;  %v1530_v36 = vrot.slane %v1528_v30, 4  ;;  %v15229_v30 = vld [vmem:[#allocation3 + $0x2e8] ss:$12 sps:$4 sm:$0xff]  }
  0xab   : > { %2121 = vmatpush1.bf16.msra.mxu0 %v15220_v7  ;;  %v1511_v9 = vrot.slane %v1510_v56, 4  ;;  %v1537_v7 = vshll.u32 %v16327_v43, 16  ;;  %v1547_v22 = vshll.u32 %v1247_v50, 16  ;;  %v1543_v29 = vrot.slane %v1541_v11, 4  ;;  %v276_v50 = vld [vmem:[%s16006_s9 + $0x138] sm:$0xff] }
  0xac   : > { %2122 = vmatprep.subr.bf16.mxu0 %v15225_v31  ;;  %v1520_v21 = vor.u32 %v1519_v54, %v1515_v15  ;;  %v1555_v31 = vshll.u32 %v16348_v45, 16  ;;  %v1534_v25 = vor.u32 %v1533_v41, %v1530_v36  ;;  %v1554_v13 = vrot.slane %v1552_v42, 4 }
  0xad   : > { %v1516_v24 = vsel %vm16156_vm2, %v1511_v9, %v1515_v15  ;;  %v1539_v3 = vrot.slane %v1537_v7, 5  ;;  %v1565_v15 = vshrl.u32 %v16351_v5, 16  ;;  %v1549_v54 = vrot.slane %v1547_v22, 5 }
  0xae   : > { %v1521_v0 = vrot.slane %v1520_v21, 4  ;;  %v1557_v35 = vrot.slane %v1555_v31, 5  ;;  %v1535_v27 = vrot.slane %v1534_v25, 4  ;;  %v1571_v41 = vshll.u32 %v1250_v44, 16 }
  0xaf   : > { %2123 = vmatpush1.bf16.msra.mxu0 %v15223_v47  ;;  %v1561_v47 = vshll.u32 %v16351_v5, 16  ;;  %v1567_v21 = vrot.slane %v1565_v15, 4  ;;  %v12477_v7 = vcombine.low %v16348_v45, %v16351_v5 }
  0xb0   : > { %2124 = vmatprep.subr.bf16.mxu0 %v15228_v49  ;;  %v1526_v43 = vsel %vm16156_vm2, %v1521_v0, %v1525_v59  ;;  %v277_v49 = vld [vmem:[%s16006_s9 + $0x140] sm:$0xff]  ;;  %v1540_v59 = vsel %vm16156_vm2, %v1535_v27, %v1539_v3  ;;  %v1558_v36 = vor.u32 %v1557_v35, %v1554_v13  ;;  %v1579_v0 = vshll.u32 %v276_v50, 16  ;;  %v1253_v27 = vld [vmem:[%s16006_s9 + $0x148] sm:$0x11] }
  0xb1   : > { %865 = vmatmul.mubr.bf16.gmra.mrb[28].mxu0 %v16197_v12  ;;  %1076 = vmatmul.mubr.bf16.gmra.mrb[44].mxu1 %v16345_v2  ;;  %v16401_v39 = vcombine.high %v1516_v24, %v1526_v43  ;;  %v16403_v56 = vcombine.low %v1516_v24, %v1526_v43  ;;  %v1544_v12 = vor.u32 %v1543_v29, %v1539_v3  ;;  %v1563_v9 = vrot.slane %v1561_v47, 5 }
  0xb2   : > { %874 = vmatprep.mubr.bf16.mxu0 %v16220_v46  ;;  %1083 = vmatprep.mubr.bf16.mxu1 %v16371_v23  ;;  %v12480_v11 = vcombine.high %v276_v50, %v277_v49  ;;  %v1559_v42 = vrot.slane %v1558_v36, 4  ;;  %v1576_v24 = vshrl.u32 %v276_v50, 16  ;;  %v1581_v5 = vrot.slane %v1579_v0, 5  ;;  %v15280_v0 = vld [vmem:[#allocation3 + $0x458] ss:$12 sps:$4 sm:$0xff]  }
  0xb3   : > { %2125 = vmatpush1.bf16.msra.mxu0 %v15226_v32  ;;  %v1545_v46 = vrot.slane %v1544_v12, 4  ;;  %v1568_v31 = vor.u32 %v1567_v21, %v1563_v9  ;;  %v1573_v32 = vrot.slane %v1571_v41, 5  ;;  %v1585_v13 = vshll.u32 %v277_v49, 16 }
  0xb4   : > { %2126 = vmatprep.subr.bf16.mxu0 %v15231_v17  ;;  %v1564_v17 = vsel %vm16156_vm2, %v1559_v42, %v1563_v9  ;;  %v1578_v45 = vrot.slane %v1576_v24, 4  ;;  %v1589_v35 = vshrl.u32 %v277_v49, 16  ;;  %v12479_v9 = vcombine.low %v276_v50, %v277_v49  ;;  %v15210_v50 = vld [vmem:[%s16006_s9 + $0x16c] ss:$8 sps:$4 sm:$0xff]  }
  0xb5   : > { %v1550_v22 = vsel %vm16156_vm2, %v1545_v46, %v1549_v54  ;;  %v1569_v29 = vrot.slane %v1568_v31, 4  ;;  %v1595_v54 = vshll.u32 %v1253_v27, 16  ;;  %v15206_v31 = vld [vmem:[%s16006_s9 + $0x150] ss:$8 sps:$4 sm:$0xff]   ;;  %v15240_v49 = vld [vmem:[#allocation3 + $0x3e0] ss:$12 sps:$4 sm:$0xff]  }
  0xb6   : > { %v16412_v25 = vcombine.high %v1540_v59, %v1550_v22  ;;  %v16414_v3 = vcombine.low %v1540_v59, %v1550_v22  ;;  %v1582_v15 = vor.u32 %v1581_v5, %v1578_v45  ;;  %v1591_v12 = vrot.slane %v1589_v35, 4  ;;  %v15241_v22 = vld [vmem:[#allocation3 + $0x320] ss:$12 sps:$4 sm:$0xff]   ;;  %v15283_v45 = vld [vmem:[#allocation3 + $0x3b0] ss:$12 sps:$4 sm:$0xff]  }
  0xb7   : > { %2127 = vmatpush1.bf16.msra.mxu0 %v15229_v30  ;;  %v1574_v43 = vsel %vm16156_vm2, %v1569_v29, %v1573_v32  ;;  %v1587_v30 = vrot.slane %v1585_v13, 5  ;;  %v1597_v36 = vrot.slane %v1595_v54, 5  ;;  %v15256_v32 = vld [vmem:[#allocation3 + $0x410] ss:$12 sps:$4 sm:$0xff]   ;;  %v15273_v24 = vld [vmem:[#allocation3 + $0x380] ss:$12 sps:$4 sm:$0xff]  }
  0xb8   : > { %3398 = vmatprep.subr.bf16.mxu0 %v15236_v57  ;;  %v16423_v44 = vcombine.high %v1564_v17, %v1574_v43  ;;  %v16425_v47 = vcombine.low %v1564_v17, %v1574_v43  ;;  %v1583_v57 = vrot.slane %v1582_v15, 4  ;;  %v15281_v17 = vld [vmem:[#allocation3 + $0x398] ss:$12 sps:$4 sm:$0xff]   ;;  %v15282_v29 = vld [vmem:[#allocation3 + $0x470] ss:$12 sps:$4 sm:$0xff]  }
  0xb9   : > { %875 = vmatmul.mubr.bf16.gmra.mrb[32].mxu0 %v16255_v10  ;;  %1084 = vmatmul.mubr.bf16.gmra.mrb[48].mxu1 %v12477_v7  ;;  %v15204_v10 = vld [vmem:[%s16006_s9 + $0x154] ss:$8 sps:$4 sm:$0xff]   ;;  %v1592_v59 = vor.u32 %v1591_v12, %v1587_v30  ;;  %v15239_v35 = vld [vmem:[#allocation3 + $0x31c] ss:$12 sps:$4 sm:$0xff]   ;;  %v15237_v43 = vld [vmem:[#allocation3 + $0x318] ss:$12 sps:$4 sm:$0xff]  }
  0xba   : > { %884 = vmatprep.mubr.bf16.mxu0 %v16261_v14  ;;  %1091 = vmatprep.mubr.bf16.mxu1 %v12480_v11  ;;  %v1588_v14 = vsel %vm16156_vm2, %v1583_v57, %v1587_v30  ;;  %v15296_v5 = vld [vmem:[#allocation3 + $0x548] ss:$12 sps:$4 sm:$0xff]   ;;  %v15234_v13 = vld [vmem:[#allocation3 + $0x300] ss:$12 sps:$4 sm:$0xff]   ;;  %v15242_v27 = vld [vmem:[#allocation3 + $0x330] ss:$12 sps:$4 sm:$0xff]  }
  0xbb   : > { %v1593_v21 = vrot.slane %v1592_v59, 4  ;;  %v15247_v15 = vld [vmem:[#allocation3 + $0x34c] ss:$12 sps:$4 sm:$0xff]   ;;  %v15255_v12 = vld [vmem:[#allocation3 + $0x37c] ss:$12 sps:$4 sm:$0xff]  }
  0xbc   : > { %v15250_v30 = vld [vmem:[#allocation3 + $0x360] ss:$12 sps:$4 sm:$0xff]   ;;  %v15258_v54 = vld [vmem:[#allocation3 + $0x390] ss:$12 sps:$4 sm:$0xff]  }
  0xbd   : > { %v1598_v46 = vsel %vm16156_vm2, %v1593_v21, %v1597_v36  ;;  %v15263_v57 = vld [vmem:[#allocation3 + $0x3ac] ss:$12 sps:$4 sm:$0xff]   ;;  %v15271_v59 = vld [vmem:[#allocation3 + $0x3dc] ss:$12 sps:$4 sm:$0xff]   ;;  %v15286_v21 = vld [vmem:[#allocation3 + $0x424] ss:$12 sps:$4 sm:$0xff]  }
  0xbe   : > { %v16434_v41 = vcombine.high %v1588_v14, %v1598_v46  ;;  %v16436_v42 = vcombine.low %v1588_v14, %v1598_v46  ;;  %v15274_v36 = vld [vmem:[#allocation3 + $0x3f0] ss:$12 sps:$4 sm:$0xff]   ;;  %v15277_v14 = vld [vmem:[#allocation3 + $0x408] ss:$12 sps:$4 sm:$0xff]   ;;  %v15284_v46 = vld [vmem:[#allocation3 + $0x420] ss:$12 sps:$4 sm:$0xff]  }
  0xc1   : > { %885 = vmatmul.mubr.bf16.gmra.mrb[36].mxu0 %v16295_v28  ;;  %1092 = vmatmul.mubr.bf16.gmra.mrb[52].mxu1 %v12479_v9  ;;  %v15212_v28 = vld [vmem:[%s16006_s9 + $0x168] ss:$8 sps:$4 sm:$0xff]  }
  0xc2   : > { %894 = vmatprep.mubr.bf16.mxu0 %v16299_v53  ;;  %1099 = vmatprep.mubr.bf16.mxu1 %v15204_v10  ;;  %v15233_v53 = vld [vmem:[#allocation3 + $0x308] ss:$12 sps:$4 sm:$0xff]  }
  0xc9   : > { %895 = vmatmul.mubr.bf16.gmra.mrb[40].mxu0 %v16303_v52  ;;  %1100 = vmatmul.mubr.bf16.gmra.mrb[56].mxu1 %v15206_v31  ;;  %v15248_v52 = vld [vmem:[#allocation3 + $0x3f8] ss:$12 sps:$4 sm:$0xff]  }
  0xca   : > { %904 = vmatprep.mubr.bf16.mxu0 %v16341_v1  ;;  %1107 = vmatprep.mubr.bf16.mxu1 %v15210_v50  ;;  %v15249_v1 = vld [vmem:[#allocation3 + $0x338] ss:$12 sps:$4 sm:$0xff]  }
  0xd1   : > { %905 = vmatmul.mubr.bf16.gmra.mrb[44].mxu0 %v16345_v2  ;;  %1108 = vmatmul.mubr.bf16.gmra.mrb[60].mxu1 %v15212_v28  ;;  %v15257_v2 = vld [vmem:[#allocation3 + $0x350] ss:$12 sps:$4 sm:$0xff]  }
  0xd2   : > { %914 = vmatprep.mubr.bf16.mxu0 %v16371_v23  ;;  %2321 = vmatprep.mubr.bf16.mxu1 %v16210_v34  ;;  %v15264_v23 = vld [vmem:[#allocation3 + $0x428] ss:$12 sps:$4 sm:$0xff]  }
  0xd9   : > { %915 = vmatmul.mubr.bf16.gmra.mrb[48].mxu0 %v12477_v7  ;;  %2322 = vmatmul.mubr.bf16.vlgmr.msra.gmra.mrb[64].mxu1 %v16208_v33  ;;  %v15265_v7 = vld [vmem:[#allocation3 + $0x368] ss:$12 sps:$4 sm:$0xff]  }
  0xda   : > { %924 = vmatprep.mubr.bf16.mxu0 %v12480_v11  ;;  %2329 = vmatprep.mubr.bf16.mxu1 %v16222_v48  ;;  %v15272_v11 = vld [vmem:[#allocation3 + $0x440] ss:$12 sps:$4 sm:$0xff]  }
  0xdb   : > { %13713 = vmatpush3.bf16.msra.mxu1 %v15233_v53 }
  0xdc   : > { %13714 = vmatprep.subr.bf16.mxu1 %v15240_v49 }
  0xdf   : > { %13715 = vmatpush3.bf16.msra.mxu1 %v15241_v22 }
  0xe0   : > { %13716 = vmatprep.subr.bf16.mxu1 %v15248_v52 }
  0xe1   : > { %925 = vmatmul.mubr.bf16.gmra.mrb[52].mxu0 %v12479_v9  ;;  %2330 = vmatmul.mubr.bf16.gmra.mrb[68].mxu1 %v16224_v51  ;;  %v15279_v9 = vld [vmem:[#allocation3 + $0x40c] ss:$12 sps:$4 sm:$0xff]  }
  0xe2   : > { %934 = vmatprep.mubr.bf16.mxu0 %v15204_v10  ;;  %2337 = vmatprep.mubr.bf16.mxu1 %v16230_v63  ;;  %v15266_v10 = vld [vmem:[#allocation3 + $0x3c0] ss:$12 sps:$4 sm:$0xff]  }
  0xe3   : > { %13717 = vmatpush3.bf16.msra.mxu1 %v15249_v1 }
  0xe4   : > { %13718 = vmatprep.subr.bf16.mxu1 %v15256_v32  ;;  %v1257_v32 = vld [vmem:[%s16006_s9 + $0x168] sm:$0xff] }
  0xe7   : > { %13719 = vmatpush3.bf16.msra.mxu1 %v15257_v2  ;;  %v15287_v2 = vld [vmem:[#allocation3 + $0x438] ss:$12 sps:$4 sm:$0xff]  }
  0xe8   : > { %13720 = vmatprep.subr.bf16.mxu1 %v15264_v23 }
  0xe9   : > { %935 = vmatmul.mubr.bf16.gmra.mrb[56].mxu0 %v15206_v31  ;;  %2338 = vmatmul.mubr.bf16.gmra.mrb[72].mxu1 %v16232_v55 }
  0xea   : > { %944 = vmatprep.mubr.bf16.mxu0 %v15210_v50  ;;  %2345 = vmatprep.mubr.bf16.mxu1 %v16243_v4 }
  0xeb   : > { %13721 = vmatpush3.bf16.msra.mxu1 %v15265_v7  ;;  %v15292_v7 = vld [vmem:[#allocation3 + $0x454] ss:$12 sps:$4 sm:$0xff]  }
  0xec   : > { %13722 = vmatprep.subr.bf16.mxu1 %v15272_v11 }
  0xef   : > { %13723 = vmatpush3.bf16.msra.mxu1 %v15273_v24 }
  0xf0   : > { %13724 = vmatprep.subr.bf16.mxu1 %v15280_v0  ;;  %v1258_v0 = vld [vmem:[%s16006_s9 + $0x170] sm:$0xff] }
  0xf1   : > { %945 = vmatmul.mubr.bf16.gmra.mrb[60].mxu0 %v15212_v28  ;;  %2346 = vmatmul.mubr.bf16.gmra.mrb[76].mxu1 %v16245_v38  ;;  %v15289_v28 = vld [vmem:[#allocation3 + $0x43c] ss:$12 sps:$4 sm:$0xff]  }
  0xf2   : > { %2128 = vmatprep.mubr.bf16.mxu0 %v16210_v34  ;;  %2353 = vmatprep.mubr.bf16.mxu1 %v16264_v18  ;;  %v15244_v34 = vld [vmem:[#allocation3 + $0x334] ss:$12 sps:$4 sm:$0xff]  }
  0xf3   : > { %13725 = vmatpush3.bf16.msra.mxu1 %v15281_v17  ;;  %v15295_v17 = vld [vmem:[#allocation3 + $0x46c] ss:$12 sps:$4 sm:$0xff]  }
  0xf4   : > { %13726 = vmatprep.subr.bf16.mxu1 %v15282_v29 }
  0xf7   : > { %13727 = vmatpush3.bf16.msra.mxu1 %v15283_v45 }
  0xf8   : > { %13824 = vmatprep.subr.bf16.mxu1 %v15296_v5 }
  0xf9   : > { %2129 = vmatmul.mubr.bf16.vlgmr.msra.gmra.mrb[0].mxu0 %v16208_v33  ;;  %2354 = vmatmul.mubr.bf16.gmra.mrb[80].mxu1 %v16267_v20  ;;  %v15245_v33 = vld [vmem:[#allocation3 + $0x348] ss:$12 sps:$4 sm:$0xff]  }
  0xfa   : > { %3399 = vmatpush1.bf16.msra.mxu0 %v15234_v13  ;;  %2138 = vmatprep.mubr.bf16.mxu0 %v16222_v48  ;;  %v15252_v48 = vld [vmem:[#allocation3 + $0x364] ss:$12 sps:$4 sm:$0xff]  }
  0xfb   : > { %2361 = vmatprep.mubr.bf16.mxu1 %v16282_v40  ;;  %3400 = vmatprep.subr.bf16.mxu0 %v15239_v35  ;;  %v1624_v35 = vshrl.u32 %v1257_v32, 16 }
  0xfe   : > { %3401 = vmatpush1.bf16.msra.mxu0 %v15237_v43 }
  0xff   : > { %3402 = vmatprep.subr.bf16.mxu0 %v15244_v34  ;;  %v1627_v34 = vshll.u32 %v1257_v32, 16 }
 0x101   : > { %2139 = vmatmul.mubr.bf16.gmra.mrb[4].mxu0 %v16224_v51  ;;  %2362 = vmatmul.mubr.bf16.gmra.mrb[84].mxu1 %v16285_v6  ;;  %v15253_v51 = vld [vmem:[#allocation3 + $0x378] ss:$12 sps:$4 sm:$0xff]  }
 0x102   : > { %2148 = vmatprep.mubr.bf16.mxu0 %v16230_v63  ;;  %2369 = vmatprep.mubr.bf16.mxu1 %v16307_v60  ;;  %v15260_v63 = vld [vmem:[#allocation3 + $0x394] ss:$12 sps:$4 sm:$0xff]  }
 0x103   : > { %3403 = vmatpush1.bf16.msra.mxu0 %v15242_v27 }
 0x104   : > { %3404 = vmatprep.subr.bf16.mxu0 %v15247_v15 }
 0x107   : > { %3405 = vmatpush1.bf16.msra.mxu0 %v15245_v33 }
 0x108   : > { %3406 = vmatprep.subr.bf16.mxu0 %v15252_v48  ;;  %v1633_v48 = vshll.u32 %v1258_v0, 16 }
 0x109   : > { %2149 = vmatmul.mubr.bf16.gmra.mrb[8].mxu0 %v16232_v55  ;;  %2370 = vmatmul.mubr.bf16.gmra.mrb[88].mxu1 %v16309_v62  ;;  %v15261_v55 = vld [vmem:[#allocation3 + $0x3a8] ss:$12 sps:$4 sm:$0xff]  }
 0x10a   : > { %2158 = vmatprep.mubr.bf16.mxu0 %v16243_v4  ;;  %2377 = vmatprep.mubr.bf16.mxu1 %v16334_v19  ;;  %v15268_v4 = vld [vmem:[#allocation3 + $0x3c4] ss:$12 sps:$4 sm:$0xff]  }
 0x10b   : > { %3407 = vmatpush1.bf16.msra.mxu0 %v15250_v30  ;;  %v15293_v30 = vld [vmem:[#allocation3 + $0x468] ss:$12 sps:$4 sm:$0xff]  }
 0x10c   : > { %3408 = vmatprep.subr.bf16.mxu0 %v15255_v12  ;;  %v1626_v12 = vrot.slane %v1624_v35, 4  ;;  %v2741_v35 = vld [vmem:[%s16006_s9 + $0x18] sm:$0xee] }
 0x10f   : > { %3409 = vmatpush1.bf16.msra.mxu0 %v15253_v51  ;;  %v1637_v51 = vshrl.u32 %v1258_v0, 16 }
 0x110   : > { %3410 = vmatprep.subr.bf16.mxu0 %v15260_v63 }
 0x111   : > { %2159 = vmatmul.mubr.bf16.gmra.mrb[12].mxu0 %v16245_v38  ;;  %2378 = vmatmul.mubr.bf16.gmra.mrb[92].mxu1 %v16336_v58  ;;  %v15269_v38 = vld [vmem:[#allocation3 + $0x3d8] ss:$12 sps:$4 sm:$0xff]  }
 0x112   : > { %2168 = vmatprep.mubr.bf16.mxu0 %v16264_v18  ;;  %2385 = vmatprep.mubr.bf16.mxu1 %v16361_v26  ;;  %v15276_v18 = vld [vmem:[#allocation3 + $0x3f4] ss:$12 sps:$4 sm:$0xff]  }
 0x113   : > { %3411 = vmatpush1.bf16.msra.mxu0 %v15258_v54  ;;  %v1629_v54 = vrot.slane %v1627_v34, 5 }
 0x114   : > { %3412 = vmatprep.subr.bf16.mxu0 %v15263_v57 }
 0x117   : > { %3413 = vmatpush1.bf16.msra.mxu0 %v15261_v55 }
 0x118   : > { %3414 = vmatprep.subr.bf16.mxu0 %v15268_v4 }
 0x119   : > { %2169 = vmatmul.mubr.bf16.gmra.mrb[16].mxu0 %v16267_v20  ;;  %2386 = vmatmul.mubr.bf16.gmra.mrb[96].mxu1 %v16363_v37  ;;  %v1254_v20 = vld [vmem:[%s16006_s9 + $0x150] sm:$0xff] }
 0x11a   : > { %2178 = vmatprep.mubr.bf16.mxu0 %v16282_v40  ;;  %2393 = vmatprep.mubr.bf16.mxu1 %v16381_v16  ;;  %v1255_v40 = vld [vmem:[%s16006_s9 + $0x158] sm:$0xff]  ;;  %v1600_v31 = vshrl.u32 %v1254_v20, 16  ;;  %v1603_v50 = vshll.u32 %v1254_v20, 16 }
 0x11b   : > { %3415 = vmatpush1.bf16.msra.mxu0 %v15266_v10  ;;  %v1609_v53 = vshll.u32 %v1255_v40, 16  ;;  %v1639_v10 = vrot.slane %v1637_v51, 4 }
 0x11c   : > { %3416 = vmatprep.subr.bf16.mxu0 %v15271_v59  ;;  %v1602_v49 = vrot.slane %v1600_v31, 4  ;;  %v1605_v22 = vrot.slane %v1603_v50, 5 }
 0x11d   : > { %v1611_v52 = vrot.slane %v1609_v53, 5 }
 0x11e   : > { %v1606_v45 = vor.u32 %v1605_v22, %v1602_v49  ;;  %v2738_v49 = vld [vmem:[%s16006_s9] sm:$0xee] }
 0x11f   : > { %3417 = vmatpush1.bf16.msra.mxu0 %v15269_v38  ;;  %v1259_v38 = vld [vmem:[%s16006_s9 + $0x178] sm:$0x11] }
 0x120   : > { %3418 = vmatprep.subr.bf16.mxu0 %v15276_v18  ;;  %v1607_v27 = vrot.slane %v1606_v45, 4  ;;  %v1630_v18 = vor.u32 %v1629_v54, %v1626_v12  ;;  %v19433_v45 = vmov 0 }
 0x121   : > { %2179 = vmatmul.mubr.bf16.gmra.mrb[20].mxu0 %v16285_v6  ;;  %2394 = vmatmul.mubr.bf16.gmra.mrb[100].mxu1 %v16383_v8  ;;  %v1613_v6 = vshrl.u32 %v1255_v40, 16  ;;  %v19434_v45 = vsel %vm16533_vm5, 4294967295, %v19433_v45 }
 0x122   : > { %2188 = vmatprep.mubr.bf16.mxu0 %v16307_v60  ;;  %2401 = vmatprep.mubr.bf16.mxu1 %v16401_v39  ;;  %v1256_v60 = vld [vmem:[%s16006_s9 + $0x160] sm:$0x11]  ;;  %19435 = vst [vmem:[#allocation13_spill] sm:$0xff] %v19434_v45 }
 0x123   : > { %3419 = vmatpush1.bf16.msra.mxu0 %v15274_v36  ;;  %v1615_v1 = vrot.slane %v1613_v6, 4  ;;  %v1619_v23 = vshll.u32 %v1256_v60, 16 }
 0x124   : > { %3420 = vmatprep.subr.bf16.mxu0 %v15279_v9  ;;  %v1612_v9 = vsel %vm16156_vm2, %v1607_v27, %v1611_v52  ;;  %v2743_v27 = vld [vmem:[%s16006_s9 + $0x28] sm:$0x11] }
 0x125   : > { %v1616_v5 = vor.u32 %v1615_v1, %v1611_v52  ;;  %v1621_v33 = vrot.slane %v1619_v23, 5  ;;  %v2740_v1 = vld [vmem:[%s16006_s9 + $0x10] sm:$0x11]  ;;  %v2849_v54 = vrot.slane %v2743_v27, 5 }
 0x127   : > { %3421 = vmatpush1.bf16.msra.mxu0 %v15277_v14  ;;  %v1617_v15 = vrot.slane %v1616_v5, 4  ;;  %v1631_v14 = vrot.slane %v1630_v18, 4  ;;  %v2742_v5 = vld [vmem:[%s16006_s9 + $0x20] sm:$0xff] }
 0x128   : > { %3422 = vmatprep.subr.bf16.mxu0 %v15286_v21  ;;  %v2746_v18 = vld [vmem:[%s16006_s9 + $0x40] sm:$0x11] }
 0x129   : > { %2189 = vmatmul.mubr.bf16.gmra.mrb[24].mxu0 %v16309_v62  ;;  %2402 = vmatmul.mubr.bf16.gmra.mrb[104].mxu1 %v16403_v56  ;;  %v15290_v62 = vld [vmem:[#allocation3 + $0x450] ss:$12 sps:$4 sm:$0xff]   ;;  %v1622_v20 = vsel %vm16156_vm2, %v1617_v15, %v1621_v33  ;;  %v2846_v15 = vrot.slane %v2742_v5, 5 }
 0x12a   : > { %2198 = vmatprep.mubr.bf16.mxu0 %v16334_v19  ;;  %2409 = vmatprep.mubr.bf16.mxu1 %v16412_v25  ;;  %v16509_v31 = vcombine.high %v1612_v9, %v1622_v20 }
 0x12b   : > { %3423 = vmatpush1.bf16.msra.mxu0 %v15284_v46 }
 0x12c   : > { %3424 = vmatprep.subr.bf16.mxu0 %v15289_v28  ;;  %v13504_v11 = vpop.f32.mrb[0].mxu1  ;;  %v2739_v28 = vld [vmem:[%s16006_s9 + $0x8] sm:$0xff] }
 0x12d   : > { %v13505_v24 = vpop.f32.mrb[1].mxu1 }
 0x12e   : > { %v16488_v29 = vadd.f32 %v13505_v24, %v13504_v11  ;;  %v13507_v19 = vpop.f32.mrb[2].mxu1 }
 0x12f   : > { %3425 = vmatpush1.bf16.msra.mxu0 %v15287_v2  ;;  %v13508_v13 = vpop.f32.mrb[3].mxu1  ;;  %v12613_v2 = vrot.slane %v2738_v49, 9  ;;  %v2749_v49 = vld [vmem:[%s16006_s9 + $0x58] sm:$0x11] }
 0x130   : > { %3426 = vmatprep.subr.bf16.mxu0 %v15292_v7  ;;  %v16491_v43 = vadd.f32 %v13508_v13, %v13507_v19  ;;  %v16526_v7 = vcombine.low %v1612_v9, %v1622_v20 }
 0x131   : > { %2199 = vmatmul.mubr.bf16.gmra.mrb[28].mxu0 %v16336_v58  ;;  %2410 = vmatmul.mubr.bf16.gmra.mrb[108].mxu1 %v16414_v3  ;;  %v15300_v58 = vld [vmem:[#allocation3 + $0x484] ss:$12 sps:$4 sm:$0xff]  }
 0x132   : > { %2208 = vmatprep.mubr.bf16.mxu0 %v16361_v26  ;;  %2417 = vmatprep.mubr.bf16.mxu1 %v16423_v44  ;;  %v1635_v26 = vrot.slane %v1633_v48, 5 }
 0x133   : > { %3427 = vmatpush1.bf16.msra.mxu0 %v15290_v62  ;;  %v2842_v62 = vrot.slane %v2740_v1, 5 }
 0x134   : > { %3428 = vmatprep.subr.bf16.mxu0 %v15295_v17  ;;  %v13510_v63 = vpop.f32.mrb[4].mxu1  ;;  %v1640_v40 = vor.u32 %v1639_v10, %v1635_v26  ;;  %v1636_v52 = vsel %vm16156_vm2, %v1631_v14, %v1635_v26  ;;  %v2744_v26 = vld [vmem:[%s16006_s9 + $0x30] sm:$0xee] }
 0x135   : > { %v13511_v57 = vpop.f32.mrb[5].mxu1  ;;  %v12615_v9 = vrot.slane %v2744_v26, 9 }
 0x136   : > { %v16496_v55 = vadd.f32 %v13511_v57, %v13510_v63  ;;  %v13513_v4 = vpop.f32.mrb[6].mxu1  ;;  %v1641_v53 = vrot.slane %v1640_v40, 4  ;;  %v2848_v63 = vrot.slane %v2846_v15, 4  ;;  %v16556_v57 = vld [vmem:[%s16006_s9 + $0x38] sm:$0xff] }
 0x137   : > { %3429 = vmatpush1.bf16.msra.mxu0 %v15293_v30  ;;  %v13514_v59 = vpop.f32.mrb[7].mxu1  ;;  %v15297_v40 = vld [vmem:[#allocation3 + $0x488] ss:$12 sps:$4 sm:$0xff]  }
 0x138   : > { %4554 = vmatprep.subr.bf16.mxu0 %v15300_v58  ;;  %v16500_v36 = vadd.f32 %v13514_v59, %v13513_v4 }
 0x139   : > { %2209 = vmatmul.mubr.bf16.gmra.mrb[32].mxu0 %v16363_v37  ;;  %2418 = vmatmul.mubr.bf16.gmra.mrb[112].mxu1 %v16425_v47  ;;  %v1643_v37 = vshll.u32 %v1259_v38, 16  ;;  %v2850_v38 = vsel %vm16533_vm5, %v2848_v63, %v2849_v54  ;;  %v15321_v54 = vld [vmem:[#allocation3 + $0x4d0] ss:$12 sps:$4 sm:$0xff]  }
 0x13a   : > { %2218 = vmatprep.mubr.bf16.mxu0 %v16381_v16  ;;  %2425 = vmatprep.mubr.bf16.mxu1 %v16434_v41 }
 0x13b   : > { %v1645_v6 = vrot.slane %v1643_v37, 5 }
 0x13c   : > { %v13516_v21 = vpop.f32.mrb[8].mxu1 }
 0x13d   : > { %v13517_v46 = vpop.f32.mrb[9].mxu1  ;;  %v1646_v32 = vsel %vm16156_vm2, %v1641_v53, %v1645_v6 }
 0x13e   : > { %v16511_v50 = vadd.f32 %v13517_v46, %v13516_v21  ;;  %v13519_v16 = vpop.f32.mrb[10].mxu1  ;;  %v16549_v48 = vcombine.low %v1636_v52, %v1646_v32  ;;  %v2747_v21 = vld [vmem:[%s16006_s9 + $0x48] sm:$0xee] }
 0x13f   : > { %v13520_v60 = vpop.f32.mrb[11].mxu1  ;;  %v15304_v46 = vld [vmem:[#allocation3 + $0x560] ss:$12 sps:$4 sm:$0xff]  }
 0x140   : > { %v16516_v22 = vadd.f32 %v13520_v60, %v13519_v16 }
 0x141   : > { %2219 = vmatmul.mubr.bf16.gmra.mrb[36].mxu0 %v16383_v8  ;;  %2426 = vmatmul.mubr.bf16.gmra.mrb[116].mxu1 %v16436_v42  ;;  %v2839_v8 = vrot.slane %v2739_v28, 5  ;;  %v2856_v28 = vrot.slane %v2746_v18, 5 }
 0x142   : > { %2228 = vmatprep.mubr.bf16.mxu0 %v16401_v39  ;;  %2433 = vmatprep.mubr.bf16.mxu1 %v16509_v31  ;;  %v16528_v39 = vcombine.high %v1636_v52, %v1646_v32 }
 0x143   : > { %v2841_v17 = vrot.slane %v2839_v8, 4  ;;  %v2840_v34 = vsel %vm16533_vm5, %v12613_v2, %v2839_v8  ;;  %v12616_v8 = vrot.slane %v2747_v21, 9  ;;  %v15305_v2 = vld [vmem:[#allocation3 + $0x4a0] ss:$12 sps:$4 sm:$0xff]  }
 0x144   : > { %v13522_v23 = vpop.f32.mrb[12].mxu1 }
 0x145   : > { %v13523_v11 = vpop.f32.mrb[13].mxu1 }
 0x146   : > { %v16530_v24 = vadd.f32 %v13523_v11, %v13522_v23  ;;  %v13525_v0 = vpop.f32.mrb[14].mxu1  ;;  %v15312_v23 = vld [vmem:[#allocation3 + $0x578] ss:$12 sps:$4 sm:$0xff]  }
 0x147   : > { %v13526_v19 = vpop.f32.mrb[15].mxu1 }
 0x148   : > { %v16538_v13 = vadd.f32 %v13526_v19, %v13525_v0 }
 0x149   : > { %2229 = vmatmul.mubr.bf16.gmra.mrb[40].mxu0 %v16403_v56  ;;  %2434 = vmatmul.mubr.bf16.gmra.mrb[120].mxu1 %v16526_v7  ;;  %v2843_v56 = vsel %vm16533_vm5, %v2841_v17, %v2842_v62  ;;  %v16594_v62 = vld [vmem:[%s16006_s9 + $0x68] sm:$0xff] }
 0x14a   : > { %2238 = vmatprep.mubr.bf16.mxu0 %v16412_v25  ;;  %2441 = vmatprep.mubr.bf16.mxu1 %v16528_v39  ;;  %v16551_v12 = vcombine.high %v2840_v34, %v2843_v56  ;;  %v12614_v25 = vrot.slane %v2741_v35, 9  ;;  %v16571_v37 = vcombine.low %v2840_v34, %v2843_v56  ;;  %v15313_v17 = vld [vmem:[#allocation3 + $0x4b8] ss:$12 sps:$4 sm:$0xff]   ;;  %v15320_v34 = vld [vmem:[#allocation3 + $0x590] ss:$12 sps:$4 sm:$0xff]  }
 0x14c   : > { %v13528_v33 = vpop.f32.mrb[16].mxu1  ;;  %v2847_v59 = vsel %vm16533_vm5, %v12614_v25, %v2846_v15 }
 0x14d   : > { %v13529_v30 = vpop.f32.mrb[17].mxu1  ;;  %v16577_v16 = vcombine.high %v2847_v59, %v2850_v38  ;;  %v16596_v19 = vcombine.low %v2847_v59, %v2850_v38 }
 0x14e   : > { %v16553_v51 = vadd.f32 %v13529_v30, %v13528_v33  ;;  %v13531_v58 = vpop.f32.mrb[18].mxu1  ;;  %v2750_v33 = vld [vmem:[%s16006_s9 + $0x60] sm:$0xee]  ;;  %v2752_v30 = vld [vmem:[%s16006_s9 + $0x70] sm:$0x11] }
 0x14f   : > { %v13532_v4 = vpop.f32.mrb[19].mxu1  ;;  %v12617_v59 = vrot.slane %v2750_v33, 9  ;;  %v2870_v38 = vrot.slane %v2752_v30, 5  ;;  %v15346_v30 = vld [vmem:[#allocation3 + $0x5f0] ss:$12 sps:$4 sm:$0xff]  }
 0x150   : > { %v16560_v10 = vadd.f32 %v13532_v4, %v13531_v58  ;;  %v2867_v58 = vrot.slane %v16594_v62, 5  ;;  %v15328_v4 = vld [vmem:[#allocation3 + $0x5a8] ss:$12 sps:$4 sm:$0xff]  }
 0x151   : > { %2239 = vmatmul.mubr.bf16.gmra.mrb[44].mxu0 %v16414_v3  ;;  %2442 = vmatmul.mubr.bf16.gmra.mrb[124].mxu1 %v16549_v48  ;;  %v2853_v3 = vrot.slane %v16556_v57, 5 }
 0x152   : > { %2248 = vmatprep.mubr.bf16.mxu0 %v16423_v44  ;;  %3623 = vmatprep.mubr.bf16.mxu1 %v16551_v12  ;;  %v16575_v44 = vld [vmem:[%s16006_s9 + $0x50] sm:$0xff] }
 0x153   : > { %v2855_v60 = vrot.slane %v2853_v3, 4  ;;  %v2860_v32 = vrot.slane %v16575_v44, 5  ;;  %v2854_v11 = vsel %vm16533_vm5, %v12615_v9, %v2853_v3  ;;  %v15329_v9 = vld [vmem:[#allocation3 + $0x4e8] ss:$12 sps:$4 sm:$0xff]  }
 0x154   : > { %v13534_v20 = vpop.f32.mrb[20].mxu1 }
 0x155   : > { %v13535_v14 = vpop.f32.mrb[21].mxu1  ;;  %v2862_v5 = vrot.slane %v2860_v32, 4  ;;  %v2861_v26 = vsel %vm16533_vm5, %v12616_v8, %v2860_v32 }
 0x156   : > { %v16579_v53 = vadd.f32 %v13535_v14, %v13534_v20  ;;  %v13537_v6 = vpop.f32.mrb[22].mxu1 }
 0x157   : > { %v13538_v52 = vpop.f32.mrb[23].mxu1 }
 0x158   : > { %v16583_v1 = vadd.f32 %v13538_v52, %v13537_v6  ;;  %v2868_v52 = vsel %vm16533_vm5, %v12617_v59, %v2867_v58  ;;  %v2758_v59 = vld [vmem:[%s16006_s9 + $0xa0] sm:$0x11] }
 0x159   : > { %2249 = vmatmul.mubr.bf16.gmra.mrb[48].mxu0 %v16425_v47  ;;  %3624 = vmatmul.mubr.bf16.vlgmr.msra.gmra.mrb[128].mxu1 %v16571_v37  ;;  %v2857_v47 = vsel %vm16533_vm5, %v2855_v60, %v2856_v28  ;;  %v16622_v28 = vld [vmem:[%s16006_s9 + $0x80] sm:$0xff] }
 0x15a   : > { %2258 = vmatprep.mubr.bf16.mxu0 %v16434_v41  ;;  %3631 = vmatprep.mubr.bf16.mxu1 %v16577_v16  ;;  %v2863_v41 = vrot.slane %v2749_v49, 5  ;;  %v16598_v56 = vcombine.high %v2854_v11, %v2857_v47  ;;  %v16615_v3 = vcombine.low %v2854_v11, %v2857_v47  ;;  %v15337_v49 = vld [vmem:[#allocation3 + $0x500] ss:$12 sps:$4 sm:$0xff]   ;;  %v2874_v8 = vrot.slane %v16622_v28, 5 }
 0x15b   : > { %13825 = vmatpush3.bf16.msra.mxu1 %v15297_v40  ;;  %v15336_v40 = vld [vmem:[#allocation3 + $0x5c0] ss:$12 sps:$4 sm:$0xff]  }
 0x15c   : > { %13826 = vmatprep.subr.bf16.mxu1 %v15304_v46  ;;  %v13540_v0 = vpop.f32.mrb[24].mxu1 }
 0x15d   : > { %v13541_v35 = vpop.f32.mrb[25].mxu1 }
 0x15e   : > { %v16600_v27 = vadd.f32 %v13541_v35, %v13540_v0  ;;  %v13543_v15 = vpop.f32.mrb[26].mxu1 }
 0x15f   : > { %13827 = vmatpush3.bf16.msra.mxu1 %v15305_v2  ;;  %v13544_v25 = vpop.f32.mrb[27].mxu1  ;;  %v2753_v2 = vld [vmem:[%s16006_s9 + $0x78] sm:$0xee] }
 0x160   : > { %13828 = vmatprep.subr.bf16.mxu1 %v15312_v23  ;;  %v16606_v63 = vadd.f32 %v13544_v25, %v13543_v15  ;;  %v2755_v23 = vld [vmem:[%s16006_s9 + $0x88] sm:$0x11]  ;;  %v12618_v35 = vrot.slane %v2753_v2, 9  ;;  %v16645_v25 = vld [vmem:[%s16006_s9 + $0x98] sm:$0xff]  ;;  %v16667_v2 = vld [vmem:[%s16006_s9 + $0xb0] sm:$0xff] }
 0x161   : > { %2259 = vmatmul.mubr.bf16.gmra.mrb[52].mxu0 %v16436_v42  ;;  %3632 = vmatmul.mubr.bf16.gmra.mrb[132].mxu1 %v16596_v19  ;;  %v2864_v42 = vsel %vm16533_vm5, %v2862_v5, %v2863_v41  ;;  %v15345_v5 = vld [vmem:[#allocation3 + $0x518] ss:$12 sps:$4 sm:$0xff]   ;;  %v2877_v15 = vrot.slane %v2755_v23, 5 }
 0x162   : > { %2268 = vmatprep.mubr.bf16.mxu0 %v16509_v31  ;;  %3639 = vmatprep.mubr.bf16.mxu1 %v16598_v56  ;;  %v2869_v31 = vrot.slane %v2867_v58, 4  ;;  %v16617_v14 = vcombine.high %v2861_v26, %v2864_v42  ;;  %v16637_v47 = vcombine.low %v2861_v26, %v2864_v42  ;;  %v2756_v42 = vld [vmem:[%s16006_s9 + $0x90] sm:$0xee]  ;;  %v15301_v23 = vld [vmem:[#allocation3 + $0x498] ss:$12 sps:$4 sm:$0xff]  }
 0x163   : > { %13829 = vmatpush3.bf16.msra.mxu1 %v15313_v17 }
 0x164   : > { %13830 = vmatprep.subr.bf16.mxu1 %v15320_v34  ;;  %v13546_v18 = vpop.f32.mrb[28].mxu1  ;;  %v2871_v32 = vsel %vm16533_vm5, %v2869_v31, %v2870_v38  ;;  %v2876_v34 = vrot.slane %v2874_v8, 4 }
 0x165   : > { %v13547_v20 = vpop.f32.mrb[29].mxu1  ;;  %v16639_v41 = vcombine.high %v2868_v52, %v2871_v32 }
 0x166   : > { %v16619_v21 = vadd.f32 %v13547_v20, %v13546_v18  ;;  %v13549_v46 = vpop.f32.mrb[30].mxu1  ;;  %v2878_v26 = vsel %vm16533_vm5, %v2876_v34, %v2877_v15  ;;  %v16659_v18 = vcombine.low %v2868_v52, %v2871_v32  ;;  %v15368_v32 = vld [vmem:[#allocation3 + $0x6c8] ss:$12 sps:$4 sm:$0xff]  }
 0x167   : > { %13831 = vmatpush3.bf16.msra.mxu1 %v15321_v54  ;;  %v13550_v6 = vpop.f32.mrb[31].mxu1  ;;  %v15347_v54 = vld [vmem:[#allocation3 + $0x530] ss:$12 sps:$4 sm:$0xff]  }
 0x168   : > { %13832 = vmatprep.subr.bf16.mxu1 %v15328_v4  ;;  %v16625_v60 = vadd.f32 %v13550_v6, %v13549_v46  ;;  %v2875_v4 = vsel %vm16533_vm5, %v12618_v35, %v2874_v8  ;;  %v15303_v46 = vld [vmem:[#allocation3 + $0x49c] ss:$12 sps:$4 sm:$0xff]   ;;  %v12619_v6 = vrot.slane %v2756_v42, 9  ;;  %v2884_v8 = vrot.slane %v2758_v59, 5  ;;  %v2761_v35 = vld [vmem:[%s16006_s9 + $0xb8] sm:$0x11] }
 0x169   : > { %2269 = vmatmul.mubr.bf16.gmra.mrb[56].mxu0 %v16526_v7  ;;  %3640 = vmatmul.mubr.bf16.gmra.mrb[136].mxu1 %v16615_v3  ;;  %v15344_v7 = vld [vmem:[#allocation3 + $0x5d8] ss:$12 sps:$4 sm:$0xff]   ;;  %v16661_v31 = vcombine.high %v2875_v4, %v2878_v26  ;;  %v16681_v15 = vcombine.low %v2875_v4, %v2878_v26 }
 0x16a   : > { %2278 = vmatprep.mubr.bf16.mxu0 %v16528_v39  ;;  %3647 = vmatprep.mubr.bf16.mxu1 %v16617_v14  ;;  %v16691_v26 = vld [vmem:[%s16006_s9 + $0xc8] sm:$0xff] }
 0x16b   : > { %13833 = vmatpush3.bf16.msra.mxu1 %v15329_v9 }
 0x16c   : > { %13834 = vmatprep.subr.bf16.mxu1 %v15336_v40  ;;  %v13552_v11 = vpop.f32.mrb[32].mxu1 }
 0x16d   : > { %v13553_v39 = vpop.f32.mrb[33].mxu1 }
 0x16e   : > { %v16641_v0 = vadd.f32 %v13553_v39, %v13552_v11  ;;  %v13555_v17 = vpop.f32.mrb[34].mxu1  ;;  %v15308_v11 = vld [vmem:[#allocation3 + $0x4b4] ss:$12 sps:$4 sm:$0xff]  }
 0x16f   : > { %13835 = vmatpush3.bf16.msra.mxu1 %v15337_v49  ;;  %v13556_v33 = vpop.f32.mrb[35].mxu1 }
 0x170   : > { %13836 = vmatprep.subr.bf16.mxu1 %v15344_v7  ;;  %v16647_v58 = vadd.f32 %v13556_v33, %v13555_v17  ;;  %v2888_v17 = vrot.slane %v16667_v2, 5 }
 0x171   : > { %2279 = vmatmul.mubr.bf16.gmra.mrb[60].mxu0 %v16549_v48  ;;  %3648 = vmatmul.mubr.bf16.gmra.mrb[140].mxu1 %v16637_v47  ;;  %v2881_v48 = vrot.slane %v16645_v25, 5 }
 0x172   : > { %3430 = vmatprep.mubr.bf16.mxu0 %v16551_v12  ;;  %3655 = vmatprep.mubr.bf16.mxu1 %v16639_v41  ;;  %v15298_v12 = vld [vmem:[#allocation3 + $0x480] ss:$12 sps:$4 sm:$0xff]   ;;  %v2890_v59 = vrot.slane %v2888_v17, 4 }
 0x173   : > { %13837 = vmatpush3.bf16.msra.mxu1 %v15345_v5  ;;  %v2883_v49 = vrot.slane %v2881_v48, 4  ;;  %v2882_v39 = vsel %vm16533_vm5, %v12619_v6, %v2881_v48  ;;  %v2759_v5 = vld [vmem:[%s16006_s9 + $0xa8] sm:$0xee] }
 0x174   : > { %13838 = vmatprep.subr.bf16.mxu1 %v15346_v30  ;;  %v13558_v38 = vpop.f32.mrb[36].mxu1  ;;  %v15306_v30 = vld [vmem:[#allocation3 + $0x4b0] ss:$12 sps:$4 sm:$0xff]   ;;  %v12620_v42 = vrot.slane %v2759_v5, 9 }
 0x175   : > { %v13559_v9 = vpop.f32.mrb[37].mxu1 }
 0x176   : > { %v16663_v20 = vadd.f32 %v13559_v9, %v13558_v38  ;;  %v13561_v40 = vpop.f32.mrb[38].mxu1  ;;  %v2891_v38 = vrot.slane %v2761_v35, 5 }
 0x177   : > { %13839 = vmatpush3.bf16.msra.mxu1 %v15347_v54  ;;  %v13562_v7 = vpop.f32.mrb[39].mxu1 }
 0x178   : > { %v16669_v52 = vadd.f32 %v13562_v7, %v13561_v40  ;;  %13936 = vmatprep.subr.bf16.mxu1 %v15368_v32  ;;  %v15309_v40 = vld [vmem:[#allocation3 + $0x4c8] ss:$12 sps:$4 sm:$0xff]   ;;  %v2892_v6 = vsel %vm16533_vm5, %v2890_v59, %v2891_v38  ;;  %v2762_v7 = vld [vmem:[%s16006_s9 + $0xc0] sm:$0xee] }
 0x179   : > { %3431 = vmatmul.mubr.bf16.vlgmr.msra.gmra.mrb[0].mxu0 %v16571_v37  ;;  %3656 = vmatmul.mubr.bf16.gmra.mrb[144].mxu1 %v16659_v18  ;;  %v2885_v37 = vsel %vm16533_vm5, %v2883_v49, %v2884_v8  ;;  %v15316_v49 = vld [vmem:[#allocation3 + $0x4e4] ss:$12 sps:$4 sm:$0xff]   ;;  %v2764_v32 = vld [vmem:[%s16006_s9 + $0xd0] sm:$0x11] }
 0x17a   : > { %4555 = vmatpush1.bf16.msra.mxu0 %v15298_v12  ;;  %3440 = vmatprep.mubr.bf16.mxu0 %v16577_v16  ;;  %v16683_v33 = vcombine.high %v2882_v39, %v2885_v37  ;;  %v15311_v12 = vld [vmem:[#allocation3 + $0x4cc] ss:$12 sps:$4 sm:$0xff]  }
 0x17b   : > { %3663 = vmatprep.mubr.bf16.mxu1 %v16661_v31  ;;  %4556 = vmatprep.subr.bf16.mxu0 %v15303_v46  ;;  %v2889_v46 = vsel %vm16533_vm5, %v12620_v42, %v2888_v17  ;;  %v15314_v17 = vld [vmem:[#allocation3 + $0x4e0] ss:$12 sps:$4 sm:$0xff]   ;;  %v15319_v42 = vld [vmem:[#allocation3 + $0x4fc] ss:$12 sps:$4 sm:$0xff]   ;;  %v15317_v59 = vld [vmem:[#allocation3 + $0x4f8] ss:$12 sps:$4 sm:$0xff]  }
 0x17c   : > { %v13564_v34 = vpop.f32.mrb[40].mxu1 }
 0x17d   : > { %v13565_v16 = vpop.f32.mrb[41].mxu1 }
 0x17e   : > { %4557 = vmatpush1.bf16.msra.mxu0 %v15301_v23  ;;  %v16685_v54 = vadd.f32 %v13565_v16, %v13564_v34  ;;  %v13567_v48 = vpop.f32.mrb[42].mxu1  ;;  %v16703_v23 = vcombine.low %v2882_v39, %v2885_v37  ;;  %v12621_v34 = vrot.slane %v2762_v7, 9  ;;  %v16713_v37 = vld [vmem:[%s16006_s9 + $0xe0] sm:$0xff]  ;;  %v16725_v7 = vcombine.low %v2889_v46, %v2892_v6 }
 0x17f   : > { %4558 = vmatprep.subr.bf16.mxu0 %v15308_v11  ;;  %v13568_v9 = vpop.f32.mrb[43].mxu1  ;;  %v16705_v11 = vcombine.high %v2889_v46, %v2892_v6  ;;  %v16735_v6 = vld [vmem:[%s16006_s9 + $0xf8] sm:$0xff] }
 0x180   : > { %v16688_v4 = vadd.f32 %v13568_v9, %v13567_v48  ;;  %v15324_v9 = vld [vmem:[#allocation3 + $0x514] ss:$12 sps:$4 sm:$0xff]   ;;  %19438 = vst [vmem:[#allocation16_spill] sm:$0xff] %v16735_v6 }
 0x181   : > { %3441 = vmatmul.mubr.bf16.gmra.mrb[4].mxu0 %v16596_v19  ;;  %3664 = vmatmul.mubr.bf16.gmra.mrb[148].mxu1 %v16681_v15  ;;  %v2895_v19 = vrot.slane %v16691_v26, 5 }
 0x182   : > { %3450 = vmatprep.mubr.bf16.mxu0 %v16598_v56  ;;  %3671 = vmatprep.mubr.bf16.mxu1 %v16683_v33 }
 0x183   : > { %4559 = vmatpush1.bf16.msra.mxu0 %v15306_v30  ;;  %v2897_v16 = vrot.slane %v2895_v19, 4  ;;  %v2898_v30 = vrot.slane %v2764_v32, 5  ;;  %v2896_v38 = vsel %vm16533_vm5, %v12621_v34, %v2895_v19  ;;  %v15322_v19 = vld [vmem:[#allocation3 + $0x510] ss:$12 sps:$4 sm:$0xff]  }
 0x184   : > { %4560 = vmatprep.subr.bf16.mxu0 %v15311_v12  ;;  %v13570_v8 = vpop.f32.mrb[44].mxu1 }
 0x185   : > { %v13571_v56 = vpop.f32.mrb[45].mxu1  ;;  %v2899_v12 = vsel %vm16533_vm5, %v2897_v16, %v2898_v30 }
 0x186   : > { %v16707_v5 = vadd.f32 %v13571_v56, %v13570_v8  ;;  %v13573_v35 = vpop.f32.mrb[46].mxu1  ;;  %v2767_v8 = vld [vmem:[%s16006_s9 + $0xe8] sm:$0x11]  ;;  %v16727_v32 = vcombine.high %v2896_v38, %v2899_v12 }
 0x187   : > { %4561 = vmatpush1.bf16.msra.mxu0 %v15309_v40  ;;  %v13574_v48 = vpop.f32.mrb[47].mxu1  ;;  %v2905_v30 = vrot.slane %v2767_v8, 5  ;;  %v2768_v8 = vld [vmem:[%s16006_s9 + $0xf0] sm:$0xee] }
 0x188   : > { %4562 = vmatprep.subr.bf16.mxu0 %v15316_v49  ;;  %v16710_v39 = vadd.f32 %v13574_v48, %v13573_v35  ;;  %v2765_v49 = vld [vmem:[%s16006_s9 + $0xd8] sm:$0xee]  ;;  %v15327_v48 = vld [vmem:[#allocation3 + $0x52c] ss:$12 sps:$4 sm:$0xff]  }
 0x189   : > { %3451 = vmatmul.mubr.bf16.gmra.mrb[8].mxu0 %v16615_v3  ;;  %3672 = vmatmul.mubr.bf16.gmra.mrb[152].mxu1 %v16703_v23  ;;  %v2902_v3 = vrot.slane %v16713_v37, 5  ;;  %v12622_v34 = vrot.slane %v2765_v49, 9 }
 0x18a   : > { %3460 = vmatprep.mubr.bf16.mxu0 %v16617_v14  ;;  %3679 = vmatprep.mubr.bf16.mxu1 %v16705_v11 }
 0x18b   : > { %4563 = vmatpush1.bf16.msra.mxu0 %v15314_v17  ;;  %v2904_v16 = vrot.slane %v2902_v3, 4 }
 0x18c   : > { %4564 = vmatprep.subr.bf16.mxu0 %v15319_v42  ;;  %v13576_v40 = vpop.f32.mrb[48].mxu1  ;;  %v15325_v42 = vld [vmem:[#allocation3 + $0x528] ss:$12 sps:$4 sm:$0xff]  }
 0x18d   : > { %v13577_v14 = vpop.f32.mrb[49].mxu1 }
 0x18e   : > { %v16729_v56 = vadd.f32 %v13577_v14, %v13576_v40  ;;  %v13579_v17 = vpop.f32.mrb[50].mxu1  ;;  %v15332_v40 = vld [vmem:[#allocation3 + $0x544] ss:$12 sps:$4 sm:$0xff]   ;;  %v2770_v14 = vld [vmem:[%s16006_s9 + $0x100] sm:$0x11] }
 0x18f   : > { %4565 = vmatpush1.bf16.msra.mxu0 %v15317_v59  ;;  %v13580_v35 = vpop.f32.mrb[51].mxu1  ;;  %v2903_v59 = vsel %vm16533_vm5, %v12622_v34, %v2902_v3  ;;  %v15330_v3 = vld [vmem:[#allocation3 + $0x540] ss:$12 sps:$4 sm:$0xff]  }
 0x190   : > { %19436 = vst [vmem:[#allocation14_spill] sm:$0xff] %v16729_v56  ;;  %4566 = vmatprep.subr.bf16.mxu0 %v15324_v9  ;;  %v16732_v46 = vadd.f32 %v13580_v35, %v13579_v17  ;;  %v2906_v9 = vsel %vm16533_vm5, %v2904_v16, %v2905_v30  ;;  %v16747_v17 = vcombine.low %v2896_v38, %v2899_v12  ;;  %v12623_v16 = vrot.slane %v2768_v8, 9  ;;  %v16757_v12 = vld [vmem:[%s16006_s9 + $0x110] sm:$0xff] }
 0x191   : > { %3461 = vmatmul.mubr.bf16.gmra.mrb[12].mxu0 %v16637_v47  ;;  %3680 = vmatmul.mubr.bf16.gmra.mrb[156].mxu1 %v16725_v7  ;;  %v2909_v47 = vrot.slane %v16735_v6, 5  ;;  %v16749_v35 = vcombine.high %v2903_v59, %v2906_v9  ;;  %v2912_v6 = vrot.slane %v2770_v14, 5  ;;  %19441 = vst [vmem:[#allocation19_spill] sm:$0xff] %v16757_v12  ;;  %v2771_v14 = vld [vmem:[%s16006_s9 + $0x108] sm:$0xee] }
 0x192   : > { %19437 = vst [vmem:[#allocation15_spill] sm:$0xff] %v16732_v46  ;;  %3470 = vmatprep.mubr.bf16.mxu0 %v16639_v41  ;;  %3687 = vmatprep.mubr.bf16.mxu1 %v16727_v32 }
 0x193   : > { %4567 = vmatpush1.bf16.msra.mxu0 %v15322_v19  ;;  %v2911_v30 = vrot.slane %v2909_v47, 4 }
 0x194   : > { %4568 = vmatprep.subr.bf16.mxu0 %v15327_v48  ;;  %v13582_v49 = vpop.f32.mrb[52].mxu1  ;;  %v15335_v48 = vld [vmem:[#allocation3 + $0x55c] ss:$12 sps:$4 sm:$0xff]  }
 0x195   : > { %v13583_v41 = vpop.f32.mrb[53].mxu1 }
 0x196   : > { %v16751_v19 = vadd.f32 %v13583_v41, %v13582_v49  ;;  %v13585_v61 = vpop.f32.mrb[54].mxu1  ;;  %v2913_v49 = vsel %vm16533_vm5, %v2911_v30, %v2912_v6  ;;  %v2773_v41 = vld [vmem:[%s16006_s9 + $0x118] sm:$0x11]  ;;  %v12624_v6 = vrot.slane %v2771_v14, 9 }
 0x197   : > { %4569 = vmatpush1.bf16.msra.mxu0 %v15325_v42  ;;  %v13586_v34 = vpop.f32.mrb[55].mxu1  ;;  %v15333_v42 = vld [vmem:[#allocation3 + $0x558] ss:$12 sps:$4 sm:$0xff]  }
 0x198   : > { %19439 = vst [vmem:[#allocation17_spill] sm:$0xff] %v16751_v19  ;;  %4570 = vmatprep.subr.bf16.mxu0 %v15332_v40  ;;  %v16754_v38 = vadd.f32 %v13586_v34, %v13585_v61  ;;  %v2910_v40 = vsel %vm16533_vm5, %v12623_v16, %v2909_v47  ;;  %v15340_v61 = vld [vmem:[#allocation3 + $0x574] ss:$12 sps:$4 sm:$0xff]   ;;  %v16769_v34 = vcombine.low %v2903_v59, %v2906_v9  ;;  %v15338_v47 = vld [vmem:[#allocation3 + $0x570] ss:$12 sps:$4 sm:$0xff]  }
 0x199   : > { %3471 = vmatmul.mubr.bf16.gmra.mrb[16].mxu0 %v16659_v18  ;;  %3688 = vmatmul.mubr.bf16.gmra.mrb[160].mxu1 %v16747_v17  ;;  %v2916_v18 = vrot.slane %v16757_v12, 5  ;;  %v16773_v19 = vcombine.high %v2910_v40, %v2913_v49  ;;  %v2919_v12 = vrot.slane %v2773_v41, 5  ;;  %v16779_v9 = vld [vmem:[%s16006_s9 + $0x128] sm:$0xff] }
 0x19a   : > { %19440 = vst [vmem:[#allocation18_spill] sm:$0xff] %v16754_v38  ;;  %3480 = vmatprep.mubr.bf16.mxu0 %v16661_v31  ;;  %3695 = vmatprep.mubr.bf16.mxu1 %v16749_v35  ;;  %19444 = vst [vmem:[#allocation22_spill] sm:$0xff] %v16779_v9  ;;  %v15352_v14 = vld [vmem:[#allocation3 + $0x5a4] ss:$12 sps:$4 sm:$0xff]  }
 0x19b   : > { %4571 = vmatpush1.bf16.msra.mxu0 %v15330_v3  ;;  %v2918_v30 = vrot.slane %v2916_v18, 4 }
 0x19c   : > { %4572 = vmatprep.subr.bf16.mxu0 %v15335_v48  ;;  %v13588_v8 = vpop.f32.mrb[56].mxu1  ;;  %v15343_v48 = vld [vmem:[#allocation3 + $0x58c] ss:$12 sps:$4 sm:$0xff]  }
 0x19d   : > { %v13589_v31 = vpop.f32.mrb[57].mxu1 }
 0x19e   : > { %v16771_v38 = vadd.f32 %v13589_v31, %v13588_v8  ;;  %v13591_v3 = vpop.f32.mrb[58].mxu1  ;;  %v2920_v8 = vsel %vm16533_vm5, %v2918_v30, %v2919_v12  ;;  %v2774_v31 = vld [vmem:[%s16006_s9 + $0x120] sm:$0xee] }
 0x19f   : > { %4573 = vmatpush1.bf16.msra.mxu0 %v15333_v42  ;;  %v13592_v16 = vpop.f32.mrb[59].mxu1  ;;  %v15341_v42 = vld [vmem:[#allocation3 + $0x588] ss:$12 sps:$4 sm:$0xff]   ;;  %v12625_v12 = vrot.slane %v2774_v31, 9 }
 0x1a0   : > { %19442 = vst [vmem:[#allocation20_spill] sm:$0xff] %v16771_v38  ;;  %4574 = vmatprep.subr.bf16.mxu0 %v15340_v61  ;;  %v16776_v59 = vadd.f32 %v13592_v16, %v13591_v3  ;;  %v2917_v61 = vsel %vm16533_vm5, %v12624_v6, %v2916_v18  ;;  %v2776_v3 = vld [vmem:[%s16006_s9 + $0x130] sm:$0x11] }
 0x1a1   : > { %3481 = vmatmul.mubr.bf16.gmra.mrb[20].mxu0 %v16681_v15  ;;  %3696 = vmatmul.mubr.bf16.gmra.mrb[164].mxu1 %v16769_v34  ;;  %v2923_v15 = vrot.slane %v16779_v9, 5  ;;  %v16795_v38 = vcombine.high %v2917_v61, %v2920_v8  ;;  %v15350_v18 = vld [vmem:[#allocation3 + $0x5a0] ss:$12 sps:$4 sm:$0xff]   ;;  %v2926_v9 = vrot.slane %v2776_v3, 5  ;;  %v2777_v3 = vld [vmem:[%s16006_s9 + $0x138] sm:$0xee] }
 0x1a2   : > { %19443 = vst [vmem:[#allocation21_spill] sm:$0xff] %v16776_v59  ;;  %3490 = vmatprep.mubr.bf16.mxu0 %v16683_v33  ;;  %3703 = vmatprep.mubr.bf16.mxu1 %v16773_v19  ;;  %v16791_v33 = vcombine.low %v2910_v40, %v2913_v49  ;;  %v16801_v40 = vld [vmem:[%s16006_s9 + $0x140] sm:$0xff] }
 0x1a3   : > { %4575 = vmatpush1.bf16.msra.mxu0 %v15338_v47  ;;  %v2925_v30 = vrot.slane %v2923_v15, 4  ;;  %19447 = vst [vmem:[#allocation25_spill] sm:$0xff] %v16801_v40  ;;  %v15354_v49 = vld [vmem:[#allocation3 + $0x5b8] ss:$12 sps:$4 sm:$0xff]  }
 0x1a4   : > { %4576 = vmatprep.subr.bf16.mxu0 %v15343_v48  ;;  %v13594_v41 = vpop.f32.mrb[60].mxu1  ;;  %v15356_v48 = vld [vmem:[#allocation3 + $0x5bc] ss:$12 sps:$4 sm:$0xff]  }
 0x1a5   : > { %v13595_v16 = vpop.f32.mrb[61].mxu1 }
 0x1a6   : > { %v16793_v59 = vadd.f32 %v13595_v16, %v13594_v41  ;;  %v13597_v47 = vpop.f32.mrb[62].mxu1  ;;  %v15361_v41 = vld [vmem:[#allocation3 + $0x5d4] ss:$12 sps:$4 sm:$0xff]  }
 0x1a7   : > { %4577 = vmatpush1.bf16.msra.mxu0 %v15341_v42  ;;  %v13598_v6 = vpop.f32.mrb[63].mxu1  ;;  %v2924_v42 = vsel %vm16533_vm5, %v12625_v12, %v2923_v15  ;;  %v2779_v16 = vld [vmem:[%s16006_s9 + $0x148] sm:$0x11]  ;;  %v15359_v15 = vld [vmem:[#allocation3 + $0x5d0] ss:$12 sps:$4 sm:$0xff]  }
 0x1a8   : > { %19445 = vst [vmem:[#allocation23_spill] sm:$0xff] %v16793_v59  ;;  %4578 = vmatprep.subr.bf16.mxu0 %v15352_v14  ;;  %v16798_v46 = vadd.f32 %v13598_v6, %v13597_v47  ;;  %v2927_v14 = vsel %vm16533_vm5, %v2925_v30, %v2926_v9  ;;  %v12626_v59 = vrot.slane %v2777_v3, 9  ;;  %v2933_v30 = vrot.slane %v2779_v16, 5  ;;  %v2780_v16 = vld [vmem:[%s16006_s9 + $0x150] sm:$0xee] }
 0x1a9   : > { %3491 = vmatmul.mubr.bf16.gmra.mrb[24].mxu0 %v16703_v23  ;;  %3704 = vmatmul.mubr.bf16.gmra.mrb[168].mxu1 %v16791_v33  ;;  %v2930_v23 = vrot.slane %v16801_v40, 5 }
 0x1aa   : > { %19446 = vst [vmem:[#allocation24_spill] sm:$0xff] %v16798_v46  ;;  %3500 = vmatprep.mubr.bf16.mxu0 %v16705_v11  ;;  %3711 = vmatprep.mubr.bf16.mxu1 %v16795_v38  ;;  %v16813_v11 = vcombine.low %v2917_v61, %v2920_v8  ;;  %v16815_v46 = vcombine.high %v2924_v42, %v2927_v14  ;;  %v16822_v61 = vld [vmem:[%s16006_s9 + $0x158] sm:$0xff] }
 0x1ab   : > { %4579 = vmatpush1.bf16.msra.mxu0 %v15350_v18  ;;  %v2932_v9 = vrot.slane %v2930_v23, 4 }
 0x1ac   : > { %4580 = vmatprep.subr.bf16.mxu0 %v15356_v48  ;;  %v13616_v31 = vpop.f32.mrb[64].mxu1  ;;  %v15366_v48 = vld [vmem:[#allocation3 + $0x5ec] ss:$12 sps:$4 sm:$0xff]  }
 0x1ad   : > { %v13617_v47 = vpop.f32.mrb[65].mxu1 }
 0x1ae   : > { %v13618_v6 = vadd.f32 %v13617_v47, %v13616_v31  ;;  %v13619_v18 = vpop.f32.mrb[66].mxu1  ;;  %v15374_v31 = vld [vmem:[#allocation3 + $0x604] ss:$12 sps:$4 sm:$0xff]  }
 0x1af   : > { %4581 = vmatpush1.bf16.msra.mxu0 %v15354_v49  ;;  %v13620_v12 = vpop.f32.mrb[67].mxu1  ;;  %v15364_v49 = vld [vmem:[#allocation3 + $0x5e8] ss:$12 sps:$4 sm:$0xff]  }
 0x1b0   : > { %4582 = vmatprep.subr.bf16.mxu0 %v15361_v41  ;;  %v16818_v40 = vadd.f32 %v13618_v6, %v16488_v29  ;;  %v13621_v56 = vadd.f32 %v13620_v12, %v13619_v18  ;;  %v2931_v29 = vsel %vm16533_vm5, %v12626_v59, %v2930_v23  ;;  %v2934_v41 = vsel %vm16533_vm5, %v2932_v9, %v2933_v30 }
 0x1b1   : > { %3501 = vmatmul.mubr.bf16.gmra.mrb[28].mxu0 %v16725_v7  ;;  %3712 = vmatmul.mubr.bf16.gmra.mrb[172].mxu1 %v16813_v11  ;;  %v2937_v7 = vrot.slane %v16822_v61, 5  ;;  %v16839_v18 = vcombine.high %v2931_v29, %v2934_v41  ;;  %v12627_v23 = vrot.slane %v2780_v16, 9 }
 0x1b2   : > { %3510 = vmatprep.mubr.bf16.mxu0 %v16727_v32  ;;  %v16827_v8 = vadd.f32 %v13621_v56, %v16491_v43  ;;  %3719 = vmatprep.mubr.bf16.mxu1 %v16815_v46  ;;  %v2782_v32 = vld [vmem:[%s16006_s9 + $0x160] sm:$0x11]  ;;  %v16837_v56 = vcombine.low %v2924_v42, %v2927_v14  ;;  %v16846_v42 = vld [vmem:[%s16006_s9 + $0x170] sm:$0xff] }
 0x1b3   : > { %4583 = vmatpush1.bf16.msra.mxu0 %v15359_v15  ;;  %v2939_v15 = vrot.slane %v2937_v7, 4  ;;  %v2940_v12 = vrot.slane %v2782_v32, 5  ;;  %v16861_v32 = vcombine.low %v2931_v29, %v2934_v41 }
 0x1b4   : > { %4584 = vmatprep.subr.bf16.mxu0 %v15366_v48  ;;  %v13622_v3 = vpop.f32.mrb[68].mxu1  ;;  %v2938_v48 = vsel %vm16533_vm5, %v12627_v23, %v2937_v7 }
 0x1b5   : > { %v13623_v43 = vpop.f32.mrb[69].mxu1 }
 0x1b6   : > { %v13624_v47 = vadd.f32 %v13623_v43, %v13622_v3  ;;  %v13625_v6 = vpop.f32.mrb[70].mxu1  ;;  %v2785_v3 = vld [vmem:[%s16006_s9 + $0x178] sm:$0x11] }
 0x1b7   : > { %4585 = vmatpush1.bf16.msra.mxu0 %v15364_v49  ;;  %v13626_v59 = vpop.f32.mrb[71].mxu1  ;;  %v2944_v49 = vrot.slane %v16846_v42, 5 }
 0x1b8   : > { %6077 = vmatprep.subr.bf16.mxu0 %v15374_v31  ;;  %v16842_v9 = vadd.f32 %v13624_v47, %v16496_v55  ;;  %v13627_v30 = vadd.f32 %v13626_v59, %v13625_v6  ;;  %v2941_v55 = vsel %vm16533_vm5, %v2939_v15, %v2940_v12  ;;  %v2783_v31 = vld [vmem:[%s16006_s9 + $0x168] sm:$0xee] }
 0x1b9   : > { %3511 = vmatmul.mubr.bf16.gmra.mrb[32].mxu0 %v16747_v17  ;;  %3720 = vmatmul.mubr.bf16.gmra.mrb[176].mxu1 %v16837_v56  ;;  %v12628_v6 = vrot.slane %v2783_v31, 9  ;;  %v2946_v59 = vrot.slane %v2944_v49, 4 }
 0x1ba   : > { %3520 = vmatprep.mubr.bf16.mxu0 %v16749_v35  ;;  %v16851_v14 = vadd.f32 %v13627_v30, %v16500_v36  ;;  %3727 = vmatprep.mubr.bf16.mxu1 %v16839_v18  ;;  %v16863_v36 = vcombine.high %v2938_v48, %v2941_v55  ;;  %v2947_v30 = vrot.slane %v2785_v3, 5 }
 0x1bb   : > { %v2945_v41 = vsel %vm16533_vm5, %v12628_v6, %v2944_v49  ;;  %v15746_v6 = vld [vmem:[%s16006_s9 + $0x20] sm:$0xff] }
 0x1bc   : > { %v13628_v17 = vpop.f32.mrb[72].mxu1 }
 0x1bd   : > { %v13629_v16 = vpop.f32.mrb[73].mxu1 }
 0x1be   : > { %v13630_v35 = vadd.f32 %v13629_v16, %v13628_v17  ;;  %v13631_v43 = vpop.f32.mrb[74].mxu1  ;;  %v16879_v17 = vcombine.low %v2938_v48, %v2941_v55  ;;  %v16894_v48 = vld [vmem:[%s16006_s9 + $0x18] sm:$0xff] }
 0x1bf   : > { %v13632_v47 = vpop.f32.mrb[75].mxu1 }
 0x1c0   : > { %v16866_v7 = vadd.f32 %v13630_v35, %v16511_v50  ;;  %v13633_v23 = vadd.f32 %v13632_v47, %v13631_v43  ;;  %v2948_v50 = vsel %vm16533_vm5, %v2946_v59, %v2947_v30 }
 0x1c1   : > { %3521 = vmatmul.mubr.bf16.gmra.mrb[36].mxu0 %v16769_v34  ;;  %3728 = vmatmul.mubr.bf16.gmra.mrb[180].mxu1 %v16861_v32  ;;  %v16896_v43 = vcombine.low %v2945_v41, %v2948_v50 }
 0x1c2   : > { %3530 = vmatprep.mubr.bf16.mxu0 %v16773_v19  ;;  %v16872_v29 = vadd.f32 %v13633_v23, %v16516_v22  ;;  %3735 = vmatprep.mubr.bf16.mxu1 %v16863_v36  ;;  %v16881_v19 = vcombine.high %v2945_v41, %v2948_v50  ;;  %v16913_v23 = vld [vmem:[%s16006_s9 + $0x30] sm:$0xff] }
 0x1c4   : > { %v13634_v15 = vpop.f32.mrb[76].mxu1 }
 0x1c5   : > { %v13635_v12 = vpop.f32.mrb[77].mxu1 }
 0x1c6   : > { %v13636_v34 = vadd.f32 %v13635_v12, %v13634_v15  ;;  %v13637_v31 = vpop.f32.mrb[78].mxu1  ;;  %v16916_v15 = vcombine.low %v16894_v48, %v15746_v6 }
 0x1c7   : > { %v13638_v22 = vpop.f32.mrb[79].mxu1 }
 0x1c8   : > { %v16884_v3 = vadd.f32 %v13636_v34, %v16530_v24  ;;  %v13639_v16 = vadd.f32 %v13638_v22, %v13637_v31 }
 0x1c9   : > { %3531 = vmatmul.mubr.bf16.gmra.mrb[40].mxu0 %v16791_v33  ;;  %3736 = vmatmul.mubr.bf16.gmra.mrb[184].mxu1 %v16879_v17  ;;  %v16900_v33 = vcombine.high %v16894_v48, %v15746_v6 }
 0x1ca   : > { %3540 = vmatprep.mubr.bf16.mxu0 %v16795_v38  ;;  %v16890_v49 = vadd.f32 %v13639_v16, %v16538_v13  ;;  %3743 = vmatprep.mubr.bf16.mxu1 %v16881_v19 }
 0x1cc   : > { %v13640_v55 = vpop.f32.mrb[80].mxu1 }
 0x1cd   : > { %v13641_v35 = vpop.f32.mrb[81].mxu1 }
 0x1ce   : > { %v13642_v24 = vadd.f32 %v13641_v35, %v13640_v55  ;;  %v13643_v47 = vpop.f32.mrb[82].mxu1  ;;  %v16933_v55 = vld [vmem:[%s16006_s9 + $0x48] sm:$0xff] }
 0x1cf   : > { %v13644_v59 = vpop.f32.mrb[83].mxu1  ;;  %v15392_v35 = vld [vmem:[#allocation3 + $0x6f8] ss:$12 sps:$4 sm:$0xff]  }
 0x1d0   : > { %v16903_v38 = vadd.f32 %v13642_v24, %v16553_v51  ;;  %v13645_v13 = vadd.f32 %v13644_v59, %v13643_v47  ;;  %v15747_v47 = vld [vmem:[%s16006_s9 + $0x38] sm:$0xff] }
 0x1d1   : > { %3541 = vmatmul.mubr.bf16.gmra.mrb[44].mxu0 %v16813_v11  ;;  %3744 = vmatmul.mubr.bf16.gmra.mrb[188].mxu1 %v16896_v43  ;;  %v16920_v11 = vcombine.high %v16913_v23, %v16556_v57  ;;  %v15381_v57 = vld [vmem:[#allocation3 + $0x620] ss:$12 sps:$4 sm:$0xff]  }
 0x1d2   : > { %3550 = vmatprep.mubr.bf16.mxu0 %v16815_v46  ;;  %v16909_v30 = vadd.f32 %v13645_v13, %v16560_v10  ;;  %4779 = vmatprep.mubr.bf16.mxu1 %v16900_v33  ;;  %v15369_v46 = vld [vmem:[#allocation3 + $0x608] ss:$12 sps:$4 sm:$0xff]   ;;  %v15380_v10 = vld [vmem:[#allocation3 + $0x6e0] ss:$12 sps:$4 sm:$0xff]  }
 0x1d4   : > { %v13646_v41 = vpop.f32.mrb[84].mxu1 }
 0x1d5   : > { %v13647_v50 = vpop.f32.mrb[85].mxu1 }
 0x1d6   : > { %v13648_v51 = vadd.f32 %v13647_v50, %v13646_v41  ;;  %v13649_v12 = vpop.f32.mrb[86].mxu1  ;;  %v15404_v41 = vld [vmem:[#allocation3 + $0x710] ss:$12 sps:$4 sm:$0xff]  }
 0x1d7   : > { %v13650_v34 = vpop.f32.mrb[87].mxu1 }
 0x1d8   : > { %v16923_v31 = vadd.f32 %v13648_v51, %v16579_v53  ;;  %v13651_v22 = vadd.f32 %v13650_v34, %v13649_v12  ;;  %v15416_v34 = vld [vmem:[#allocation3 + $0x728] ss:$12 sps:$4 sm:$0xff]  }
 0x1d9   : > { %3551 = vmatmul.mubr.bf16.gmra.mrb[48].mxu0 %v16837_v56  ;;  %4780 = vmatmul.mubr.bf16.vlgmr.msra.gmra.mrb[192].mxu1 %v16916_v15  ;;  %v16937_v56 = vcombine.low %v16913_v23, %v15747_v47 }
 0x1da   : > { %3560 = vmatprep.mubr.bf16.mxu0 %v16839_v18  ;;  %v16929_v16 = vadd.f32 %v13651_v22, %v16583_v1  ;;  %4787 = vmatprep.mubr.bf16.mxu1 %v16920_v11  ;;  %v16941_v1 = vcombine.high %v16933_v55, %v16575_v44  ;;  %v15393_v18 = vld [vmem:[#allocation3 + $0x638] ss:$12 sps:$4 sm:$0xff]   ;;  %v15405_v44 = vld [vmem:[#allocation3 + $0x650] ss:$12 sps:$4 sm:$0xff]   ;;  %v15748_v22 = vld [vmem:[%s16006_s9 + $0x50] sm:$0xff] }
 0x1db   : > { %13937 = vmatpush3.bf16.msra.mxu1 %v15369_v46  ;;  %v16954_v46 = vld [vmem:[%s16006_s9 + $0x60] sm:$0xff] }
 0x1dc   : > { %13938 = vmatprep.subr.bf16.mxu1 %v15380_v10  ;;  %v13652_v53 = vpop.f32.mrb[88].mxu1 }
 0x1dd   : > { %v13653_v24 = vpop.f32.mrb[89].mxu1 }
 0x1de   : > { %v13654_v6 = vadd.f32 %v13653_v24, %v13652_v53  ;;  %v13655_v59 = vpop.f32.mrb[90].mxu1  ;;  %v15428_v24 = vld [vmem:[#allocation3 + $0x740] ss:$12 sps:$4 sm:$0xff]  }
 0x1df   : > { %13939 = vmatpush3.bf16.msra.mxu1 %v15381_v57  ;;  %v13656_v13 = vpop.f32.mrb[91].mxu1 }
 0x1e0   : > { %13940 = vmatprep.subr.bf16.mxu1 %v15392_v35  ;;  %v16944_v50 = vadd.f32 %v13654_v6, %v16600_v27  ;;  %v13657_v51 = vadd.f32 %v13656_v13, %v13655_v59  ;;  %v16975_v13 = vld [vmem:[%s16006_s9 + $0x78] sm:$0xff] }
 0x1e1   : > { %3561 = vmatmul.mubr.bf16.gmra.mrb[52].mxu0 %v16861_v32  ;;  %4788 = vmatmul.mubr.bf16.gmra.mrb[196].mxu1 %v16937_v56  ;;  %v16958_v32 = vcombine.low %v16933_v55, %v15748_v22 }
 0x1e2   : > { %3570 = vmatprep.mubr.bf16.mxu0 %v16863_v36  ;;  %v16950_v12 = vadd.f32 %v13657_v51, %v16606_v63  ;;  %4795 = vmatprep.mubr.bf16.mxu1 %v16941_v1  ;;  %v16962_v63 = vcombine.high %v16954_v46, %v16594_v62  ;;  %v15417_v36 = vld [vmem:[#allocation3 + $0x668] ss:$12 sps:$4 sm:$0xff]  }
 0x1e3   : > { %13941 = vmatpush3.bf16.msra.mxu1 %v15393_v18  ;;  %v15429_v18 = vld [vmem:[#allocation3 + $0x680] ss:$12 sps:$4 sm:$0xff]  }
 0x1e4   : > { %13942 = vmatprep.subr.bf16.mxu1 %v15404_v41  ;;  %v13658_v27 = vpop.f32.mrb[92].mxu1  ;;  %v15441_v41 = vld [vmem:[#allocation3 + $0x758] ss:$12 sps:$4 sm:$0xff]  }
 0x1e5   : > { %v13659_v10 = vpop.f32.mrb[93].mxu1 }
 0x1e6   : > { %v13660_v57 = vadd.f32 %v13659_v10, %v13658_v27  ;;  %v13661_v35 = vpop.f32.mrb[94].mxu1  ;;  %v15443_v10 = vld [vmem:[#allocation3 + $0x770] ss:$12 sps:$4 sm:$0xff]  }
 0x1e7   : > { %13943 = vmatpush3.bf16.msra.mxu1 %v15405_v44  ;;  %v13662_v53 = vpop.f32.mrb[95].mxu1 }
 0x1e8   : > { %13944 = vmatprep.subr.bf16.mxu1 %v15416_v34  ;;  %v16965_v47 = vadd.f32 %v13660_v57, %v16619_v21  ;;  %v13663_v6 = vadd.f32 %v13662_v53, %v13661_v35  ;;  %v15444_v35 = vld [vmem:[#allocation3 + $0x6b0] ss:$12 sps:$4 sm:$0xff]  }
 0x1e9   : > { %3571 = vmatmul.mubr.bf16.gmra.mrb[56].mxu0 %v16879_v17  ;;  %4796 = vmatmul.mubr.bf16.gmra.mrb[200].mxu1 %v16958_v32  ;;  %v16979_v17 = vcombine.low %v16954_v46, %v16594_v62 }
 0x1ea   : > { %3580 = vmatprep.mubr.bf16.mxu0 %v16881_v19  ;;  %v16971_v59 = vadd.f32 %v13663_v6, %v16625_v60  ;;  %4803 = vmatprep.mubr.bf16.mxu1 %v16962_v63  ;;  %v16983_v60 = vcombine.high %v16975_v13, %v16622_v28  ;;  %v15442_v19 = vld [vmem:[#allocation3 + $0x698] ss:$12 sps:$4 sm:$0xff]  }
 0x1eb   : > { %13945 = vmatpush3.bf16.msra.mxu1 %v15417_v36  ;;  %v16996_v36 = vld [vmem:[%s16006_s9 + $0x90] sm:$0xff] }
 0x1ec   : > { %13946 = vmatprep.subr.bf16.mxu1 %v15428_v24  ;;  %v13664_v21 = vpop.f32.mrb[96].mxu1  ;;  %v17000_v24 = vcombine.low %v16975_v13, %v16622_v28  ;;  %v15377_v28 = vld [vmem:[#allocation3 + $0x618] ss:$12 sps:$4 sm:$0xff]  }
 0x1ed   : > { %v13665_v51 = vpop.f32.mrb[97].mxu1 }
 0x1ee   : > { %v13666_v44 = vadd.f32 %v13665_v51, %v13664_v21  ;;  %v13667_v34 = vpop.f32.mrb[98].mxu1 }
 0x1ef   : > { %13947 = vmatpush3.bf16.msra.mxu1 %v15429_v18  ;;  %v13668_v27 = vpop.f32.mrb[99].mxu1 }
 0x1f0   : > { %13948 = vmatprep.subr.bf16.mxu1 %v15441_v41  ;;  %v16986_v22 = vadd.f32 %v13666_v44, %v16641_v0  ;;  %v13669_v57 = vadd.f32 %v13668_v27, %v13667_v34  ;;  %v15379_v41 = vld [vmem:[#allocation3 + $0x61c] ss:$12 sps:$4 sm:$0xff]   ;;  %v12721_v27 = vld [vmem:[%s16006_s9 + $0xa8] sm:$0xff] }
 0x1f1   : > { %3581 = vmatmul.mubr.bf16.gmra.mrb[60].mxu0 %v16896_v43  ;;  %4804 = vmatmul.mubr.bf16.gmra.mrb[204].mxu1 %v16979_v17  ;;  %v15372_v43 = vld [vmem:[#allocation3 + $0x600] ss:$12 sps:$4 sm:$0xff]   ;;  %v15457_v44 = vld [vmem:[#allocation3 + $0x848] ss:$12 sps:$4 sm:$0xff]  }
 0x1f2   : > { %4586 = vmatprep.mubr.bf16.mxu0 %v16900_v33  ;;  %v16992_v62 = vadd.f32 %v13669_v57, %v16647_v58  ;;  %4811 = vmatprep.mubr.bf16.mxu1 %v16983_v60  ;;  %v17004_v58 = vcombine.high %v16996_v36, %v16645_v25 }
 0x1f3   : > { %13949 = vmatpush3.bf16.msra.mxu1 %v15442_v19  ;;  %v15386_v19 = vld [vmem:[#allocation3 + $0x634] ss:$12 sps:$4 sm:$0xff]  }
 0x1f4   : > { %13950 = vmatprep.subr.bf16.mxu1 %v15443_v10  ;;  %v13670_v53 = vpop.f32.mrb[100].mxu1 }
 0x1f5   : > { %v13671_v0 = vpop.f32.mrb[101].mxu1 }
 0x1f6   : > { %v13672_v6 = vadd.f32 %v13671_v0, %v13670_v53  ;;  %v13673_v18 = vpop.f32.mrb[102].mxu1  ;;  %v15391_v0 = vld [vmem:[#allocation3 + $0x64c] ss:$12 sps:$4 sm:$0xff]  }
 0x1f7   : > { %13951 = vmatpush3.bf16.msra.mxu1 %v15444_v35  ;;  %v13674_v33 = vpop.f32.mrb[103].mxu1 }
 0x1f8   : > { %v17007_v21 = vadd.f32 %v13672_v6, %v16663_v20  ;;  %v13675_v51 = vadd.f32 %v13674_v33, %v13673_v18  ;;  %14048 = vmatprep.subr.bf16.mxu1 %v15457_v44  ;;  %v15389_v18 = vld [vmem:[#allocation3 + $0x648] ss:$12 sps:$4 sm:$0xff]   ;;  %v12723_v33 = vld [vmem:[%s16006_s9 + $0xc0] sm:$0xff]  ;;  %v17036_v44 = vcombine.low %v12721_v27, %v16667_v2 }
 0x1f9   : > { %4587 = vmatmul.mubr.bf16.vlgmr.msra.gmra.mrb[0].mxu0 %v16916_v15  ;;  %4812 = vmatmul.mubr.bf16.gmra.mrb[208].mxu1 %v17000_v24  ;;  %v17019_v15 = vcombine.low %v16996_v36, %v16645_v25 }
 0x1fa   : > { %6078 = vmatpush1.bf16.msra.mxu0 %v15372_v43  ;;  %v17012_v34 = vadd.f32 %v13675_v51, %v16669_v52  ;;  %4596 = vmatprep.mubr.bf16.mxu0 %v16920_v11  ;;  %v17022_v52 = vcombine.high %v12721_v27, %v16667_v2  ;;  %v15384_v11 = vld [vmem:[#allocation3 + $0x630] ss:$12 sps:$4 sm:$0xff]   ;;  %v15401_v27 = vld [vmem:[#allocation3 + $0x678] ss:$12 sps:$4 sm:$0xff]  }
 0x1fb   : > { %4819 = vmatprep.mubr.bf16.mxu1 %v17004_v58  ;;  %6079 = vmatprep.subr.bf16.mxu0 %v15379_v41  ;;  %v15398_v41 = vld [vmem:[#allocation3 + $0x664] ss:$12 sps:$4 sm:$0xff]  }
 0x1fc   : > { %v13676_v20 = vpop.f32.mrb[104].mxu1 }
 0x1fd   : > { %v13677_v10 = vpop.f32.mrb[105].mxu1 }
 0x1fe   : > { %6080 = vmatpush1.bf16.msra.mxu0 %v15377_v28  ;;  %v13678_v57 = vadd.f32 %v13677_v10, %v13676_v20  ;;  %v13679_v35 = vpop.f32.mrb[106].mxu1  ;;  %v15403_v20 = vld [vmem:[#allocation3 + $0x67c] ss:$12 sps:$4 sm:$0xff]  }
 0x1ff   : > { %6081 = vmatprep.subr.bf16.mxu0 %v15386_v19  ;;  %v13680_v53 = vpop.f32.mrb[107].mxu1 }
 0x200   : > { %v17025_v43 = vadd.f32 %v13678_v57, %v16685_v54  ;;  %v13681_v6 = vadd.f32 %v13680_v53, %v13679_v35  ;;  %v12725_v35 = vld [vmem:[%s16006_s9 + $0xd8] sm:$0xff] }
 0x201   : > { %4597 = vmatmul.mubr.bf16.gmra.mrb[4].mxu0 %v16937_v56  ;;  %4820 = vmatmul.mubr.bf16.gmra.mrb[212].mxu1 %v17019_v15 }
 0x202   : > { %4606 = vmatprep.mubr.bf16.mxu0 %v16941_v1  ;;  %v17031_v25 = vadd.f32 %v13681_v6, %v16688_v4  ;;  %4827 = vmatprep.mubr.bf16.mxu1 %v17022_v52  ;;  %v17039_v1 = vcombine.high %v12723_v33, %v16691_v26  ;;  %v15396_v4 = vld [vmem:[#allocation3 + $0x660] ss:$12 sps:$4 sm:$0xff]  }
 0x203   : > { %6082 = vmatpush1.bf16.msra.mxu0 %v15384_v11  ;;  %v15410_v11 = vld [vmem:[#allocation3 + $0x694] ss:$12 sps:$4 sm:$0xff]  }
 0x204   : > { %6083 = vmatprep.subr.bf16.mxu0 %v15391_v0  ;;  %v13682_v51 = vpop.f32.mrb[108].mxu1  ;;  %v17053_v0 = vcombine.low %v12723_v33, %v16691_v26  ;;  %v19449_v26 = vld [vmem:[#allocation15_spill] sm:$0xff] }
 0x205   : > { %v13683_v54 = vpop.f32.mrb[109].mxu1 }
 0x206   : > { %v13684_v56 = vadd.f32 %v13683_v54, %v13682_v51  ;;  %v13685_v28 = vpop.f32.mrb[110].mxu1  ;;  %v19448_v51 = vld [vmem:[#allocation14_spill] sm:$0xff] }
 0x207   : > { %6084 = vmatpush1.bf16.msra.mxu0 %v15389_v18  ;;  %v13686_v19 = vpop.f32.mrb[111].mxu1 }
 0x208   : > { %6085 = vmatprep.subr.bf16.mxu0 %v15398_v41  ;;  %v17042_v10 = vadd.f32 %v13684_v56, %v16707_v5  ;;  %v13687_v57 = vadd.f32 %v13686_v19, %v13685_v28  ;;  %v15415_v41 = vld [vmem:[#allocation3 + $0x6ac] ss:$12 sps:$4 sm:$0xff]   ;;  %v15413_v28 = vld [vmem:[#allocation3 + $0x6a8] ss:$12 sps:$4 sm:$0xff]   ;;  %v15422_v19 = vld [vmem:[#allocation3 + $0x6c4] ss:$12 sps:$4 sm:$0xff]  }
 0x209   : > { %4607 = vmatmul.mubr.bf16.gmra.mrb[8].mxu0 %v16958_v32  ;;  %4828 = vmatmul.mubr.bf16.gmra.mrb[216].mxu1 %v17036_v44 }
 0x20a   : > { %4616 = vmatprep.mubr.bf16.mxu0 %v16962_v63  ;;  %v17048_v2 = vadd.f32 %v13687_v57, %v16710_v39  ;;  %4835 = vmatprep.mubr.bf16.mxu1 %v17039_v1  ;;  %v17056_v63 = vcombine.high %v12725_v35, %v16713_v37  ;;  %v15408_v39 = vld [vmem:[#allocation3 + $0x690] ss:$12 sps:$4 sm:$0xff]  }
 0x20b   : > { %6086 = vmatpush1.bf16.msra.mxu0 %v15396_v4  ;;  %v12727_v4 = vld [vmem:[%s16006_s9 + $0xf0] sm:$0xff] }
 0x20c   : > { %6087 = vmatprep.subr.bf16.mxu0 %v15403_v20  ;;  %v13688_v53 = vpop.f32.mrb[112].mxu1 }
 0x20d   : > { %v13689_v5 = vpop.f32.mrb[113].mxu1 }
 0x20e   : > { %v13690_v32 = vadd.f32 %v13689_v5, %v13688_v53  ;;  %v13691_v6 = vpop.f32.mrb[114].mxu1  ;;  %v19450_v53 = vld [vmem:[#allocation16_spill] sm:$0xff] }
 0x20f   : > { %6088 = vmatpush1.bf16.msra.mxu0 %v15401_v27  ;;  %v13692_v18 = vpop.f32.mrb[115].mxu1  ;;  %v17070_v27 = vcombine.low %v12725_v35, %v16713_v37  ;;  %v15420_v5 = vld [vmem:[#allocation3 + $0x6c0] ss:$12 sps:$4 sm:$0xff]   ;;  %v19452_v37 = vld [vmem:[#allocation18_spill] sm:$0xff] }
 0x210   : > { %6089 = vmatprep.subr.bf16.mxu0 %v15410_v11  ;;  %v17059_v54 = vadd.f32 %v13690_v32, %v19448_v51  ;;  %v13693_v56 = vadd.f32 %v13692_v18, %v13691_v6  ;;  %v15427_v6 = vld [vmem:[#allocation3 + $0x6dc] ss:$12 sps:$4 sm:$0xff]   ;;  %v15425_v51 = vld [vmem:[#allocation3 + $0x6d8] ss:$12 sps:$4 sm:$0xff]  }
 0x211   : > { %4617 = vmatmul.mubr.bf16.gmra.mrb[12].mxu0 %v16979_v17  ;;  %4836 = vmatmul.mubr.bf16.gmra.mrb[220].mxu1 %v17053_v0 }
 0x212   : > { %4626 = vmatprep.mubr.bf16.mxu0 %v16983_v60  ;;  %v17065_v33 = vadd.f32 %v13693_v56, %v19449_v26  ;;  %4843 = vmatprep.mubr.bf16.mxu1 %v17056_v63  ;;  %v17073_v60 = vcombine.high %v12727_v4, %v19450_v53  ;;  %v12729_v56 = vld [vmem:[%s16006_s9 + $0x108] sm:$0xff] }
 0x213   : > { %6090 = vmatpush1.bf16.msra.mxu0 %v15408_v39  ;;  %v19451_v39 = vld [vmem:[#allocation17_spill] sm:$0xff]  ;;  %v15434_v26 = vld [vmem:[#allocation3 + $0x6f4] ss:$12 sps:$4 sm:$0xff]  }
 0x214   : > { %6091 = vmatprep.subr.bf16.mxu0 %v15415_v41  ;;  %v13694_v20 = vpop.f32.mrb[116].mxu1 }
 0x215   : > { %v13695_v57 = vpop.f32.mrb[117].mxu1 }
 0x216   : > { %v13696_v17 = vadd.f32 %v13695_v57, %v13694_v20  ;;  %v13697_v11 = vpop.f32.mrb[118].mxu1  ;;  %v17087_v20 = vcombine.low %v12727_v4, %v19450_v53  ;;  %v19455_v4 = vld [vmem:[#allocation21_spill] sm:$0xff] }
 0x217   : > { %6092 = vmatpush1.bf16.msra.mxu0 %v15413_v28  ;;  %v13698_v32 = vpop.f32.mrb[119].mxu1 }
 0x218   : > { %6093 = vmatprep.subr.bf16.mxu0 %v15422_v19  ;;  %v17076_v18 = vadd.f32 %v13696_v17, %v19451_v39  ;;  %v13699_v41 = vadd.f32 %v13698_v32, %v13697_v11  ;;  %v19453_v17 = vld [vmem:[#allocation19_spill] sm:$0xff]  ;;  %v19454_v39 = vld [vmem:[#allocation20_spill] sm:$0xff] }
 0x219   : > { %4627 = vmatmul.mubr.bf16.gmra.mrb[16].mxu0 %v17000_v24  ;;  %4844 = vmatmul.mubr.bf16.gmra.mrb[224].mxu1 %v17070_v27  ;;  %v15432_v11 = vld [vmem:[#allocation3 + $0x6f0] ss:$12 sps:$4 sm:$0xff]  }
 0x21a   : > { %4636 = vmatprep.mubr.bf16.mxu0 %v17004_v58  ;;  %v17082_v35 = vadd.f32 %v13699_v41, %v19452_v37  ;;  %4851 = vmatprep.mubr.bf16.mxu1 %v17073_v60  ;;  %v17090_v58 = vcombine.high %v12729_v56, %v19453_v17  ;;  %v15438_v37 = vld [vmem:[#allocation3 + $0x708] ss:$12 sps:$4 sm:$0xff]  }
 0x21b   : > { %6094 = vmatpush1.bf16.msra.mxu0 %v15420_v5  ;;  %v15440_v5 = vld [vmem:[#allocation3 + $0x70c] ss:$12 sps:$4 sm:$0xff]  }
 0x21c   : > { %6095 = vmatprep.subr.bf16.mxu0 %v15427_v6  ;;  %v13700_v28 = vpop.f32.mrb[120].mxu1 }
 0x21d   : > { %v13701_v19 = vpop.f32.mrb[121].mxu1 }
 0x21e   : > { %v13702_v24 = vadd.f32 %v13701_v19, %v13700_v28  ;;  %v13703_v57 = vpop.f32.mrb[122].mxu1 }
 0x21f   : > { %6096 = vmatpush1.bf16.msra.mxu0 %v15425_v51  ;;  %v13704_v32 = vpop.f32.mrb[123].mxu1  ;;  %v12731_v51 = vld [vmem:[%s16006_s9 + $0x120] sm:$0xff] }
 0x220   : > { %6097 = vmatprep.subr.bf16.mxu0 %v15434_v26  ;;  %v17093_v41 = vadd.f32 %v13702_v24, %v19454_v39  ;;  %v13705_v6 = vadd.f32 %v13704_v32, %v13703_v57  ;;  %v15447_v26 = vld [vmem:[#allocation3 + $0x724] ss:$12 sps:$4 sm:$0xff]   ;;  %v17104_v24 = vcombine.low %v12729_v56, %v19453_v17  ;;  %v15445_v39 = vld [vmem:[#allocation3 + $0x720] ss:$12 sps:$4 sm:$0xff]  }
 0x221   : > { %4637 = vmatmul.mubr.bf16.gmra.mrb[20].mxu0 %v17019_v15  ;;  %4852 = vmatmul.mubr.bf16.gmra.mrb[228].mxu1 %v17087_v20  ;;  %v19456_v32 = vld [vmem:[#allocation22_spill] sm:$0xff]  ;;  %v19458_v56 = vld [vmem:[#allocation24_spill] sm:$0xff] }
 0x222   : > { %4646 = vmatprep.mubr.bf16.mxu0 %v17022_v52  ;;  %v17099_v53 = vadd.f32 %v13705_v6, %v19455_v4  ;;  %4859 = vmatprep.mubr.bf16.mxu1 %v17090_v58  ;;  %v17107_v52 = vcombine.high %v12731_v51, %v19456_v32  ;;  %v19457_v4 = vld [vmem:[#allocation23_spill] sm:$0xff] }
 0x223   : > { %6098 = vmatpush1.bf16.msra.mxu0 %v15432_v11  ;;  %v15450_v11 = vld [vmem:[#allocation3 + $0x73c] ss:$12 sps:$4 sm:$0xff]  }
 0x224   : > { %6099 = vmatprep.subr.bf16.mxu0 %v15440_v5  ;;  %v13706_v28 = vpop.f32.mrb[124].mxu1 }
 0x225   : > { %v13707_v19 = vpop.f32.mrb[125].mxu1 }
 0x226   : > { %v13708_v15 = vadd.f32 %v13707_v19, %v13706_v28  ;;  %v13709_v57 = vpop.f32.mrb[126].mxu1  ;;  %v12733_v28 = vld [vmem:[%s16006_s9 + $0x138] sm:$0xff] }
 0x227   : > { %6100 = vmatpush1.bf16.msra.mxu0 %v15438_v37  ;;  %v13710_v6 = vpop.f32.mrb[127].mxu1  ;;  %v15448_v37 = vld [vmem:[#allocation3 + $0x738] ss:$12 sps:$4 sm:$0xff]  }
 0x228   : > { %6101 = vmatprep.subr.bf16.mxu0 %v15447_v26  ;;  %v17110_v45 = vadd.f32 %v13708_v15, %v19457_v4  ;;  %v13711_v5 = vadd.f32 %v13710_v6, %v13709_v57  ;;  %v15453_v26 = vld [vmem:[#allocation3 + $0x754] ss:$12 sps:$4 sm:$0xff]   ;;  %v17121_v57 = vcombine.low %v12731_v51, %v19456_v32  ;;  %v19460_v4 = vld [vmem:[#allocation25_spill] sm:$0xff] }
 0x229   : > { %4647 = vmatmul.mubr.bf16.gmra.mrb[24].mxu0 %v17036_v44  ;;  %4860 = vmatmul.mubr.bf16.gmra.mrb[232].mxu1 %v17104_v24  ;;  %v15454_v32 = vld [vmem:[#allocation3 + $0x768] ss:$12 sps:$4 sm:$0xff]  }
 0x22a   : > { %4656 = vmatprep.mubr.bf16.mxu0 %v17039_v1  ;;  %v17116_v17 = vadd.f32 %v13711_v5, %v19458_v56  ;;  %4867 = vmatprep.mubr.bf16.mxu1 %v17107_v52  ;;  %v17124_v1 = vcombine.high %v12733_v28, %v19460_v4  ;;  %v15451_v5 = vld [vmem:[#allocation3 + $0x750] ss:$12 sps:$4 sm:$0xff]  }
 0x22b   : > { %6102 = vmatpush1.bf16.msra.mxu0 %v15445_v39  ;;  %v15456_v39 = vld [vmem:[#allocation3 + $0x76c] ss:$12 sps:$4 sm:$0xff]  }
 0x22c   : > { %19459 = vst [vmem:[#allocation14_spill] sm:$0xff] %v17116_v17  ;;  %6103 = vmatprep.subr.bf16.mxu0 %v15450_v11  ;;  %v13728_v19 = vpop.f32.mrb[128].mxu1 }
 0x22d   : > { %v13729_v15 = vpop.f32.mrb[129].mxu1 }
 0x22e   : > { %v13730_v44 = vadd.f32 %v13729_v15, %v13728_v19  ;;  %v13731_v6 = vpop.f32.mrb[130].mxu1  ;;  %v17138_v15 = vcombine.low %v12733_v28, %v19460_v4  ;;  %v5245_v28 = vshrl.u32 %v16894_v48, 16  ;;  %v5248_v4 = vshll.u32 %v16894_v48, 16 }
 0x22f   : > { %6104 = vmatpush1.bf16.msra.mxu0 %v15448_v37  ;;  %v13732_v56 = vpop.f32.mrb[131].mxu1  ;;  %v12735_v37 = vld [vmem:[%s16006_s9 + $0x150] sm:$0xff] }
 0x230   : > { %6105 = vmatprep.subr.bf16.mxu0 %v15453_v26  ;;  %v17127_v17 = vadd.f32 %v13730_v44, %v16818_v40  ;;  %v13733_v11 = vadd.f32 %v13732_v56, %v13731_v6  ;;  %v15461_v26 = vld [vmem:[#allocation3 + $0x784] ss:$12 sps:$4 sm:$0xff]   ;;  %v17141_v6 = vcombine.high %v12735_v37, %v16822_v61 }
 0x231   : > { %4657 = vmatmul.mubr.bf16.gmra.mrb[28].mxu0 %v17053_v0  ;;  %4868 = vmatmul.mubr.bf16.gmra.mrb[236].mxu1 %v17121_v57 }
 0x232   : > { %19461 = vst [vmem:[#allocation15_spill] sm:$0xff] %v17127_v17  ;;  %4666 = vmatprep.mubr.bf16.mxu0 %v17056_v63  ;;  %v17133_v51 = vadd.f32 %v13733_v11, %v16827_v8  ;;  %4875 = vmatprep.mubr.bf16.mxu1 %v17124_v1  ;;  %v12822_v8 = vld [vmem:[%s16006_s9 + $0x20] sm:$0xff] }
 0x233   : > { %6106 = vmatpush1.bf16.msra.mxu0 %v15451_v5  ;;  %v5258_v11 = vshrl.u32 %v12822_v8, 16 }
 0x234   : > { %19462 = vst [vmem:[#allocation16_spill] sm:$0xff] %v17133_v51  ;;  %6107 = vmatprep.subr.bf16.mxu0 %v15456_v39  ;;  %v13734_v40 = vpop.f32.mrb[132].mxu1  ;;  %v5254_v39 = vshll.u32 %v12822_v8, 16 }
 0x235   : > { %v13735_v19 = vpop.f32.mrb[133].mxu1 }
 0x236   : > { %v13736_v0 = vadd.f32 %v13735_v19, %v13734_v40  ;;  %v13737_v44 = vpop.f32.mrb[134].mxu1  ;;  %v5247_v40 = vrot.slane %v5245_v28, 4  ;;  %v17158_v19 = vcombine.low %v12735_v37, %v16822_v61 }
 0x237   : > { %6108 = vmatpush1.bf16.msra.mxu0 %v15454_v32  ;;  %v13738_v63 = vpop.f32.mrb[135].mxu1 }
 0x238   : > { %7376 = vmatprep.subr.bf16.mxu0 %v15461_v26  ;;  %v17145_v5 = vadd.f32 %v13736_v0, %v16842_v9  ;;  %v13739_v56 = vadd.f32 %v13738_v63, %v13737_v44  ;;  %v12737_v9 = vld [vmem:[%s16006_s9 + $0x168] sm:$0xff]  ;;  %v5250_v44 = vrot.slane %v5248_v4, 5  ;;  %v5260_v63 = vrot.slane %v5258_v11, 4 }
 0x239   : > { %4667 = vmatmul.mubr.bf16.gmra.mrb[32].mxu0 %v17070_v27  ;;  %4876 = vmatmul.mubr.bf16.gmra.mrb[240].mxu1 %v17138_v15  ;;  %v12823_v0 = vld [vmem:[%s16006_s9 + $0x28] sm:$0x11]  ;;  %v17162_v8 = vcombine.high %v12737_v9, %v16846_v42  ;;  %v5272_v11 = vshll.u32 %v16913_v23, 16 }
 0x23a   : > { %19463 = vst [vmem:[#allocation17_spill] sm:$0xff] %v17145_v5  ;;  %4676 = vmatprep.mubr.bf16.mxu0 %v17073_v60  ;;  %v17153_v32 = vadd.f32 %v13739_v56, %v16851_v14  ;;  %4883 = vmatprep.mubr.bf16.mxu1 %v17141_v6  ;;  %v5256_v60 = vrot.slane %v5254_v39, 5  ;;  %v12825_v56 = vld [vmem:[%s16006_s9 + $0x38] sm:$0xff]  ;;  %v5264_v61 = vshll.u32 %v12823_v0, 16  ;;  %v5251_v37 = vor.u32 %v5250_v44, %v5247_v40  ;;  %v17181_v0 = vld [vmem:[%s16006_s9 + $0x184] ss:$8 sps:$4 sm:$0xff]  }
 0x23b   : > { %v5269_v39 = vshrl.u32 %v16913_v23, 16 }
 0x23c   : > { %19464 = vst [vmem:[#allocation18_spill] sm:$0xff] %v17153_v32  ;;  %v13740_v26 = vpop.f32.mrb[136].mxu1  ;;  %v5261_v4 = vor.u32 %v5260_v63, %v5256_v60  ;;  %v5252_v44 = vrot.slane %v5251_v37, 4 }
 0x23d   : > { %v13741_v27 = vpop.f32.mrb[137].mxu1  ;;  %v5271_v23 = vrot.slane %v5269_v39, 4 }
 0x23e   : > { %v13742_v48 = vadd.f32 %v13741_v27, %v13740_v26  ;;  %v13743_v5 = vpop.f32.mrb[138].mxu1  ;;  %v17178_v27 = vcombine.low %v12737_v9, %v16846_v42  ;;  %v5262_v63 = vrot.slane %v5261_v4, 4  ;;  %v12828_v9 = vld [vmem:[%s16006_s9 + $0x50] sm:$0xff]  ;;  %v5257_v37 = vsel %vm16156_vm2, %v5252_v44, %v5256_v60 }
 0x23f   : > { %v13744_v14 = vpop.f32.mrb[139].mxu1 }
 0x240   : > { %v17166_v32 = vadd.f32 %v13742_v48, %v16866_v7  ;;  %v13745_v28 = vadd.f32 %v13744_v14, %v13743_v5  ;;  %v5278_v7 = vshll.u32 %v12825_v56, 16  ;;  %v5282_v5 = vshrl.u32 %v12825_v56, 16 }
 0x241   : > { %4677 = vmatmul.mubr.bf16.gmra.mrb[36].mxu0 %v17087_v20  ;;  %4884 = vmatmul.mubr.bf16.gmra.mrb[244].mxu1 %v17158_v19  ;;  %v5274_v48 = vrot.slane %v5272_v11, 5 }
 0x242   : > { %19465 = vst [vmem:[#allocation19_spill] sm:$0xff] %v17166_v32  ;;  %4686 = vmatprep.mubr.bf16.mxu0 %v17090_v58  ;;  %v17174_v26 = vadd.f32 %v13745_v28, %v16872_v29  ;;  %4891 = vmatprep.mubr.bf16.mxu1 %v17162_v8  ;;  %v5266_v58 = vrot.slane %v5264_v61, 5  ;;  %v12826_v28 = vld [vmem:[%s16006_s9 + $0x40] sm:$0x11]  ;;  %v5284_v32 = vrot.slane %v5282_v5, 4  ;;  %v5306_v5 = vshrl.u32 %v12828_v9, 16 }
 0x243   : > { %v5275_v39 = vor.u32 %v5274_v48, %v5271_v23  ;;  %v5288_v11 = vshll.u32 %v12826_v28, 16  ;;  %v15529_v61 = vld [vmem:[#allocation3 + $0x9e0] ss:$12 sps:$4 sm:$0xff]  }
 0x244   : > { %19466 = vst [vmem:[#allocation20_spill] sm:$0xff] %v17174_v26  ;;  %v13746_v20 = vpop.f32.mrb[140].mxu1  ;;  %v5280_v26 = vrot.slane %v5278_v7, 5  ;;  %v5267_v4 = vsel %vm16156_vm2, %v5262_v63, %v5266_v58  ;;  %v5296_v7 = vshll.u32 %v16933_v55, 16 }
 0x245   : > { %v13747_v40 = vpop.f32.mrb[141].mxu1  ;;  %v17204_v58 = vcombine.high %v5257_v37, %v5267_v4  ;;  %v5276_v44 = vrot.slane %v5275_v39, 4  ;;  %v5290_v63 = vrot.slane %v5288_v11, 5  ;;  %v12829_v39 = vld [vmem:[%s16006_s9 + $0x58] sm:$0x11] }
 0x246   : > { %v13748_v14 = vadd.f32 %v13747_v40, %v13746_v20  ;;  %v13749_v29 = vpop.f32.mrb[142].mxu1  ;;  %v17202_v40 = vld [vmem:[%s16006_s9 + $0x180] ss:$8 sps:$4 sm:$0xff]  }
 0x247   : > { %v13750_v51 = vpop.f32.mrb[143].mxu1 }
 0x248   : > { %v17185_v56 = vadd.f32 %v13748_v14, %v16884_v3  ;;  %v13751_v42 = vadd.f32 %v13750_v51, %v13749_v29  ;;  %v5293_v51 = vshrl.u32 %v16933_v55, 16  ;;  %v5298_v29 = vrot.slane %v5296_v7, 5 }
 0x249   : > { %4687 = vmatmul.mubr.bf16.gmra.mrb[40].mxu0 %v17104_v24  ;;  %4892 = vmatmul.mubr.bf16.gmra.mrb[248].mxu1 %v17178_v27  ;;  %v5285_v24 = vor.u32 %v5284_v32, %v5280_v26  ;;  %v5308_v55 = vrot.slane %v5306_v5, 4  ;;  %v5312_v7 = vshll.u32 %v12829_v39, 16 }
 0x24a   : > { %19467 = vst [vmem:[#allocation21_spill] sm:$0xff] %v17185_v56  ;;  %4696 = vmatprep.mubr.bf16.mxu0 %v17107_v52  ;;  %v17196_v3 = vadd.f32 %v13751_v42, %v16890_v49  ;;  %4899 = vmatprep.mubr.bf16.mxu1 %v17181_v0  ;;  %v5302_v52 = vshll.u32 %v12828_v9, 16  ;;  %v12831_v49 = vld [vmem:[%s16006_s9 + $0x68] sm:$0xff]  ;;  %v5295_v32 = vrot.slane %v5293_v51, 4  ;;  %v5317_v9 = vshrl.u32 %v16954_v46, 16 }
 0x24b   : > { %v5286_v14 = vrot.slane %v5285_v24, 4  ;;  %v5326_v11 = vshll.u32 %v12831_v49, 16 }
 0x24c   : > { %19469 = vst [vmem:[#allocation22_spill] sm:$0xff] %v17196_v3  ;;  %v13752_v20 = vpop.f32.mrb[144].mxu1  ;;  %v5304_v42 = vrot.slane %v5302_v52, 5  ;;  %v5320_v3 = vshll.u32 %v16954_v46, 16  ;;  %v5319_v52 = vrot.slane %v5317_v9, 4 }
 0x24d   : > { %v13753_v60 = vpop.f32.mrb[145].mxu1  ;;  %v5291_v46 = vsel %vm16156_vm2, %v5286_v14, %v5290_v63  ;;  %v15465_v9 = vld [vmem:[#allocation3 + $0x860] ss:$12 sps:$4 sm:$0xff]  }
 0x24e   : > { %v13754_v23 = vadd.f32 %v13753_v60, %v13752_v20  ;;  %v13755_v48 = vpop.f32.mrb[146].mxu1  ;;  %v5330_v20 = vshrl.u32 %v12831_v49, 16  ;;  %v5309_v51 = vor.u32 %v5308_v55, %v5304_v42  ;;  %v5322_v5 = vrot.slane %v5320_v3, 5 }
 0x24f   : > { %v13756_v28 = vpop.f32.mrb[147].mxu1  ;;  %v5328_v49 = vrot.slane %v5326_v11, 5  ;;  %v5341_v11 = vshrl.u32 %v16975_v13, 16 }
 0x250   : > { %v17210_v56 = vadd.f32 %v13754_v23, %v16903_v38  ;;  %v13757_v17 = vadd.f32 %v13756_v28, %v13755_v48  ;;  %v5281_v38 = vsel %vm16156_vm2, %v5276_v44, %v5280_v26  ;;  %v15458_v26 = vld [vmem:[#allocation3 + $0x788] ss:$12 sps:$4 sm:$0xff]   ;;  %v12834_v44 = vld [vmem:[%s16006_s9 + $0x80] sm:$0xff]  ;;  %v5323_v55 = vor.u32 %v5322_v5, %v5319_v52 }
 0x251   : > { %4697 = vmatmul.mubr.bf16.gmra.mrb[44].mxu0 %v17121_v57  ;;  %4900 = vmatmul.mubr.bf16.gmra.mrb[252].mxu1 %v17202_v40  ;;  %v5299_v57 = vor.u32 %v5298_v29, %v5295_v32  ;;  %v5310_v32 = vrot.slane %v5309_v51, 4  ;;  %v5314_v29 = vrot.slane %v5312_v7, 5  ;;  %v5354_v51 = vshrl.u32 %v12834_v44, 16 }
 0x252   : > { %4706 = vmatprep.mubr.bf16.mxu0 %v17124_v1  ;;  %v17217_v24 = vadd.f32 %v13757_v17, %v16909_v30  ;;  %6302 = vmatprep.mubr.bf16.mxu1 %v17204_v58  ;;  %v5332_v1 = vrot.slane %v5330_v20, 4  ;;  %v17224_v30 = vcombine.low %v5257_v37, %v5267_v4  ;;  %v12832_v17 = vld [vmem:[%s16006_s9 + $0x70] sm:$0x11]  ;;  %v5344_v20 = vshll.u32 %v16975_v13, 16 }
 0x253   : > { %v5300_v14 = vrot.slane %v5299_v57, 4  ;;  %v5336_v4 = vshll.u32 %v12832_v17, 16  ;;  %v5350_v57 = vshll.u32 %v12834_v44, 16  ;;  %v5315_v52 = vsel %vm16156_vm2, %v5310_v32, %v5314_v29  ;;  %v15474_v32 = vld [vmem:[#allocation3 + $0x7b8] ss:$12 sps:$4 sm:$0xff]  }
 0x254   : > { %19470 = vst [vmem:[#allocation23_spill] sm:$0xff] %v17217_v24  ;;  %v13758_v60 = vpop.f32.mrb[148].mxu1  ;;  %v17227_v24 = vcombine.high %v5281_v38, %v5291_v46  ;;  %v5333_v37 = vor.u32 %v5332_v1, %v5328_v49  ;;  %v17246_v13 = vcombine.low %v5281_v38, %v5291_v46  ;;  %v5343_v17 = vrot.slane %v5341_v11, 4  ;;  %v12837_v38 = vld [vmem:[%s16006_s9 + $0x98] sm:$0xff] }
 0x255   : > { %v13759_v23 = vpop.f32.mrb[149].mxu1  ;;  %v5338_v1 = vrot.slane %v5336_v4, 5  ;;  %v15481_v46 = vld [vmem:[#allocation3 + $0x890] ss:$12 sps:$4 sm:$0xff]  }
 0x256   : > { %v13760_v48 = vadd.f32 %v13759_v23, %v13758_v60  ;;  %v13761_v28 = vpop.f32.mrb[150].mxu1  ;;  %v5324_v60 = vrot.slane %v5323_v55, 4 }
 0x257   : > { %v13762_v63 = vpop.f32.mrb[151].mxu1 }
 0x258   : > { %v17231_v3 = vadd.f32 %v13760_v48, %v16923_v31  ;;  %v13763_v39 = vadd.f32 %v13762_v63, %v13761_v28  ;;  %v15466_v31 = vld [vmem:[#allocation3 + $0x7a0] ss:$12 sps:$4 sm:$0xff]   ;;  %v5346_v48 = vrot.slane %v5344_v20, 5  ;;  %v17248_v28 = vrot.slane %v5350_v57, 5 }
 0x259   : > { %4707 = vmatmul.mubr.bf16.gmra.mrb[48].mxu0 %v17138_v15  ;;  %6303 = vmatmul.mubr.bf16.vlgmr.msra.gmra.mrb[0].mxu1 %v17224_v30  ;;  %v5305_v15 = vsel %vm16156_vm2, %v5300_v14, %v5304_v42  ;;  %v12835_v14 = vld [vmem:[%s16006_s9 + $0x88] sm:$0x11]  ;;  %v5374_v57 = vshll.u32 %v12837_v38, 16 }
 0x25a   : > { %4716 = vmatprep.mubr.bf16.mxu0 %v17141_v6  ;;  %v17239_v7 = vadd.f32 %v13763_v39, %v16929_v16  ;;  %6310 = vmatprep.mubr.bf16.mxu1 %v17227_v24  ;;  %v15473_v6 = vld [vmem:[#allocation3 + $0x878] ss:$12 sps:$4 sm:$0xff]   ;;  %v5334_v16 = vrot.slane %v5333_v37, 4  ;;  %v17250_v63 = vcombine.high %v5305_v15, %v5315_v52  ;;  %v17260_v39 = vsel %vm16156_vm2, %v5324_v60, %v5328_v49 }
 0x25b   : > { %14049 = vmatpush3.bf16.msra.mxu1 %v15458_v26  ;;  %v5356_v26 = vrot.slane %v5354_v51, 4  ;;  %v5347_v4 = vor.u32 %v5346_v48, %v5343_v17  ;;  %v5368_v49 = vshll.u32 %v16996_v36, 16  ;;  %v5378_v51 = vshrl.u32 %v12837_v38, 16  ;;  %v12839_v60 = vld [vmem:[%s16006_s9 + $0xa8] sm:$0xff]  ;;  %v12840_v48 = vld [vmem:[%s16006_s9 + $0xb0] sm:$0xff] }
 0x25c   : > { %14050 = vmatprep.subr.bf16.mxu1 %v15465_v9  ;;  %v13764_v5 = vpop.f32.mrb[152].mxu1  ;;  %v5339_v37 = vsel %vm16156_vm2, %v5334_v16, %v5338_v1  ;;  %v5392_v38 = vshll.u32 %v12839_v60, 16 }
 0x25d   : > { %v13765_v23 = vpop.f32.mrb[153].mxu1  ;;  %v5357_v11 = vor.u32 %v5356_v26, %v17248_v28  ;;  %v5348_v1 = vrot.slane %v5347_v4, 4 }
 0x25e   : > { %v13766_v42 = vadd.f32 %v13765_v23, %v13764_v5  ;;  %v13767_v44 = vpop.f32.mrb[154].mxu1  ;;  %v17273_v5 = vcombine.low %v5305_v15, %v5315_v52  ;;  %v5380_v52 = vrot.slane %v5378_v51, 4 }
 0x25f   : > { %14051 = vmatpush3.bf16.msra.mxu1 %v15466_v31  ;;  %v13768_v29 = vpop.f32.mrb[155].mxu1  ;;  %v15489_v31 = vld [vmem:[#allocation3 + $0x8a8] ss:$12 sps:$4 sm:$0xff]   ;;  %v5358_v23 = vrot.slane %v5357_v11, 4  ;;  %v12838_v11 = vld [vmem:[%s16006_s9 + $0xa0] sm:$0x11] }
 0x260   : > { %14052 = vmatprep.subr.bf16.mxu1 %v15473_v6  ;;  %v17255_v55 = vadd.f32 %v13766_v42, %v16944_v50  ;;  %v13769_v9 = vadd.f32 %v13768_v29, %v13767_v44  ;;  %v5360_v50 = vshll.u32 %v12835_v14, 16  ;;  %v5370_v44 = vrot.slane %v5368_v49, 5 }
 0x261   : > { %4717 = vmatmul.mubr.bf16.gmra.mrb[52].mxu0 %v17158_v19  ;;  %6311 = vmatmul.mubr.bf16.gmra.mrb[4].mxu1 %v17246_v13  ;;  %v5365_v19 = vshrl.u32 %v16996_v36, 16  ;;  %v17280_v14 = vrot.slane %v5374_v57, 5  ;;  %v5389_v29 = vshrl.u32 %v12839_v60, 16  ;;  %v5353_v49 = vsel %vm16156_vm2, %v5348_v1, %v17248_v28  ;;  %v15505_v28 = vld [vmem:[#allocation3 + $0x8d8] ss:$12 sps:$4 sm:$0xff]  }
 0x262   : > { %4726 = vmatprep.mubr.bf16.mxu0 %v17162_v8  ;;  %v17268_v20 = vadd.f32 %v13769_v9, %v16950_v12  ;;  %6318 = vmatprep.mubr.bf16.mxu1 %v17250_v63  ;;  %v15482_v8 = vld [vmem:[#allocation3 + $0x7d0] ss:$12 sps:$4 sm:$0xff]   ;;  %v17277_v12 = vcombine.high %v17260_v39, %v5339_v37  ;;  %v5362_v17 = vrot.slane %v5360_v50, 5  ;;  %v5398_v50 = vshll.u32 %v12840_v48, 16 }
 0x263   : > { %14053 = vmatpush3.bf16.msra.mxu1 %v15474_v32  ;;  %v5367_v42 = vrot.slane %v5365_v19, 4  ;;  %v15490_v32 = vld [vmem:[#allocation3 + $0x7e8] ss:$12 sps:$4 sm:$0xff]   ;;  %v5402_v19 = vshrl.u32 %v12840_v48, 16  ;;  %v5381_v51 = vor.u32 %v5380_v52, %v17280_v14  ;;  %v17300_v48 = vcombine.low %v17260_v39, %v5339_v37 }
 0x264   : > { %14054 = vmatprep.subr.bf16.mxu1 %v15481_v46  ;;  %v13770_v6 = vpop.f32.mrb[156].mxu1  ;;  %v15497_v46 = vld [vmem:[#allocation3 + $0x8c0] ss:$12 sps:$4 sm:$0xff]   ;;  %v5400_v60 = vrot.slane %v5398_v50, 5 }
 0x265   : > { %v13771_v16 = vpop.f32.mrb[157].mxu1 }
 0x266   : > { %v13772_v26 = vadd.f32 %v13771_v16, %v13770_v6  ;;  %v13773_v36 = vpop.f32.mrb[158].mxu1  ;;  %v5394_v6 = vrot.slane %v5392_v38, 5  ;;  %v5404_v16 = vrot.slane %v5402_v19, 4 }
 0x267   : > { %14055 = vmatpush3.bf16.msra.mxu1 %v15482_v8  ;;  %v13774_v15 = vpop.f32.mrb[159].mxu1  ;;  %v15498_v8 = vld [vmem:[#allocation3 + $0x800] ss:$12 sps:$4 sm:$0xff]  }
 0x268   : > { %14056 = vmatprep.subr.bf16.mxu1 %v15489_v31  ;;  %v17283_v9 = vadd.f32 %v13772_v26, %v16965_v47  ;;  %v13775_v4 = vadd.f32 %v13774_v15, %v13773_v36  ;;  %v5363_v47 = vsel %vm16156_vm2, %v5358_v23, %v5362_v17  ;;  %v5391_v31 = vrot.slane %v5389_v29, 4  ;;  %v12841_v23 = vld [vmem:[%s16006_s9 + $0xb8] sm:$0x11] }
 0x269   : > { %4727 = vmatmul.mubr.bf16.gmra.mrb[56].mxu0 %v17178_v27  ;;  %6319 = vmatmul.mubr.bf16.gmra.mrb[8].mxu1 %v17273_v5  ;;  %v5371_v27 = vor.u32 %v5370_v44, %v5367_v42  ;;  %v17303_v36 = vcombine.high %v5353_v49, %v5363_v47  ;;  %v12842_v42 = vld [vmem:[%s16006_s9 + $0xc0] sm:$0xff]  ;;  %v12843_v44 = vld [vmem:[%s16006_s9 + $0xc8] sm:$0xff]  ;;  %v5382_v29 = vrot.slane %v5381_v51, 4  ;;  %v5405_v37 = vor.u32 %v5404_v16, %v5400_v60 }
 0x26a   : > { %4736 = vmatprep.mubr.bf16.mxu0 %v17181_v0  ;;  %v17293_v57 = vadd.f32 %v13775_v4, %v16971_v59  ;;  %6326 = vmatprep.mubr.bf16.mxu1 %v17277_v12  ;;  %v5384_v0 = vshll.u32 %v12838_v11, 16  ;;  %v15507_v4 = vld [vmem:[#allocation3 + $0x8f0] ss:$12 sps:$4 sm:$0xff]   ;;  %v5408_v50 = vshll.u32 %v12841_v23, 16  ;;  %v5413_v19 = vshrl.u32 %v12842_v42, 16 }
 0x26b   : > { %14057 = vmatpush3.bf16.msra.mxu1 %v15490_v32  ;;  %v15506_v32 = vld [vmem:[#allocation3 + $0x818] ss:$12 sps:$4 sm:$0xff]   ;;  %v5372_v52 = vrot.slane %v5371_v27, 4  ;;  %v5422_v27 = vshll.u32 %v12843_v44, 16  ;;  %v5426_v51 = vshrl.u32 %v12843_v44, 16 }
 0x26c   : > { %14058 = vmatprep.subr.bf16.mxu1 %v15497_v46  ;;  %v13776_v59 = vpop.f32.mrb[160].mxu1  ;;  %v5386_v38 = vrot.slane %v5384_v0, 5  ;;  %v5395_v46 = vor.u32 %v5394_v6, %v5391_v31  ;;  %v17322_v6 = vcombine.low %v5353_v49, %v5363_v47  ;;  %v5410_v16 = vrot.slane %v5408_v50, 5  ;;  %v15464_v47 = vld [vmem:[#allocation3 + $0x79c] ss:$12 sps:$4 sm:$0xff]  }
 0x26d   : > { %v13777_v1 = vpop.f32.mrb[161].mxu1  ;;  %v5415_v23 = vrot.slane %v5413_v19, 4 }
 0x26e   : > { %v13778_v17 = vadd.f32 %v13777_v1, %v13776_v59  ;;  %v13779_v26 = vpop.f32.mrb[162].mxu1  ;;  %v5387_v31 = vsel %vm16156_vm2, %v5382_v29, %v5386_v38  ;;  %v5406_v59 = vrot.slane %v5405_v37, 4  ;;  %v12846_v29 = vld [vmem:[%s16006_s9 + $0xe0] sm:$0xff] }
 0x26f   : > { %14059 = vmatpush3.bf16.msra.mxu1 %v15498_v8  ;;  %v13780_v15 = vpop.f32.mrb[163].mxu1  ;;  %v5416_v8 = vshll.u32 %v12842_v42, 16  ;;  %v15462_v37 = vld [vmem:[#allocation3 + $0x798] ss:$12 sps:$4 sm:$0xff]  }
 0x270   : > { %14060 = vmatprep.subr.bf16.mxu1 %v15505_v28  ;;  %v17308_v11 = vadd.f32 %v13778_v17, %v16986_v22  ;;  %v13781_v39 = vadd.f32 %v13780_v15, %v13779_v26  ;;  %v15508_v22 = vld [vmem:[#allocation3 + $0x830] ss:$12 sps:$4 sm:$0xff]   ;;  %v15459_v28 = vld [vmem:[#allocation3 + $0x780] ss:$12 sps:$4 sm:$0xff]   ;;  %v17324_v26 = vrot.slane %v5422_v27, 5  ;;  %v5411_v50 = vsel %vm16156_vm2, %v5406_v59, %v5410_v16 }
 0x271   : > { %4737 = vmatmul.mubr.bf16.gmra.mrb[60].mxu0 %v17202_v40  ;;  %6327 = vmatmul.mubr.bf16.gmra.mrb[12].mxu1 %v17300_v48  ;;  %v5377_v40 = vsel %vm16156_vm2, %v5372_v52, %v17280_v14  ;;  %v5418_v17 = vrot.slane %v5416_v8, 5  ;;  %v5428_v14 = vrot.slane %v5426_v51, 4  ;;  %v12844_v15 = vld [vmem:[%s16006_s9 + $0xd0] sm:$0x11]  ;;  %v12845_v52 = vld [vmem:[%s16006_s9 + $0xd8] sm:$0xff] }
 0x272   : > { %6109 = vmatprep.mubr.bf16.mxu0 %v17204_v58  ;;  %v17314_v0 = vadd.f32 %v13781_v39, %v16992_v62  ;;  %6334 = vmatprep.mubr.bf16.mxu1 %v17303_v36  ;;  %v5396_v62 = vrot.slane %v5395_v46, 4  ;;  %v15521_v39 = vld [vmem:[#allocation3 + $0x9c8] ss:$12 sps:$4 sm:$0xff]   ;;  %v5432_v8 = vshll.u32 %v12844_v15, 16  ;;  %v5440_v51 = vshll.u32 %v12845_v52, 16 }
 0x273   : > { %14061 = vmatpush3.bf16.msra.mxu1 %v15506_v32  ;;  %v17326_v32 = vcombine.high %v5377_v40, %v5387_v31  ;;  %v5419_v19 = vor.u32 %v5418_v17, %v5415_v23  ;;  %v12848_v59 = vld [vmem:[%s16006_s9 + $0xf0] sm:$0xff]  ;;  %v12849_v17 = vld [vmem:[%s16006_s9 + $0xf8] sm:$0xff] }
 0x274   : > { %14062 = vmatprep.subr.bf16.mxu1 %v15507_v4  ;;  %v13782_v58 = vpop.f32.mrb[164].mxu1  ;;  %v17337_v4 = vsel %vm16156_vm2, %v5396_v62, %v5400_v60  ;;  %v5437_v60 = vshrl.u32 %v12845_v52, 16  ;;  %v17348_v62 = vcombine.low %v5377_v40, %v5387_v31  ;;  %v5434_v23 = vrot.slane %v5432_v8, 5  ;;  %v15472_v31 = vld [vmem:[#allocation3 + $0x7cc] ss:$12 sps:$4 sm:$0xff]  }
 0x275   : > { %v13783_v1 = vpop.f32.mrb[165].mxu1  ;;  %v5474_v8 = vshrl.u32 %v12849_v17, 16 }
 0x276   : > { %v13784_v42 = vadd.f32 %v13783_v1, %v13782_v58  ;;  %v13785_v44 = vpop.f32.mrb[166].mxu1  ;;  %v5450_v58 = vshrl.u32 %v12846_v29, 16  ;;  %v5439_v15 = vrot.slane %v5437_v60, 4 }
 0x277   : > { %14063 = vmatpush3.bf16.msra.mxu1 %v15508_v22  ;;  %v13786_v49 = vpop.f32.mrb[167].mxu1  ;;  %v5446_v22 = vshll.u32 %v12846_v29, 16  ;;  %v5461_v29 = vshrl.u32 %v12848_v59, 16 }
 0x278   : > { %v17332_v38 = vadd.f32 %v13784_v42, %v17007_v21  ;;  %v13787_v46 = vadd.f32 %v13786_v49, %v13785_v44  ;;  %v5429_v21 = vor.u32 %v5428_v14, %v17324_v26  ;;  %14160 = vmatprep.subr.bf16.mxu1 %v15521_v39  ;;  %v15467_v44 = vld [vmem:[#allocation3 + $0x7b0] ss:$12 sps:$4 sm:$0xff]   ;;  %v5442_v49 = vrot.slane %v5440_v51, 5 }
 0x279   : > { %6110 = vmatmul.mubr.bf16.vlgmr.msra.gmra.mrb[0].mxu0 %v17224_v30  ;;  %6335 = vmatmul.mubr.bf16.gmra.mrb[16].mxu1 %v17322_v6  ;;  %v15469_v30 = vld [vmem:[#allocation3 + $0x7b4] ss:$12 sps:$4 sm:$0xff]   ;;  %v5452_v52 = vrot.slane %v5450_v58, 4  ;;  %v15477_v58 = vld [vmem:[#allocation3 + $0x7e4] ss:$12 sps:$4 sm:$0xff]  }
 0x27a   : > { %7377 = vmatpush1.bf16.msra.mxu0 %v15459_v28  ;;  %v17344_v27 = vadd.f32 %v13787_v46, %v17012_v34  ;;  %6119 = vmatprep.mubr.bf16.mxu0 %v17227_v24  ;;  %v17352_v34 = vcombine.high %v17337_v4, %v5411_v50  ;;  %v5420_v24 = vrot.slane %v5419_v19, 4  ;;  %v5430_v1 = vrot.slane %v5429_v21, 4  ;;  %v12847_v19 = vld [vmem:[%s16006_s9 + $0xe8] sm:$0x11] }
 0x27b   : > { %6342 = vmatprep.mubr.bf16.mxu1 %v17326_v32  ;;  %7378 = vmatprep.subr.bf16.mxu0 %v15464_v47  ;;  %v17355_v47 = vrot.slane %v5446_v22, 5  ;;  %v5464_v46 = vshll.u32 %v12848_v59, 16  ;;  %v5470_v21 = vshll.u32 %v12849_v17, 16  ;;  %v5443_v51 = vor.u32 %v5442_v49, %v5439_v15  ;;  %v12851_v15 = vld [vmem:[%s16006_s9 + $0x108] sm:$0xff]  ;;  %v12852_v49 = vld [vmem:[%s16006_s9 + $0x110] sm:$0xff] }
 0x27c   : > { %v13788_v28 = vpop.f32.mrb[168].mxu1  ;;  %v17377_v17 = vcombine.low %v17337_v4, %v5411_v50 }
 0x27d   : > { %v13789_v16 = vpop.f32.mrb[169].mxu1  ;;  %v5453_v22 = vor.u32 %v5452_v52, %v17355_v47  ;;  %v17374_v59 = vrot.slane %v5470_v21, 5 }
 0x27e   : > { %7379 = vmatpush1.bf16.msra.mxu0 %v15462_v37  ;;  %v13790_v14 = vadd.f32 %v13789_v16, %v13788_v28  ;;  %v13791_v42 = vpop.f32.mrb[170].mxu1  ;;  %v5466_v28 = vrot.slane %v5464_v46, 5  ;;  %v5476_v16 = vrot.slane %v5474_v8, 4  ;;  %v5485_v8 = vshrl.u32 %v12851_v15, 16 }
 0x27f   : > { %7380 = vmatprep.subr.bf16.mxu0 %v15469_v30  ;;  %v13792_v40 = vpop.f32.mrb[171].mxu1  ;;  %v5425_v30 = vsel %vm16156_vm2, %v5420_v24, %v17324_v26  ;;  %v5463_v26 = vrot.slane %v5461_v29, 4  ;;  %v5454_v52 = vrot.slane %v5453_v22, 4  ;;  %v5498_v22 = vshrl.u32 %v12852_v49, 16 }
 0x280   : > { %v17358_v39 = vadd.f32 %v13790_v14, %v17025_v43  ;;  %v13793_v37 = vadd.f32 %v13792_v40, %v13791_v42  ;;  %v5435_v43 = vsel %vm16156_vm2, %v5430_v1, %v5434_v23  ;;  %v12850_v1 = vld [vmem:[%s16006_s9 + $0x100] sm:$0x11]  ;;  %v5477_v50 = vor.u32 %v5476_v16, %v17374_v59 }
 0x281   : > { %6120 = vmatmul.mubr.bf16.gmra.mrb[4].mxu0 %v17246_v13  ;;  %6343 = vmatmul.mubr.bf16.gmra.mrb[20].mxu1 %v17348_v62  ;;  %v15470_v13 = vld [vmem:[#allocation3 + $0x7c8] ss:$12 sps:$4 sm:$0xff]   ;;  %v17380_v42 = vcombine.high %v5425_v30, %v5435_v43  ;;  %v5467_v46 = vor.u32 %v5466_v28, %v5463_v26  ;;  %v5480_v21 = vshll.u32 %v12850_v1, 16  ;;  %v17400_v28 = vcombine.low %v5425_v30, %v5435_v43  ;;  %v12854_v43 = vld [vmem:[%s16006_s9 + $0x120] sm:$0xff] }
 0x282   : > { %6129 = vmatprep.mubr.bf16.mxu0 %v17250_v63  ;;  %v17368_v60 = vadd.f32 %v13793_v37, %v17031_v25  ;;  %6350 = vmatprep.mubr.bf16.mxu1 %v17352_v34  ;;  %v5456_v63 = vshll.u32 %v12847_v19, 16  ;;  %v15480_v37 = vld [vmem:[#allocation3 + $0x7fc] ss:$12 sps:$4 sm:$0xff]   ;;  %v5487_v1 = vrot.slane %v5485_v8, 4 }
 0x283   : > { %7381 = vmatpush1.bf16.msra.mxu0 %v15467_v44  ;;  %v15475_v44 = vld [vmem:[#allocation3 + $0x7e0] ss:$12 sps:$4 sm:$0xff]   ;;  %v5482_v16 = vrot.slane %v5480_v21, 5 }
 0x284   : > { %7382 = vmatprep.subr.bf16.mxu0 %v15472_v31  ;;  %v13794_v25 = vpop.f32.mrb[172].mxu1  ;;  %v5444_v31 = vrot.slane %v5443_v51, 4  ;;  %v5458_v29 = vrot.slane %v5456_v63, 5  ;;  %v5494_v51 = vshll.u32 %v12852_v49, 16 }
 0x285   : > { %v13795_v24 = vpop.f32.mrb[173].mxu1 }
 0x286   : > { %v13796_v23 = vadd.f32 %v13795_v24, %v13794_v25  ;;  %v13797_v14 = vpop.f32.mrb[174].mxu1  ;;  %v5468_v25 = vrot.slane %v5467_v46, 4 }
 0x287   : > { %7383 = vmatpush1.bf16.msra.mxu0 %v15470_v13  ;;  %v13798_v40 = vpop.f32.mrb[175].mxu1  ;;  %v5488_v13 = vshll.u32 %v12851_v15, 16 }
 0x288   : > { %7384 = vmatprep.subr.bf16.mxu0 %v15477_v58  ;;  %v17385_v19 = vadd.f32 %v13796_v23, %v17042_v10  ;;  %v13799_v4 = vadd.f32 %v13798_v40, %v13797_v14  ;;  %v15478_v10 = vld [vmem:[#allocation3 + $0x7f8] ss:$12 sps:$4 sm:$0xff]   ;;  %v5459_v58 = vsel %vm16156_vm2, %v5454_v52, %v5458_v29  ;;  %v17402_v14 = vrot.slane %v5494_v51, 5  ;;  %v12853_v40 = vld [vmem:[%s16006_s9 + $0x118] sm:$0x11] }
 0x289   : > { %6130 = vmatmul.mubr.bf16.gmra.mrb[8].mxu0 %v17273_v5  ;;  %6351 = vmatmul.mubr.bf16.gmra.mrb[24].mxu1 %v17377_v17  ;;  %v5449_v5 = vsel %vm16156_vm2, %v5444_v31, %v17355_v47  ;;  %v5490_v23 = vrot.slane %v5488_v13, 5  ;;  %v5500_v47 = vrot.slane %v5498_v22, 4  ;;  %v15483_v31 = vld [vmem:[#allocation3 + $0x810] ss:$12 sps:$4 sm:$0xff]   ;;  %v12855_v52 = vld [vmem:[%s16006_s9 + $0x128] sm:$0xff]  ;;  %v5504_v8 = vshll.u32 %v12853_v40, 16 }
 0x28a   : > { %6139 = vmatprep.mubr.bf16.mxu0 %v17277_v12  ;;  %v17392_v63 = vadd.f32 %v13799_v4, %v17048_v2  ;;  %6358 = vmatprep.mubr.bf16.mxu1 %v17380_v42  ;;  %v15485_v12 = vld [vmem:[#allocation3 + $0x814] ss:$12 sps:$4 sm:$0xff]   ;;  %v5478_v2 = vrot.slane %v5477_v50, 4  ;;  %v17404_v49 = vcombine.high %v5449_v5, %v5459_v58  ;;  %v15488_v29 = vld [vmem:[#allocation3 + $0x82c] ss:$12 sps:$4 sm:$0xff]   ;;  %v17416_v4 = vsel %vm16156_vm2, %v5468_v25, %v17374_v59 }
 0x28b   : > { %7385 = vmatpush1.bf16.msra.mxu0 %v15475_v44  ;;  %v5491_v21 = vor.u32 %v5490_v23, %v5487_v1  ;;  %v5512_v59 = vshll.u32 %v12854_v43, 16  ;;  %v5518_v51 = vshll.u32 %v12855_v52, 16  ;;  %v15486_v22 = vld [vmem:[#allocation3 + $0x828] ss:$12 sps:$4 sm:$0xff]   ;;  %v5506_v1 = vrot.slane %v5504_v8, 5  ;;  %v12858_v23 = vld [vmem:[%s16006_s9 + $0x140] sm:$0xff] }
 0x28c   : > { %7386 = vmatprep.subr.bf16.mxu0 %v15480_v37  ;;  %v13800_v26 = vpop.f32.mrb[176].mxu1  ;;  %v5483_v50 = vsel %vm16156_vm2, %v5478_v2, %v5482_v16  ;;  %v12857_v25 = vld [vmem:[%s16006_s9 + $0x138] sm:$0xff]  ;;  %v5542_v8 = vshll.u32 %v12858_v23, 16 }
 0x28d   : > { %v13801_v24 = vpop.f32.mrb[177].mxu1  ;;  %v17431_v16 = vcombine.high %v17416_v4, %v5483_v50  ;;  %v5514_v40 = vrot.slane %v5512_v59, 5 }
 0x28e   : > { %v13802_v44 = vadd.f32 %v13801_v24, %v13800_v26  ;;  %v13803_v15 = vpop.f32.mrb[178].mxu1  ;;  %v17427_v26 = vcombine.low %v5449_v5, %v5459_v58 }
 0x28f   : > { %7387 = vmatpush1.bf16.msra.mxu0 %v15478_v10  ;;  %v13804_v30 = vpop.f32.mrb[179].mxu1  ;;  %v15493_v10 = vld [vmem:[#allocation3 + $0x844] ss:$12 sps:$4 sm:$0xff]  }
 0x290   : > { %7388 = vmatprep.subr.bf16.mxu0 %v15485_v12  ;;  %v17410_v46 = vadd.f32 %v13802_v44, %v17059_v54  ;;  %v13805_v37 = vadd.f32 %v13804_v30, %v13803_v15  ;;  %v5501_v54 = vor.u32 %v5500_v47, %v17402_v14  ;;  %v15491_v30 = vld [vmem:[#allocation3 + $0x840] ss:$12 sps:$4 sm:$0xff]  }
 0x291   : > { %6140 = vmatmul.mubr.bf16.gmra.mrb[12].mxu0 %v17300_v48  ;;  %6359 = vmatmul.mubr.bf16.gmra.mrb[28].mxu1 %v17400_v28  ;;  %v5509_v48 = vshrl.u32 %v12854_v43, 16  ;;  %v5533_v43 = vshrl.u32 %v12857_v25, 16 }
 0x292   : > { %6149 = vmatprep.mubr.bf16.mxu0 %v17303_v36  ;;  %v17424_v13 = vadd.f32 %v13805_v37, %v17065_v33  ;;  %6366 = vmatprep.mubr.bf16.mxu1 %v17404_v49  ;;  %v5522_v36 = vshrl.u32 %v12855_v52, 16  ;;  %v5492_v33 = vrot.slane %v5491_v21, 4  ;;  %v5502_v24 = vrot.slane %v5501_v54, 4  ;;  %v12856_v54 = vld [vmem:[%s16006_s9 + $0x130] sm:$0x11] }
 0x293   : > { %7389 = vmatpush1.bf16.msra.mxu0 %v15483_v31  ;;  %v5511_v15 = vrot.slane %v5509_v48, 4  ;;  %v17434_v31 = vrot.slane %v5518_v51, 5  ;;  %v5536_v52 = vshll.u32 %v12857_v25, 16  ;;  %v5546_v48 = vshrl.u32 %v12858_v23, 16 }
 0x294   : > { %7390 = vmatprep.subr.bf16.mxu0 %v15488_v29  ;;  %v13806_v12 = vpop.f32.mrb[180].mxu1  ;;  %v5524_v58 = vrot.slane %v5522_v36, 4  ;;  %v15496_v29 = vld [vmem:[#allocation3 + $0x85c] ss:$12 sps:$4 sm:$0xff]   ;;  %v5497_v59 = vsel %vm16156_vm2, %v5492_v33, %v17402_v14  ;;  %v15501_v14 = vld [vmem:[#allocation3 + $0x874] ss:$12 sps:$4 sm:$0xff]   ;;  %v17456_v23 = vcombine.low %v17416_v4, %v5483_v50 }
 0x295   : > { %v13807_v2 = vpop.f32.mrb[181].mxu1  ;;  %v17453_v25 = vrot.slane %v5542_v8, 5 }
 0x296   : > { %v13808_v47 = vadd.f32 %v13807_v2, %v13806_v12  ;;  %v13809_v44 = vpop.f32.mrb[182].mxu1  ;;  %v5525_v36 = vor.u32 %v5524_v58, %v17434_v31  ;;  %v5538_v12 = vrot.slane %v5536_v52, 5  ;;  %v5548_v2 = vrot.slane %v5546_v48, 4 }
 0x297   : > { %7391 = vmatpush1.bf16.msra.mxu0 %v15486_v22  ;;  %v13810_v5 = vpop.f32.mrb[183].mxu1  ;;  %v15494_v22 = vld [vmem:[#allocation3 + $0x858] ss:$12 sps:$4 sm:$0xff]  }
 0x298   : > { %7392 = vmatprep.subr.bf16.mxu0 %v15493_v10  ;;  %v17437_v37 = vadd.f32 %v13808_v47, %v17076_v18  ;;  %v13811_v21 = vadd.f32 %v13810_v5, %v13809_v44  ;;  %v5507_v18 = vsel %vm16156_vm2, %v5502_v24, %v5506_v1  ;;  %v5535_v10 = vrot.slane %v5533_v43, 4  ;;  %v12859_v24 = vld [vmem:[%s16006_s9 + $0x148] sm:$0x11] }
 0x299   : > { %6150 = vmatmul.mubr.bf16.gmra.mrb[16].mxu0 %v17322_v6  ;;  %6367 = vmatmul.mubr.bf16.gmra.mrb[32].mxu1 %v17427_v26  ;;  %v5515_v6 = vor.u32 %v5514_v40, %v5511_v15  ;;  %v17459_v44 = vcombine.high %v5497_v59, %v5507_v18  ;;  %v12860_v15 = vld [vmem:[%s16006_s9 + $0x150] sm:$0xff]  ;;  %v12861_v40 = vld [vmem:[%s16006_s9 + $0x158] sm:$0xff]  ;;  %v5526_v43 = vrot.slane %v5525_v36, 4  ;;  %v5549_v50 = vor.u32 %v5548_v2, %v17453_v25 }
 0x29a   : > { %6159 = vmatprep.mubr.bf16.mxu0 %v17326_v32  ;;  %v17447_v51 = vadd.f32 %v13811_v21, %v17082_v35  ;;  %6374 = vmatprep.mubr.bf16.mxu1 %v17431_v16  ;;  %v5528_v32 = vshll.u32 %v12856_v54, 16  ;;  %v15504_v21 = vld [vmem:[#allocation3 + $0x88c] ss:$12 sps:$4 sm:$0xff]   ;;  %v5552_v8 = vshll.u32 %v12859_v24, 16  ;;  %v5557_v48 = vshrl.u32 %v12860_v15, 16 }
 0x29b   : > { %7393 = vmatpush1.bf16.msra.mxu0 %v15491_v30  ;;  %v15499_v30 = vld [vmem:[#allocation3 + $0x870] ss:$12 sps:$4 sm:$0xff]   ;;  %v5516_v58 = vrot.slane %v5515_v6, 4  ;;  %v5560_v6 = vshll.u32 %v12860_v15, 16  ;;  %v5570_v36 = vshrl.u32 %v12861_v40, 16 }
 0x29c   : > { %7394 = vmatprep.subr.bf16.mxu0 %v15496_v29  ;;  %v13812_v35 = vpop.f32.mrb[184].mxu1  ;;  %v5530_v52 = vrot.slane %v5528_v32, 5  ;;  %v5539_v29 = vor.u32 %v5538_v12, %v5535_v10  ;;  %v5554_v2 = vrot.slane %v5552_v8, 5  ;;  %v5559_v24 = vrot.slane %v5557_v48, 4 }
 0x29d   : > { %v13813_v33 = vpop.f32.mrb[185].mxu1  ;;  %v5572_v15 = vrot.slane %v5570_v36, 4 }
 0x29e   : > { %v13814_v1 = vadd.f32 %v13813_v33, %v13812_v35  ;;  %v13815_v47 = vpop.f32.mrb[186].mxu1  ;;  %v5531_v10 = vsel %vm16156_vm2, %v5526_v43, %v5530_v52  ;;  %v5550_v35 = vrot.slane %v5549_v50, 4  ;;  %v15509_v43 = vld [vmem:[#allocation3 + $0x8a0] ss:$12 sps:$4 sm:$0xff]  }
 0x29f   : > { %7395 = vmatpush1.bf16.msra.mxu0 %v15494_v22  ;;  %v13816_v5 = vpop.f32.mrb[187].mxu1  ;;  %v5566_v22 = vshll.u32 %v12861_v40, 16 }
 0x2a0   : > { %7396 = vmatprep.subr.bf16.mxu0 %v15501_v14  ;;  %v17464_v54 = vadd.f32 %v13814_v1, %v17093_v41  ;;  %v13817_v4 = vadd.f32 %v13816_v5, %v13815_v47  ;;  %v15502_v41 = vld [vmem:[#allocation3 + $0x888] ss:$12 sps:$4 sm:$0xff]   ;;  %v17479_v14 = vcombine.low %v5497_v59, %v5507_v18  ;;  %v5562_v1 = vrot.slane %v5560_v6, 5  ;;  %v12862_v5 = vld [vmem:[%s16006_s9 + $0x160] sm:$0x11] }
 0x2a1   : > { %6160 = vmatmul.mubr.bf16.gmra.mrb[20].mxu0 %v17348_v62  ;;  %6375 = vmatmul.mubr.bf16.gmra.mrb[36].mxu1 %v17456_v23  ;;  %v5521_v62 = vsel %vm16156_vm2, %v5516_v58, %v17434_v31  ;;  %v5568_v47 = vrot.slane %v5566_v22, 5  ;;  %v12863_v58 = vld [vmem:[%s16006_s9 + $0x168] sm:$0xff]  ;;  %v12864_v59 = vld [vmem:[%s16006_s9 + $0x170] sm:$0xff]  ;;  %v5555_v50 = vsel %vm16156_vm2, %v5550_v35, %v5554_v2  ;;  %v5576_v6 = vshll.u32 %v12862_v5, 16 }
 0x2a2   : > { %6169 = vmatprep.mubr.bf16.mxu0 %v17352_v34  ;;  %v17471_v32 = vadd.f32 %v13817_v4, %v17099_v53  ;;  %6382 = vmatprep.mubr.bf16.mxu1 %v17459_v44  ;;  %v15511_v34 = vld [vmem:[#allocation3 + $0x8a4] ss:$12 sps:$4 sm:$0xff]   ;;  %v5540_v53 = vrot.slane %v5539_v29, 4  ;;  %v15514_v18 = vld [vmem:[#allocation3 + $0x8bc] ss:$12 sps:$4 sm:$0xff]   ;;  %v5563_v8 = vor.u32 %v5562_v1, %v5559_v24  ;;  %v5581_v22 = vshrl.u32 %v12863_v58, 16 }
 0x2a3   : > { %7397 = vmatpush1.bf16.msra.mxu0 %v15499_v30  ;;  %v17481_v30 = vcombine.high %v5521_v62, %v5531_v10  ;;  %v5573_v48 = vor.u32 %v5572_v15, %v5568_v47  ;;  %v17501_v35 = vcombine.low %v5521_v62, %v5531_v10  ;;  %v5578_v1 = vrot.slane %v5576_v6, 5  ;;  %v15520_v62 = vld [vmem:[#allocation3 + $0x8ec] ss:$12 sps:$4 sm:$0xff]   ;;  %v12867_v6 = vld [vmem:[%s16006_s9 + $0x188] sm:$0xff] }
 0x2a4   : > { %7398 = vmatprep.subr.bf16.mxu0 %v15504_v21  ;;  %v13818_v12 = vpop.f32.mrb[188].mxu1  ;;  %v5545_v4 = vsel %vm16156_vm2, %v5540_v53, %v17453_v25  ;;  %v15512_v25 = vld [vmem:[#allocation3 + $0x8b8] ss:$12 sps:$4 sm:$0xff]   ;;  %v5583_v15 = vrot.slane %v5581_v22, 4 }
 0x2a5   : > { %v13819_v33 = vpop.f32.mrb[189].mxu1  ;;  %v5574_v24 = vrot.slane %v5573_v48, 4  ;;  %v19472_v10 = vld [vmem:[#allocation15_spill] sm:$0xff] }
 0x2a6   : > { %v13820_v31 = vadd.f32 %v13819_v33, %v13818_v12  ;;  %v13821_v40 = vpop.f32.mrb[190].mxu1  ;;  %v15517_v12 = vld [vmem:[#allocation3 + $0x8d4] ss:$12 sps:$4 sm:$0xff]   ;;  %v5564_v33 = vrot.slane %v5563_v8, 4  ;;  %v12866_v48 = vld [vmem:[%s16006_s9 + $0x180] sm:$0xff] }
 0x2a7   : > { %7399 = vmatpush1.bf16.msra.mxu0 %v15502_v41  ;;  %v13822_v52 = vpop.f32.mrb[191].mxu1  ;;  %v5590_v41 = vshll.u32 %v12864_v59, 16 }
 0x2a8   : > { %7400 = vmatprep.subr.bf16.mxu0 %v15511_v34  ;;  %v17487_v29 = vadd.f32 %v13820_v31, %v17110_v45  ;;  %v13823_v21 = vadd.f32 %v13822_v52, %v13821_v40  ;;  %v19471_v45 = vld [vmem:[#allocation14_spill] sm:$0xff]  ;;  %v5594_v34 = vshrl.u32 %v12864_v59, 16  ;;  %v5569_v22 = vsel %vm16156_vm2, %v5564_v33, %v5568_v47 }
 0x2a9   : > { %6170 = vmatmul.mubr.bf16.gmra.mrb[24].mxu0 %v17377_v17  ;;  %6383 = vmatmul.mubr.bf16.gmra.mrb[40].mxu1 %v17479_v14  ;;  %v5584_v17 = vshll.u32 %v12863_v58, 16  ;;  %v5592_v58 = vrot.slane %v5590_v41, 5  ;;  %v15515_v52 = vld [vmem:[#allocation3 + $0x8d0] ss:$12 sps:$4 sm:$0xff]  }
 0x2aa   : > { %6179 = vmatprep.mubr.bf16.mxu0 %v17380_v42  ;;  %v17498_v36 = vadd.f32 %v13823_v21, %v19471_v45  ;;  %6390 = vmatprep.mubr.bf16.mxu1 %v17481_v30  ;;  %v17503_v42 = vcombine.high %v5545_v4, %v5555_v50  ;;  %v5579_v45 = vsel %vm16156_vm2, %v5574_v24, %v5578_v1 }
 0x2ab   : > { %7401 = vmatpush1.bf16.msra.mxu0 %v15509_v43  ;;  %v5586_v5 = vrot.slane %v5584_v17, 5  ;;  %v5596_v43 = vrot.slane %v5594_v34, 4  ;;  %v19473_v17 = vld [vmem:[#allocation16_spill] sm:$0xff]  ;;  %v17524_v24 = vcombine.high %v5569_v22, %v5579_v45 }
 0x2ac   : > { %7402 = vmatprep.subr.bf16.mxu0 %v15514_v18  ;;  %v13840_v53 = vpop.f32.mrb[192].mxu1  ;;  %v12865_v18 = vld [vmem:[%s16006_s9 + $0x178] sm:$0x11] }
 0x2ad   : > { %v13841_v2 = vpop.f32.mrb[193].mxu1  ;;  %v5587_v34 = vor.u32 %v5586_v5, %v5583_v15 }
 0x2ae   : > { %v13842_v31 = vadd.f32 %v13841_v2, %v13840_v53  ;;  %v13843_v40 = vpop.f32.mrb[194].mxu1  ;;  %v5605_v53 = vshrl.u32 %v12866_v48, 16  ;;  %v5608_v2 = vshll.u32 %v12866_v48, 16 }
 0x2af   : > { %7403 = vmatpush1.bf16.msra.mxu0 %v15512_v25  ;;  %v13844_v59 = vpop.f32.mrb[195].mxu1  ;;  %v5597_v25 = vor.u32 %v5596_v43, %v5592_v58  ;;  %v5588_v15 = vrot.slane %v5587_v34, 4  ;;  %v19475_v34 = vld [vmem:[#allocation18_spill] sm:$0xff] }
 0x2b0   : > { %7404 = vmatprep.subr.bf16.mxu0 %v15517_v12  ;;  %v17507_v21 = vadd.f32 %v13842_v31, %v19472_v10  ;;  %v13845_v8 = vadd.f32 %v13844_v59, %v13843_v40  ;;  %v15518_v12 = vld [vmem:[#allocation3 + $0x8e8] ss:$12 sps:$4 sm:$0xff]   ;;  %v5614_v31 = vshll.u32 %v12867_v6, 16  ;;  %v15525_v40 = vld [vmem:[#allocation3 + $0x904] ss:$12 sps:$4 sm:$0xff]   ;;  %v17522_v59 = vcombine.low %v5545_v4, %v5555_v50 }
 0x2b1   : > { %6180 = vmatmul.mubr.bf16.gmra.mrb[28].mxu0 %v17400_v28  ;;  %6391 = vmatmul.mubr.bf16.gmra.mrb[44].mxu1 %v17501_v35  ;;  %v5600_v28 = vshll.u32 %v12865_v18, 16  ;;  %v5598_v5 = vrot.slane %v5597_v25, 4  ;;  %v5607_v18 = vrot.slane %v5605_v53, 4  ;;  %v12868_v50 = vld [vmem:[%s16006_s9 + $0x190] sm:$0x11] }
 0x2b2   : > { %6189 = vmatprep.mubr.bf16.mxu0 %v17404_v49  ;;  %v17519_v41 = vadd.f32 %v13845_v8, %v19473_v17  ;;  %6398 = vmatprep.mubr.bf16.mxu1 %v17503_v42  ;;  %v5618_v49 = vshrl.u32 %v12867_v6, 16  ;;  %v5610_v8 = vrot.slane %v5608_v2, 5  ;;  %v5616_v48 = vrot.slane %v5614_v31, 5 }
 0x2b3   : > { %7405 = vmatpush1.bf16.msra.mxu0 %v15515_v52  ;;  %v5602_v43 = vrot.slane %v5600_v28, 5  ;;  %v5593_v28 = vsel %vm16156_vm2, %v5588_v15, %v5592_v58 }
 0x2b4   : > { %7406 = vmatprep.subr.bf16.mxu0 %v15520_v62  ;;  %v13846_v47 = vpop.f32.mrb[196].mxu1  ;;  %v5620_v6 = vrot.slane %v5618_v49, 4  ;;  %v19474_v62 = vld [vmem:[#allocation17_spill] sm:$0xff]  ;;  %v5611_v53 = vor.u32 %v5610_v8, %v5607_v18  ;;  %v12950_v18 = vld [vmem:[%s16006_s9 + $0x20] sm:$0xff] }
 0x2b5   : > { %v13847_v33 = vpop.f32.mrb[197].mxu1 }
 0x2b6   : > { %v13848_v1 = vadd.f32 %v13847_v33, %v13846_v47  ;;  %v13849_v10 = vpop.f32.mrb[198].mxu1  ;;  %v5621_v2 = vor.u32 %v5620_v6, %v5616_v48 }
 0x2b7   : > { %7407 = vmatpush1.bf16.msra.mxu0 %v15518_v12  ;;  %v13850_v52 = vpop.f32.mrb[199].mxu1  ;;  %v5603_v12 = vsel %vm16156_vm2, %v5598_v5, %v5602_v43 }
 0x2b8   : > { %8532 = vmatprep.subr.bf16.mxu0 %v15525_v40  ;;  %v17527_v17 = vadd.f32 %v13848_v1, %v19474_v62  ;;  %v13851_v4 = vadd.f32 %v13850_v52, %v13849_v10  ;;  %v17541_v40 = vcombine.low %v5569_v22, %v5579_v45  ;;  %v17543_v33 = vcombine.high %v5593_v28, %v5603_v12  ;;  %v19476_v52 = vld [vmem:[#allocation19_spill] sm:$0xff]  ;;  %v19477_v22 = vld [vmem:[#allocation20_spill] sm:$0xff] }
 0x2b9   : > { %6190 = vmatmul.mubr.bf16.gmra.mrb[32].mxu0 %v17427_v26  ;;  %6399 = vmatmul.mubr.bf16.gmra.mrb[48].mxu1 %v17522_v59  ;;  %v5624_v26 = vshll.u32 %v12868_v50, 16  ;;  %v5612_v10 = vrot.slane %v5611_v53, 4  ;;  %v5622_v58 = vrot.slane %v5621_v2, 4  ;;  %v6817_v62 = vrot.slane %v12950_v18, 5  ;;  %v12951_v50 = vld [vmem:[%s16006_s9 + $0x28] sm:$0x11] }
 0x2ba   : > { %6199 = vmatprep.mubr.bf16.mxu0 %v17431_v16  ;;  %v17534_v25 = vadd.f32 %v13851_v4, %v19475_v34  ;;  %6406 = vmatprep.mubr.bf16.mxu1 %v17524_v24  ;;  %v17562_v53 = vcombine.low %v5593_v28, %v5603_v12  ;;  %v19479_v28 = vld [vmem:[#allocation22_spill] sm:$0xff] }
 0x2bb   : > { %v5626_v15 = vrot.slane %v5624_v26, 5  ;;  %v5617_v8 = vsel %vm16156_vm2, %v5612_v10, %v5616_v48  ;;  %v6819_v48 = vrot.slane %v6817_v62, 4 }
 0x2bc   : > { %v13852_v31 = vpop.f32.mrb[200].mxu1 }
 0x2bd   : > { %v13853_v49 = vpop.f32.mrb[201].mxu1  ;;  %v5627_v6 = vsel %vm16156_vm2, %v5622_v58, %v5626_v15  ;;  %v17571_v58 = vld [vmem:[%s16006_s9 + $0x38] sm:$0xff] }
 0x2be   : > { %v13854_v16 = vadd.f32 %v13853_v49, %v13852_v31  ;;  %v13855_v47 = vpop.f32.mrb[202].mxu1  ;;  %v17564_v26 = vcombine.high %v5617_v8, %v5627_v6  ;;  %v6824_v18 = vrot.slane %v17571_v58, 5  ;;  %v15609_v15 = vld [vmem:[#allocation3 + $0xab0] ss:$12 sps:$4 sm:$0xff]  }
 0x2bf   : > { %v13856_v1 = vpop.f32.mrb[203].mxu1 }
 0x2c0   : > { %v17546_v5 = vadd.f32 %v13854_v16, %v19476_v52  ;;  %v13857_v43 = vadd.f32 %v13856_v1, %v13855_v47  ;;  %v6820_v16 = vrot.slane %v12951_v50, 5  ;;  %v19478_v47 = vld [vmem:[#allocation21_spill] sm:$0xff]  ;;  %v17586_v50 = vcombine.low %v5617_v8, %v5627_v6  ;;  %v19481_v8 = vld [vmem:[#allocation23_spill] sm:$0xff] }
 0x2c1   : > { %6200 = vmatmul.mubr.bf16.gmra.mrb[36].mxu0 %v17456_v23  ;;  %6407 = vmatmul.mubr.bf16.gmra.mrb[52].mxu1 %v17541_v40  ;;  %v12949_v23 = vld [vmem:[%s16006_s9 + $0x18] sm:$0xee] }
 0x2c2   : > { %6209 = vmatprep.mubr.bf16.mxu0 %v17459_v44  ;;  %v17553_v45 = vadd.f32 %v13857_v43, %v19477_v22  ;;  %6414 = vmatprep.mubr.bf16.mxu1 %v17543_v33  ;;  %v12997_v49 = vrot.slane %v12949_v23, 9  ;;  %v6821_v43 = vsel %vm16533_vm5, %v6819_v48, %v6820_v16  ;;  %v12952_v22 = vld [vmem:[%s16006_s9 + $0x30] sm:$0xee] }
 0x2c4   : > { %v13858_v4 = vpop.f32.mrb[204].mxu1  ;;  %v6818_v52 = vsel %vm16533_vm5, %v12997_v49, %v6817_v62  ;;  %v6826_v62 = vrot.slane %v6824_v18, 4 }
 0x2c5   : > { %v13859_v34 = vpop.f32.mrb[205].mxu1 }
 0x2c6   : > { %v13860_v44 = vadd.f32 %v13859_v34, %v13858_v4  ;;  %v13861_v2 = vpop.f32.mrb[206].mxu1  ;;  %v12954_v4 = vld [vmem:[%s16006_s9 + $0x40] sm:$0x11] }
 0x2c7   : > { %v13862_v31 = vpop.f32.mrb[207].mxu1  ;;  %v6827_v49 = vrot.slane %v12954_v4, 5 }
 0x2c8   : > { %v17567_v1 = vadd.f32 %v13860_v44, %v19478_v47  ;;  %v13863_v10 = vadd.f32 %v13862_v31, %v13861_v2  ;;  %v17588_v44 = vcombine.high %v6818_v52, %v6821_v43  ;;  %v12998_v31 = vrot.slane %v12952_v22, 9  ;;  %v17595_v47 = vld [vmem:[%s16006_s9 + $0x50] sm:$0xff]  ;;  %v12957_v22 = vld [vmem:[%s16006_s9 + $0x58] sm:$0x11] }
 0x2c9   : > { %6210 = vmatmul.mubr.bf16.gmra.mrb[40].mxu0 %v17479_v14  ;;  %6415 = vmatmul.mubr.bf16.gmra.mrb[56].mxu1 %v17562_v53 }
 0x2ca   : > { %6219 = vmatprep.mubr.bf16.mxu0 %v17481_v30  ;;  %v17576_v12 = vadd.f32 %v13863_v10, %v19479_v28  ;;  %6422 = vmatprep.mubr.bf16.mxu1 %v17564_v26  ;;  %v6825_v10 = vsel %vm16533_vm5, %v12998_v31, %v6824_v18  ;;  %v6831_v28 = vrot.slane %v17595_v47, 5  ;;  %v6834_v31 = vrot.slane %v12957_v22, 5  ;;  %v15537_v22 = vld [vmem:[#allocation3 + $0x9f8] ss:$12 sps:$4 sm:$0xff]  }
 0x2cc   : > { %v13864_v14 = vpop.f32.mrb[208].mxu1  ;;  %v6833_v18 = vrot.slane %v6831_v28, 4 }
 0x2cd   : > { %v13865_v23 = vpop.f32.mrb[209].mxu1 }
 0x2ce   : > { %v13866_v30 = vadd.f32 %v13865_v23, %v13864_v14  ;;  %v13867_v34 = vpop.f32.mrb[210].mxu1  ;;  %v12955_v14 = vld [vmem:[%s16006_s9 + $0x48] sm:$0xee]  ;;  %v17610_v23 = vcombine.low %v6818_v52, %v6821_v43 }
 0x2cf   : > { %v13868_v2 = vpop.f32.mrb[211].mxu1  ;;  %v17619_v52 = vld [vmem:[%s16006_s9 + $0x68] sm:$0xff] }
 0x2d0   : > { %v17591_v48 = vadd.f32 %v13866_v30, %v17210_v56  ;;  %v13869_v16 = vadd.f32 %v13868_v2, %v13867_v34  ;;  %v6828_v56 = vsel %vm16533_vm5, %v6826_v62, %v6827_v49  ;;  %v15522_v2 = vld [vmem:[#allocation3 + $0x908] ss:$12 sps:$4 sm:$0xff]   ;;  %19483 = vst [vmem:[#allocation25_spill] sm:$0xff] %v17619_v52 }
 0x2d1   : > { %6220 = vmatmul.mubr.bf16.gmra.mrb[44].mxu0 %v17501_v35  ;;  %6423 = vmatmul.mubr.bf16.gmra.mrb[60].mxu1 %v17586_v50  ;;  %v17612_v34 = vcombine.high %v6825_v10, %v6828_v56 }
 0x2d2   : > { %6229 = vmatprep.mubr.bf16.mxu0 %v17503_v42  ;;  %v17600_v6 = vadd.f32 %v13869_v16, %v19481_v8  ;;  %7601 = vmatprep.mubr.bf16.mxu1 %v17588_v44  ;;  %v12999_v8 = vrot.slane %v12955_v14, 9  ;;  %v6835_v14 = vsel %vm16533_vm5, %v6833_v18, %v6834_v31 }
 0x2d4   : > { %v13870_v35 = vpop.f32.mrb[212].mxu1 }
 0x2d5   : > { %v13871_v4 = vpop.f32.mrb[213].mxu1 }
 0x2d6   : > { %v13872_v42 = vadd.f32 %v13871_v4, %v13870_v35  ;;  %v13873_v30 = vpop.f32.mrb[214].mxu1  ;;  %v15530_v35 = vld [vmem:[#allocation3 + $0x920] ss:$12 sps:$4 sm:$0xff]  }
 0x2d7   : > { %v13874_v16 = vpop.f32.mrb[215].mxu1 }
 0x2d8   : > { %v17615_v62 = vadd.f32 %v13872_v42, %v17231_v3  ;;  %v13875_v49 = vadd.f32 %v13874_v16, %v13873_v30  ;;  %v6832_v3 = vsel %vm16533_vm5, %v12999_v8, %v6831_v28  ;;  %v12958_v42 = vld [vmem:[%s16006_s9 + $0x60] sm:$0xee] }
 0x2d9   : > { %6230 = vmatmul.mubr.bf16.gmra.mrb[48].mxu0 %v17522_v59  ;;  %7602 = vmatmul.mubr.bf16.vlgmr.msra.gmra.mrb[64].mxu1 %v17610_v23  ;;  %v6838_v59 = vrot.slane %v17619_v52, 5  ;;  %v15538_v28 = vld [vmem:[#allocation3 + $0x938] ss:$12 sps:$4 sm:$0xff]  }
 0x2da   : > { %19482 = vst [vmem:[#allocation24_spill] sm:$0xff] %v17615_v62  ;;  %6239 = vmatprep.mubr.bf16.mxu0 %v17524_v24  ;;  %v17624_v43 = vadd.f32 %v13875_v49, %v17239_v7  ;;  %7609 = vmatprep.mubr.bf16.mxu1 %v17612_v34  ;;  %v12960_v24 = vld [vmem:[%s16006_s9 + $0x70] sm:$0x11]  ;;  %v17634_v7 = vcombine.low %v6825_v10, %v6828_v56  ;;  %v17643_v10 = vld [vmem:[%s16006_s9 + $0x80] sm:$0xff] }
 0x2db   : > { %14161 = vmatpush3.bf16.msra.mxu1 %v15522_v2  ;;  %v17636_v49 = vcombine.high %v6832_v3, %v6835_v14  ;;  %v6840_v18 = vrot.slane %v6838_v59, 4  ;;  %v6841_v31 = vrot.slane %v12960_v24, 5  ;;  %19485 = vst [vmem:[#allocation15_spill] sm:$0xff] %v17643_v10  ;;  %v12961_v24 = vld [vmem:[%s16006_s9 + $0x78] sm:$0xee] }
 0x2dc   : > { %19484 = vst [vmem:[#allocation14_spill] sm:$0xff] %v17624_v43  ;;  %14162 = vmatprep.subr.bf16.mxu1 %v15529_v61  ;;  %v13876_v4 = vpop.f32.mrb[216].mxu1  ;;  %v13000_v43 = vrot.slane %v12958_v42, 9  ;;  %v15545_v61 = vld [vmem:[#allocation3 + $0xa10] ss:$12 sps:$4 sm:$0xff]  }
 0x2dd   : > { %v13877_v30 = vpop.f32.mrb[217].mxu1 }
 0x2de   : > { %v13878_v16 = vadd.f32 %v13877_v30, %v13876_v4  ;;  %v13879_v2 = vpop.f32.mrb[218].mxu1  ;;  %v15553_v4 = vld [vmem:[#allocation3 + $0xa28] ss:$12 sps:$4 sm:$0xff]  }
 0x2df   : > { %14163 = vmatpush3.bf16.msra.mxu1 %v15530_v35  ;;  %v13880_v8 = vpop.f32.mrb[219].mxu1  ;;  %v15546_v35 = vld [vmem:[#allocation3 + $0x950] ss:$12 sps:$4 sm:$0xff]  }
 0x2e0   : > { %14164 = vmatprep.subr.bf16.mxu1 %v15537_v22  ;;  %v17639_v52 = vadd.f32 %v13878_v16, %v17255_v55  ;;  %v13881_v62 = vadd.f32 %v13880_v8, %v13879_v2  ;;  %v6839_v55 = vsel %vm16533_vm5, %v13000_v43, %v6838_v59  ;;  %v6842_v22 = vsel %vm16533_vm5, %v6840_v18, %v6841_v31  ;;  %v15554_v43 = vld [vmem:[#allocation3 + $0x968] ss:$12 sps:$4 sm:$0xff]   ;;  %v15561_v31 = vld [vmem:[#allocation3 + $0xa40] ss:$12 sps:$4 sm:$0xff]  }
 0x2e1   : > { %6240 = vmatmul.mubr.bf16.gmra.mrb[52].mxu0 %v17541_v40  ;;  %7610 = vmatmul.mubr.bf16.gmra.mrb[68].mxu1 %v17634_v7  ;;  %v6845_v40 = vrot.slane %v17643_v10, 5  ;;  %v17660_v2 = vcombine.high %v6839_v55, %v6842_v22 }
 0x2e2   : > { %6249 = vmatprep.mubr.bf16.mxu0 %v17543_v33  ;;  %v17648_v56 = vadd.f32 %v13881_v62, %v17268_v20  ;;  %7617 = vmatprep.mubr.bf16.mxu1 %v17636_v49  ;;  %v12963_v33 = vld [vmem:[%s16006_s9 + $0x88] sm:$0x11]  ;;  %v17658_v20 = vcombine.low %v6832_v3, %v6835_v14  ;;  %v17667_v3 = vld [vmem:[%s16006_s9 + $0x98] sm:$0xff] }
 0x2e3   : > { %14165 = vmatpush3.bf16.msra.mxu1 %v15538_v28  ;;  %v13001_v28 = vrot.slane %v12961_v24, 9  ;;  %v6847_v8 = vrot.slane %v6845_v40, 4  ;;  %v6848_v18 = vrot.slane %v12963_v33, 5  ;;  %19486 = vst [vmem:[#allocation16_spill] sm:$0xff] %v17667_v3  ;;  %v12964_v33 = vld [vmem:[%s16006_s9 + $0x90] sm:$0xee] }
 0x2e4   : > { %14166 = vmatprep.subr.bf16.mxu1 %v15545_v61  ;;  %v13882_v42 = vpop.f32.mrb[220].mxu1 }
 0x2e5   : > { %v13883_v30 = vpop.f32.mrb[221].mxu1 }
 0x2e6   : > { %v13884_v62 = vadd.f32 %v13883_v30, %v13882_v42  ;;  %v13885_v16 = vpop.f32.mrb[222].mxu1  ;;  %v15569_v42 = vld [vmem:[#allocation3 + $0xa58] ss:$12 sps:$4 sm:$0xff]  }
 0x2e7   : > { %14167 = vmatpush3.bf16.msra.mxu1 %v15546_v35  ;;  %v13886_v59 = vpop.f32.mrb[223].mxu1  ;;  %v15562_v35 = vld [vmem:[#allocation3 + $0x980] ss:$12 sps:$4 sm:$0xff]  }
 0x2e8   : > { %14168 = vmatprep.subr.bf16.mxu1 %v15553_v4  ;;  %v17663_v61 = vadd.f32 %v13884_v62, %v17283_v9  ;;  %v13887_v10 = vadd.f32 %v13886_v59, %v13885_v16  ;;  %v6846_v9 = vsel %vm16533_vm5, %v13001_v28, %v6845_v40  ;;  %v6849_v4 = vsel %vm16533_vm5, %v6847_v8, %v6848_v18  ;;  %v15570_v40 = vld [vmem:[#allocation3 + $0x998] ss:$12 sps:$4 sm:$0xff]   ;;  %v15571_v18 = vld [vmem:[#allocation3 + $0xa70] ss:$12 sps:$4 sm:$0xff]  }
 0x2e9   : > { %6250 = vmatmul.mubr.bf16.gmra.mrb[56].mxu0 %v17562_v53  ;;  %7618 = vmatmul.mubr.bf16.gmra.mrb[72].mxu1 %v17658_v20  ;;  %v6852_v53 = vrot.slane %v17667_v3, 5  ;;  %v17684_v16 = vcombine.high %v6846_v9, %v6849_v4  ;;  %v13002_v59 = vrot.slane %v12964_v33, 9  ;;  %v12967_v33 = vld [vmem:[%s16006_s9 + $0xa8] sm:$0xee] }
 0x2ea   : > { %6259 = vmatprep.mubr.bf16.mxu0 %v17564_v26  ;;  %v17672_v14 = vadd.f32 %v13887_v10, %v17293_v57  ;;  %7625 = vmatprep.mubr.bf16.mxu1 %v17660_v2  ;;  %v12966_v26 = vld [vmem:[%s16006_s9 + $0xa0] sm:$0x11]  ;;  %v17682_v57 = vcombine.low %v6839_v55, %v6842_v22  ;;  %v17691_v55 = vld [vmem:[%s16006_s9 + $0xb0] sm:$0xff] }
 0x2eb   : > { %14169 = vmatpush3.bf16.msra.mxu1 %v15554_v43  ;;  %v6854_v28 = vrot.slane %v6852_v53, 4  ;;  %v6855_v8 = vrot.slane %v12966_v26, 5  ;;  %19487 = vst [vmem:[#allocation17_spill] sm:$0xff] %v17691_v55  ;;  %v12969_v26 = vld [vmem:[%s16006_s9 + $0xb8] sm:$0x11] }
 0x2ec   : > { %14170 = vmatprep.subr.bf16.mxu1 %v15561_v31  ;;  %v13888_v24 = vpop.f32.mrb[224].mxu1 }
 0x2ed   : > { %v13889_v30 = vpop.f32.mrb[225].mxu1 }
 0x2ee   : > { %v13890_v10 = vadd.f32 %v13889_v30, %v13888_v24  ;;  %v13891_v62 = vpop.f32.mrb[226].mxu1 }
 0x2ef   : > { %14171 = vmatpush3.bf16.msra.mxu1 %v15562_v35  ;;  %v13892_v43 = vpop.f32.mrb[227].mxu1  ;;  %v15572_v35 = vld [vmem:[#allocation3 + $0x9b0] ss:$12 sps:$4 sm:$0xff]  }
 0x2f0   : > { %14172 = vmatprep.subr.bf16.mxu1 %v15569_v42  ;;  %v17687_v31 = vadd.f32 %v13890_v10, %v17308_v11  ;;  %v13893_v3 = vadd.f32 %v13892_v43, %v13891_v62  ;;  %v6853_v11 = vsel %vm16533_vm5, %v13002_v59, %v6852_v53  ;;  %v6856_v42 = vsel %vm16533_vm5, %v6854_v28, %v6855_v8  ;;  %v15593_v53 = vld [vmem:[#allocation3 + $0xb48] ss:$12 sps:$4 sm:$0xff]  }
 0x2f1   : > { %6260 = vmatmul.mubr.bf16.gmra.mrb[60].mxu0 %v17586_v50  ;;  %7626 = vmatmul.mubr.bf16.gmra.mrb[76].mxu1 %v17682_v57  ;;  %v6859_v50 = vrot.slane %v17691_v55, 5  ;;  %v17708_v62 = vcombine.high %v6853_v11, %v6856_v42  ;;  %v15528_v43 = vld [vmem:[#allocation3 + $0x91c] ss:$12 sps:$4 sm:$0xff]   ;;  %v13003_v59 = vrot.slane %v12967_v33, 9  ;;  %v6862_v8 = vrot.slane %v12969_v26, 5 }
 0x2f2   : > { %7408 = vmatprep.mubr.bf16.mxu0 %v17588_v44  ;;  %v17696_v22 = vadd.f32 %v13893_v3, %v17314_v0  ;;  %7633 = vmatprep.mubr.bf16.mxu1 %v17684_v16  ;;  %v17706_v0 = vcombine.low %v6846_v9, %v6849_v4  ;;  %v15523_v3 = vld [vmem:[#allocation3 + $0x900] ss:$12 sps:$4 sm:$0xff]   ;;  %v15526_v4 = vld [vmem:[#allocation3 + $0x918] ss:$12 sps:$4 sm:$0xff]  }
 0x2f3   : > { %14173 = vmatpush3.bf16.msra.mxu1 %v15570_v40  ;;  %v6861_v28 = vrot.slane %v6859_v50, 4  ;;  %v17715_v9 = vld [vmem:[%s16006_s9 + $0xc8] sm:$0xff] }
 0x2f4   : > { %14174 = vmatprep.subr.bf16.mxu1 %v15571_v18  ;;  %v13894_v24 = vpop.f32.mrb[228].mxu1  ;;  %19488 = vst [vmem:[#allocation18_spill] sm:$0xff] %v17715_v9  ;;  %v6866_v33 = vrot.slane %v17715_v9, 5 }
 0x2f5   : > { %v13895_v44 = vpop.f32.mrb[229].mxu1 }
 0x2f6   : > { %v13896_v30 = vadd.f32 %v13895_v44, %v13894_v24  ;;  %v13897_v10 = vpop.f32.mrb[230].mxu1  ;;  %v6863_v24 = vsel %vm16533_vm5, %v6861_v28, %v6862_v8  ;;  %v12970_v44 = vld [vmem:[%s16006_s9 + $0xc0] sm:$0xee] }
 0x2f7   : > { %14175 = vmatpush3.bf16.msra.mxu1 %v15572_v35  ;;  %v13898_v40 = vpop.f32.mrb[231].mxu1  ;;  %v15536_v28 = vld [vmem:[#allocation3 + $0x94c] ss:$12 sps:$4 sm:$0xff]  }
 0x2f8   : > { %v17711_v18 = vadd.f32 %v13896_v30, %v17332_v38  ;;  %v13899_v55 = vadd.f32 %v13898_v40, %v13897_v10  ;;  %14272 = vmatprep.subr.bf16.mxu1 %v15593_v53  ;;  %v15533_v38 = vld [vmem:[#allocation3 + $0x934] ss:$12 sps:$4 sm:$0xff]   ;;  %v15531_v53 = vld [vmem:[#allocation3 + $0x930] ss:$12 sps:$4 sm:$0xff]   ;;  %v13004_v40 = vrot.slane %v12970_v44, 9 }
 0x2f9   : > { %7409 = vmatmul.mubr.bf16.vlgmr.msra.gmra.mrb[0].mxu0 %v17610_v23  ;;  %7634 = vmatmul.mubr.bf16.gmra.mrb[80].mxu1 %v17706_v0  ;;  %v6860_v23 = vsel %vm16533_vm5, %v13003_v59, %v6859_v50 }
 0x2fa   : > { %8533 = vmatpush1.bf16.msra.mxu0 %v15523_v3  ;;  %v17719_v35 = vadd.f32 %v13899_v55, %v17344_v27  ;;  %7418 = vmatprep.mubr.bf16.mxu0 %v17612_v34  ;;  %v12972_v3 = vld [vmem:[%s16006_s9 + $0xd0] sm:$0x11]  ;;  %v17730_v27 = vcombine.low %v6853_v11, %v6856_v42  ;;  %v17732_v10 = vcombine.high %v6860_v23, %v6863_v24  ;;  %v17739_v11 = vld [vmem:[%s16006_s9 + $0xe0] sm:$0xff] }
 0x2fb   : > { %7641 = vmatprep.mubr.bf16.mxu1 %v17708_v62  ;;  %8534 = vmatprep.subr.bf16.mxu0 %v15528_v43  ;;  %v6868_v43 = vrot.slane %v6866_v33, 4  ;;  %v6869_v59 = vrot.slane %v12972_v3, 5  ;;  %19489 = vst [vmem:[#allocation19_spill] sm:$0xff] %v17739_v11  ;;  %v12973_v3 = vld [vmem:[%s16006_s9 + $0xd8] sm:$0xee] }
 0x2fc   : > { %v13900_v26 = vpop.f32.mrb[232].mxu1 }
 0x2fd   : > { %v13901_v30 = vpop.f32.mrb[233].mxu1 }
 0x2fe   : > { %8535 = vmatpush1.bf16.msra.mxu0 %v15526_v4  ;;  %v13902_v34 = vadd.f32 %v13901_v30, %v13900_v26  ;;  %v13903_v55 = vpop.f32.mrb[234].mxu1  ;;  %v15534_v4 = vld [vmem:[#allocation3 + $0x948] ss:$12 sps:$4 sm:$0xff]   ;;  %v15541_v26 = vld [vmem:[#allocation3 + $0x964] ss:$12 sps:$4 sm:$0xff]  }
 0x2ff   : > { %8536 = vmatprep.subr.bf16.mxu0 %v15533_v38  ;;  %v13904_v50 = vpop.f32.mrb[235].mxu1  ;;  %v6870_v38 = vsel %vm16533_vm5, %v6868_v43, %v6869_v59  ;;  %v15544_v59 = vld [vmem:[#allocation3 + $0x97c] ss:$12 sps:$4 sm:$0xff]  }
 0x300   : > { %v17735_v8 = vadd.f32 %v13902_v34, %v17358_v39  ;;  %v13905_v9 = vadd.f32 %v13904_v50, %v13903_v55  ;;  %v6867_v39 = vsel %vm16533_vm5, %v13004_v40, %v6866_v33  ;;  %v15539_v33 = vld [vmem:[#allocation3 + $0x960] ss:$12 sps:$4 sm:$0xff]   ;;  %v13005_v50 = vrot.slane %v12973_v3, 9 }
 0x301   : > { %7419 = vmatmul.mubr.bf16.gmra.mrb[4].mxu0 %v17634_v7  ;;  %7642 = vmatmul.mubr.bf16.gmra.mrb[84].mxu1 %v17730_v27  ;;  %v6873_v7 = vrot.slane %v17739_v11, 5  ;;  %v17756_v55 = vcombine.high %v6867_v39, %v6870_v38 }
 0x302   : > { %7428 = vmatprep.mubr.bf16.mxu0 %v17636_v49  ;;  %v17744_v42 = vadd.f32 %v13905_v9, %v17368_v60  ;;  %7649 = vmatprep.mubr.bf16.mxu1 %v17732_v10  ;;  %v12975_v49 = vld [vmem:[%s16006_s9 + $0xe8] sm:$0x11]  ;;  %v17754_v60 = vcombine.low %v6860_v23, %v6863_v24  ;;  %v17763_v23 = vld [vmem:[%s16006_s9 + $0xf8] sm:$0xff] }
 0x303   : > { %8537 = vmatpush1.bf16.msra.mxu0 %v15531_v53  ;;  %v6875_v40 = vrot.slane %v6873_v7, 4  ;;  %v6876_v43 = vrot.slane %v12975_v49, 5  ;;  %19490 = vst [vmem:[#allocation20_spill] sm:$0xff] %v17763_v23  ;;  %v12976_v49 = vld [vmem:[%s16006_s9 + $0xf0] sm:$0xee] }
 0x304   : > { %8538 = vmatprep.subr.bf16.mxu0 %v15536_v28  ;;  %v13906_v44 = vpop.f32.mrb[236].mxu1 }
 0x305   : > { %v13907_v30 = vpop.f32.mrb[237].mxu1 }
 0x306   : > { %v13908_v9 = vadd.f32 %v13907_v30, %v13906_v44  ;;  %v13909_v34 = vpop.f32.mrb[238].mxu1  ;;  %v15549_v44 = vld [vmem:[#allocation3 + $0x994] ss:$12 sps:$4 sm:$0xff]  }
 0x307   : > { %8539 = vmatpush1.bf16.msra.mxu0 %v15534_v4  ;;  %v13910_v53 = vpop.f32.mrb[239].mxu1  ;;  %v15542_v4 = vld [vmem:[#allocation3 + $0x978] ss:$12 sps:$4 sm:$0xff]  }
 0x308   : > { %8540 = vmatprep.subr.bf16.mxu0 %v15541_v26  ;;  %v17759_v28 = vadd.f32 %v13908_v9, %v17385_v19  ;;  %v13911_v11 = vadd.f32 %v13910_v53, %v13909_v34  ;;  %v6874_v19 = vsel %vm16533_vm5, %v13005_v50, %v6873_v7  ;;  %v6877_v26 = vsel %vm16533_vm5, %v6875_v40, %v6876_v43  ;;  %v15547_v7 = vld [vmem:[#allocation3 + $0x990] ss:$12 sps:$4 sm:$0xff]   ;;  %v15552_v43 = vld [vmem:[#allocation3 + $0x9ac] ss:$12 sps:$4 sm:$0xff]  }
 0x309   : > { %7429 = vmatmul.mubr.bf16.gmra.mrb[8].mxu0 %v17658_v20  ;;  %7650 = vmatmul.mubr.bf16.gmra.mrb[88].mxu1 %v17754_v60  ;;  %v6880_v20 = vrot.slane %v17763_v23, 5  ;;  %v17780_v34 = vcombine.high %v6874_v19, %v6877_v26  ;;  %v13006_v53 = vrot.slane %v12976_v49, 9 }
 0x30a   : > { %7438 = vmatprep.mubr.bf16.mxu0 %v17660_v2  ;;  %v17768_v24 = vadd.f32 %v13911_v11, %v17392_v63  ;;  %7657 = vmatprep.mubr.bf16.mxu1 %v17756_v55  ;;  %v12978_v2 = vld [vmem:[%s16006_s9 + $0x100] sm:$0x11]  ;;  %v17778_v63 = vcombine.low %v6867_v39, %v6870_v38  ;;  %v17787_v39 = vld [vmem:[%s16006_s9 + $0x110] sm:$0xff] }
 0x30b   : > { %8541 = vmatpush1.bf16.msra.mxu0 %v15539_v33  ;;  %v6882_v50 = vrot.slane %v6880_v20, 4  ;;  %v6883_v40 = vrot.slane %v12978_v2, 5  ;;  %19491 = vst [vmem:[#allocation21_spill] sm:$0xff] %v17787_v39  ;;  %v12979_v2 = vld [vmem:[%s16006_s9 + $0x108] sm:$0xee] }
 0x30c   : > { %8542 = vmatprep.subr.bf16.mxu0 %v15544_v59  ;;  %v13912_v3 = vpop.f32.mrb[240].mxu1 }
 0x30d   : > { %v13913_v30 = vpop.f32.mrb[241].mxu1 }
 0x30e   : > { %v13914_v11 = vadd.f32 %v13913_v30, %v13912_v3  ;;  %v13915_v9 = vpop.f32.mrb[242].mxu1  ;;  %v15557_v3 = vld [vmem:[#allocation3 + $0x9c4] ss:$12 sps:$4 sm:$0xff]  }
 0x30f   : > { %8543 = vmatpush1.bf16.msra.mxu0 %v15542_v4  ;;  %v13916_v33 = vpop.f32.mrb[243].mxu1  ;;  %v15550_v4 = vld [vmem:[#allocation3 + $0x9a8] ss:$12 sps:$4 sm:$0xff]  }
 0x310   : > { %8544 = vmatprep.subr.bf16.mxu0 %v15549_v44  ;;  %v17783_v59 = vadd.f32 %v13914_v11, %v17410_v46  ;;  %v13917_v23 = vadd.f32 %v13916_v33, %v13915_v9  ;;  %v6881_v46 = vsel %vm16533_vm5, %v13006_v53, %v6880_v20  ;;  %v6884_v44 = vsel %vm16533_vm5, %v6882_v50, %v6883_v40  ;;  %v15555_v20 = vld [vmem:[#allocation3 + $0x9c0] ss:$12 sps:$4 sm:$0xff]   ;;  %v15560_v40 = vld [vmem:[#allocation3 + $0x9dc] ss:$12 sps:$4 sm:$0xff]  }
 0x311   : > { %7439 = vmatmul.mubr.bf16.gmra.mrb[12].mxu0 %v17682_v57  ;;  %7658 = vmatmul.mubr.bf16.gmra.mrb[92].mxu1 %v17778_v63  ;;  %v6887_v57 = vrot.slane %v17787_v39, 5  ;;  %v17804_v9 = vcombine.high %v6881_v46, %v6884_v44  ;;  %v13007_v33 = vrot.slane %v12979_v2, 9 }
 0x312   : > { %7448 = vmatprep.mubr.bf16.mxu0 %v17684_v16  ;;  %v17792_v38 = vadd.f32 %v13917_v23, %v17424_v13  ;;  %7665 = vmatprep.mubr.bf16.mxu1 %v17780_v34  ;;  %v12981_v16 = vld [vmem:[%s16006_s9 + $0x118] sm:$0x11]  ;;  %v17802_v13 = vcombine.low %v6874_v19, %v6877_v26  ;;  %v17811_v19 = vld [vmem:[%s16006_s9 + $0x128] sm:$0xff] }
 0x313   : > { %8545 = vmatpush1.bf16.msra.mxu0 %v15547_v7  ;;  %v6889_v53 = vrot.slane %v6887_v57, 4  ;;  %v6890_v50 = vrot.slane %v12981_v16, 5  ;;  %19492 = vst [vmem:[#allocation22_spill] sm:$0xff] %v17811_v19  ;;  %v12982_v16 = vld [vmem:[%s16006_s9 + $0x120] sm:$0xee] }
 0x314   : > { %8546 = vmatprep.subr.bf16.mxu0 %v15552_v43  ;;  %v13918_v49 = vpop.f32.mrb[244].mxu1 }
 0x315   : > { %v13919_v30 = vpop.f32.mrb[245].mxu1 }
 0x316   : > { %v13920_v23 = vadd.f32 %v13919_v30, %v13918_v49  ;;  %v13921_v11 = vpop.f32.mrb[246].mxu1  ;;  %v15565_v49 = vld [vmem:[#allocation3 + $0x9f4] ss:$12 sps:$4 sm:$0xff]  }
 0x317   : > { %8547 = vmatpush1.bf16.msra.mxu0 %v15550_v4  ;;  %v13922_v7 = vpop.f32.mrb[247].mxu1  ;;  %v15558_v4 = vld [vmem:[#allocation3 + $0x9d8] ss:$12 sps:$4 sm:$0xff]  }
 0x318   : > { %8548 = vmatprep.subr.bf16.mxu0 %v15557_v3  ;;  %v17807_v43 = vadd.f32 %v13920_v23, %v17437_v37  ;;  %v13923_v39 = vadd.f32 %v13922_v7, %v13921_v11  ;;  %v6888_v37 = vsel %vm16533_vm5, %v13007_v33, %v6887_v57  ;;  %v6891_v3 = vsel %vm16533_vm5, %v6889_v53, %v6890_v50  ;;  %v15563_v57 = vld [vmem:[#allocation3 + $0x9f0] ss:$12 sps:$4 sm:$0xff]   ;;  %v15568_v50 = vld [vmem:[#allocation3 + $0xa0c] ss:$12 sps:$4 sm:$0xff]  }
 0x319   : > { %7449 = vmatmul.mubr.bf16.gmra.mrb[16].mxu0 %v17706_v0  ;;  %7666 = vmatmul.mubr.bf16.gmra.mrb[96].mxu1 %v17802_v13  ;;  %v6894_v0 = vrot.slane %v17811_v19, 5  ;;  %v17828_v11 = vcombine.high %v6888_v37, %v6891_v3  ;;  %v13008_v7 = vrot.slane %v12982_v16, 9 }
 0x31a   : > { %7458 = vmatprep.mubr.bf16.mxu0 %v17708_v62  ;;  %v17816_v26 = vadd.f32 %v13923_v39, %v17447_v51  ;;  %7673 = vmatprep.mubr.bf16.mxu1 %v17804_v9  ;;  %v12984_v62 = vld [vmem:[%s16006_s9 + $0x130] sm:$0x11]  ;;  %v17826_v51 = vcombine.low %v6881_v46, %v6884_v44  ;;  %v17835_v46 = vld [vmem:[%s16006_s9 + $0x140] sm:$0xff] }
 0x31b   : > { %8549 = vmatpush1.bf16.msra.mxu0 %v15555_v20  ;;  %v6896_v33 = vrot.slane %v6894_v0, 4  ;;  %v6897_v53 = vrot.slane %v12984_v62, 5  ;;  %19493 = vst [vmem:[#allocation23_spill] sm:$0xff] %v17835_v46  ;;  %v12985_v62 = vld [vmem:[%s16006_s9 + $0x138] sm:$0xee] }
 0x31c   : > { %8550 = vmatprep.subr.bf16.mxu0 %v15560_v40  ;;  %v13924_v2 = vpop.f32.mrb[248].mxu1 }
 0x31d   : > { %v13925_v30 = vpop.f32.mrb[249].mxu1 }
 0x31e   : > { %v13926_v39 = vadd.f32 %v13925_v30, %v13924_v2  ;;  %v13927_v23 = vpop.f32.mrb[250].mxu1  ;;  %v15577_v2 = vld [vmem:[#allocation3 + $0xa24] ss:$12 sps:$4 sm:$0xff]  }
 0x31f   : > { %8551 = vmatpush1.bf16.msra.mxu0 %v15558_v4  ;;  %v13928_v20 = vpop.f32.mrb[251].mxu1  ;;  %v15566_v4 = vld [vmem:[#allocation3 + $0xa08] ss:$12 sps:$4 sm:$0xff]  }
 0x320   : > { %8552 = vmatprep.subr.bf16.mxu0 %v15565_v49  ;;  %v17831_v40 = vadd.f32 %v13926_v39, %v17464_v54  ;;  %v13929_v19 = vadd.f32 %v13928_v20, %v13927_v23  ;;  %v6895_v54 = vsel %vm16533_vm5, %v13008_v7, %v6894_v0  ;;  %v6898_v49 = vsel %vm16533_vm5, %v6896_v33, %v6897_v53  ;;  %v15575_v0 = vld [vmem:[#allocation3 + $0xa20] ss:$12 sps:$4 sm:$0xff]   ;;  %v15582_v53 = vld [vmem:[#allocation3 + $0xa3c] ss:$12 sps:$4 sm:$0xff]  }
 0x321   : > { %7459 = vmatmul.mubr.bf16.gmra.mrb[20].mxu0 %v17730_v27  ;;  %7674 = vmatmul.mubr.bf16.gmra.mrb[100].mxu1 %v17826_v51  ;;  %v6901_v27 = vrot.slane %v17835_v46, 5  ;;  %v17852_v23 = vcombine.high %v6895_v54, %v6898_v49  ;;  %v13009_v20 = vrot.slane %v12985_v62, 9 }
 0x322   : > { %7468 = vmatprep.mubr.bf16.mxu0 %v17732_v10  ;;  %v17840_v44 = vadd.f32 %v13929_v19, %v17471_v32  ;;  %7681 = vmatprep.mubr.bf16.mxu1 %v17828_v11  ;;  %v12987_v10 = vld [vmem:[%s16006_s9 + $0x148] sm:$0x11]  ;;  %v17850_v32 = vcombine.low %v6888_v37, %v6891_v3  ;;  %v17859_v37 = vld [vmem:[%s16006_s9 + $0x158] sm:$0xff] }
 0x323   : > { %8553 = vmatpush1.bf16.msra.mxu0 %v15563_v57  ;;  %v6903_v7 = vrot.slane %v6901_v27, 4  ;;  %v6904_v33 = vrot.slane %v12987_v10, 5  ;;  %19494 = vst [vmem:[#allocation26_spill] sm:$0xff] %v17859_v37  ;;  %v12988_v10 = vld [vmem:[%s16006_s9 + $0x150] sm:$0xee] }
 0x324   : > { %8554 = vmatprep.subr.bf16.mxu0 %v15568_v50  ;;  %v13930_v16 = vpop.f32.mrb[252].mxu1 }
 0x325   : > { %v13931_v30 = vpop.f32.mrb[253].mxu1 }
 0x326   : > { %v13932_v19 = vadd.f32 %v13931_v30, %v13930_v16  ;;  %v13933_v39 = vpop.f32.mrb[254].mxu1  ;;  %v15587_v16 = vld [vmem:[#allocation3 + $0xa54] ss:$12 sps:$4 sm:$0xff]  }
 0x327   : > { %8555 = vmatpush1.bf16.msra.mxu0 %v15566_v4  ;;  %v13934_v57 = vpop.f32.mrb[255].mxu1  ;;  %v15580_v4 = vld [vmem:[#allocation3 + $0xa38] ss:$12 sps:$4 sm:$0xff]  }
 0x328   : > { %8556 = vmatprep.subr.bf16.mxu0 %v15577_v2  ;;  %v17855_v50 = vadd.f32 %v13932_v19, %v17487_v29  ;;  %v13935_v46 = vadd.f32 %v13934_v57, %v13933_v39  ;;  %v6902_v29 = vsel %vm16533_vm5, %v13009_v20, %v6901_v27  ;;  %v6905_v2 = vsel %vm16533_vm5, %v6903_v7, %v6904_v33  ;;  %v15585_v27 = vld [vmem:[#allocation3 + $0xa50] ss:$12 sps:$4 sm:$0xff]   ;;  %v15592_v33 = vld [vmem:[#allocation3 + $0xa6c] ss:$12 sps:$4 sm:$0xff]  }
 0x329   : > { %7469 = vmatmul.mubr.bf16.gmra.mrb[24].mxu0 %v17754_v60  ;;  %7682 = vmatmul.mubr.bf16.gmra.mrb[104].mxu1 %v17850_v32  ;;  %v6908_v60 = vrot.slane %v17859_v37, 5  ;;  %v17876_v39 = vcombine.high %v6902_v29, %v6905_v2  ;;  %v13010_v57 = vrot.slane %v12988_v10, 9  ;;  %v17880_v37 = vld [vmem:[%s16006_s9 + $0x170] sm:$0xff] }
 0x32a   : > { %7478 = vmatprep.mubr.bf16.mxu0 %v17756_v55  ;;  %v17864_v3 = vadd.f32 %v13935_v46, %v17498_v36  ;;  %7689 = vmatprep.mubr.bf16.mxu1 %v17852_v23  ;;  %v12990_v55 = vld [vmem:[%s16006_s9 + $0x160] sm:$0x11]  ;;  %v17874_v46 = vcombine.low %v6895_v54, %v6898_v49  ;;  %v15590_v49 = vld [vmem:[#allocation3 + $0xa68] ss:$12 sps:$4 sm:$0xff]  }
 0x32b   : > { %8557 = vmatpush1.bf16.msra.mxu0 %v15575_v0  ;;  %v6910_v20 = vrot.slane %v6908_v60, 4  ;;  %v6911_v7 = vrot.slane %v12990_v55, 5  ;;  %v12993_v55 = vld [vmem:[%s16006_s9 + $0x178] sm:$0x11] }
 0x32c   : > { %8558 = vmatprep.subr.bf16.mxu0 %v15582_v53  ;;  %v13952_v62 = vpop.f32.mrb[0].mxu1 }
 0x32d   : > { %v13953_v36 = vpop.f32.mrb[1].mxu1 }
 0x32e   : > { %v13954_v30 = vadd.f32 %v13953_v36, %v13952_v62  ;;  %v13955_v19 = vpop.f32.mrb[2].mxu1  ;;  %v15599_v62 = vld [vmem:[#allocation3 + $0xa84] ss:$12 sps:$4 sm:$0xff]  }
 0x32f   : > { %8559 = vmatpush1.bf16.msra.mxu0 %v15580_v4  ;;  %v13956_v0 = vpop.f32.mrb[3].mxu1 }
 0x330   : > { %8560 = vmatprep.subr.bf16.mxu0 %v15587_v16  ;;  %v13957_v53 = vadd.f32 %v13956_v0, %v13955_v19  ;;  %v17883_v54 = vadd.f32 %v13954_v30, %v17507_v21  ;;  %v6912_v16 = vsel %vm16533_vm5, %v6910_v20, %v6911_v7  ;;  %v6915_v21 = vrot.slane %v17880_v37, 5 }
 0x331   : > { %7479 = vmatmul.mubr.bf16.gmra.mrb[28].mxu0 %v17778_v63  ;;  %7690 = vmatmul.mubr.bf16.gmra.mrb[108].mxu1 %v17874_v46  ;;  %v6909_v63 = vsel %vm16533_vm5, %v13010_v57, %v6908_v60  ;;  %v17898_v30 = vcombine.low %v6902_v29, %v6905_v2  ;;  %v6918_v20 = vrot.slane %v12993_v55, 5 }
 0x332   : > { %7488 = vmatprep.mubr.bf16.mxu0 %v17780_v34  ;;  %7697 = vmatprep.mubr.bf16.mxu1 %v17876_v39  ;;  %v17889_v4 = vadd.f32 %v13957_v53, %v17519_v41  ;;  %v12991_v34 = vld [vmem:[%s16006_s9 + $0x168] sm:$0xee]  ;;  %v6917_v57 = vrot.slane %v6915_v21, 4  ;;  %v17922_v55 = vcombine.low %v6909_v63, %v6912_v16 }
 0x333   : > { %8561 = vmatpush1.bf16.msra.mxu0 %v15585_v27  ;;  %v17900_v27 = vcombine.high %v6909_v63, %v6912_v16  ;;  %v13011_v0 = vrot.slane %v12991_v34, 9 }
 0x334   : > { %8562 = vmatprep.subr.bf16.mxu0 %v15592_v33  ;;  %v13958_v10 = vpop.f32.mrb[4].mxu1  ;;  %v17904_v33 = vld [vmem:[%s16006_s9 + $0x188] sm:$0xff] }
 0x335   : > { %v13959_v36 = vpop.f32.mrb[5].mxu1  ;;  %v6916_v53 = vsel %vm16533_vm5, %v13011_v0, %v6915_v21 }
 0x336   : > { %v13960_v19 = vadd.f32 %v13959_v36, %v13958_v10  ;;  %v13961_v41 = vpop.f32.mrb[6].mxu1  ;;  %v12996_v10 = vld [vmem:[%s16006_s9 + $0x190] sm:$0x11] }
 0x337   : > { %8563 = vmatpush1.bf16.msra.mxu0 %v15590_v49  ;;  %v13962_v60 = vpop.f32.mrb[7].mxu1  ;;  %v6922_v49 = vrot.slane %v17904_v33, 5 }
 0x338   : > { %10055 = vmatprep.subr.bf16.mxu0 %v15599_v62  ;;  %v13963_v7 = vadd.f32 %v13962_v60, %v13961_v41  ;;  %v17907_v29 = vadd.f32 %v13960_v19, %v17527_v17  ;;  %v12994_v17 = vld [vmem:[%s16006_s9 + $0x180] sm:$0xee] }
 0x339   : > { %7489 = vmatmul.mubr.bf16.gmra.mrb[32].mxu0 %v17802_v13  ;;  %7698 = vmatmul.mubr.bf16.gmra.mrb[112].mxu1 %v17898_v30  ;;  %v6919_v13 = vsel %vm16533_vm5, %v6917_v57, %v6918_v20  ;;  %v13012_v41 = vrot.slane %v12994_v17, 9  ;;  %v6924_v60 = vrot.slane %v6922_v49, 4 }
 0x33a   : > { %7498 = vmatprep.mubr.bf16.mxu0 %v17804_v9  ;;  %7705 = vmatprep.mubr.bf16.mxu1 %v17900_v27  ;;  %v17913_v2 = vadd.f32 %v13963_v7, %v17534_v25  ;;  %v17924_v19 = vcombine.high %v6916_v53, %v6919_v13  ;;  %v6925_v7 = vrot.slane %v12996_v10, 5 }
 0x33b   : > { %v6923_v16 = vsel %vm16533_vm5, %v13012_v41, %v6922_v49 }
 0x33c   : > { %v13964_v62 = vpop.f32.mrb[8].mxu1  ;;  %v6926_v57 = vsel %vm16533_vm5, %v6924_v60, %v6925_v7  ;;  %v17974_v7 = vld [vmem:[%s16006_s9 + $0x48] sm:$0xff] }
 0x33d   : > { %v13965_v34 = vpop.f32.mrb[9].mxu1  ;;  %v17942_v10 = vcombine.high %v6923_v16, %v6926_v57 }
 0x33e   : > { %v13966_v9 = vadd.f32 %v13965_v34, %v13964_v62  ;;  %v13967_v36 = vpop.f32.mrb[10].mxu1 }
 0x33f   : > { %v13968_v25 = vpop.f32.mrb[11].mxu1 }
 0x340   : > { %v13969_v21 = vadd.f32 %v13968_v25, %v13967_v36  ;;  %v17928_v0 = vadd.f32 %v13966_v9, %v17546_v5  ;;  %v17940_v5 = vcombine.low %v6916_v53, %v6919_v13  ;;  %v17955_v13 = vld [vmem:[%s16006_s9 + $0x30] sm:$0xff]  ;;  %v17957_v36 = vcombine.low %v6923_v16, %v6926_v57 }
 0x341   : > { %7499 = vmatmul.mubr.bf16.gmra.mrb[36].mxu0 %v17826_v51  ;;  %7706 = vmatmul.mubr.bf16.gmra.mrb[116].mxu1 %v17922_v55  ;;  %v17978_v57 = vcombine.low %v17955_v13, %v17571_v58 }
 0x342   : > { %7508 = vmatprep.mubr.bf16.mxu0 %v17828_v11  ;;  %7713 = vmatprep.mubr.bf16.mxu1 %v17924_v19  ;;  %v17934_v63 = vadd.f32 %v13969_v21, %v17553_v45 }
 0x344   : > { %v13970_v51 = vpop.f32.mrb[12].mxu1 }
 0x345   : > { %v13971_v20 = vpop.f32.mrb[13].mxu1 }
 0x346   : > { %v13972_v62 = vadd.f32 %v13971_v20, %v13970_v51  ;;  %v13973_v17 = vpop.f32.mrb[14].mxu1  ;;  %v17982_v51 = vcombine.high %v17974_v7, %v17595_v47 }
 0x347   : > { %v13974_v11 = vpop.f32.mrb[15].mxu1 }
 0x348   : > { %v13975_v34 = vadd.f32 %v13974_v11, %v13973_v17  ;;  %v17946_v45 = vadd.f32 %v13972_v62, %v17567_v1  ;;  %v17961_v1 = vcombine.high %v17955_v13, %v17571_v58  ;;  %v15605_v62 = vld [vmem:[#allocation3 + $0xb60] ss:$12 sps:$4 sm:$0xff]  }
 0x349   : > { %7509 = vmatmul.mubr.bf16.gmra.mrb[40].mxu0 %v17850_v32  ;;  %7714 = vmatmul.mubr.bf16.gmra.mrb[120].mxu1 %v17940_v5  ;;  %v19495_v17 = vld [vmem:[#allocation24_spill] sm:$0xff] }
 0x34a   : > { %7518 = vmatprep.mubr.bf16.mxu0 %v17852_v23  ;;  %7721 = vmatprep.mubr.bf16.mxu1 %v17942_v10  ;;  %v17952_v53 = vadd.f32 %v13975_v34, %v17576_v12  ;;  %v15606_v58 = vld [vmem:[#allocation3 + $0xaa0] ss:$12 sps:$4 sm:$0xff]   ;;  %v19496_v34 = vld [vmem:[#allocation14_spill] sm:$0xff] }
 0x34c   : > { %v13976_v49 = vpop.f32.mrb[16].mxu1 }
 0x34d   : > { %v13977_v9 = vpop.f32.mrb[17].mxu1 }
 0x34e   : > { %v13978_v32 = vadd.f32 %v13977_v9, %v13976_v49  ;;  %v13979_v25 = vpop.f32.mrb[18].mxu1  ;;  %v17995_v9 = vld [vmem:[%s16006_s9 + $0x60] sm:$0xff] }
 0x34f   : > { %v13980_v41 = vpop.f32.mrb[19].mxu1 }
 0x350   : > { %v13981_v23 = vadd.f32 %v13980_v41, %v13979_v25  ;;  %v17965_v12 = vadd.f32 %v13978_v32, %v17591_v48  ;;  %v15617_v32 = vld [vmem:[#allocation3 + $0xb78] ss:$12 sps:$4 sm:$0xff]   ;;  %v17999_v41 = vcombine.low %v17974_v7, %v17595_v47  ;;  %v15630_v47 = vld [vmem:[#allocation3 + $0xad0] ss:$12 sps:$4 sm:$0xff]  }
 0x351   : > { %7519 = vmatmul.mubr.bf16.gmra.mrb[44].mxu0 %v17874_v46  ;;  %7722 = vmatmul.mubr.bf16.gmra.mrb[124].mxu1 %v17957_v36 }
 0x352   : > { %7528 = vmatprep.mubr.bf16.mxu0 %v17876_v39  ;;  %8757 = vmatprep.mubr.bf16.mxu1 %v17961_v1  ;;  %v17971_v60 = vadd.f32 %v13981_v23, %v17600_v6  ;;  %v15594_v39 = vld [vmem:[#allocation3 + $0xa88] ss:$12 sps:$4 sm:$0xff]  }
 0x354   : > { %v13982_v21 = vpop.f32.mrb[20].mxu1 }
 0x355   : > { %v13983_v16 = vpop.f32.mrb[21].mxu1 }
 0x356   : > { %v13984_v48 = vadd.f32 %v13983_v16, %v13982_v21  ;;  %v13985_v46 = vpop.f32.mrb[22].mxu1 }
 0x357   : > { %v13986_v20 = vpop.f32.mrb[23].mxu1 }
 0x358   : > { %v13987_v6 = vadd.f32 %v13986_v20, %v13985_v46  ;;  %v17986_v11 = vadd.f32 %v13984_v48, %v19495_v17  ;;  %v15618_v48 = vld [vmem:[#allocation3 + $0xab8] ss:$12 sps:$4 sm:$0xff]   ;;  %v18016_v17 = vld [vmem:[%s16006_s9 + $0x78] sm:$0xff] }
 0x359   : > { %7529 = vmatmul.mubr.bf16.gmra.mrb[48].mxu0 %v17898_v30  ;;  %8758 = vmatmul.mubr.bf16.vlgmr.msra.gmra.mrb[128].mxu1 %v17978_v57 }
 0x35a   : > { %7538 = vmatprep.mubr.bf16.mxu0 %v17900_v27  ;;  %8765 = vmatprep.mubr.bf16.mxu1 %v17982_v51  ;;  %v17992_v49 = vadd.f32 %v13987_v6, %v19496_v34  ;;  %v19497_v27 = vld [vmem:[#allocation25_spill] sm:$0xff] }
 0x35b   : > { %14273 = vmatpush3.bf16.msra.mxu1 %v15594_v39  ;;  %v18003_v16 = vcombine.high %v17995_v9, %v19497_v27  ;;  %v15629_v39 = vld [vmem:[#allocation3 + $0xb90] ss:$12 sps:$4 sm:$0xff]  }
 0x35c   : > { %14274 = vmatprep.subr.bf16.mxu1 %v15605_v62  ;;  %v13988_v25 = vpop.f32.mrb[24].mxu1 }
 0x35d   : > { %v13989_v30 = vpop.f32.mrb[25].mxu1 }
 0x35e   : > { %v13990_v23 = vadd.f32 %v13989_v30, %v13988_v25  ;;  %v13991_v21 = vpop.f32.mrb[26].mxu1 }
 0x35f   : > { %14275 = vmatpush3.bf16.msra.mxu1 %v15606_v58  ;;  %v13992_v46 = vpop.f32.mrb[27].mxu1  ;;  %v15641_v58 = vld [vmem:[#allocation3 + $0xba8] ss:$12 sps:$4 sm:$0xff]  }
 0x360   : > { %14276 = vmatprep.subr.bf16.mxu1 %v15617_v32  ;;  %v13993_v20 = vadd.f32 %v13992_v46, %v13991_v21  ;;  %v18007_v62 = vadd.f32 %v13990_v23, %v17639_v52  ;;  %v18020_v52 = vcombine.low %v17995_v9, %v19497_v27  ;;  %v15653_v21 = vld [vmem:[#allocation3 + $0xbc0] ss:$12 sps:$4 sm:$0xff]  }
 0x361   : > { %7539 = vmatmul.mubr.bf16.gmra.mrb[52].mxu0 %v17922_v55  ;;  %8766 = vmatmul.mubr.bf16.gmra.mrb[132].mxu1 %v17999_v41  ;;  %v15654_v27 = vld [vmem:[#allocation3 + $0xb00] ss:$12 sps:$4 sm:$0xff]  }
 0x362   : > { %7548 = vmatprep.mubr.bf16.mxu0 %v17924_v19  ;;  %8773 = vmatprep.mubr.bf16.mxu1 %v18003_v16  ;;  %v18013_v6 = vadd.f32 %v13993_v20, %v17648_v56  ;;  %v19498_v19 = vld [vmem:[#allocation15_spill] sm:$0xff]  ;;  %v15642_v56 = vld [vmem:[#allocation3 + $0xae8] ss:$12 sps:$4 sm:$0xff]  }
 0x363   : > { %14277 = vmatpush3.bf16.msra.mxu1 %v15618_v48  ;;  %v18024_v30 = vcombine.high %v18016_v17, %v19498_v19  ;;  %v18037_v20 = vld [vmem:[%s16006_s9 + $0x90] sm:$0xff] }
 0x364   : > { %14278 = vmatprep.subr.bf16.mxu1 %v15629_v39  ;;  %v13994_v34 = vpop.f32.mrb[28].mxu1 }
 0x365   : > { %v13995_v55 = vpop.f32.mrb[29].mxu1 }
 0x366   : > { %v13996_v32 = vadd.f32 %v13995_v55, %v13994_v34  ;;  %v13997_v25 = vpop.f32.mrb[30].mxu1 }
 0x367   : > { %14279 = vmatpush3.bf16.msra.mxu1 %v15630_v47  ;;  %v13998_v23 = vpop.f32.mrb[31].mxu1  ;;  %v15666_v47 = vld [vmem:[#allocation3 + $0xbd8] ss:$12 sps:$4 sm:$0xff]  }
 0x368   : > { %14280 = vmatprep.subr.bf16.mxu1 %v15641_v58  ;;  %v13999_v48 = vadd.f32 %v13998_v23, %v13997_v25  ;;  %v18028_v46 = vadd.f32 %v13996_v32, %v17663_v61  ;;  %v18041_v61 = vcombine.low %v18016_v17, %v19498_v19  ;;  %v15669_v19 = vld [vmem:[#allocation3 + $0xb30] ss:$12 sps:$4 sm:$0xff]  }
 0x369   : > { %7549 = vmatmul.mubr.bf16.gmra.mrb[56].mxu0 %v17940_v5  ;;  %8774 = vmatmul.mubr.bf16.gmra.mrb[136].mxu1 %v18020_v52 }
 0x36a   : > { %7558 = vmatprep.mubr.bf16.mxu0 %v17942_v10  ;;  %8781 = vmatprep.mubr.bf16.mxu1 %v18024_v30  ;;  %v18034_v39 = vadd.f32 %v13999_v48, %v17672_v14  ;;  %v19499_v10 = vld [vmem:[#allocation16_spill] sm:$0xff] }
 0x36b   : > { %14281 = vmatpush3.bf16.msra.mxu1 %v15642_v56  ;;  %v18045_v32 = vcombine.high %v18037_v20, %v19499_v10  ;;  %v15667_v14 = vld [vmem:[#allocation3 + $0xb18] ss:$12 sps:$4 sm:$0xff]   ;;  %v15668_v56 = vld [vmem:[#allocation3 + $0xbf0] ss:$12 sps:$4 sm:$0xff]  }
 0x36c   : > { %14282 = vmatprep.subr.bf16.mxu1 %v15653_v21  ;;  %v14000_v58 = vpop.f32.mrb[32].mxu1 }
 0x36d   : > { %v14001_v5 = vpop.f32.mrb[33].mxu1 }
 0x36e   : > { %v14002_v34 = vadd.f32 %v14001_v5, %v14000_v58  ;;  %v14003_v55 = vpop.f32.mrb[34].mxu1 }
 0x36f   : > { %14283 = vmatpush3.bf16.msra.mxu1 %v15654_v27  ;;  %v14004_v25 = vpop.f32.mrb[35].mxu1  ;;  %v13103_v27 = vld [vmem:[%s16006_s9 + $0xa8] sm:$0xff] }
 0x370   : > { %14284 = vmatprep.subr.bf16.mxu1 %v15666_v47  ;;  %v14005_v23 = vadd.f32 %v14004_v25, %v14003_v55  ;;  %v18049_v21 = vadd.f32 %v14002_v34, %v17687_v31  ;;  %v15597_v31 = vld [vmem:[#allocation3 + $0xa80] ss:$12 sps:$4 sm:$0xff]   ;;  %v15604_v25 = vld [vmem:[#allocation3 + $0xa9c] ss:$12 sps:$4 sm:$0xff]  }
 0x371   : > { %7559 = vmatmul.mubr.bf16.gmra.mrb[60].mxu0 %v17957_v36  ;;  %8782 = vmatmul.mubr.bf16.gmra.mrb[140].mxu1 %v18041_v61  ;;  %v18060_v36 = vcombine.low %v18037_v20, %v19499_v10  ;;  %v19500_v55 = vld [vmem:[#allocation17_spill] sm:$0xff]  ;;  %v15602_v10 = vld [vmem:[#allocation3 + $0xa98] ss:$12 sps:$4 sm:$0xff]  }
 0x372   : > { %8564 = vmatprep.mubr.bf16.mxu0 %v17961_v1  ;;  %8789 = vmatprep.mubr.bf16.mxu1 %v18045_v32  ;;  %v18055_v48 = vadd.f32 %v14005_v23, %v17696_v22  ;;  %v18063_v1 = vcombine.high %v13103_v27, %v19500_v55  ;;  %v15682_v23 = vld [vmem:[#allocation3 + $0xcc8] ss:$12 sps:$4 sm:$0xff]  }
 0x373   : > { %14285 = vmatpush3.bf16.msra.mxu1 %v15667_v14 }
 0x374   : > { %14286 = vmatprep.subr.bf16.mxu1 %v15668_v56  ;;  %v14006_v47 = vpop.f32.mrb[36].mxu1 }
 0x375   : > { %v14007_v58 = vpop.f32.mrb[37].mxu1 }
 0x376   : > { %v14008_v5 = vadd.f32 %v14007_v58, %v14006_v47  ;;  %v14009_v34 = vpop.f32.mrb[38].mxu1  ;;  %v15611_v47 = vld [vmem:[#allocation3 + $0xab4] ss:$12 sps:$4 sm:$0xff]   ;;  %v13105_v58 = vld [vmem:[%s16006_s9 + $0xc0] sm:$0xff] }
 0x377   : > { %14287 = vmatpush3.bf16.msra.mxu1 %v15669_v19  ;;  %v14010_v14 = vpop.f32.mrb[39].mxu1 }
 0x378   : > { %v14011_v22 = vadd.f32 %v14010_v14, %v14009_v34  ;;  %v18067_v56 = vadd.f32 %v14008_v5, %v17711_v18  ;;  %14384 = vmatprep.subr.bf16.mxu1 %v15682_v23  ;;  %v18077_v18 = vcombine.low %v13103_v27, %v19500_v55  ;;  %v19502_v14 = vld [vmem:[#allocation18_spill] sm:$0xff] }
 0x379   : > { %8565 = vmatmul.mubr.bf16.vlgmr.msra.gmra.mrb[0].mxu0 %v17978_v57  ;;  %8790 = vmatmul.mubr.bf16.gmra.mrb[144].mxu1 %v18060_v36  ;;  %v15614_v27 = vld [vmem:[#allocation3 + $0xac8] ss:$12 sps:$4 sm:$0xff]  }
 0x37a   : > { %19501 = vst [vmem:[#allocation24_spill] sm:$0xff] %v18067_v56  ;;  %10056 = vmatpush1.bf16.msra.mxu0 %v15597_v31  ;;  %8574 = vmatprep.mubr.bf16.mxu0 %v17982_v51  ;;  %v18073_v19 = vadd.f32 %v14011_v22, %v17719_v35  ;;  %v18080_v51 = vcombine.high %v13105_v58, %v19502_v14  ;;  %v15616_v35 = vld [vmem:[#allocation3 + $0xacc] ss:$12 sps:$4 sm:$0xff]   ;;  %v13107_v23 = vld [vmem:[%s16006_s9 + $0xd8] sm:$0xff] }
 0x37b   : > { %8797 = vmatprep.mubr.bf16.mxu1 %v18063_v1  ;;  %10057 = vmatprep.subr.bf16.mxu0 %v15604_v25 }
 0x37c   : > { %v14012_v57 = vpop.f32.mrb[40].mxu1 }
 0x37d   : > { %v14013_v34 = vpop.f32.mrb[41].mxu1 }
 0x37e   : > { %10058 = vmatpush1.bf16.msra.mxu0 %v15602_v10  ;;  %v14014_v5 = vadd.f32 %v14013_v34, %v14012_v57  ;;  %v14015_v31 = vpop.f32.mrb[42].mxu1  ;;  %v15623_v10 = vld [vmem:[#allocation3 + $0xae4] ss:$12 sps:$4 sm:$0xff]   ;;  %v19503_v34 = vld [vmem:[#allocation19_spill] sm:$0xff] }
 0x37f   : > { %10059 = vmatprep.subr.bf16.mxu0 %v15611_v47  ;;  %v14016_v56 = vpop.f32.mrb[43].mxu1 }
 0x380   : > { %v14017_v22 = vadd.f32 %v14016_v56, %v14015_v31  ;;  %v18084_v25 = vadd.f32 %v14014_v5, %v17735_v8 }
 0x381   : > { %8575 = vmatmul.mubr.bf16.gmra.mrb[4].mxu0 %v17999_v41  ;;  %8798 = vmatmul.mubr.bf16.gmra.mrb[148].mxu1 %v18077_v18  ;;  %v18094_v41 = vcombine.low %v13105_v58, %v19502_v14  ;;  %v15626_v58 = vld [vmem:[#allocation3 + $0xaf8] ss:$12 sps:$4 sm:$0xff]  }
 0x382   : > { %8584 = vmatprep.mubr.bf16.mxu0 %v18003_v16  ;;  %8805 = vmatprep.mubr.bf16.mxu1 %v18080_v51  ;;  %v18090_v55 = vadd.f32 %v14017_v22, %v17744_v42  ;;  %v18097_v16 = vcombine.high %v13107_v23, %v19503_v34  ;;  %v15628_v42 = vld [vmem:[#allocation3 + $0xafc] ss:$12 sps:$4 sm:$0xff]  }
 0x383   : > { %10060 = vmatpush1.bf16.msra.mxu0 %v15609_v15  ;;  %v15621_v15 = vld [vmem:[#allocation3 + $0xae0] ss:$12 sps:$4 sm:$0xff]  }
 0x384   : > { %10061 = vmatprep.subr.bf16.mxu0 %v15616_v35  ;;  %v14018_v56 = vpop.f32.mrb[44].mxu1  ;;  %v13109_v22 = vld [vmem:[%s16006_s9 + $0xf0] sm:$0xff] }
 0x385   : > { %v14019_v47 = vpop.f32.mrb[45].mxu1 }
 0x386   : > { %v14020_v8 = vadd.f32 %v14019_v47, %v14018_v56  ;;  %v14021_v57 = vpop.f32.mrb[46].mxu1 }
 0x387   : > { %10062 = vmatpush1.bf16.msra.mxu0 %v15614_v27  ;;  %v14022_v5 = vpop.f32.mrb[47].mxu1  ;;  %v15635_v27 = vld [vmem:[#allocation3 + $0xb14] ss:$12 sps:$4 sm:$0xff]  }
 0x388   : > { %10063 = vmatprep.subr.bf16.mxu0 %v15623_v10  ;;  %v14023_v31 = vadd.f32 %v14022_v5, %v14021_v57  ;;  %v18101_v35 = vadd.f32 %v14020_v8, %v17759_v28  ;;  %v19504_v8 = vld [vmem:[#allocation20_spill] sm:$0xff]  ;;  %v15633_v57 = vld [vmem:[#allocation3 + $0xb10] ss:$12 sps:$4 sm:$0xff]  }
 0x389   : > { %8585 = vmatmul.mubr.bf16.gmra.mrb[8].mxu0 %v18020_v52  ;;  %8806 = vmatmul.mubr.bf16.gmra.mrb[152].mxu1 %v18094_v41  ;;  %v18111_v52 = vcombine.low %v13107_v23, %v19503_v34  ;;  %v15638_v23 = vld [vmem:[#allocation3 + $0xb28] ss:$12 sps:$4 sm:$0xff]  }
 0x38a   : > { %8594 = vmatprep.mubr.bf16.mxu0 %v18024_v30  ;;  %8813 = vmatprep.mubr.bf16.mxu1 %v18097_v16  ;;  %v18107_v14 = vadd.f32 %v14023_v31, %v17768_v24  ;;  %v18114_v30 = vcombine.high %v13109_v22, %v19504_v8  ;;  %v15640_v24 = vld [vmem:[#allocation3 + $0xb2c] ss:$12 sps:$4 sm:$0xff]   ;;  %v13111_v31 = vld [vmem:[%s16006_s9 + $0x108] sm:$0xff] }
 0x38b   : > { %10064 = vmatpush1.bf16.msra.mxu0 %v15621_v15 }
 0x38c   : > { %10065 = vmatprep.subr.bf16.mxu0 %v15628_v42  ;;  %v14024_v10 = vpop.f32.mrb[48].mxu1 }
 0x38d   : > { %v14025_v56 = vpop.f32.mrb[49].mxu1 }
 0x38e   : > { %v14026_v28 = vadd.f32 %v14025_v56, %v14024_v10  ;;  %v14027_v47 = vpop.f32.mrb[50].mxu1 }
 0x38f   : > { %10066 = vmatpush1.bf16.msra.mxu0 %v15626_v58  ;;  %v14028_v15 = vpop.f32.mrb[51].mxu1  ;;  %v15647_v58 = vld [vmem:[#allocation3 + $0xb44] ss:$12 sps:$4 sm:$0xff]  }
 0x390   : > { %10067 = vmatprep.subr.bf16.mxu0 %v15635_v27  ;;  %v14029_v5 = vadd.f32 %v14028_v15, %v14027_v47  ;;  %v18118_v42 = vadd.f32 %v14026_v28, %v17783_v59  ;;  %v19505_v28 = vld [vmem:[#allocation21_spill] sm:$0xff] }
 0x391   : > { %8595 = vmatmul.mubr.bf16.gmra.mrb[12].mxu0 %v18041_v61  ;;  %8814 = vmatmul.mubr.bf16.gmra.mrb[156].mxu1 %v18111_v52  ;;  %v18128_v61 = vcombine.low %v13109_v22, %v19504_v8  ;;  %v15645_v47 = vld [vmem:[#allocation3 + $0xb40] ss:$12 sps:$4 sm:$0xff]   ;;  %v15650_v22 = vld [vmem:[#allocation3 + $0xb58] ss:$12 sps:$4 sm:$0xff]  }
 0x392   : > { %8604 = vmatprep.mubr.bf16.mxu0 %v18045_v32  ;;  %8821 = vmatprep.mubr.bf16.mxu1 %v18114_v30  ;;  %v18124_v34 = vadd.f32 %v14029_v5, %v17792_v38  ;;  %v18131_v32 = vcombine.high %v13111_v31, %v19505_v28  ;;  %v15652_v38 = vld [vmem:[#allocation3 + $0xb5c] ss:$12 sps:$4 sm:$0xff]  }
 0x393   : > { %10068 = vmatpush1.bf16.msra.mxu0 %v15633_v57  ;;  %v13113_v5 = vld [vmem:[%s16006_s9 + $0x120] sm:$0xff] }
 0x394   : > { %10069 = vmatprep.subr.bf16.mxu0 %v15640_v24  ;;  %v14030_v27 = vpop.f32.mrb[52].mxu1 }
 0x395   : > { %v14031_v10 = vpop.f32.mrb[53].mxu1 }
 0x396   : > { %v14032_v59 = vadd.f32 %v14031_v10, %v14030_v27  ;;  %v14033_v56 = vpop.f32.mrb[54].mxu1 }
 0x397   : > { %10070 = vmatpush1.bf16.msra.mxu0 %v15638_v23  ;;  %v14034_v57 = vpop.f32.mrb[55].mxu1  ;;  %v15659_v23 = vld [vmem:[#allocation3 + $0xb74] ss:$12 sps:$4 sm:$0xff]  }
 0x398   : > { %10071 = vmatprep.subr.bf16.mxu0 %v15647_v58  ;;  %v14035_v15 = vadd.f32 %v14034_v57, %v14033_v56  ;;  %v18135_v24 = vadd.f32 %v14032_v59, %v17807_v43  ;;  %v19506_v59 = vld [vmem:[#allocation22_spill] sm:$0xff] }
 0x399   : > { %8605 = vmatmul.mubr.bf16.gmra.mrb[16].mxu0 %v18060_v36  ;;  %8822 = vmatmul.mubr.bf16.gmra.mrb[160].mxu1 %v18128_v61  ;;  %v18145_v36 = vcombine.low %v13111_v31, %v19505_v28  ;;  %v15657_v56 = vld [vmem:[#allocation3 + $0xb70] ss:$12 sps:$4 sm:$0xff]   ;;  %v15663_v31 = vld [vmem:[#allocation3 + $0xb88] ss:$12 sps:$4 sm:$0xff]  }
 0x39a   : > { %8614 = vmatprep.mubr.bf16.mxu0 %v18063_v1  ;;  %8829 = vmatprep.mubr.bf16.mxu1 %v18131_v32  ;;  %v18141_v8 = vadd.f32 %v14035_v15, %v17816_v26  ;;  %v18148_v1 = vcombine.high %v13113_v5, %v19506_v59  ;;  %v15665_v26 = vld [vmem:[#allocation3 + $0xb8c] ss:$12 sps:$4 sm:$0xff]   ;;  %v13115_v15 = vld [vmem:[%s16006_s9 + $0x138] sm:$0xff] }
 0x39b   : > { %10072 = vmatpush1.bf16.msra.mxu0 %v15645_v47 }
 0x39c   : > { %10073 = vmatprep.subr.bf16.mxu0 %v15652_v38  ;;  %v14036_v58 = vpop.f32.mrb[56].mxu1 }
 0x39d   : > { %v14037_v27 = vpop.f32.mrb[57].mxu1 }
 0x39e   : > { %v14038_v43 = vadd.f32 %v14037_v27, %v14036_v58  ;;  %v14039_v10 = vpop.f32.mrb[58].mxu1 }
 0x39f   : > { %10074 = vmatpush1.bf16.msra.mxu0 %v15650_v22  ;;  %v14040_v47 = vpop.f32.mrb[59].mxu1  ;;  %v15672_v22 = vld [vmem:[#allocation3 + $0xba4] ss:$12 sps:$4 sm:$0xff]  }
 0x3a0   : > { %10075 = vmatprep.subr.bf16.mxu0 %v15659_v23  ;;  %v14041_v57 = vadd.f32 %v14040_v47, %v14039_v10  ;;  %v18152_v38 = vadd.f32 %v14038_v43, %v17831_v40  ;;  %v19507_v43 = vld [vmem:[#allocation23_spill] sm:$0xff]  ;;  %v15670_v10 = vld [vmem:[#allocation3 + $0xba0] ss:$12 sps:$4 sm:$0xff]  }
 0x3a1   : > { %8615 = vmatmul.mubr.bf16.gmra.mrb[20].mxu0 %v18077_v18  ;;  %8830 = vmatmul.mubr.bf16.gmra.mrb[164].mxu1 %v18145_v36  ;;  %v18162_v18 = vcombine.low %v13113_v5, %v19506_v59  ;;  %v15673_v5 = vld [vmem:[#allocation3 + $0xbb8] ss:$12 sps:$4 sm:$0xff]  }
 0x3a2   : > { %8624 = vmatprep.mubr.bf16.mxu0 %v18080_v51  ;;  %8837 = vmatprep.mubr.bf16.mxu1 %v18148_v1  ;;  %v18158_v28 = vadd.f32 %v14041_v57, %v17840_v44  ;;  %v18165_v51 = vcombine.high %v13115_v15, %v19507_v43  ;;  %v15675_v44 = vld [vmem:[#allocation3 + $0xbbc] ss:$12 sps:$4 sm:$0xff]  }
 0x3a3   : > { %10076 = vmatpush1.bf16.msra.mxu0 %v15657_v56  ;;  %v13117_v57 = vld [vmem:[%s16006_s9 + $0x150] sm:$0xff] }
 0x3a4   : > { %10077 = vmatprep.subr.bf16.mxu0 %v15665_v26  ;;  %v14042_v23 = vpop.f32.mrb[60].mxu1 }
 0x3a5   : > { %v14043_v58 = vpop.f32.mrb[61].mxu1 }
 0x3a6   : > { %v14044_v40 = vadd.f32 %v14043_v58, %v14042_v23  ;;  %v14045_v27 = vpop.f32.mrb[62].mxu1 }
 0x3a7   : > { %10078 = vmatpush1.bf16.msra.mxu0 %v15663_v31  ;;  %v14046_v56 = vpop.f32.mrb[63].mxu1  ;;  %v15678_v31 = vld [vmem:[#allocation3 + $0xbd4] ss:$12 sps:$4 sm:$0xff]  }
 0x3a8   : > { %10079 = vmatprep.subr.bf16.mxu0 %v15672_v22  ;;  %v14047_v47 = vadd.f32 %v14046_v56, %v14045_v27  ;;  %v18169_v26 = vadd.f32 %v14044_v40, %v17855_v50  ;;  %v19508_v40 = vld [vmem:[#allocation26_spill] sm:$0xff] }
 0x3a9   : > { %8625 = vmatmul.mubr.bf16.gmra.mrb[24].mxu0 %v18094_v41  ;;  %8838 = vmatmul.mubr.bf16.gmra.mrb[168].mxu1 %v18162_v18  ;;  %v18179_v41 = vcombine.low %v13115_v15, %v19507_v43  ;;  %v15676_v27 = vld [vmem:[#allocation3 + $0xbd0] ss:$12 sps:$4 sm:$0xff]   ;;  %v15679_v43 = vld [vmem:[#allocation3 + $0xbe8] ss:$12 sps:$4 sm:$0xff]  }
 0x3aa   : > { %8634 = vmatprep.mubr.bf16.mxu0 %v18097_v16  ;;  %8845 = vmatprep.mubr.bf16.mxu1 %v18165_v51  ;;  %v18175_v59 = vadd.f32 %v14047_v47, %v17864_v3  ;;  %v18182_v16 = vcombine.high %v13117_v57, %v19508_v40  ;;  %v15681_v3 = vld [vmem:[#allocation3 + $0xbec] ss:$12 sps:$4 sm:$0xff]   ;;  %v13119_v47 = vld [vmem:[%s16006_s9 + $0x168] sm:$0xff] }
 0x3ab   : > { %10080 = vmatpush1.bf16.msra.mxu0 %v15670_v10 }
 0x3ac   : > { %10081 = vmatprep.subr.bf16.mxu0 %v15675_v44  ;;  %v14064_v22 = vpop.f32.mrb[64].mxu1 }
 0x3ad   : > { %v14065_v23 = vpop.f32.mrb[65].mxu1 }
 0x3ae   : > { %v14066_v50 = vadd.f32 %v14065_v23, %v14064_v22  ;;  %v14067_v58 = vpop.f32.mrb[66].mxu1  ;;  %v18196_v22 = vcombine.low %v13117_v57, %v19508_v40  ;;  %v9223_v57 = vshrl.u32 %v17955_v13, 16  ;;  %v9226_v40 = vshll.u32 %v17955_v13, 16 }
 0x3af   : > { %10082 = vmatpush1.bf16.msra.mxu0 %v15673_v5  ;;  %v14068_v10 = vpop.f32.mrb[67].mxu1  ;;  %v15686_v5 = vld [vmem:[#allocation3 + $0xc04] ss:$12 sps:$4 sm:$0xff]  }
 0x3b0   : > { %10083 = vmatprep.subr.bf16.mxu0 %v15678_v31  ;;  %v18185_v56 = vadd.f32 %v14066_v50, %v17883_v54  ;;  %v14069_v44 = vadd.f32 %v14068_v10, %v14067_v58  ;;  %v18199_v50 = vcombine.high %v13119_v47, %v17880_v37 }
 0x3b1   : > { %8635 = vmatmul.mubr.bf16.gmra.mrb[28].mxu0 %v18111_v52  ;;  %8846 = vmatmul.mubr.bf16.gmra.mrb[172].mxu1 %v18179_v41 }
 0x3b2   : > { %8644 = vmatprep.mubr.bf16.mxu0 %v18114_v30  ;;  %v18191_v15 = vadd.f32 %v14069_v44, %v17889_v4  ;;  %8853 = vmatprep.mubr.bf16.mxu1 %v18182_v16  ;;  %v13206_v4 = vld [vmem:[%s16006_s9 + $0x38] sm:$0xff] }
 0x3b3   : > { %10084 = vmatpush1.bf16.msra.mxu0 %v15676_v27  ;;  %v9232_v10 = vshll.u32 %v13206_v4, 16 }
 0x3b4   : > { %19509 = vst [vmem:[#allocation14_spill] sm:$0xff] %v18191_v15  ;;  %10085 = vmatprep.subr.bf16.mxu0 %v15681_v3  ;;  %v14070_v54 = vpop.f32.mrb[68].mxu1  ;;  %v9236_v3 = vshrl.u32 %v13206_v4, 16 }
 0x3b5   : > { %v14071_v31 = vpop.f32.mrb[69].mxu1 }
 0x3b6   : > { %v14072_v52 = vadd.f32 %v14071_v31, %v14070_v54  ;;  %v14073_v23 = vpop.f32.mrb[70].mxu1  ;;  %v18216_v54 = vcombine.low %v13119_v47, %v17880_v37  ;;  %v13207_v31 = vld [vmem:[%s16006_s9 + $0x40] sm:$0x11] }
 0x3b7   : > { %10086 = vmatpush1.bf16.msra.mxu0 %v15679_v43  ;;  %v14074_v30 = vpop.f32.mrb[71].mxu1  ;;  %v9242_v37 = vshll.u32 %v13207_v31, 16 }
 0x3b8   : > { %11354 = vmatprep.subr.bf16.mxu0 %v15686_v5  ;;  %v18203_v58 = vadd.f32 %v14072_v52, %v17907_v29  ;;  %v14075_v27 = vadd.f32 %v14074_v30, %v14073_v23  ;;  %v13121_v29 = vld [vmem:[%s16006_s9 + $0x180] sm:$0xff]  ;;  %v9225_v5 = vrot.slane %v9223_v57, 4  ;;  %v9228_v52 = vrot.slane %v9226_v40, 5 }
 0x3b9   : > { %8645 = vmatmul.mubr.bf16.gmra.mrb[32].mxu0 %v18128_v61  ;;  %8854 = vmatmul.mubr.bf16.gmra.mrb[176].mxu1 %v18196_v22  ;;  %v9238_v23 = vrot.slane %v9236_v3, 4  ;;  %v18220_v4 = vcombine.high %v13121_v29, %v17904_v33  ;;  %v9250_v3 = vshll.u32 %v17974_v7, 16  ;;  %v18236_v31 = vcombine.low %v13121_v29, %v17904_v33  ;;  %v13212_v29 = vld [vmem:[%s16006_s9 + $0x68] sm:$0xff] }
 0x3ba   : > { %19510 = vst [vmem:[#allocation25_spill] sm:$0xff] %v18203_v58  ;;  %8654 = vmatprep.mubr.bf16.mxu0 %v18131_v32  ;;  %v18211_v44 = vadd.f32 %v14075_v27, %v17913_v2  ;;  %8861 = vmatprep.mubr.bf16.mxu1 %v18199_v50  ;;  %v9234_v32 = vrot.slane %v9232_v10, 5  ;;  %v13209_v27 = vld [vmem:[%s16006_s9 + $0x50] sm:$0xff]  ;;  %v9229_v47 = vor.u32 %v9228_v52, %v9225_v5  ;;  %v9247_v10 = vshrl.u32 %v17974_v7, 16 }
 0x3bc   : > { %19511 = vst [vmem:[#allocation15_spill] sm:$0xff] %v18211_v44  ;;  %v14076_v43 = vpop.f32.mrb[72].mxu1  ;;  %v9239_v40 = vor.u32 %v9238_v23, %v9234_v32  ;;  %v9230_v52 = vrot.slane %v9229_v47, 4  ;;  %v9249_v7 = vrot.slane %v9247_v10, 4 }
 0x3bd   : > { %v14077_v61 = vpop.f32.mrb[73].mxu1 }
 0x3be   : > { %v14078_v13 = vadd.f32 %v14077_v61, %v14076_v43  ;;  %v14079_v30 = vpop.f32.mrb[74].mxu1  ;;  %v9260_v61 = vshrl.u32 %v13209_v27, 16  ;;  %v9240_v23 = vrot.slane %v9239_v40, 4  ;;  %v9235_v47 = vsel %vm16156_vm2, %v9230_v52, %v9234_v32 }
 0x3bf   : > { %v14080_v2 = vpop.f32.mrb[75].mxu1 }
 0x3c0   : > { %v18224_v44 = vadd.f32 %v14078_v13, %v17928_v0  ;;  %v14081_v57 = vadd.f32 %v14080_v2, %v14079_v30  ;;  %v9256_v0 = vshll.u32 %v13209_v27, 16  ;;  %v18239_v13 = vld [vmem:[%s16006_s9 + $0x19c] ss:$8 sps:$4 sm:$0xff]   ;;  %v9252_v30 = vrot.slane %v9250_v3, 5 }
 0x3c1   : > { %8655 = vmatmul.mubr.bf16.gmra.mrb[36].mxu0 %v18145_v36  ;;  %8862 = vmatmul.mubr.bf16.gmra.mrb[180].mxu1 %v18216_v54 }
 0x3c2   : > { %19512 = vst [vmem:[#allocation16_spill] sm:$0xff] %v18224_v44  ;;  %8664 = vmatprep.mubr.bf16.mxu0 %v18148_v1  ;;  %v18232_v43 = vadd.f32 %v14081_v57, %v17934_v63  ;;  %8869 = vmatprep.mubr.bf16.mxu1 %v18220_v4  ;;  %v9244_v1 = vrot.slane %v9242_v37, 5  ;;  %v13210_v57 = vld [vmem:[%s16006_s9 + $0x58] sm:$0x11]  ;;  %v9262_v44 = vrot.slane %v9260_v61, 4  ;;  %v9253_v10 = vor.u32 %v9252_v30, %v9249_v7 }
 0x3c3   : > { %v9266_v3 = vshll.u32 %v13210_v57, 16  ;;  %v9284_v61 = vshrl.u32 %v13212_v29, 16 }
 0x3c4   : > { %19513 = vst [vmem:[#allocation17_spill] sm:$0xff] %v18232_v43  ;;  %v14082_v36 = vpop.f32.mrb[76].mxu1  ;;  %v9258_v43 = vrot.slane %v9256_v0, 5  ;;  %v9245_v40 = vsel %vm16156_vm2, %v9240_v23, %v9244_v1  ;;  %v9274_v0 = vshll.u32 %v17995_v9, 16  ;;  %v9254_v52 = vrot.slane %v9253_v10, 4 }
 0x3c5   : > { %v14083_v5 = vpop.f32.mrb[77].mxu1  ;;  %v18262_v1 = vcombine.high %v9235_v47, %v9245_v40  ;;  %v9268_v23 = vrot.slane %v9266_v3, 5  ;;  %v13213_v10 = vld [vmem:[%s16006_s9 + $0x70] sm:$0x11] }
 0x3c6   : > { %v14084_v2 = vadd.f32 %v14083_v5, %v14082_v36  ;;  %v14085_v63 = vpop.f32.mrb[78].mxu1  ;;  %v18260_v5 = vld [vmem:[%s16006_s9 + $0x198] ss:$8 sps:$4 sm:$0xff]  }
 0x3c7   : > { %v14086_v58 = vpop.f32.mrb[79].mxu1 }
 0x3c8   : > { %v18243_v27 = vadd.f32 %v14084_v2, %v17946_v45  ;;  %v14087_v33 = vadd.f32 %v14086_v58, %v14085_v63  ;;  %v9271_v58 = vshrl.u32 %v17995_v9, 16  ;;  %v9276_v63 = vrot.slane %v9274_v0, 5 }
 0x3c9   : > { %8665 = vmatmul.mubr.bf16.gmra.mrb[40].mxu0 %v18162_v18  ;;  %8870 = vmatmul.mubr.bf16.gmra.mrb[184].mxu1 %v18236_v31  ;;  %v9263_v18 = vor.u32 %v9262_v44, %v9258_v43  ;;  %v9286_v9 = vrot.slane %v9284_v61, 4  ;;  %v9290_v0 = vshll.u32 %v13213_v10, 16 }
 0x3ca   : > { %19514 = vst [vmem:[#allocation18_spill] sm:$0xff] %v18243_v27  ;;  %8674 = vmatprep.mubr.bf16.mxu0 %v18165_v51  ;;  %v18254_v45 = vadd.f32 %v14087_v33, %v17952_v53  ;;  %8877 = vmatprep.mubr.bf16.mxu1 %v18239_v13  ;;  %v9280_v51 = vshll.u32 %v13212_v29, 16  ;;  %v13215_v53 = vld [vmem:[%s16006_s9 + $0x80] sm:$0xff]  ;;  %v9273_v44 = vrot.slane %v9271_v58, 4  ;;  %v9295_v29 = vshrl.u32 %v18016_v17, 16 }
 0x3cb   : > { %v9264_v2 = vrot.slane %v9263_v18, 4  ;;  %v9304_v3 = vshll.u32 %v13215_v53, 16 }
 0x3cc   : > { %19516 = vst [vmem:[#allocation19_spill] sm:$0xff] %v18254_v45  ;;  %v14088_v36 = vpop.f32.mrb[80].mxu1  ;;  %v9282_v33 = vrot.slane %v9280_v51, 5  ;;  %v9298_v45 = vshll.u32 %v18016_v17, 16  ;;  %v9297_v51 = vrot.slane %v9295_v29, 4 }
 0x3cd   : > { %v14089_v32 = vpop.f32.mrb[81].mxu1  ;;  %v9269_v17 = vsel %vm16156_vm2, %v9264_v2, %v9268_v23  ;;  %v15690_v29 = vld [vmem:[#allocation3 + $0xce0] ss:$12 sps:$4 sm:$0xff]  }
 0x3ce   : > { %v14090_v7 = vadd.f32 %v14089_v32, %v14088_v36  ;;  %v14091_v30 = vpop.f32.mrb[82].mxu1  ;;  %v9308_v36 = vshrl.u32 %v13215_v53, 16  ;;  %v9287_v58 = vor.u32 %v9286_v9, %v9282_v33  ;;  %v9300_v61 = vrot.slane %v9298_v45, 5 }
 0x3cf   : > { %v14092_v57 = vpop.f32.mrb[83].mxu1  ;;  %v9306_v53 = vrot.slane %v9304_v3, 5  ;;  %v9319_v3 = vshrl.u32 %v18037_v20, 16 }
 0x3d0   : > { %v18268_v27 = vadd.f32 %v14090_v7, %v17965_v12  ;;  %v14093_v15 = vadd.f32 %v14092_v57, %v14091_v30  ;;  %v9259_v12 = vsel %vm16156_vm2, %v9254_v52, %v9258_v43  ;;  %v15683_v43 = vld [vmem:[#allocation3 + $0xc08] ss:$12 sps:$4 sm:$0xff]   ;;  %v9301_v9 = vor.u32 %v9300_v61, %v9297_v51 }
 0x3d1   : > { %8675 = vmatmul.mubr.bf16.gmra.mrb[44].mxu0 %v18179_v41  ;;  %8878 = vmatmul.mubr.bf16.gmra.mrb[188].mxu1 %v18260_v5  ;;  %v9277_v41 = vor.u32 %v9276_v63, %v9273_v44  ;;  %v13218_v52 = vld [vmem:[%s16006_s9 + $0x98] sm:$0xff]  ;;  %v9288_v44 = vrot.slane %v9287_v58, 4  ;;  %v9292_v63 = vrot.slane %v9290_v0, 5 }
 0x3d2   : > { %8684 = vmatprep.mubr.bf16.mxu0 %v18182_v16  ;;  %v18275_v18 = vadd.f32 %v14093_v15, %v17971_v60  ;;  %10280 = vmatprep.mubr.bf16.mxu1 %v18262_v1  ;;  %v9310_v16 = vrot.slane %v9308_v36, 4  ;;  %v18282_v60 = vcombine.low %v9235_v47, %v9245_v40  ;;  %v13216_v15 = vld [vmem:[%s16006_s9 + $0x88] sm:$0x11]  ;;  %v9322_v36 = vshll.u32 %v18037_v20, 16  ;;  %v19529_v37 = vld [vmem:[#allocation18_spill] sm:$0xff] }
 0x3d3   : > { %v9278_v2 = vrot.slane %v9277_v41, 4  ;;  %v9314_v40 = vshll.u32 %v13216_v15, 16  ;;  %v9328_v41 = vshll.u32 %v13218_v52, 16  ;;  %v9332_v58 = vshrl.u32 %v13218_v52, 16 }
 0x3d4   : > { %19517 = vst [vmem:[#allocation20_spill] sm:$0xff] %v18275_v18  ;;  %v14094_v32 = vpop.f32.mrb[84].mxu1  ;;  %v18285_v18 = vcombine.high %v9259_v12, %v9269_v17  ;;  %v9311_v47 = vor.u32 %v9310_v16, %v9306_v53  ;;  %v9293_v51 = vsel %vm16156_vm2, %v9288_v44, %v9292_v63  ;;  %v18304_v20 = vcombine.low %v9259_v12, %v9269_v17  ;;  %v15699_v44 = vld [vmem:[#allocation3 + $0xc38] ss:$12 sps:$4 sm:$0xff]   ;;  %v13221_v63 = vld [vmem:[%s16006_s9 + $0xb0] sm:$0xff] }
 0x3d5   : > { %v14095_v7 = vpop.f32.mrb[85].mxu1  ;;  %v9316_v16 = vrot.slane %v9314_v40, 5  ;;  %v9321_v15 = vrot.slane %v9319_v3, 4  ;;  %v13220_v17 = vld [vmem:[%s16006_s9 + $0xa8] sm:$0xff] }
 0x3d6   : > { %v14096_v30 = vadd.f32 %v14095_v7, %v14094_v32  ;;  %v14097_v57 = vpop.f32.mrb[86].mxu1  ;;  %v9302_v32 = vrot.slane %v9301_v9, 4  ;;  %v15706_v9 = vld [vmem:[#allocation3 + $0xd10] ss:$12 sps:$4 sm:$0xff]  }
 0x3d7   : > { %v14098_v23 = vpop.f32.mrb[87].mxu1 }
 0x3d8   : > { %v18289_v45 = vadd.f32 %v14096_v30, %v17986_v11  ;;  %v14099_v10 = vadd.f32 %v14098_v23, %v14097_v57  ;;  %v15691_v11 = vld [vmem:[#allocation3 + $0xc20] ss:$12 sps:$4 sm:$0xff]   ;;  %v9324_v30 = vrot.slane %v9322_v36, 5  ;;  %v18306_v57 = vrot.slane %v9328_v41, 5 }
 0x3d9   : > { %8685 = vmatmul.mubr.bf16.gmra.mrb[48].mxu0 %v18196_v22  ;;  %10281 = vmatmul.mubr.bf16.vlgmr.msra.gmra.mrb[192].mxu1 %v18282_v60  ;;  %v9283_v22 = vsel %vm16156_vm2, %v9278_v2, %v9282_v33  ;;  %v9334_v33 = vrot.slane %v9332_v58, 4  ;;  %v13219_v2 = vld [vmem:[%s16006_s9 + $0xa0] sm:$0x11]  ;;  %v9352_v58 = vshll.u32 %v13221_v63, 16 }
 0x3da   : > { %8694 = vmatprep.mubr.bf16.mxu0 %v18199_v50  ;;  %v18297_v0 = vadd.f32 %v14099_v10, %v17992_v49  ;;  %10288 = vmatprep.mubr.bf16.mxu1 %v18285_v18  ;;  %v15698_v50 = vld [vmem:[#allocation3 + $0xcf8] ss:$12 sps:$4 sm:$0xff]   ;;  %v9312_v49 = vrot.slane %v9311_v47, 4  ;;  %v18308_v23 = vcombine.high %v9283_v22, %v9293_v51  ;;  %v18319_v47 = vsel %vm16156_vm2, %v9302_v32, %v9306_v53 }
 0x3db   : > { %14385 = vmatpush3.bf16.msra.mxu1 %v15683_v43  ;;  %v9325_v3 = vor.u32 %v9324_v30, %v9321_v15  ;;  %v9335_v36 = vor.u32 %v9334_v33, %v18306_v57  ;;  %v9346_v53 = vshll.u32 %v13220_v17, 16  ;;  %v18330_v32 = vcombine.low %v9283_v22, %v9293_v51  ;;  %v13224_v33 = vld [vmem:[%s16006_s9 + $0xc8] sm:$0xff] }
 0x3dc   : > { %14386 = vmatprep.subr.bf16.mxu1 %v15690_v29  ;;  %v14100_v61 = vpop.f32.mrb[88].mxu1  ;;  %v9317_v40 = vsel %vm16156_vm2, %v9312_v49, %v9316_v16  ;;  %v13223_v49 = vld [vmem:[%s16006_s9 + $0xc0] sm:$0xff] }
 0x3dd   : > { %v14101_v7 = vpop.f32.mrb[89].mxu1  ;;  %v9336_v15 = vrot.slane %v9335_v36, 4 }
 0x3de   : > { %v14102_v43 = vadd.f32 %v14101_v7, %v14100_v61  ;;  %v14103_v52 = vpop.f32.mrb[90].mxu1  ;;  %v18334_v7 = vcombine.high %v18319_v47, %v9317_v40 }
 0x3df   : > { %14387 = vmatpush3.bf16.msra.mxu1 %v15691_v11  ;;  %v14104_v12 = vpop.f32.mrb[91].mxu1  ;;  %v15707_v11 = vld [vmem:[#allocation3 + $0xc50] ss:$12 sps:$4 sm:$0xff]  }
 0x3e0   : > { %14388 = vmatprep.subr.bf16.mxu1 %v15698_v50  ;;  %v18314_v29 = vadd.f32 %v14102_v43, %v18007_v62  ;;  %v14105_v10 = vadd.f32 %v14104_v12, %v14103_v52  ;;  %v9338_v62 = vshll.u32 %v13219_v2, 16  ;;  %v15714_v50 = vld [vmem:[#allocation3 + $0xd28] ss:$12 sps:$4 sm:$0xff]   ;;  %v18337_v12 = vrot.slane %v9352_v58, 5 }
 0x3e1   : > { %8695 = vmatmul.mubr.bf16.gmra.mrb[52].mxu0 %v18216_v54  ;;  %10289 = vmatmul.mubr.bf16.gmra.mrb[196].mxu1 %v18304_v20  ;;  %v9343_v54 = vshrl.u32 %v13220_v17, 16  ;;  %v15715_v17 = vld [vmem:[#allocation3 + $0xc68] ss:$12 sps:$4 sm:$0xff]  }
 0x3e2   : > { %8704 = vmatprep.mubr.bf16.mxu0 %v18220_v4  ;;  %v18327_v41 = vadd.f32 %v14105_v10, %v18013_v6  ;;  %10296 = vmatprep.mubr.bf16.mxu1 %v18308_v23  ;;  %v9356_v4 = vshrl.u32 %v13221_v63, 16  ;;  %v9326_v6 = vrot.slane %v9325_v3, 4  ;;  %v9340_v30 = vrot.slane %v9338_v62, 5  ;;  %v15722_v10 = vld [vmem:[#allocation3 + $0xd40] ss:$12 sps:$4 sm:$0xff]  }
 0x3e3   : > { %14389 = vmatpush3.bf16.msra.mxu1 %v15699_v44  ;;  %v9345_v2 = vrot.slane %v9343_v54, 4  ;;  %v9348_v44 = vrot.slane %v9346_v53, 5  ;;  %v9367_v63 = vshrl.u32 %v13223_v49, 16  ;;  %v13222_v62 = vld [vmem:[%s16006_s9 + $0xb8] sm:$0x11]  ;;  %v9380_v54 = vshrl.u32 %v13224_v33, 16 }
 0x3e4   : > { %14390 = vmatprep.subr.bf16.mxu1 %v15706_v9  ;;  %v14106_v61 = vpop.f32.mrb[92].mxu1  ;;  %v9358_v51 = vrot.slane %v9356_v4, 4  ;;  %v9370_v9 = vshll.u32 %v13223_v49, 16  ;;  %v9331_v53 = vsel %vm16156_vm2, %v9326_v6, %v18306_v57  ;;  %v15730_v57 = vld [vmem:[#allocation3 + $0xd58] ss:$12 sps:$4 sm:$0xff]  }
 0x3e5   : > { %v14107_v16 = vpop.f32.mrb[93].mxu1  ;;  %v9382_v6 = vrot.slane %v9380_v54, 4 }
 0x3e6   : > { %v14108_v43 = vadd.f32 %v14107_v16, %v14106_v61  ;;  %v14109_v52 = vpop.f32.mrb[94].mxu1  ;;  %v9376_v61 = vshll.u32 %v13224_v33, 16  ;;  %v9359_v4 = vor.u32 %v9358_v51, %v18337_v12  ;;  %v9372_v49 = vrot.slane %v9370_v9, 5 }
 0x3e7   : > { %14391 = vmatpush3.bf16.msra.mxu1 %v15707_v11  ;;  %v14110_v22 = vpop.f32.mrb[95].mxu1  ;;  %v15723_v11 = vld [vmem:[#allocation3 + $0xc80] ss:$12 sps:$4 sm:$0xff]  }
 0x3e8   : > { %14392 = vmatprep.subr.bf16.mxu1 %v15714_v50  ;;  %v18340_v3 = vadd.f32 %v14108_v43, %v18028_v46  ;;  %v14111_v36 = vadd.f32 %v14110_v22, %v14109_v52  ;;  %v9341_v46 = vsel %vm16156_vm2, %v9336_v15, %v9340_v30  ;;  %v9369_v50 = vrot.slane %v9367_v63, 4  ;;  %v13225_v15 = vld [vmem:[%s16006_s9 + $0xd0] sm:$0x11]  ;;  %v15731_v22 = vld [vmem:[#allocation3 + $0xc98] ss:$12 sps:$4 sm:$0xff]  }
 0x3e9   : > { %8705 = vmatmul.mubr.bf16.gmra.mrb[56].mxu0 %v18236_v31  ;;  %10297 = vmatmul.mubr.bf16.gmra.mrb[200].mxu1 %v18330_v32  ;;  %v9349_v31 = vor.u32 %v9348_v44, %v9345_v2  ;;  %v9378_v16 = vrot.slane %v9376_v61, 5  ;;  %v18357_v43 = vcombine.low %v18319_v47, %v9317_v40  ;;  %v18360_v2 = vcombine.high %v9331_v53, %v9341_v46  ;;  %v13226_v44 = vld [vmem:[%s16006_s9 + $0xd8] sm:$0xff] }
 0x3ea   : > { %8714 = vmatprep.mubr.bf16.mxu0 %v18239_v13  ;;  %v18350_v58 = vadd.f32 %v14111_v36, %v18034_v39  ;;  %10304 = vmatprep.mubr.bf16.mxu1 %v18334_v7  ;;  %v9362_v13 = vshll.u32 %v13222_v62, 16  ;;  %v9360_v9 = vrot.slane %v9359_v4, 4  ;;  %v9373_v36 = vor.u32 %v9372_v49, %v9369_v50  ;;  %v15732_v62 = vld [vmem:[#allocation3 + $0xd70] ss:$12 sps:$4 sm:$0xff]  }
 0x3eb   : > { %14393 = vmatpush3.bf16.msra.mxu1 %v15715_v17  ;;  %v13227_v17 = vld [vmem:[%s16006_s9 + $0xe0] sm:$0xff]  ;;  %v9350_v63 = vrot.slane %v9349_v31, 4  ;;  %v9383_v40 = vor.u32 %v9382_v6, %v9378_v16  ;;  %v9386_v54 = vshll.u32 %v13225_v15, 16  ;;  %v18379_v49 = vcombine.low %v9331_v53, %v9341_v46  ;;  %v13229_v46 = vld [vmem:[%s16006_s9 + $0xf0] sm:$0xff] }
 0x3ec   : > { %14394 = vmatprep.subr.bf16.mxu1 %v15722_v10  ;;  %v14112_v39 = vpop.f32.mrb[96].mxu1  ;;  %v9364_v10 = vrot.slane %v9362_v13, 5  ;;  %v9400_v31 = vshll.u32 %v13227_v17, 16  ;;  %v9404_v4 = vshrl.u32 %v13227_v17, 16  ;;  %v15689_v53 = vld [vmem:[#allocation3 + $0xc1c] ss:$12 sps:$4 sm:$0xff]  }
 0x3ed   : > { %v14113_v33 = vpop.f32.mrb[97].mxu1  ;;  %v9384_v6 = vrot.slane %v9383_v40, 4 }
 0x3ee   : > { %v14114_v30 = vadd.f32 %v14113_v33, %v14112_v39  ;;  %v14115_v52 = vpop.f32.mrb[98].mxu1  ;;  %v9394_v39 = vshll.u32 %v13226_v44, 16  ;;  %v9365_v50 = vsel %vm16156_vm2, %v9360_v9, %v9364_v10  ;;  %v9388_v33 = vrot.slane %v9386_v54, 5  ;;  %v13230_v10 = vld [vmem:[%s16006_s9 + $0xf8] sm:$0xff]  ;;  %v15687_v54 = vld [vmem:[#allocation3 + $0xc18] ss:$12 sps:$4 sm:$0xff]  }
 0x3ef   : > { %14395 = vmatpush3.bf16.msra.mxu1 %v15723_v11  ;;  %v14116_v51 = vpop.f32.mrb[99].mxu1  ;;  %v9391_v11 = vshrl.u32 %v13226_v44, 16  ;;  %v9402_v44 = vrot.slane %v9400_v31, 5  ;;  %v9406_v17 = vrot.slane %v9404_v4, 4 }
 0x3f0   : > { %14396 = vmatprep.subr.bf16.mxu1 %v15730_v57  ;;  %v18365_v61 = vadd.f32 %v14114_v30, %v18049_v21  ;;  %v14117_v47 = vadd.f32 %v14116_v51, %v14115_v52  ;;  %v15733_v21 = vld [vmem:[#allocation3 + $0xcb0] ss:$12 sps:$4 sm:$0xff]   ;;  %v15684_v57 = vld [vmem:[#allocation3 + $0xc00] ss:$12 sps:$4 sm:$0xff]   ;;  %v9396_v52 = vrot.slane %v9394_v39, 5 }
 0x3f1   : > { %8715 = vmatmul.mubr.bf16.gmra.mrb[60].mxu0 %v18260_v5  ;;  %10305 = vmatmul.mubr.bf16.gmra.mrb[204].mxu1 %v18357_v43  ;;  %v9355_v5 = vsel %vm16156_vm2, %v9350_v63, %v18337_v12  ;;  %v9393_v30 = vrot.slane %v9391_v11, 4  ;;  %v13228_v63 = vld [vmem:[%s16006_s9 + $0xe8] sm:$0x11]  ;;  %v9389_v11 = vsel %vm16156_vm2, %v9384_v6, %v9388_v33  ;;  %v9407_v31 = vor.u32 %v9406_v17, %v9402_v44  ;;  %v13233_v17 = vld [vmem:[%s16006_s9 + $0x110] sm:$0xff] }
 0x3f2   : > { %10087 = vmatprep.mubr.bf16.mxu0 %v18262_v1  ;;  %v18371_v13 = vadd.f32 %v14117_v47, %v18055_v48  ;;  %10312 = vmatprep.mubr.bf16.mxu1 %v18360_v2  ;;  %v9374_v48 = vrot.slane %v9373_v36, 4  ;;  %v18381_v51 = vcombine.high %v9355_v5, %v9365_v50  ;;  %v9410_v4 = vshll.u32 %v13228_v63, 16  ;;  %v13232_v6 = vld [vmem:[%s16006_s9 + $0x108] sm:$0xff] }
 0x3f3   : > { %14397 = vmatpush3.bf16.msra.mxu1 %v15731_v22  ;;  %v9397_v39 = vor.u32 %v9396_v52, %v9393_v30 }
 0x3f4   : > { %14398 = vmatprep.subr.bf16.mxu1 %v15732_v62  ;;  %v14118_v1 = vpop.f32.mrb[100].mxu1  ;;  %v19518_v62 = vld [vmem:[#allocation24_spill] sm:$0xff]  ;;  %v18392_v40 = vsel %vm16156_vm2, %v9374_v48, %v9378_v16  ;;  %v9415_v16 = vshrl.u32 %v13229_v46, 16  ;;  %v9428_v48 = vshrl.u32 %v13230_v10, 16  ;;  %v9412_v52 = vrot.slane %v9410_v4, 5 }
 0x3f5   : > { %v14119_v15 = vpop.f32.mrb[101].mxu1  ;;  %v9398_v30 = vrot.slane %v9397_v39, 4  ;;  %v9448_v4 = vshll.u32 %v13233_v17, 16 }
 0x3f6   : > { %v14120_v12 = vadd.f32 %v14119_v15, %v14118_v1  ;;  %v14121_v22 = vpop.f32.mrb[102].mxu1  ;;  %v9418_v1 = vshll.u32 %v13229_v46, 16 }
 0x3f7   : > { %14399 = vmatpush3.bf16.msra.mxu1 %v15733_v21  ;;  %v14122_v9 = vpop.f32.mrb[103].mxu1 }
 0x3f8   : > { %v18387_v36 = vadd.f32 %v14120_v12, %v19518_v62  ;;  %v14123_v47 = vadd.f32 %v14122_v9, %v14121_v22  ;;  %v18402_v12 = vcombine.low %v9355_v5, %v9365_v50  ;;  %v15692_v9 = vld [vmem:[#allocation3 + $0xc30] ss:$12 sps:$4 sm:$0xff]   ;;  %v9420_v46 = vrot.slane %v9418_v1, 5  ;;  %v15697_v50 = vld [vmem:[#allocation3 + $0xc4c] ss:$12 sps:$4 sm:$0xff]  }
 0x3f9   : > { %10088 = vmatmul.mubr.bf16.vlgmr.msra.gmra.mrb[0].mxu0 %v18282_v60  ;;  %10313 = vmatmul.mubr.bf16.gmra.mrb[208].mxu1 %v18379_v49  ;;  %v15694_v60 = vld [vmem:[#allocation3 + $0xc34] ss:$12 sps:$4 sm:$0xff]   ;;  %v9430_v62 = vrot.slane %v9428_v48, 4  ;;  %v15702_v48 = vld [vmem:[#allocation3 + $0xc64] ss:$12 sps:$4 sm:$0xff]  }
 0x3fa   : > { %11355 = vmatpush1.bf16.msra.mxu0 %v15684_v57  ;;  %v18398_v21 = vadd.f32 %v14123_v47, %v18073_v19  ;;  %10097 = vmatprep.mubr.bf16.mxu0 %v18285_v18  ;;  %v9424_v57 = vshll.u32 %v13230_v10, 16  ;;  %v18406_v19 = vcombine.high %v18392_v40, %v9389_v11  ;;  %v9408_v18 = vrot.slane %v9407_v31, 4  ;;  %v13231_v31 = vld [vmem:[%s16006_s9 + $0x100] sm:$0x11] }
 0x3fb   : > { %10320 = vmatprep.mubr.bf16.mxu1 %v18381_v51  ;;  %11356 = vmatprep.subr.bf16.mxu0 %v15689_v53  ;;  %v9417_v53 = vrot.slane %v9415_v16, 4  ;;  %v9439_v47 = vshrl.u32 %v13232_v6, 16 }
 0x3fc   : > { %19519 = vst [vmem:[#allocation21_spill] sm:$0xff] %v18398_v21  ;;  %v14124_v15 = vpop.f32.mrb[104].mxu1  ;;  %v18409_v10 = vrot.slane %v9424_v57, 5 }
 0x3fd   : > { %v14125_v33 = vpop.f32.mrb[105].mxu1  ;;  %v9421_v1 = vor.u32 %v9420_v46, %v9417_v53  ;;  %v15700_v53 = vld [vmem:[#allocation3 + $0xc60] ss:$12 sps:$4 sm:$0xff]   ;;  %v13235_v46 = vld [vmem:[%s16006_s9 + $0x120] sm:$0xff] }
 0x3fe   : > { %11357 = vmatpush1.bf16.msra.mxu0 %v15687_v54  ;;  %v14126_v22 = vadd.f32 %v14125_v33, %v14124_v15  ;;  %v14127_v63 = vpop.f32.mrb[106].mxu1  ;;  %v9442_v54 = vshll.u32 %v13232_v6, 16  ;;  %v9452_v15 = vshrl.u32 %v13233_v17, 16  ;;  %v9431_v57 = vor.u32 %v9430_v62, %v18409_v10 }
 0x3ff   : > { %11358 = vmatprep.subr.bf16.mxu0 %v15694_v60  ;;  %v14128_v5 = vpop.f32.mrb[107].mxu1  ;;  %v9403_v60 = vsel %vm16156_vm2, %v9398_v30, %v9402_v44  ;;  %v9441_v44 = vrot.slane %v9439_v47, 4  ;;  %v18427_v33 = vrot.slane %v9448_v4, 5  ;;  %v9422_v62 = vrot.slane %v9421_v1, 4 }
 0x400   : > { %v18412_v21 = vadd.f32 %v14126_v22, %v18084_v25  ;;  %v14129_v39 = vadd.f32 %v14128_v5, %v14127_v63  ;;  %v9413_v25 = vsel %vm16156_vm2, %v9408_v18, %v9412_v52  ;;  %v9444_v6 = vrot.slane %v9442_v54, 5  ;;  %v13234_v18 = vld [vmem:[%s16006_s9 + $0x118] sm:$0x11]  ;;  %v13236_v5 = vld [vmem:[%s16006_s9 + $0x128] sm:$0xff] }
 0x401   : > { %10098 = vmatmul.mubr.bf16.gmra.mrb[4].mxu0 %v18304_v20  ;;  %10321 = vmatmul.mubr.bf16.gmra.mrb[212].mxu1 %v18402_v12  ;;  %v15695_v20 = vld [vmem:[#allocation3 + $0xc48] ss:$12 sps:$4 sm:$0xff]   ;;  %v9454_v30 = vrot.slane %v9452_v15, 4  ;;  %v18430_v22 = vcombine.low %v18392_v40, %v9389_v11  ;;  %v9432_v47 = vrot.slane %v9431_v57, 4  ;;  %v9458_v15 = vshll.u32 %v13234_v18, 16 }
 0x402   : > { %10107 = vmatprep.mubr.bf16.mxu0 %v18308_v23  ;;  %v18421_v16 = vadd.f32 %v14129_v39, %v18090_v55  ;;  %10328 = vmatprep.mubr.bf16.mxu1 %v18406_v19  ;;  %v9434_v23 = vshll.u32 %v13231_v31, 16  ;;  %v9445_v39 = vor.u32 %v9444_v6, %v9441_v44  ;;  %v15705_v31 = vld [vmem:[#allocation3 + $0xc7c] ss:$12 sps:$4 sm:$0xff]   ;;  %v9466_v1 = vshll.u32 %v13235_v46, 16 }
 0x403   : > { %11359 = vmatpush1.bf16.msra.mxu0 %v15692_v9  ;;  %v18433_v9 = vcombine.high %v9403_v60, %v9413_v25  ;;  %v9455_v11 = vor.u32 %v9454_v30, %v18427_v33  ;;  %v9472_v57 = vshll.u32 %v13236_v5, 16 }
 0x404   : > { %11360 = vmatprep.subr.bf16.mxu0 %v15697_v50  ;;  %v14130_v55 = vpop.f32.mrb[108].mxu1  ;;  %v9436_v54 = vrot.slane %v9434_v23, 5  ;;  %v9476_v23 = vshrl.u32 %v13236_v5, 16  ;;  %v9446_v30 = vrot.slane %v9445_v39, 4  ;;  %v15713_v39 = vld [vmem:[#allocation3 + $0xcac] ss:$12 sps:$4 sm:$0xff]  }
 0x405   : > { %v14131_v17 = vpop.f32.mrb[109].mxu1 }
 0x406   : > { %v14132_v52 = vadd.f32 %v14131_v17, %v14130_v55  ;;  %v14133_v63 = vpop.f32.mrb[110].mxu1  ;;  %v9437_v44 = vsel %vm16156_vm2, %v9432_v47, %v9436_v54  ;;  %v18453_v55 = vcombine.low %v9403_v60, %v9413_v25  ;;  %v9460_v17 = vrot.slane %v9458_v15, 5  ;;  %v15708_v47 = vld [vmem:[#allocation3 + $0xc90] ss:$12 sps:$4 sm:$0xff]  }
 0x407   : > { %11361 = vmatpush1.bf16.msra.mxu0 %v15695_v20  ;;  %v14134_v50 = vpop.f32.mrb[111].mxu1  ;;  %v9463_v20 = vshrl.u32 %v13235_v46, 16  ;;  %v13238_v25 = vld [vmem:[%s16006_s9 + $0x138] sm:$0xff]  ;;  %v18462_v54 = vld [vmem:[%s16006_s9 + $0x140] sm:$0xff] }
 0x408   : > { %11362 = vmatprep.subr.bf16.mxu0 %v15702_v48  ;;  %v18438_v4 = vadd.f32 %v14132_v52, %v18101_v35  ;;  %v14135_v40 = vadd.f32 %v14134_v50, %v14133_v63  ;;  %v15703_v35 = vld [vmem:[#allocation3 + $0xc78] ss:$12 sps:$4 sm:$0xff]   ;;  %v9468_v63 = vrot.slane %v9466_v1, 5  ;;  %19520 = vst [vmem:[#allocation22_spill] sm:$0xff] %v18462_v54 }
 0x409   : > { %10108 = vmatmul.mubr.bf16.gmra.mrb[8].mxu0 %v18330_v32  ;;  %10329 = vmatmul.mubr.bf16.gmra.mrb[216].mxu1 %v18430_v22  ;;  %v9427_v32 = vsel %vm16156_vm2, %v9422_v62, %v18409_v10  ;;  %v9465_v52 = vrot.slane %v9463_v20, 4  ;;  %v9478_v10 = vrot.slane %v9476_v23, 4  ;;  %v13237_v62 = vld [vmem:[%s16006_s9 + $0x130] sm:$0x11]  ;;  %v9496_v23 = vshll.u32 %v18462_v54, 16 }
 0x40a   : > { %10117 = vmatprep.mubr.bf16.mxu0 %v18334_v7  ;;  %v18445_v48 = vadd.f32 %v14135_v40, %v18107_v14  ;;  %10336 = vmatprep.mubr.bf16.mxu1 %v18433_v9  ;;  %v15710_v7 = vld [vmem:[#allocation3 + $0xc94] ss:$12 sps:$4 sm:$0xff]   ;;  %v9456_v14 = vrot.slane %v9455_v11, 4  ;;  %v18457_v50 = vcombine.high %v9427_v32, %v9437_v44  ;;  %v18471_v11 = vsel %vm16156_vm2, %v9446_v30, %v18427_v33 }
 0x40b   : > { %11363 = vmatpush1.bf16.msra.mxu0 %v15700_v53  ;;  %v18455_v53 = vrot.slane %v9472_v57, 5  ;;  %v9469_v20 = vor.u32 %v9468_v63, %v9465_v52  ;;  %v9482_v1 = vshll.u32 %v13237_v62, 16  ;;  %v9490_v33 = vshll.u32 %v13238_v25, 16 }
 0x40c   : > { %11364 = vmatprep.subr.bf16.mxu0 %v15705_v31  ;;  %v14136_v6 = vpop.f32.mrb[112].mxu1  ;;  %v9461_v15 = vsel %vm16156_vm2, %v9456_v14, %v9460_v17  ;;  %v18484_v30 = vcombine.low %v9427_v32, %v9437_v44  ;;  %v13241_v14 = vld [vmem:[%s16006_s9 + $0x150] sm:$0xff] }
 0x40d   : > { %v14137_v18 = vpop.f32.mrb[113].mxu1  ;;  %v9484_v63 = vrot.slane %v9482_v1, 5  ;;  %v15716_v32 = vld [vmem:[#allocation3 + $0xcc0] ss:$12 sps:$4 sm:$0xff]  }
 0x40e   : > { %v14138_v46 = vadd.f32 %v14137_v18, %v14136_v6  ;;  %v14139_v5 = vpop.f32.mrb[114].mxu1  ;;  %v9470_v18 = vrot.slane %v9469_v20, 4  ;;  %v13240_v1 = vld [vmem:[%s16006_s9 + $0x148] sm:$0x11] }
 0x40f   : > { %11365 = vmatpush1.bf16.msra.mxu0 %v15703_v35  ;;  %v14140_v60 = vpop.f32.mrb[115].mxu1  ;;  %v9500_v35 = vshrl.u32 %v18462_v54, 16  ;;  %v15721_v54 = vld [vmem:[#allocation3 + $0xcdc] ss:$12 sps:$4 sm:$0xff]  }
 0x410   : > { %11366 = vmatprep.subr.bf16.mxu0 %v15710_v7  ;;  %v18465_v31 = vadd.f32 %v14138_v46, %v18118_v42  ;;  %v14141_v40 = vadd.f32 %v14140_v60, %v14139_v5  ;;  %v9479_v42 = vor.u32 %v9478_v10, %v18455_v53  ;;  %v15718_v7 = vld [vmem:[#allocation3 + $0xcc4] ss:$12 sps:$4 sm:$0xff]   ;;  %v18493_v60 = vrot.slane %v9496_v23, 5 }
 0x411   : > { %10118 = vmatmul.mubr.bf16.gmra.mrb[12].mxu0 %v18357_v43  ;;  %10337 = vmatmul.mubr.bf16.gmra.mrb[220].mxu1 %v18453_v55  ;;  %v9487_v43 = vshrl.u32 %v13238_v25, 16  ;;  %v18491_v10 = vld [vmem:[%s16006_s9 + $0x158] sm:$0xff]  ;;  %v9502_v25 = vrot.slane %v9500_v35, 4  ;;  %v9475_v23 = vsel %vm16156_vm2, %v9470_v18, %v18455_v53  ;;  %v15719_v35 = vld [vmem:[#allocation3 + $0xcd8] ss:$12 sps:$4 sm:$0xff]  }
 0x412   : > { %10127 = vmatprep.mubr.bf16.mxu0 %v18360_v2  ;;  %v18479_v57 = vadd.f32 %v14141_v40, %v18124_v34  ;;  %10344 = vmatprep.mubr.bf16.mxu1 %v18457_v50  ;;  %v15711_v2 = vld [vmem:[#allocation3 + $0xca8] ss:$12 sps:$4 sm:$0xff]   ;;  %v18488_v34 = vcombine.high %v18471_v11, %v9461_v15  ;;  %v9480_v52 = vrot.slane %v9479_v42, 4  ;;  %v9514_v40 = vshll.u32 %v13241_v14, 16 }
 0x413   : > { %11367 = vmatpush1.bf16.msra.mxu0 %v15708_v47  ;;  %v9489_v62 = vrot.slane %v9487_v43, 4  ;;  %v9492_v47 = vrot.slane %v9490_v33, 5  ;;  %v9520_v43 = vshll.u32 %v18491_v10, 16  ;;  %v9524_v33 = vshrl.u32 %v18491_v10, 16  ;;  %v15726_v53 = vld [vmem:[#allocation3 + $0xcf4] ss:$12 sps:$4 sm:$0xff]  }
 0x414   : > { %11368 = vmatprep.subr.bf16.mxu0 %v15713_v39  ;;  %v14142_v6 = vpop.f32.mrb[116].mxu1  ;;  %v9511_v39 = vshrl.u32 %v13241_v14, 16  ;;  %v9516_v14 = vrot.slane %v9514_v40, 5 }
 0x415   : > { %v14143_v17 = vpop.f32.mrb[117].mxu1  ;;  %v9526_v18 = vrot.slane %v9524_v33, 4 }
 0x416   : > { %v14144_v46 = vadd.f32 %v14143_v17, %v14142_v6  ;;  %v14145_v5 = vpop.f32.mrb[118].mxu1  ;;  %v9513_v6 = vrot.slane %v9511_v39, 4  ;;  %v18514_v17 = vrot.slane %v9520_v43, 5  ;;  %v15729_v43 = vld [vmem:[#allocation3 + $0xd0c] ss:$12 sps:$4 sm:$0xff]  }
 0x417   : > { %11369 = vmatpush1.bf16.msra.mxu0 %v15711_v2  ;;  %v14146_v44 = vpop.f32.mrb[119].mxu1 }
 0x418   : > { %11370 = vmatprep.subr.bf16.mxu0 %v15718_v7  ;;  %v18496_v20 = vadd.f32 %v14144_v46, %v18135_v24  ;;  %v14147_v42 = vadd.f32 %v14146_v44, %v14145_v5  ;;  %v9485_v24 = vsel %vm16156_vm2, %v9480_v52, %v9484_v63  ;;  %v9503_v7 = vor.u32 %v9502_v25, %v18493_v60  ;;  %v13243_v52 = vld [vmem:[%s16006_s9 + $0x160] sm:$0x11]  ;;  %v18524_v44 = vld [vmem:[%s16006_s9 + $0x170] sm:$0xff] }
 0x419   : > { %10128 = vmatmul.mubr.bf16.gmra.mrb[16].mxu0 %v18379_v49  ;;  %10345 = vmatmul.mubr.bf16.gmra.mrb[224].mxu1 %v18484_v30  ;;  %v9493_v49 = vor.u32 %v9492_v47, %v9489_v62  ;;  %v18517_v5 = vcombine.low %v18471_v11, %v9461_v15  ;;  %v18520_v47 = vcombine.high %v9475_v23, %v9485_v24  ;;  %v15724_v25 = vld [vmem:[#allocation3 + $0xcf0] ss:$12 sps:$4 sm:$0xff]  }
 0x41a   : > { %10137 = vmatprep.mubr.bf16.mxu0 %v18381_v51  ;;  %v18508_v2 = vadd.f32 %v14147_v42, %v18141_v8  ;;  %10352 = vmatprep.mubr.bf16.mxu1 %v18488_v34  ;;  %v9506_v51 = vshll.u32 %v13240_v1, 16  ;;  %19521 = vst [vmem:[#allocation23_spill] sm:$0xff] %v18524_v44  ;;  %v9504_v40 = vrot.slane %v9503_v7, 4  ;;  %v9517_v1 = vor.u32 %v9516_v14, %v9513_v6  ;;  %v15736_v14 = vld [vmem:[#allocation3 + $0xd24] ss:$12 sps:$4 sm:$0xff]  }
 0x41b   : > { %11371 = vmatpush1.bf16.msra.mxu0 %v15716_v32  ;;  %v13244_v32 = vld [vmem:[%s16006_s9 + $0x168] sm:$0xff]  ;;  %v9494_v39 = vrot.slane %v9493_v49, 4  ;;  %v9527_v33 = vor.u32 %v9526_v18, %v18514_v17  ;;  %v9544_v7 = vshll.u32 %v18524_v44, 16  ;;  %v18544_v18 = vcombine.low %v9475_v23, %v9485_v24  ;;  %v15739_v24 = vld [vmem:[#allocation3 + $0xd3c] ss:$12 sps:$4 sm:$0xff]  }
 0x41c   : > { %11372 = vmatprep.subr.bf16.mxu0 %v15721_v54  ;;  %v14148_v8 = vpop.f32.mrb[120].mxu1  ;;  %v9508_v42 = vrot.slane %v9506_v51, 5  ;;  %v9538_v49 = vshll.u32 %v13244_v32, 16  ;;  %v9548_v51 = vshrl.u32 %v18524_v44, 16  ;;  %v18551_v23 = vld [vmem:[%s16006_s9 + $0x188] sm:$0xff] }
 0x41d   : > { %v14149_v46 = vpop.f32.mrb[121].mxu1  ;;  %19522 = vst [vmem:[#allocation26_spill] sm:$0xff] %v18551_v23 }
 0x41e   : > { %v14150_v63 = vadd.f32 %v14149_v46, %v14148_v8  ;;  %v14151_v62 = vpop.f32.mrb[122].mxu1  ;;  %v9530_v8 = vshll.u32 %v13243_v52, 16  ;;  %v9528_v46 = vrot.slane %v9527_v33, 4 }
 0x41f   : > { %11373 = vmatpush1.bf16.msra.mxu0 %v15719_v35  ;;  %v14152_v54 = vpop.f32.mrb[123].mxu1  ;;  %v9535_v35 = vshrl.u32 %v13244_v32, 16  ;;  %v9540_v32 = vrot.slane %v9538_v49, 5 }
 0x420   : > { %11374 = vmatprep.subr.bf16.mxu0 %v15726_v53  ;;  %v18527_v11 = vadd.f32 %v14150_v63, %v18152_v38  ;;  %v14153_v15 = vadd.f32 %v14152_v54, %v14151_v62  ;;  %v15727_v38 = vld [vmem:[#allocation3 + $0xd08] ss:$12 sps:$4 sm:$0xff]   ;;  %v9532_v52 = vrot.slane %v9530_v8, 5  ;;  %v9550_v54 = vrot.slane %v9548_v51, 4 }
 0x421   : > { %10138 = vmatmul.mubr.bf16.gmra.mrb[20].mxu0 %v18402_v12  ;;  %10353 = vmatmul.mubr.bf16.gmra.mrb[228].mxu1 %v18517_v5  ;;  %v9499_v12 = vsel %vm16156_vm2, %v9494_v39, %v18493_v60  ;;  %v9537_v62 = vrot.slane %v9535_v35, 4 }
 0x422   : > { %10147 = vmatprep.mubr.bf16.mxu0 %v18406_v19  ;;  %v18536_v6 = vadd.f32 %v14153_v15, %v18158_v28  ;;  %10360 = vmatprep.mubr.bf16.mxu1 %v18520_v47  ;;  %v9509_v19 = vsel %vm16156_vm2, %v9504_v40, %v9508_v42  ;;  %v9518_v28 = vrot.slane %v9517_v1, 4  ;;  %v13246_v40 = vld [vmem:[%s16006_s9 + $0x178] sm:$0x11]  ;;  %v13247_v42 = vld [vmem:[%s16006_s9 + $0x180] sm:$0xff]  ;;  %v9533_v35 = vsel %vm16156_vm2, %v9528_v46, %v9532_v52 }
 0x423   : > { %11375 = vmatpush1.bf16.msra.mxu0 %v15724_v25  ;;  %v9546_v25 = vrot.slane %v9544_v7, 5  ;;  %v18546_v15 = vcombine.high %v9499_v12, %v9509_v19  ;;  %v9541_v49 = vor.u32 %v9540_v32, %v9537_v62  ;;  %v9554_v51 = vshll.u32 %v13246_v40, 16 }
 0x424   : > { %11376 = vmatprep.subr.bf16.mxu0 %v15729_v43  ;;  %v14154_v53 = vpop.f32.mrb[124].mxu1  ;;  %v15734_v43 = vld [vmem:[#allocation3 + $0xd20] ss:$12 sps:$4 sm:$0xff]   ;;  %v9523_v8 = vsel %vm16156_vm2, %v9518_v28, %v18514_v17  ;;  %v9572_v17 = vshrl.u32 %v18551_v23, 16 }
 0x425   : > { %v14155_v63 = vpop.f32.mrb[125].mxu1  ;;  %v9551_v7 = vor.u32 %v9550_v54, %v9546_v25  ;;  %v18572_v46 = vcombine.high %v9523_v8, %v9533_v35  ;;  %v9556_v62 = vrot.slane %v9554_v51, 5  ;;  %v18581_v51 = vld [vmem:[%s16006_s9 + $0x1a0] sm:$0xff] }
 0x426   : > { %v14156_v60 = vadd.f32 %v14155_v63, %v14154_v53  ;;  %v14157_v39 = vpop.f32.mrb[126].mxu1  ;;  %v15742_v53 = vld [vmem:[#allocation3 + $0xd54] ss:$12 sps:$4 sm:$0xff]   ;;  %19523 = vst [vmem:[#allocation12_spill] sm:$0xff] %v18581_v51 }
 0x427   : > { %11377 = vmatpush1.bf16.msra.mxu0 %v15727_v38  ;;  %v14158_v44 = vpop.f32.mrb[127].mxu1  ;;  %v9559_v38 = vshrl.u32 %v13247_v42, 16  ;;  %v9552_v63 = vrot.slane %v9551_v7, 4  ;;  %v13250_v7 = vld [vmem:[%s16006_s9 + $0x198] sm:$0xff] }
 0x428   : > { %11378 = vmatprep.subr.bf16.mxu0 %v15736_v14  ;;  %v18554_v1 = vadd.f32 %v14156_v60, %v18169_v26  ;;  %v14159_v33 = vadd.f32 %v14158_v44, %v14157_v39  ;;  %v9568_v44 = vshll.u32 %v18551_v23, 16  ;;  %v15737_v14 = vld [vmem:[#allocation3 + $0xd38] ss:$12 sps:$4 sm:$0xff]  }
 0x429   : > { %10148 = vmatmul.mubr.bf16.gmra.mrb[24].mxu0 %v18430_v22  ;;  %10361 = vmatmul.mubr.bf16.gmra.mrb[232].mxu1 %v18544_v18  ;;  %v9562_v22 = vshll.u32 %v13247_v42, 16  ;;  %v9561_v32 = vrot.slane %v9559_v38, 4  ;;  %v9574_v42 = vrot.slane %v9572_v17, 4 }
 0x42a   : > { %10157 = vmatprep.mubr.bf16.mxu0 %v18433_v9  ;;  %v18565_v26 = vadd.f32 %v14159_v33, %v18175_v59  ;;  %10368 = vmatprep.mubr.bf16.mxu1 %v18546_v15  ;;  %v18570_v9 = vcombine.low %v9499_v12, %v9509_v19  ;;  %v9542_v59 = vrot.slane %v9541_v49, 4  ;;  %v9570_v40 = vrot.slane %v9568_v44, 5  ;;  %v13249_v33 = vld [vmem:[%s16006_s9 + $0x190] sm:$0x11]  ;;  %v19524_v44 = vld [vmem:[#allocation14_spill] sm:$0xff] }
 0x42b   : > { %11379 = vmatpush1.bf16.msra.mxu0 %v15734_v43  ;;  %v9564_v39 = vrot.slane %v9562_v22, 5  ;;  %v15740_v43 = vld [vmem:[#allocation3 + $0xd50] ss:$12 sps:$4 sm:$0xff]   ;;  %v15745_v12 = vld [vmem:[#allocation3 + $0xd6c] ss:$12 sps:$4 sm:$0xff]   ;;  %v9557_v22 = vsel %vm16156_vm2, %v9552_v63, %v9556_v62  ;;  %v18595_v63 = vcombine.low %v9523_v8, %v9533_v35 }
 0x42c   : > { %11380 = vmatprep.subr.bf16.mxu0 %v15739_v24  ;;  %v14176_v28 = vpop.f32.mrb[128].mxu1  ;;  %v9547_v38 = vsel %vm16156_vm2, %v9542_v59, %v9546_v25  ;;  %v13252_v8 = vld [vmem:[%s16006_s9 + $0x1a8] sm:$0x11]  ;;  %v19526_v35 = vld [vmem:[#allocation15_spill] sm:$0xff] }
 0x42d   : > { %v14177_v52 = vpop.f32.mrb[129].mxu1  ;;  %v18597_v62 = vcombine.high %v9547_v38, %v9557_v22 }
 0x42e   : > { %v14178_v54 = vadd.f32 %v14177_v52, %v14176_v28  ;;  %v14179_v60 = vpop.f32.mrb[130].mxu1  ;;  %v9583_v28 = vshrl.u32 %v13250_v7, 16  ;;  %v9586_v52 = vshll.u32 %v13250_v7, 16 }
 0x42f   : > { %11381 = vmatpush1.bf16.msra.mxu0 %v15737_v14  ;;  %v14180_v24 = vpop.f32.mrb[131].mxu1  ;;  %v9578_v14 = vshll.u32 %v13249_v33, 16 }
 0x430   : > { %11382 = vmatprep.subr.bf16.mxu0 %v15742_v53  ;;  %v18576_v19 = vadd.f32 %v14178_v54, %v18185_v56  ;;  %v14181_v49 = vadd.f32 %v14180_v24, %v14179_v60  ;;  %v9565_v56 = vor.u32 %v9564_v39, %v9561_v32  ;;  %v15743_v53 = vld [vmem:[#allocation3 + $0xd68] ss:$12 sps:$4 sm:$0xff]   ;;  %v9596_v54 = vshrl.u32 %v18581_v51, 16 }
 0x431   : > { %10158 = vmatmul.mubr.bf16.gmra.mrb[28].mxu0 %v18453_v55  ;;  %10369 = vmatmul.mubr.bf16.gmra.mrb[236].mxu1 %v18570_v9  ;;  %v9575_v55 = vor.u32 %v9574_v42, %v9570_v40  ;;  %v9585_v33 = vrot.slane %v9583_v28, 4 }
 0x432   : > { %10167 = vmatprep.mubr.bf16.mxu0 %v18457_v50  ;;  %v18590_v17 = vadd.f32 %v14181_v49, %v19524_v44  ;;  %10376 = vmatprep.mubr.bf16.mxu1 %v18572_v46  ;;  %v9592_v50 = vshll.u32 %v18581_v51, 16  ;;  %v9566_v39 = vrot.slane %v9565_v56, 4  ;;  %v9588_v49 = vrot.slane %v9586_v52, 5  ;;  %v19525_v51 = vld [vmem:[#allocation25_spill] sm:$0xff] }
 0x433   : > { %11383 = vmatpush1.bf16.msra.mxu0 %v15740_v43  ;;  %v9576_v42 = vrot.slane %v9575_v55, 4  ;;  %v9580_v43 = vrot.slane %v9578_v14, 5  ;;  %v9598_v44 = vrot.slane %v9596_v54, 4 }
 0x434   : > { %11384 = vmatprep.subr.bf16.mxu0 %v15745_v12  ;;  %v14182_v25 = vpop.f32.mrb[132].mxu1  ;;  %v9594_v7 = vrot.slane %v9592_v50, 5  ;;  %v9571_v55 = vsel %vm16156_vm2, %v9566_v39, %v9570_v40  ;;  %v9589_v14 = vor.u32 %v9588_v49, %v9585_v33  ;;  %v18614_v50 = vcombine.low %v9547_v38, %v9557_v22  ;;  %v19528_v38 = vld [vmem:[#allocation17_spill] sm:$0xff] }
 0x435   : > { %v14183_v59 = vpop.f32.mrb[133].mxu1 }
 0x436   : > { %v14184_v60 = vadd.f32 %v14183_v59, %v14182_v25  ;;  %v14185_v32 = vpop.f32.mrb[134].mxu1  ;;  %v9590_v59 = vrot.slane %v9589_v14, 4 }
 0x437   : > { %11385 = vmatpush1.bf16.msra.mxu0 %v15743_v53  ;;  %v14186_v24 = vpop.f32.mrb[135].mxu1  ;;  %v9599_v53 = vor.u32 %v9598_v44, %v9594_v7 }
 0x438   : > { %v18600_v12 = vadd.f32 %v14184_v60, %v19525_v51  ;;  %v14187_v23 = vadd.f32 %v14186_v24, %v14185_v32  ;;  %v9581_v51 = vsel %vm16156_vm2, %v9576_v42, %v9580_v43  ;;  %v19527_v32 = vld [vmem:[#allocation16_spill] sm:$0xff]  ;;  %v13334_v43 = vld [vmem:[%s16006_s9 + $0x38] sm:$0xff]  ;;  %v9595_v24 = vsel %vm16156_vm2, %v9590_v59, %v9594_v7  ;;  %v13337_v59 = vld [vmem:[%s16006_s9 + $0x50] sm:$0xff] }
 0x439   : > { %10168 = vmatmul.mubr.bf16.gmra.mrb[32].mxu0 %v18484_v30  ;;  %10377 = vmatmul.mubr.bf16.gmra.mrb[240].mxu1 %v18595_v63  ;;  %v9602_v30 = vshll.u32 %v13252_v8, 16  ;;  %v9600_v40 = vrot.slane %v9599_v53, 4  ;;  %v10795_v49 = vrot.slane %v13334_v43, 5  ;;  %v13335_v8 = vld [vmem:[%s16006_s9 + $0x40] sm:$0x11]  ;;  %v18635_v14 = vcombine.low %v9571_v55, %v9581_v51 }
 0x43a   : > { %10177 = vmatprep.mubr.bf16.mxu0 %v18488_v34  ;;  %v18607_v56 = vadd.f32 %v14187_v23, %v19526_v35  ;;  %10384 = vmatprep.mubr.bf16.mxu1 %v18597_v62  ;;  %v18616_v23 = vcombine.high %v9571_v55, %v9581_v51  ;;  %v19530_v55 = vld [vmem:[#allocation19_spill] sm:$0xff] }
 0x43b   : > { %v9604_v60 = vrot.slane %v9602_v30, 5  ;;  %v10797_v7 = vrot.slane %v10795_v49, 4 }
 0x43c   : > { %v14188_v28 = vpop.f32.mrb[136].mxu1 }
 0x43d   : > { %v14189_v52 = vpop.f32.mrb[137].mxu1  ;;  %v9605_v33 = vsel %vm16156_vm2, %v9600_v40, %v9604_v60 }
 0x43e   : > { %v14190_v34 = vadd.f32 %v14189_v52, %v14188_v28  ;;  %v14191_v54 = vpop.f32.mrb[138].mxu1  ;;  %v18637_v30 = vcombine.high %v9595_v24, %v9605_v33 }
 0x43f   : > { %v14192_v25 = vpop.f32.mrb[139].mxu1 }
 0x440   : > { %v18619_v39 = vadd.f32 %v14190_v34, %v19527_v32  ;;  %v14193_v42 = vadd.f32 %v14192_v25, %v14191_v54  ;;  %v10798_v34 = vrot.slane %v13335_v8, 5 }
 0x441   : > { %10178 = vmatmul.mubr.bf16.gmra.mrb[36].mxu0 %v18517_v5  ;;  %10385 = vmatmul.mubr.bf16.gmra.mrb[244].mxu1 %v18614_v50  ;;  %v13333_v5 = vld [vmem:[%s16006_s9 + $0x30] sm:$0xee] }
 0x442   : > { %10187 = vmatprep.mubr.bf16.mxu0 %v18520_v47  ;;  %v18626_v22 = vadd.f32 %v14193_v42, %v19528_v38  ;;  %10392 = vmatprep.mubr.bf16.mxu1 %v18616_v23  ;;  %v13381_v52 = vrot.slane %v13333_v5, 9  ;;  %v10799_v32 = vsel %vm16533_vm5, %v10797_v7, %v10798_v34  ;;  %v10802_v42 = vrot.slane %v13337_v59, 5  ;;  %v13338_v38 = vld [vmem:[%s16006_s9 + $0x58] sm:$0x11]  ;;  %v13340_v34 = vld [vmem:[%s16006_s9 + $0x68] sm:$0xff] }
 0x443   : > { %v18656_v5 = vcombine.low %v9595_v24, %v9605_v33  ;;  %v19532_v24 = vld [vmem:[#allocation20_spill] sm:$0xff] }
 0x444   : > { %v14194_v44 = vpop.f32.mrb[140].mxu1  ;;  %v10796_v60 = vsel %vm16533_vm5, %v13381_v52, %v10795_v49  ;;  %v10804_v49 = vrot.slane %v10802_v42, 4 }
 0x445   : > { %v14195_v35 = vpop.f32.mrb[141].mxu1 }
 0x446   : > { %v14196_v47 = vadd.f32 %v14195_v35, %v14194_v44  ;;  %v14197_v53 = vpop.f32.mrb[142].mxu1  ;;  %v18658_v35 = vcombine.high %v10796_v60, %v10799_v32 }
 0x447   : > { %v14198_v28 = vpop.f32.mrb[143].mxu1 }
 0x448   : > { %v18640_v54 = vadd.f32 %v14196_v47, %v19529_v37  ;;  %v14199_v25 = vadd.f32 %v14198_v28, %v14197_v53  ;;  %v10805_v28 = vrot.slane %v13338_v38, 5 }
 0x449   : > { %10188 = vmatmul.mubr.bf16.gmra.mrb[40].mxu0 %v18544_v18  ;;  %10393 = vmatmul.mubr.bf16.gmra.mrb[248].mxu1 %v18635_v14  ;;  %v13336_v18 = vld [vmem:[%s16006_s9 + $0x48] sm:$0xee] }
 0x44a   : > { %10197 = vmatprep.mubr.bf16.mxu0 %v18546_v15  ;;  %v18647_v51 = vadd.f32 %v14199_v25, %v19530_v55  ;;  %10400 = vmatprep.mubr.bf16.mxu1 %v18637_v30  ;;  %v13382_v53 = vrot.slane %v13336_v18, 9  ;;  %v10809_v25 = vrot.slane %v13340_v34, 5  ;;  %v13341_v55 = vld [vmem:[%s16006_s9 + $0x70] sm:$0x11]  ;;  %v18677_v18 = vcombine.low %v10796_v60, %v10799_v32 }
 0x44c   : > { %v14200_v43 = vpop.f32.mrb[144].mxu1  ;;  %v10803_v37 = vsel %vm16533_vm5, %v13382_v53, %v10802_v42  ;;  %v10811_v42 = vrot.slane %v10809_v25, 4 }
 0x44d   : > { %v14201_v44 = vpop.f32.mrb[145].mxu1 }
 0x44e   : > { %v14202_v15 = vadd.f32 %v14201_v44, %v14200_v43  ;;  %v14203_v8 = vpop.f32.mrb[146].mxu1 }
 0x44f   : > { %v14204_v47 = vpop.f32.mrb[147].mxu1 }
 0x450   : > { %v18661_v52 = vadd.f32 %v14202_v15, %v18268_v27  ;;  %v14205_v7 = vadd.f32 %v14204_v47, %v14203_v8  ;;  %v10806_v27 = vsel %vm16533_vm5, %v10804_v49, %v10805_v28  ;;  %v10812_v47 = vrot.slane %v13341_v55, 5  ;;  %v13343_v28 = vld [vmem:[%s16006_s9 + $0x80] sm:$0xff] }
 0x451   : > { %10198 = vmatmul.mubr.bf16.gmra.mrb[44].mxu0 %v18570_v9  ;;  %10401 = vmatmul.mubr.bf16.gmra.mrb[252].mxu1 %v18656_v5  ;;  %v13339_v9 = vld [vmem:[%s16006_s9 + $0x60] sm:$0xee]  ;;  %v18679_v44 = vcombine.high %v10803_v37, %v10806_v27 }
 0x452   : > { %10207 = vmatprep.mubr.bf16.mxu0 %v18572_v46  ;;  %v18668_v33 = vadd.f32 %v14205_v7, %v19532_v24  ;;  %11579 = vmatprep.mubr.bf16.mxu1 %v18658_v35  ;;  %v13383_v8 = vrot.slane %v13339_v9, 9  ;;  %v10816_v7 = vrot.slane %v13343_v28, 5  ;;  %v13344_v24 = vld [vmem:[%s16006_s9 + $0x88] sm:$0x11]  ;;  %v18698_v9 = vcombine.low %v10803_v37, %v10806_v27  ;;  %v13347_v28 = vld [vmem:[%s16006_s9 + $0xa0] sm:$0x11] }
 0x454   : > { %v14206_v59 = vpop.f32.mrb[148].mxu1  ;;  %v10810_v32 = vsel %vm16533_vm5, %v13383_v8, %v10809_v25  ;;  %v10818_v25 = vrot.slane %v10816_v7, 4 }
 0x455   : > { %v14207_v43 = vpop.f32.mrb[149].mxu1 }
 0x456   : > { %v14208_v46 = vadd.f32 %v14207_v43, %v14206_v59  ;;  %v14209_v38 = vpop.f32.mrb[150].mxu1 }
 0x457   : > { %v14210_v15 = vpop.f32.mrb[151].mxu1 }
 0x458   : > { %v18682_v53 = vadd.f32 %v14208_v46, %v18289_v45  ;;  %v14211_v49 = vadd.f32 %v14210_v15, %v14209_v38  ;;  %v10813_v45 = vsel %vm16533_vm5, %v10811_v42, %v10812_v47  ;;  %v10819_v38 = vrot.slane %v13344_v24, 5  ;;  %v13346_v42 = vld [vmem:[%s16006_s9 + $0x98] sm:$0xff] }
 0x459   : > { %10208 = vmatmul.mubr.bf16.gmra.mrb[48].mxu0 %v18595_v63  ;;  %11580 = vmatmul.mubr.bf16.vlgmr.msra.gmra.mrb[0].mxu1 %v18677_v18  ;;  %v13342_v63 = vld [vmem:[%s16006_s9 + $0x78] sm:$0xee]  ;;  %v10823_v47 = vrot.slane %v13346_v42, 5  ;;  %v13350_v42 = vld [vmem:[%s16006_s9 + $0xb8] sm:$0x11] }
 0x45a   : > { %10217 = vmatprep.mubr.bf16.mxu0 %v18597_v62  ;;  %v18689_v60 = vadd.f32 %v14211_v49, %v18297_v0  ;;  %11587 = vmatprep.mubr.bf16.mxu1 %v18679_v44  ;;  %v18700_v0 = vcombine.high %v10810_v32, %v10813_v45  ;;  %v13384_v46 = vrot.slane %v13342_v63, 9  ;;  %v18719_v63 = vcombine.low %v10810_v32, %v10813_v45 }
 0x45c   : > { %v14212_v34 = vpop.f32.mrb[152].mxu1  ;;  %v10817_v27 = vsel %vm16533_vm5, %v13384_v46, %v10816_v7  ;;  %v10825_v7 = vrot.slane %v10823_v47, 4 }
 0x45d   : > { %v14213_v59 = vpop.f32.mrb[153].mxu1 }
 0x45e   : > { %v14214_v62 = vadd.f32 %v14213_v59, %v14212_v34  ;;  %v14215_v55 = vpop.f32.mrb[154].mxu1 }
 0x45f   : > { %v14216_v43 = vpop.f32.mrb[155].mxu1 }
 0x460   : > { %v18703_v15 = vadd.f32 %v14214_v62, %v18314_v29  ;;  %v14217_v8 = vadd.f32 %v14216_v43, %v14215_v55  ;;  %v10820_v29 = vsel %vm16533_vm5, %v10818_v25, %v10819_v38  ;;  %v10826_v55 = vrot.slane %v13347_v28, 5  ;;  %v13349_v25 = vld [vmem:[%s16006_s9 + $0xb0] sm:$0xff] }
 0x461   : > { %10218 = vmatmul.mubr.bf16.gmra.mrb[52].mxu0 %v18614_v50  ;;  %11588 = vmatmul.mubr.bf16.gmra.mrb[4].mxu1 %v18698_v9  ;;  %v13345_v50 = vld [vmem:[%s16006_s9 + $0x90] sm:$0xee]  ;;  %v10830_v38 = vrot.slane %v13349_v25, 5  ;;  %v13353_v25 = vld [vmem:[%s16006_s9 + $0xd0] sm:$0x11] }
 0x462   : > { %10227 = vmatprep.mubr.bf16.mxu0 %v18616_v23  ;;  %v18710_v37 = vadd.f32 %v14217_v8, %v18327_v41  ;;  %11595 = vmatprep.mubr.bf16.mxu1 %v18700_v0  ;;  %v18721_v41 = vcombine.high %v10817_v27, %v10820_v29  ;;  %v13385_v62 = vrot.slane %v13345_v50, 9  ;;  %v18740_v50 = vcombine.low %v10817_v27, %v10820_v29 }
 0x464   : > { %v14218_v49 = vpop.f32.mrb[156].mxu1  ;;  %v10824_v45 = vsel %vm16533_vm5, %v13385_v62, %v10823_v47  ;;  %v10832_v47 = vrot.slane %v10830_v38, 4 }
 0x465   : > { %v14219_v34 = vpop.f32.mrb[157].mxu1 }
 0x466   : > { %v14220_v23 = vadd.f32 %v14219_v34, %v14218_v49  ;;  %v14221_v24 = vpop.f32.mrb[158].mxu1 }
 0x467   : > { %v14222_v59 = vpop.f32.mrb[159].mxu1 }
 0x468   : > { %v18724_v43 = vadd.f32 %v14220_v23, %v18340_v3  ;;  %v14223_v46 = vadd.f32 %v14222_v59, %v14221_v24  ;;  %v10827_v3 = vsel %vm16533_vm5, %v10825_v7, %v10826_v55  ;;  %v10833_v24 = vrot.slane %v13350_v42, 5  ;;  %v13352_v7 = vld [vmem:[%s16006_s9 + $0xc8] sm:$0xff] }
 0x469   : > { %10228 = vmatmul.mubr.bf16.gmra.mrb[56].mxu0 %v18635_v14  ;;  %11596 = vmatmul.mubr.bf16.gmra.mrb[8].mxu1 %v18719_v63  ;;  %v13348_v14 = vld [vmem:[%s16006_s9 + $0xa8] sm:$0xee]  ;;  %v10837_v55 = vrot.slane %v13352_v7, 5 }
 0x46a   : > { %10237 = vmatprep.mubr.bf16.mxu0 %v18637_v30  ;;  %v18731_v32 = vadd.f32 %v14223_v46, %v18350_v58  ;;  %11603 = vmatprep.mubr.bf16.mxu1 %v18721_v41  ;;  %v18742_v58 = vcombine.high %v10824_v45, %v10827_v3  ;;  %v13386_v23 = vrot.slane %v13348_v14, 9  ;;  %v18761_v14 = vcombine.low %v10824_v45, %v10827_v3  ;;  %v19533_v45 = vld [vmem:[#allocation21_spill] sm:$0xff] }
 0x46c   : > { %v14224_v8 = vpop.f32.mrb[160].mxu1  ;;  %v10831_v29 = vsel %vm16533_vm5, %v13386_v23, %v10830_v38  ;;  %v10839_v38 = vrot.slane %v10837_v55, 4 }
 0x46d   : > { %v14225_v49 = vpop.f32.mrb[161].mxu1 }
 0x46e   : > { %v14226_v30 = vadd.f32 %v14225_v49, %v14224_v8  ;;  %v14227_v28 = vpop.f32.mrb[162].mxu1 }
 0x46f   : > { %v14228_v34 = vpop.f32.mrb[163].mxu1 }
 0x470   : > { %v18745_v59 = vadd.f32 %v14226_v30, %v18365_v61  ;;  %v14229_v62 = vadd.f32 %v14228_v34, %v14227_v28  ;;  %v10834_v61 = vsel %vm16533_vm5, %v10832_v47, %v10833_v24  ;;  %v10840_v28 = vrot.slane %v13353_v25, 5  ;;  %v13355_v47 = vld [vmem:[%s16006_s9 + $0xe0] sm:$0xff] }
 0x471   : > { %10238 = vmatmul.mubr.bf16.gmra.mrb[60].mxu0 %v18656_v5  ;;  %11604 = vmatmul.mubr.bf16.gmra.mrb[12].mxu1 %v18740_v50  ;;  %v13351_v5 = vld [vmem:[%s16006_s9 + $0xc0] sm:$0xee]  ;;  %v18782_v25 = vcombine.low %v10831_v29, %v10834_v61 }
 0x472   : > { %11386 = vmatprep.mubr.bf16.mxu0 %v18658_v35  ;;  %v18752_v27 = vadd.f32 %v14229_v62, %v18371_v13  ;;  %11611 = vmatprep.mubr.bf16.mxu1 %v18742_v58  ;;  %v18763_v13 = vcombine.high %v10831_v29, %v10834_v61  ;;  %v13387_v30 = vrot.slane %v13351_v5, 9  ;;  %v10844_v62 = vrot.slane %v13355_v47, 5 }
 0x474   : > { %v14230_v46 = vpop.f32.mrb[164].mxu1  ;;  %v10838_v24 = vsel %vm16533_vm5, %v13387_v30, %v10837_v55  ;;  %v10846_v55 = vrot.slane %v10844_v62, 4 }
 0x475   : > { %v14231_v8 = vpop.f32.mrb[165].mxu1 }
 0x476   : > { %v14232_v35 = vadd.f32 %v14231_v8, %v14230_v46  ;;  %v14233_v42 = vpop.f32.mrb[166].mxu1  ;;  %v13356_v46 = vld [vmem:[%s16006_s9 + $0xe8] sm:$0x11] }
 0x477   : > { %v14234_v49 = vpop.f32.mrb[167].mxu1  ;;  %v10847_v30 = vrot.slane %v13356_v46, 5 }
 0x478   : > { %v18766_v34 = vadd.f32 %v14232_v35, %v18387_v36  ;;  %v14235_v23 = vadd.f32 %v14234_v49, %v14233_v42  ;;  %v10841_v36 = vsel %vm16533_vm5, %v10839_v38, %v10840_v28 }
 0x479   : > { %11387 = vmatmul.mubr.bf16.vlgmr.msra.gmra.mrb[0].mxu0 %v18677_v18  ;;  %11612 = vmatmul.mubr.bf16.gmra.mrb[16].mxu1 %v18761_v14  ;;  %v13354_v18 = vld [vmem:[%s16006_s9 + $0xd8] sm:$0xee]  ;;  %v18784_v35 = vcombine.high %v10838_v24, %v10841_v36  ;;  %v18803_v46 = vcombine.low %v10838_v24, %v10841_v36 }
 0x47a   : > { %11396 = vmatprep.mubr.bf16.mxu0 %v18679_v44  ;;  %v18773_v3 = vadd.f32 %v14235_v23, %v19533_v45  ;;  %11619 = vmatprep.mubr.bf16.mxu1 %v18763_v13  ;;  %v13388_v49 = vrot.slane %v13354_v18, 9  ;;  %v13358_v23 = vld [vmem:[%s16006_s9 + $0xf8] sm:$0xff] }
 0x47b   : > { %v10851_v47 = vrot.slane %v13358_v23, 5 }
 0x47c   : > { %v14236_v7 = vpop.f32.mrb[168].mxu1  ;;  %v10845_v61 = vsel %vm16533_vm5, %v13388_v49, %v10844_v62 }
 0x47d   : > { %v14237_v5 = vpop.f32.mrb[169].mxu1  ;;  %v10853_v62 = vrot.slane %v10851_v47, 4 }
 0x47e   : > { %v14238_v44 = vadd.f32 %v14237_v5, %v14236_v7  ;;  %v14239_v8 = vpop.f32.mrb[170].mxu1  ;;  %v13359_v7 = vld [vmem:[%s16006_s9 + $0x100] sm:$0x11] }
 0x47f   : > { %v14240_v42 = vpop.f32.mrb[171].mxu1 }
 0x480   : > { %v18787_v38 = vadd.f32 %v14238_v44, %v18412_v21  ;;  %v14241_v28 = vadd.f32 %v14240_v42, %v14239_v8  ;;  %v10848_v21 = vsel %vm16533_vm5, %v10846_v55, %v10847_v30  ;;  %v10854_v42 = vrot.slane %v13359_v7, 5  ;;  %v13361_v30 = vld [vmem:[%s16006_s9 + $0x110] sm:$0xff] }
 0x481   : > { %11397 = vmatmul.mubr.bf16.gmra.mrb[4].mxu0 %v18698_v9  ;;  %11620 = vmatmul.mubr.bf16.gmra.mrb[20].mxu1 %v18782_v25  ;;  %v13357_v9 = vld [vmem:[%s16006_s9 + $0xf0] sm:$0xee]  ;;  %v18824_v7 = vcombine.low %v10845_v61, %v10848_v21 }
 0x482   : > { %11406 = vmatprep.mubr.bf16.mxu0 %v18700_v0  ;;  %v18794_v29 = vadd.f32 %v14241_v28, %v18421_v16  ;;  %11627 = vmatprep.mubr.bf16.mxu1 %v18784_v35  ;;  %v18805_v16 = vcombine.high %v10845_v61, %v10848_v21  ;;  %v13389_v8 = vrot.slane %v13357_v9, 9  ;;  %v10858_v28 = vrot.slane %v13361_v30, 5 }
 0x484   : > { %v14242_v45 = vpop.f32.mrb[172].mxu1  ;;  %v10852_v36 = vsel %vm16533_vm5, %v13389_v8, %v10851_v47  ;;  %v10860_v47 = vrot.slane %v10858_v28, 4 }
 0x485   : > { %v14243_v18 = vpop.f32.mrb[173].mxu1 }
 0x486   : > { %v14244_v0 = vadd.f32 %v14243_v18, %v14242_v45  ;;  %v14245_v5 = vpop.f32.mrb[174].mxu1  ;;  %v13362_v45 = vld [vmem:[%s16006_s9 + $0x118] sm:$0x11] }
 0x487   : > { %v14246_v44 = vpop.f32.mrb[175].mxu1 }
 0x488   : > { %v18808_v49 = vadd.f32 %v14244_v0, %v18438_v4  ;;  %v14247_v55 = vadd.f32 %v14246_v44, %v14245_v5  ;;  %v10855_v4 = vsel %vm16533_vm5, %v10853_v62, %v10854_v42  ;;  %v10861_v44 = vrot.slane %v13362_v45, 5  ;;  %v13364_v42 = vld [vmem:[%s16006_s9 + $0x128] sm:$0xff] }
 0x489   : > { %11407 = vmatmul.mubr.bf16.gmra.mrb[8].mxu0 %v18719_v63  ;;  %11628 = vmatmul.mubr.bf16.gmra.mrb[24].mxu1 %v18803_v46  ;;  %v13360_v63 = vld [vmem:[%s16006_s9 + $0x108] sm:$0xee]  ;;  %v18845_v45 = vcombine.low %v10852_v36, %v10855_v4 }
 0x48a   : > { %11416 = vmatprep.mubr.bf16.mxu0 %v18721_v41  ;;  %v18815_v24 = vadd.f32 %v14247_v55, %v18445_v48  ;;  %11635 = vmatprep.mubr.bf16.mxu1 %v18805_v16  ;;  %v18826_v48 = vcombine.high %v10852_v36, %v10855_v4  ;;  %v13390_v5 = vrot.slane %v13360_v63, 9  ;;  %v10865_v55 = vrot.slane %v13364_v42, 5 }
 0x48c   : > { %v14248_v23 = vpop.f32.mrb[176].mxu1  ;;  %v10859_v21 = vsel %vm16533_vm5, %v13390_v5, %v10858_v28 }
 0x48d   : > { %v14249_v9 = vpop.f32.mrb[177].mxu1 }
 0x48e   : > { %v14250_v41 = vadd.f32 %v14249_v9, %v14248_v23  ;;  %v14251_v18 = vpop.f32.mrb[178].mxu1  ;;  %v13363_v23 = vld [vmem:[%s16006_s9 + $0x120] sm:$0xee] }
 0x48f   : > { %v14252_v0 = vpop.f32.mrb[179].mxu1 }
 0x490   : > { %v18829_v8 = vadd.f32 %v14250_v41, %v18465_v31  ;;  %v14253_v62 = vadd.f32 %v14252_v0, %v14251_v18  ;;  %v10862_v31 = vsel %vm16533_vm5, %v10860_v47, %v10861_v44  ;;  %v13391_v18 = vrot.slane %v13363_v23, 9 }
 0x491   : > { %11417 = vmatmul.mubr.bf16.gmra.mrb[12].mxu0 %v18740_v50  ;;  %11636 = vmatmul.mubr.bf16.gmra.mrb[28].mxu1 %v18824_v7  ;;  %v13365_v50 = vld [vmem:[%s16006_s9 + $0x130] sm:$0x11]  ;;  %v18847_v41 = vcombine.high %v10859_v21, %v10862_v31  ;;  %v10867_v0 = vrot.slane %v10865_v55, 4 }
 0x492   : > { %11426 = vmatprep.mubr.bf16.mxu0 %v18742_v58  ;;  %v18836_v61 = vadd.f32 %v14253_v62, %v18479_v57  ;;  %11643 = vmatprep.mubr.bf16.mxu1 %v18826_v48  ;;  %v10868_v28 = vrot.slane %v13365_v50, 5  ;;  %v10866_v4 = vsel %vm16533_vm5, %v13391_v18, %v10865_v55  ;;  %v18866_v50 = vcombine.low %v10859_v21, %v10862_v31 }
 0x494   : > { %v14254_v30 = vpop.f32.mrb[180].mxu1  ;;  %v10869_v44 = vsel %vm16533_vm5, %v10867_v0, %v10868_v28 }
 0x495   : > { %v14255_v63 = vpop.f32.mrb[181].mxu1 }
 0x496   : > { %v14256_v9 = vadd.f32 %v14255_v63, %v14254_v30  ;;  %v14257_v58 = vpop.f32.mrb[182].mxu1  ;;  %v13366_v30 = vld [vmem:[%s16006_s9 + $0x138] sm:$0xee] }
 0x497   : > { %v14258_v57 = vpop.f32.mrb[183].mxu1 }
 0x498   : > { %v18850_v5 = vadd.f32 %v14256_v9, %v18496_v20  ;;  %v14259_v47 = vadd.f32 %v14258_v57, %v14257_v58  ;;  %v19534_v20 = vld [vmem:[#allocation22_spill] sm:$0xff]  ;;  %v13392_v58 = vrot.slane %v13366_v30, 9  ;;  %v18887_v30 = vcombine.low %v10866_v4, %v10869_v44 }
 0x499   : > { %11427 = vmatmul.mubr.bf16.gmra.mrb[16].mxu0 %v18761_v14  ;;  %11644 = vmatmul.mubr.bf16.gmra.mrb[32].mxu1 %v18845_v45  ;;  %v10872_v62 = vrot.slane %v19534_v20, 5  ;;  %v13368_v14 = vld [vmem:[%s16006_s9 + $0x148] sm:$0x11]  ;;  %v13369_v20 = vld [vmem:[%s16006_s9 + $0x150] sm:$0xee] }
 0x49a   : > { %11436 = vmatprep.mubr.bf16.mxu0 %v18763_v13  ;;  %v18856_v36 = vadd.f32 %v14259_v47, %v18508_v2  ;;  %11651 = vmatprep.mubr.bf16.mxu1 %v18847_v41  ;;  %v18868_v2 = vcombine.high %v10866_v4, %v10869_v44  ;;  %v10875_v57 = vrot.slane %v13368_v14, 5 }
 0x49b   : > { %v10874_v55 = vrot.slane %v10872_v62, 4  ;;  %v10873_v31 = vsel %vm16533_vm5, %v13392_v58, %v10872_v62 }
 0x49c   : > { %v14260_v42 = vpop.f32.mrb[184].mxu1 }
 0x49d   : > { %v14261_v23 = vpop.f32.mrb[185].mxu1  ;;  %v10876_v28 = vsel %vm16533_vm5, %v10874_v55, %v10875_v57 }
 0x49e   : > { %v14262_v13 = vadd.f32 %v14261_v23, %v14260_v42  ;;  %v14263_v63 = vpop.f32.mrb[186].mxu1 }
 0x49f   : > { %v14264_v9 = vpop.f32.mrb[187].mxu1 }
 0x4a0   : > { %v18871_v18 = vadd.f32 %v14262_v13, %v18527_v11  ;;  %v14265_v0 = vadd.f32 %v14264_v9, %v14263_v63  ;;  %v10879_v11 = vrot.slane %v18491_v10, 5  ;;  %v13393_v13 = vrot.slane %v13369_v20, 9 }
 0x4a1   : > { %11437 = vmatmul.mubr.bf16.gmra.mrb[20].mxu0 %v18782_v25  ;;  %11652 = vmatmul.mubr.bf16.gmra.mrb[36].mxu1 %v18866_v50  ;;  %v13371_v25 = vld [vmem:[%s16006_s9 + $0x160] sm:$0x11]  ;;  %v18908_v20 = vcombine.low %v10873_v31, %v10876_v28 }
 0x4a2   : > { %11446 = vmatprep.mubr.bf16.mxu0 %v18784_v35  ;;  %v18877_v21 = vadd.f32 %v14265_v0, %v18536_v6  ;;  %11659 = vmatprep.mubr.bf16.mxu1 %v18868_v2  ;;  %v18889_v6 = vcombine.high %v10873_v31, %v10876_v28  ;;  %v10881_v62 = vrot.slane %v10879_v11, 4  ;;  %v10882_v63 = vrot.slane %v13371_v25, 5  ;;  %v13372_v0 = vld [vmem:[%s16006_s9 + $0x168] sm:$0xee] }
 0x4a3   : > { %v10880_v44 = vsel %vm16533_vm5, %v13393_v13, %v10879_v11 }
 0x4a4   : > { %v14266_v47 = vpop.f32.mrb[188].mxu1  ;;  %v10883_v58 = vsel %vm16533_vm5, %v10881_v62, %v10882_v63 }
 0x4a5   : > { %v14267_v42 = vpop.f32.mrb[189].mxu1 }
 0x4a6   : > { %v14268_v35 = vadd.f32 %v14267_v42, %v14266_v47  ;;  %v14269_v14 = vpop.f32.mrb[190].mxu1 }
 0x4a7   : > { %v14270_v23 = vpop.f32.mrb[191].mxu1 }
 0x4a8   : > { %v18892_v9 = vadd.f32 %v14268_v35, %v18554_v1  ;;  %v14271_v10 = vadd.f32 %v14270_v23, %v14269_v14  ;;  %v19535_v1 = vld [vmem:[#allocation23_spill] sm:$0xff]  ;;  %v13394_v35 = vrot.slane %v13372_v0, 9  ;;  %v18929_v0 = vcombine.low %v10880_v44, %v10883_v58 }
 0x4a9   : > { %11447 = vmatmul.mubr.bf16.gmra.mrb[24].mxu0 %v18803_v46  ;;  %11660 = vmatmul.mubr.bf16.gmra.mrb[40].mxu1 %v18887_v30  ;;  %v10886_v55 = vrot.slane %v19535_v1, 5  ;;  %v13374_v46 = vld [vmem:[%s16006_s9 + $0x178] sm:$0x11]  ;;  %v13375_v1 = vld [vmem:[%s16006_s9 + $0x180] sm:$0xee] }
 0x4aa   : > { %11456 = vmatprep.mubr.bf16.mxu0 %v18805_v16  ;;  %v18898_v4 = vadd.f32 %v14271_v10, %v18565_v26  ;;  %11667 = vmatprep.mubr.bf16.mxu1 %v18889_v6  ;;  %v18910_v26 = vcombine.high %v10880_v44, %v10883_v58  ;;  %v10889_v14 = vrot.slane %v13374_v46, 5 }
 0x4ab   : > { %v10888_v11 = vrot.slane %v10886_v55, 4  ;;  %v10887_v28 = vsel %vm16533_vm5, %v13394_v35, %v10886_v55 }
 0x4ac   : > { %v14288_v57 = vpop.f32.mrb[192].mxu1 }
 0x4ad   : > { %v14289_v47 = vpop.f32.mrb[193].mxu1  ;;  %v10890_v62 = vsel %vm16533_vm5, %v10888_v11, %v10889_v14 }
 0x4ae   : > { %v14290_v16 = vadd.f32 %v14289_v47, %v14288_v57  ;;  %v14291_v25 = vpop.f32.mrb[194].mxu1 }
 0x4af   : > { %v14292_v42 = vpop.f32.mrb[195].mxu1 }
 0x4b0   : > { %v18913_v23 = vadd.f32 %v14290_v16, %v18576_v19  ;;  %v14293_v13 = vadd.f32 %v14292_v42, %v14291_v25  ;;  %v19536_v19 = vld [vmem:[#allocation26_spill] sm:$0xff]  ;;  %v13395_v16 = vrot.slane %v13375_v1, 9  ;;  %v13423_v1 = vcombine.low %v10887_v28, %v10890_v62 }
 0x4b1   : > { %11457 = vmatmul.mubr.bf16.gmra.mrb[28].mxu0 %v18824_v7  ;;  %11668 = vmatmul.mubr.bf16.gmra.mrb[44].mxu1 %v18908_v20  ;;  %v10893_v63 = vrot.slane %v19536_v19, 5  ;;  %v13377_v7 = vld [vmem:[%s16006_s9 + $0x190] sm:$0x11]  ;;  %v13378_v19 = vld [vmem:[%s16006_s9 + $0x198] sm:$0xee] }
 0x4b2   : > { %11466 = vmatprep.mubr.bf16.mxu0 %v18826_v48  ;;  %v18919_v31 = vadd.f32 %v14293_v13, %v18590_v17  ;;  %11675 = vmatprep.mubr.bf16.mxu1 %v18910_v26  ;;  %v18931_v17 = vcombine.high %v10887_v28, %v10890_v62  ;;  %v10896_v25 = vrot.slane %v13377_v7, 5 }
 0x4b3   : > { %v10895_v55 = vrot.slane %v10893_v63, 4  ;;  %v10894_v58 = vsel %vm16533_vm5, %v13395_v16, %v10893_v63 }
 0x4b4   : > { %v14294_v10 = vpop.f32.mrb[196].mxu1 }
 0x4b5   : > { %v14295_v57 = vpop.f32.mrb[197].mxu1  ;;  %v10897_v11 = vsel %vm16533_vm5, %v10895_v55, %v10896_v25 }
 0x4b6   : > { %v14296_v48 = vadd.f32 %v14295_v57, %v14294_v10  ;;  %v14297_v46 = vpop.f32.mrb[198].mxu1  ;;  %v13426_v57 = vcombine.high %v10894_v58, %v10897_v11 }
 0x4b7   : > { %v14298_v47 = vpop.f32.mrb[199].mxu1 }
 0x4b8   : > { %v18934_v42 = vadd.f32 %v14296_v48, %v18600_v12  ;;  %v14299_v35 = vadd.f32 %v14298_v47, %v14297_v46  ;;  %v19537_v12 = vld [vmem:[#allocation12_spill] sm:$0xff]  ;;  %v13396_v48 = vrot.slane %v13378_v19, 9 }
 0x4b9   : > { %11467 = vmatmul.mubr.bf16.gmra.mrb[32].mxu0 %v18845_v45  ;;  %11676 = vmatmul.mubr.bf16.gmra.mrb[48].mxu1 %v18929_v0  ;;  %v10900_v14 = vrot.slane %v19537_v12, 5  ;;  %v13380_v45 = vld [vmem:[%s16006_s9 + $0x1a8] sm:$0x11]  ;;  %s19291_s9 = scalar_lea.hbm %s19378_s4, %s13486_s25  ;;  %s15783_s25 = scalar_lea.vmem %s15782_s17, 8192 }
 0x4ba   : > { %11476 = vmatprep.mubr.bf16.mxu0 %v18847_v41  ;;  %v18940_v44 = vadd.f32 %v14299_v35, %v18607_v56  ;;  %11683 = vmatprep.mubr.bf16.mxu1 %v18931_v17  ;;  %v10903_v47 = vrot.slane %v13380_v45, 5  ;;  %p15785_p3 = scmp.lt.s32.totalorder %s15783_s25, %s15777_s15 }
 0x4bb   : > { %v10902_v46 = vrot.slane %v10900_v14, 4  ;;  %v10901_v28 = vsel %vm16533_vm5, %v13396_v48, %v10900_v14 }
 0x4bc   : > { %v14300_v13 = vpop.f32.mrb[200].mxu1  ;;  %p15786_p4 = por %p15785_p3, %p15784_p2 }
 0x4bd   : > { %v14301_v10 = vpop.f32.mrb[201].mxu1  ;;  %v10904_v62 = vsel %vm16533_vm5, %v10902_v46, %v10903_v47 }
 0x4be   : > { %v14302_v7 = vadd.f32 %v14301_v10, %v14300_v13  ;;  %v14303_v41 = vpop.f32.mrb[202].mxu1  ;;  %v13428_v19 = vcombine.high %v10901_v28, %v10904_v62  ;;  %p15787_p7 = pnand %p15786_p4, %p15780_p12 }
 0x4bf   : > { %v14304_v56 = vpop.f32.mrb[203].mxu1 }
 0x4c0   : > { %v18951_v35 = vadd.f32 %v14302_v7, %v18619_v39  ;;  %v14305_v63 = vadd.f32 %v14304_v56, %v14303_v41  ;;  %v13425_v39 = vcombine.low %v10894_v58, %v10897_v11  ;;  %v13427_v58 = vcombine.low %v10901_v28, %v10904_v62 }
 0x4c1   : > { %11477 = vmatmul.mubr.bf16.gmra.mrb[36].mxu0 %v18866_v50  ;;  %11684 = vmatmul.mubr.bf16.gmra.mrb[52].mxu1 %v13423_v1 }
 0x4c2   : > { %11486 = vmatprep.mubr.bf16.mxu0 %v18868_v2  ;;  %v18956_v16 = vadd.f32 %v14305_v63, %v18626_v22  ;;  %11691 = vmatprep.mubr.bf16.mxu1 %v13426_v57 }
 0x4c4   : > { %v14306_v55 = vpop.f32.mrb[204].mxu1 }
 0x4c5   : > { %v14307_v25 = vpop.f32.mrb[205].mxu1 }
 0x4c6   : > { %v14308_v12 = vadd.f32 %v14307_v25, %v14306_v55  ;;  %v14309_v13 = vpop.f32.mrb[206].mxu1 }
 0x4c7   : > { %v14310_v50 = vpop.f32.mrb[207].mxu1 }
 0x4c8   : > { %v18963_v45 = vadd.f32 %v14308_v12, %v18640_v54  ;;  %v14311_v2 = vadd.f32 %v14310_v50, %v14309_v13 }
 0x4c9   : > { %11487 = vmatmul.mubr.bf16.gmra.mrb[40].mxu0 %v18887_v30  ;;  %11692 = vmatmul.mubr.bf16.gmra.mrb[56].mxu1 %v13425_v39 }
 0x4ca   : > { %11496 = vmatprep.mubr.bf16.mxu0 %v18889_v6  ;;  %v18968_v22 = vadd.f32 %v14311_v2, %v18647_v51  ;;  %11699 = vmatprep.mubr.bf16.mxu1 %v13428_v19 }
 0x4cc   : > { %v14312_v40 = vpop.f32.mrb[208].mxu1 }
 0x4cd   : > { %v14313_v14 = vpop.f32.mrb[209].mxu1 }
 0x4ce   : > { %v14314_v11 = vadd.f32 %v14313_v14, %v14312_v40  ;;  %v14315_v10 = vpop.f32.mrb[210].mxu1 }
 0x4cf   : > { %v14316_v7 = vpop.f32.mrb[211].mxu1 }
 0x4d0   : > { %v18971_v41 = vadd.f32 %v14314_v11, %v18661_v52  ;;  %v14317_v54 = vadd.f32 %v14316_v7, %v14315_v10 }
 0x4d1   : > { %11497 = vmatmul.mubr.bf16.gmra.mrb[44].mxu0 %v18908_v20  ;;  %11700 = vmatmul.mubr.bf16.gmra.mrb[60].mxu1 %v13427_v58 }
 0x4d2   : > { %11506 = vmatprep.mubr.bf16.mxu0 %v18910_v26  ;;  %v18976_v30 = vadd.f32 %v14317_v54, %v18668_v33 }
 0x4d4   : > { %v14318_v51 = vpop.f32.mrb[212].mxu1 }
 0x4d5   : > { %v14319_v6 = vpop.f32.mrb[213].mxu1 }
 0x4d6   : > { %v14320_v56 = vadd.f32 %v14319_v6, %v14318_v51  ;;  %v14321_v48 = vpop.f32.mrb[214].mxu1 }
 0x4d7   : > { %v14322_v46 = vpop.f32.mrb[215].mxu1 }
 0x4d8   : > { %v18979_v47 = vadd.f32 %v14320_v56, %v18682_v53  ;;  %v14323_v63 = vadd.f32 %v14322_v46, %v14321_v48 }
 0x4d9   : > { %11507 = vmatmul.mubr.bf16.gmra.mrb[48].mxu0 %v18929_v0 }
 0x4da   : > { %11516 = vmatprep.mubr.bf16.mxu0 %v18931_v17  ;;  %v18984_v52 = vadd.f32 %v14323_v63, %v18689_v60 }
 0x4dc   : > { %v14324_v20 = vpop.f32.mrb[216].mxu1 }
 0x4dd   : > { %v14325_v26 = vpop.f32.mrb[217].mxu1 }
 0x4de   : > { %v14326_v33 = vadd.f32 %v14325_v26, %v14324_v20  ;;  %v14327_v28 = vpop.f32.mrb[218].mxu1 }
 0x4df   : > { %v14328_v62 = vpop.f32.mrb[219].mxu1 }
 0x4e0   : > { %v18987_v55 = vadd.f32 %v14326_v33, %v18703_v15  ;;  %v14329_v25 = vadd.f32 %v14328_v62, %v14327_v28 }
 0x4e1   : > { %11517 = vmatmul.mubr.bf16.gmra.mrb[52].mxu0 %v13423_v1 }
 0x4e2   : > { %11526 = vmatprep.mubr.bf16.mxu0 %v13426_v57  ;;  %v18990_v53 = vadd.f32 %v14329_v25, %v18710_v37 }
 0x4e4   : > { %v14330_v0 = vpop.f32.mrb[220].mxu1 }
 0x4e5   : > { %v14331_v12 = vpop.f32.mrb[221].mxu1 }
 0x4e6   : > { %v14332_v17 = vadd.f32 %v14331_v12, %v14330_v0  ;;  %v14333_v13 = vpop.f32.mrb[222].mxu1 }
 0x4e7   : > { %v14334_v60 = vpop.f32.mrb[223].mxu1 }
 0x4e8   : > { %v18993_v50 = vadd.f32 %v14332_v17, %v18724_v43  ;;  %v14335_v2 = vadd.f32 %v14334_v60, %v14333_v13 }
 0x4e9   : > { %11527 = vmatmul.mubr.bf16.gmra.mrb[56].mxu0 %v13425_v39 }
 0x4ea   : > { %11536 = vmatprep.mubr.bf16.mxu0 %v13428_v19  ;;  %v18996_v15 = vadd.f32 %v14335_v2, %v18731_v32 }
 0x4ec   : > { %v14336_v40 = vpop.f32.mrb[224].mxu1 }
 0x4ed   : > { %v14337_v1 = vpop.f32.mrb[225].mxu1 }
 0x4ee   : > { %v14338_v57 = vadd.f32 %v14337_v1, %v14336_v40  ;;  %v14339_v14 = vpop.f32.mrb[226].mxu1 }
 0x4ef   : > { %v14340_v37 = vpop.f32.mrb[227].mxu1 }
 0x4f0   : > { %v18999_v11 = vadd.f32 %v14338_v57, %v18745_v59  ;;  %v14341_v10 = vadd.f32 %v14340_v37, %v14339_v14 }
 0x4f1   : > { %11537 = vmatmul.mubr.bf16.gmra.mrb[60].mxu0 %v13427_v58 }
 0x4f2   : > { %v19002_v7 = vadd.f32 %v14341_v10, %v18752_v27 }
 0x4f4   : > { %v14342_v43 = vpop.f32.mrb[228].mxu1 }
 0x4f5   : > { %v14343_v54 = vpop.f32.mrb[229].mxu1 }
 0x4f6   : > { %v14344_v39 = vadd.f32 %v14343_v54, %v14342_v43  ;;  %v14345_v19 = vpop.f32.mrb[230].mxu1 }
 0x4f7   : > { %v14346_v51 = vpop.f32.mrb[231].mxu1 }
 0x4f8   : > { %v19005_v32 = vadd.f32 %v14344_v39, %v18766_v34  ;;  %v14347_v6 = vadd.f32 %v14346_v51, %v14345_v19 }
 0x4fa   : > { %v19008_v56 = vadd.f32 %v14347_v6, %v18773_v3 }
 0x4fc   : > { %v14348_v48 = vpop.f32.mrb[232].mxu1 }
 0x4fd   : > { %v14349_v59 = vpop.f32.mrb[233].mxu1 }
 0x4fe   : > { %v14350_v46 = vadd.f32 %v14349_v59, %v14348_v48  ;;  %v14351_v63 = vpop.f32.mrb[234].mxu1 }
 0x4ff   : > { %v14352_v58 = vpop.f32.mrb[235].mxu1 }
 0x500   : > { %v19011_v27 = vadd.f32 %v14350_v46, %v18787_v38  ;;  %v14353_v20 = vadd.f32 %v14352_v58, %v14351_v63  ;;  %v12165_v46 = vlaneseq }
 0x502   : > { %v19014_v26 = vadd.f32 %v14353_v20, %v18794_v29 }
 0x504   : > { %v14354_v33 = vpop.f32.mrb[236].mxu1 }
 0x505   : > { %v14355_v28 = vpop.f32.mrb[237].mxu1 }
 0x506   : > { %v14356_v34 = vadd.f32 %v14355_v28, %v14354_v33  ;;  %v14357_v62 = vpop.f32.mrb[238].mxu1 }
 0x507   : > { %v14358_v25 = vpop.f32.mrb[239].mxu1 }
 0x508   : > { %v19017_v3 = vadd.f32 %v14356_v34, %v18808_v49  ;;  %v14359_v0 = vadd.f32 %v14358_v25, %v14357_v62 }
 0x50a   : > { %v19020_v12 = vadd.f32 %v14359_v0, %v18815_v24 }
 0x50c   : > { %v14360_v17 = vpop.f32.mrb[240].mxu1 }
 0x50d   : > { %v14361_v13 = vpop.f32.mrb[241].mxu1 }
 0x50e   : > { %v14362_v38 = vadd.f32 %v14361_v13, %v14360_v17  ;;  %v14363_v60 = vpop.f32.mrb[242].mxu1 }
 0x50f   : > { %v14364_v2 = vpop.f32.mrb[243].mxu1 }
 0x510   : > { %v19023_v29 = vadd.f32 %v14362_v38, %v18829_v8  ;;  %v14365_v40 = vadd.f32 %v14364_v2, %v14363_v60 }
 0x512   : > { %v19026_v1 = vadd.f32 %v14365_v40, %v18836_v61 }
 0x514   : > { %v14366_v57 = vpop.f32.mrb[244].mxu1 }
 0x515   : > { %v14367_v14 = vpop.f32.mrb[245].mxu1 }
 0x516   : > { %v14368_v49 = vadd.f32 %v14367_v14, %v14366_v57  ;;  %v14369_v37 = vpop.f32.mrb[246].mxu1 }
 0x517   : > { %v14370_v10 = vpop.f32.mrb[247].mxu1 }
 0x518   : > { %v19029_v24 = vadd.f32 %v14368_v49, %v18850_v5  ;;  %v14371_v43 = vadd.f32 %v14370_v10, %v14369_v37 }
 0x51a   : > { %v19032_v54 = vadd.f32 %v14371_v43, %v18856_v36  ;;  %v12166_v36 = vshrl.u32 %v12165_v46, 7 }
 0x51c   : > { %v14372_v39 = vpop.f32.mrb[248].mxu1 }
 0x51d   : > { %v14373_v19 = vpop.f32.mrb[249].mxu1 }
 0x51e   : > { %v14374_v8 = vadd.f32 %v14373_v19, %v14372_v39  ;;  %v14375_v51 = vpop.f32.mrb[250].mxu1 }
 0x51f   : > { %v14376_v6 = vpop.f32.mrb[251].mxu1 }
 0x520   : > { %v19035_v61 = vadd.f32 %v14374_v8, %v18871_v18  ;;  %v14377_v48 = vadd.f32 %v14376_v6, %v14375_v51  ;;  %v12171_v18 = vsub.s32 1, %v12166_v36 }
 0x522   : > { %v19038_v59 = vadd.f32 %v14377_v48, %v18877_v21  ;;  %v12163_v21 = vld [vmem:[%s19377_s3] sm:$0x3] }
 0x523   : > { %v19053_v13 = vrot.slane %v12163_v21, %v12171_v18  ;;  %v12167_v18 = vsub.s32 0, %v12166_v36 }
 0x524   : > { %v14378_v5 = vpop.f32.mrb[252].mxu1 }
 0x525   : > { %v14379_v63 = vpop.f32.mrb[253].mxu1 }
 0x526   : > { %v14380_v58 = vadd.f32 %v14379_v63, %v14378_v5  ;;  %v14381_v20 = vpop.f32.mrb[254].mxu1 }
 0x527   : > { %v14382_v33 = vpop.f32.mrb[255].mxu1 }
 0x528   : > { %v19041_v28 = vadd.f32 %v14380_v58, %v18892_v9  ;;  %v14383_v34 = vadd.f32 %v14382_v33, %v14381_v20 }
 0x52a   : > { %v19044_v62 = vadd.f32 %v14383_v34, %v18898_v4 }
 0x52c   : > { %v14400_v25 = vpop.f32.mrb[0].mxu1 }
 0x52d   : > { %v14401_v0 = vpop.f32.mrb[1].mxu1 }
 0x52e   : > { %v14402_v17 = vadd.f32 %v14401_v0, %v14400_v25  ;;  %v14403_v9 = vpop.f32.mrb[2].mxu1 }
 0x52f   : > { %v14404_v38 = vpop.f32.mrb[3].mxu1 }
 0x530   : > { %v11806_v60 = vadd.f32 %v14402_v17, %v18913_v23  ;;  %v14405_v4 = vadd.f32 %v14404_v38, %v14403_v9  ;;  %v19082_v38 = vrot.slane %v12163_v21, %v12167_v18 }
 0x532   : > { %v12176_v2 = vadd.f32 %v19053_v13, %v11806_v60  ;;  %v11809_v40 = vadd.f32 %v14405_v4, %v18919_v31 }
 0x534   : > { %12240 = vst [vmem:[%s19058_s14 + $0x8] sm:$0xff] %v12176_v2  ;;  %v12178_v57 = vadd.f32 %v19053_v13, %v11809_v40  ;;  %v14406_v14 = vpop.f32.mrb[4].mxu1 }
 0x535   : > { %v14407_v49 = vpop.f32.mrb[5].mxu1 }
 0x536   : > { %12242 = vst [vmem:[%s19058_s14 + $0x18] sm:$0xff] %v12178_v57  ;;  %v14408_v37 = vadd.f32 %v14407_v49, %v14406_v14  ;;  %v14409_v10 = vpop.f32.mrb[6].mxu1 }
 0x537   : > { %v14410_v23 = vpop.f32.mrb[7].mxu1 }
 0x538   : > { %v11812_v43 = vadd.f32 %v14408_v37, %v18934_v42  ;;  %v14411_v39 = vadd.f32 %v14410_v23, %v14409_v10 }
 0x53a   : > { %v12180_v31 = vadd.f32 %v19053_v13, %v11812_v43  ;;  %v11815_v19 = vadd.f32 %v14411_v39, %v18940_v44 }
 0x53c   : > { %12244 = vst [vmem:[%s19058_s14 + $0x28] sm:$0xff] %v12180_v31  ;;  %v12182_v8 = vadd.f32 %v19053_v13, %v11815_v19  ;;  %v14412_v51 = vpop.f32.mrb[8].mxu1 }
 0x53d   : > { %v14413_v6 = vpop.f32.mrb[9].mxu1 }
 0x53e   : > { %12246 = vst [vmem:[%s19058_s14 + $0x38] sm:$0xff] %v12182_v8  ;;  %v14414_v48 = vadd.f32 %v14413_v6, %v14412_v51  ;;  %v14415_v46 = vpop.f32.mrb[10].mxu1 }
 0x53f   : > { %v14416_v5 = vpop.f32.mrb[11].mxu1 }
 0x540   : > { %v11818_v63 = vadd.f32 %v14414_v48, %v18951_v35  ;;  %v14417_v42 = vadd.f32 %v14416_v5, %v14415_v46 }
 0x542   : > { %v12184_v58 = vadd.f32 %v19053_v13, %v11818_v63  ;;  %v11821_v20 = vadd.f32 %v14417_v42, %v18956_v16  ;;  %v19080_v16 = vld [vmem:[%s19376_s2] ss:$0 sm:$0xff] }
 0x544   : > { %12248 = vst [vmem:[%s19058_s14 + $0x48] sm:$0xff] %v12184_v58  ;;  %v12186_v44 = vadd.f32 %v19053_v13, %v11821_v20  ;;  %v14418_v33 = vpop.f32.mrb[12].mxu1 }
 0x545   : > { %v14419_v34 = vpop.f32.mrb[13].mxu1 }
 0x546   : > { %12250 = vst [vmem:[%s19058_s14 + $0x58] sm:$0xff] %v12186_v44  ;;  %v14420_v25 = vadd.f32 %v14419_v34, %v14418_v33  ;;  %v14421_v0 = vpop.f32.mrb[14].mxu1 }
 0x547   : > { %v14422_v17 = vpop.f32.mrb[15].mxu1 }
 0x548   : > { %v11824_v9 = vadd.f32 %v14420_v25, %v18963_v45  ;;  %v14423_v35 = vadd.f32 %v14422_v17, %v14421_v0 }
 0x54a   : > { %v12188_v60 = vadd.f32 %v19053_v13, %v11824_v9  ;;  %v11827_v36 = vadd.f32 %v14423_v35, %v18968_v22 }
 0x54c   : > { %v11388_v4 = vpop.f32.mrb[0].mxu0  ;;  %12252 = vst [vmem:[%s19058_s14 + $0x68] sm:$0xff] %v12188_v60  ;;  %v12190_v2 = vadd.f32 %v19053_v13, %v11827_v36  ;;  %v14424_v40 = vpop.f32.mrb[16].mxu1 }
 0x54d   : > { %v12035_v45 = vadd.f32 %v19080_v16, %v11388_v4  ;;  %v11390_v57 = vpop.f32.mrb[1].mxu0  ;;  %v14425_v49 = vpop.f32.mrb[17].mxu1 }
 0x54e   : > { %v12175_v14 = vadd.f32 %v19082_v38, %v11390_v57  ;;  %v11392_v37 = vpop.f32.mrb[2].mxu0  ;;  %12254 = vst [vmem:[%s19058_s14 + $0x78] sm:$0xff] %v12190_v2  ;;  %v14426_v22 = vadd.f32 %v14425_v49, %v14424_v40  ;;  %v14427_v10 = vpop.f32.mrb[18].mxu1 }
 0x54f   : > { %12067 = vst [vmem:[%s19091_s23] sm:$0xff] %v12035_v45  ;;  %v12036_v21 = vadd.f32 %v19080_v16, %v11392_v37  ;;  %v11394_v23 = vpop.f32.mrb[3].mxu0  ;;  %v14428_v39 = vpop.f32.mrb[19].mxu1 }
 0x550   : > { %12239 = vst [vmem:[%s19058_s14] sm:$0xff] %v12175_v14  ;;  %v12177_v43 = vadd.f32 %v19082_v38, %v11394_v23  ;;  %v11830_v31 = vadd.f32 %v14426_v22, %v18971_v41  ;;  %v14429_v19 = vadd.f32 %v14428_v39, %v14427_v10 }
 0x551   : > { %12068 = vst [vmem:[%s19091_s23 + $0x8] sm:$0xff] %v12036_v21 }
 0x552   : > { %12241 = vst [vmem:[%s19058_s14 + $0x10] sm:$0xff] %v12177_v43  ;;  %v12192_v8 = vadd.f32 %v19053_v13, %v11830_v31  ;;  %v11833_v51 = vadd.f32 %v14429_v19, %v18976_v30 }
 0x554   : > { %v11398_v6 = vpop.f32.mrb[4].mxu0  ;;  %12256 = vst [vmem:[%s19058_s14 + $0x88] sm:$0xff] %v12192_v8  ;;  %v12194_v48 = vadd.f32 %v19053_v13, %v11833_v51  ;;  %v14430_v5 = vpop.f32.mrb[20].mxu1 }
 0x555   : > { %v12037_v46 = vadd.f32 %v19080_v16, %v11398_v6  ;;  %v11400_v63 = vpop.f32.mrb[5].mxu0  ;;  %v14431_v42 = vpop.f32.mrb[21].mxu1 }
 0x556   : > { %v12179_v41 = vadd.f32 %v19082_v38, %v11400_v63  ;;  %v11402_v58 = vpop.f32.mrb[6].mxu0  ;;  %12258 = vst [vmem:[%s19058_s14 + $0x98] sm:$0xff] %v12194_v48  ;;  %v14432_v20 = vadd.f32 %v14431_v42, %v14430_v5  ;;  %v14433_v44 = vpop.f32.mrb[22].mxu1 }
 0x557   : > { %12069 = vst [vmem:[%s19091_s23 + $0x10] sm:$0xff] %v12037_v46  ;;  %v12038_v30 = vadd.f32 %v19080_v16, %v11402_v58  ;;  %v11404_v33 = vpop.f32.mrb[7].mxu0  ;;  %v14434_v18 = vpop.f32.mrb[23].mxu1 }
 0x558   : > { %12243 = vst [vmem:[%s19058_s14 + $0x20] sm:$0xff] %v12179_v41  ;;  %v12181_v34 = vadd.f32 %v19082_v38, %v11404_v33  ;;  %v11836_v25 = vadd.f32 %v14432_v20, %v18979_v47  ;;  %v14435_v0 = vadd.f32 %v14434_v18, %v14433_v44 }
 0x559   : > { %12070 = vst [vmem:[%s19091_s23 + $0x18] sm:$0xff] %v12038_v30 }
 0x55a   : > { %12245 = vst [vmem:[%s19058_s14 + $0x30] sm:$0xff] %v12181_v34  ;;  %v12196_v17 = vadd.f32 %v19053_v13, %v11836_v25  ;;  %v11839_v9 = vadd.f32 %v14435_v0, %v18984_v52 }
 0x55c   : > { %v11408_v35 = vpop.f32.mrb[8].mxu0  ;;  %12260 = vst [vmem:[%s19058_s14 + $0xa8] sm:$0xff] %v12196_v17  ;;  %v12198_v60 = vadd.f32 %v19053_v13, %v11839_v9  ;;  %v14436_v4 = vpop.f32.mrb[24].mxu1 }
 0x55d   : > { %v12039_v36 = vadd.f32 %v19080_v16, %v11408_v35  ;;  %v11410_v2 = vpop.f32.mrb[9].mxu0  ;;  %v14437_v45 = vpop.f32.mrb[25].mxu1 }
 0x55e   : > { %v12183_v47 = vadd.f32 %v19082_v38, %v11410_v2  ;;  %v11412_v40 = vpop.f32.mrb[10].mxu0  ;;  %12262 = vst [vmem:[%s19058_s14 + $0xb8] sm:$0xff] %v12198_v60  ;;  %v14438_v57 = vadd.f32 %v14437_v45, %v14436_v4  ;;  %v14439_v14 = vpop.f32.mrb[26].mxu1 }
 0x55f   : > { %12071 = vst [vmem:[%s19091_s23 + $0x20] sm:$0xff] %v12039_v36  ;;  %v12040_v52 = vadd.f32 %v19080_v16, %v11412_v40  ;;  %v11414_v49 = vpop.f32.mrb[11].mxu0  ;;  %v14440_v22 = vpop.f32.mrb[27].mxu1 }
 0x560   : > { %12247 = vst [vmem:[%s19058_s14 + $0x40] sm:$0xff] %v12183_v47  ;;  %v12185_v37 = vadd.f32 %v19082_v38, %v11414_v49  ;;  %v11842_v21 = vadd.f32 %v14438_v57, %v18987_v55  ;;  %v14441_v10 = vadd.f32 %v14440_v22, %v14439_v14 }
 0x561   : > { %12072 = vst [vmem:[%s19091_s23 + $0x28] sm:$0xff] %v12040_v52 }
 0x562   : > { %12249 = vst [vmem:[%s19058_s14 + $0x50] sm:$0xff] %v12185_v37  ;;  %v12200_v23 = vadd.f32 %v19053_v13, %v11842_v21  ;;  %v11845_v43 = vadd.f32 %v14441_v10, %v18990_v53 }
 0x564   : > { %v11418_v39 = vpop.f32.mrb[12].mxu0  ;;  %12264 = vst [vmem:[%s19058_s14 + $0xc8] sm:$0xff] %v12200_v23  ;;  %v12202_v31 = vadd.f32 %v19053_v13, %v11845_v43  ;;  %v14442_v8 = vpop.f32.mrb[28].mxu1 }
 0x565   : > { %v12041_v19 = vadd.f32 %v19080_v16, %v11418_v39  ;;  %v11420_v51 = vpop.f32.mrb[13].mxu0  ;;  %v14443_v6 = vpop.f32.mrb[29].mxu1 }
 0x566   : > { %v12187_v55 = vadd.f32 %v19082_v38, %v11420_v51  ;;  %v11422_v48 = vpop.f32.mrb[14].mxu0  ;;  %12266 = vst [vmem:[%s19058_s14 + $0xd8] sm:$0xff] %v12202_v31  ;;  %v14444_v46 = vadd.f32 %v14443_v6, %v14442_v8  ;;  %v14445_v5 = vpop.f32.mrb[30].mxu1 }
 0x567   : > { %12073 = vst [vmem:[%s19091_s23 + $0x30] sm:$0xff] %v12041_v19  ;;  %v12042_v53 = vadd.f32 %v19080_v16, %v11422_v48  ;;  %v11424_v63 = vpop.f32.mrb[15].mxu0  ;;  %v14446_v42 = vpop.f32.mrb[31].mxu1 }
 0x568   : > { %12251 = vst [vmem:[%s19058_s14 + $0x60] sm:$0xff] %v12187_v55  ;;  %v12189_v41 = vadd.f32 %v19082_v38, %v11424_v63  ;;  %v11848_v58 = vadd.f32 %v14444_v46, %v18993_v50  ;;  %v14447_v20 = vadd.f32 %v14446_v42, %v14445_v5 }
 0x569   : > { %12074 = vst [vmem:[%s19091_s23 + $0x38] sm:$0xff] %v12042_v53 }
 0x56a   : > { %12253 = vst [vmem:[%s19058_s14 + $0x70] sm:$0xff] %v12189_v41  ;;  %v12204_v30 = vadd.f32 %v19053_v13, %v11848_v58  ;;  %v11851_v44 = vadd.f32 %v14447_v20, %v18996_v15 }
 0x56c   : > { %v11428_v33 = vpop.f32.mrb[16].mxu0  ;;  %12268 = vst [vmem:[%s19058_s14 + $0xe8] sm:$0xff] %v12204_v30  ;;  %v12206_v34 = vadd.f32 %v19053_v13, %v11851_v44  ;;  %v14448_v25 = vpop.f32.mrb[32].mxu1 }
 0x56d   : > { %v12043_v18 = vadd.f32 %v19080_v16, %v11428_v33  ;;  %v11430_v0 = vpop.f32.mrb[17].mxu0  ;;  %v14449_v17 = vpop.f32.mrb[33].mxu1 }
 0x56e   : > { %v12191_v50 = vadd.f32 %v19082_v38, %v11430_v0  ;;  %v11432_v9 = vpop.f32.mrb[18].mxu0  ;;  %12270 = vst [vmem:[%s19058_s14 + $0xf8] sm:$0xff] %v12206_v34  ;;  %v14450_v35 = vadd.f32 %v14449_v17, %v14448_v25  ;;  %v14451_v60 = vpop.f32.mrb[34].mxu1 }
 0x56f   : > { %12075 = vst [vmem:[%s19091_s23 + $0x40] sm:$0xff] %v12043_v18  ;;  %v12044_v15 = vadd.f32 %v19080_v16, %v11432_v9  ;;  %v11434_v36 = vpop.f32.mrb[19].mxu0  ;;  %v14452_v2 = vpop.f32.mrb[35].mxu1 }
 0x570   : > { %12255 = vst [vmem:[%s19058_s14 + $0x80] sm:$0xff] %v12191_v50  ;;  %v12193_v4 = vadd.f32 %v19082_v38, %v11434_v36  ;;  %v11854_v47 = vadd.f32 %v14450_v35, %v18999_v11  ;;  %v14453_v45 = vadd.f32 %v14452_v2, %v14451_v60 }
 0x571   : > { %12076 = vst [vmem:[%s19091_s23 + $0x48] sm:$0xff] %v12044_v15 }
 0x572   : > { %12257 = vst [vmem:[%s19058_s14 + $0x90] sm:$0xff] %v12193_v4  ;;  %v12208_v40 = vadd.f32 %v19053_v13, %v11854_v47  ;;  %v11857_v57 = vadd.f32 %v14453_v45, %v19002_v7 }
 0x574   : > { %v11438_v52 = vpop.f32.mrb[20].mxu0  ;;  %12272 = vst [vmem:[%s19058_s14 + $0x108] sm:$0xff] %v12208_v40  ;;  %v12210_v14 = vadd.f32 %v19053_v13, %v11857_v57  ;;  %v14454_v37 = vpop.f32.mrb[36].mxu1 }
 0x575   : > { %v12045_v49 = vadd.f32 %v19080_v16, %v11438_v52  ;;  %v11440_v22 = vpop.f32.mrb[21].mxu0  ;;  %v14455_v21 = vpop.f32.mrb[37].mxu1 }
 0x576   : > { %v12195_v11 = vadd.f32 %v19082_v38, %v11440_v22  ;;  %v11442_v10 = vpop.f32.mrb[22].mxu0  ;;  %12274 = vst [vmem:[%s19058_s14 + $0x118] sm:$0xff] %v12210_v14  ;;  %v14456_v23 = vadd.f32 %v14455_v21, %v14454_v37  ;;  %v14457_v43 = vpop.f32.mrb[38].mxu1 }
 0x577   : > { %12077 = vst [vmem:[%s19091_s23 + $0x50] sm:$0xff] %v12045_v49  ;;  %v12046_v7 = vadd.f32 %v19080_v16, %v11442_v10  ;;  %v11444_v39 = vpop.f32.mrb[23].mxu0  ;;  %v14458_v19 = vpop.f32.mrb[39].mxu1 }
 0x578   : > { %12259 = vst [vmem:[%s19058_s14 + $0xa0] sm:$0xff] %v12195_v11  ;;  %v12197_v31 = vadd.f32 %v19082_v38, %v11444_v39  ;;  %v11860_v8 = vadd.f32 %v14456_v23, %v19005_v32  ;;  %v14459_v51 = vadd.f32 %v14458_v19, %v14457_v43 }
 0x579   : > { %12078 = vst [vmem:[%s19091_s23 + $0x58] sm:$0xff] %v12046_v7 }
 0x57a   : > { %12261 = vst [vmem:[%s19058_s14 + $0xb0] sm:$0xff] %v12197_v31  ;;  %v12212_v55 = vadd.f32 %v19053_v13, %v11860_v8  ;;  %v11863_v6 = vadd.f32 %v14459_v51, %v19008_v56 }
 0x57c   : > { %v11448_v48 = vpop.f32.mrb[24].mxu0  ;;  %12276 = vst [vmem:[%s19058_s14 + $0x128] sm:$0xff] %v12212_v55  ;;  %v12214_v46 = vadd.f32 %v19053_v13, %v11863_v6  ;;  %v14460_v5 = vpop.f32.mrb[40].mxu1 }
 0x57d   : > { %v12047_v53 = vadd.f32 %v19080_v16, %v11448_v48  ;;  %v11450_v63 = vpop.f32.mrb[25].mxu0  ;;  %v14461_v41 = vpop.f32.mrb[41].mxu1 }
 0x57e   : > { %v12199_v32 = vadd.f32 %v19082_v38, %v11450_v63  ;;  %v11452_v42 = vpop.f32.mrb[26].mxu0  ;;  %12278 = vst [vmem:[%s19058_s14 + $0x138] sm:$0xff] %v12214_v46  ;;  %v14462_v58 = vadd.f32 %v14461_v41, %v14460_v5  ;;  %v14463_v20 = vpop.f32.mrb[42].mxu1 }
 0x57f   : > { %12079 = vst [vmem:[%s19091_s23 + $0x60] sm:$0xff] %v12047_v53  ;;  %v12048_v56 = vadd.f32 %v19080_v16, %v11452_v42  ;;  %v11454_v30 = vpop.f32.mrb[27].mxu0  ;;  %v14464_v33 = vpop.f32.mrb[43].mxu1 }
 0x580   : > { %12263 = vst [vmem:[%s19058_s14 + $0xc0] sm:$0xff] %v12199_v32  ;;  %v12201_v44 = vadd.f32 %v19082_v38, %v11454_v30  ;;  %v11866_v34 = vadd.f32 %v14462_v58, %v19011_v27  ;;  %v14465_v18 = vadd.f32 %v14464_v33, %v14463_v20 }
 0x581   : > { %12080 = vst [vmem:[%s19091_s23 + $0x68] sm:$0xff] %v12048_v56 }
 0x582   : > { %12265 = vst [vmem:[%s19058_s14 + $0xd0] sm:$0xff] %v12201_v44  ;;  %v12216_v25 = vadd.f32 %v19053_v13, %v11866_v34  ;;  %v11869_v0 = vadd.f32 %v14465_v18, %v19014_v26 }
 0x584   : > { %v11458_v50 = vpop.f32.mrb[28].mxu0  ;;  %12280 = vst [vmem:[%s19058_s14 + $0x148] sm:$0xff] %v12216_v25  ;;  %v12218_v17 = vadd.f32 %v19053_v13, %v11869_v0  ;;  %v14466_v35 = vpop.f32.mrb[44].mxu1 }
 0x585   : > { %v12049_v9 = vadd.f32 %v19080_v16, %v11458_v50  ;;  %v11460_v15 = vpop.f32.mrb[29].mxu0  ;;  %v14467_v60 = vpop.f32.mrb[45].mxu1 }
 0x586   : > { %v12203_v27 = vadd.f32 %v19082_v38, %v11460_v15  ;;  %v11462_v36 = vpop.f32.mrb[30].mxu0  ;;  %12282 = vst [vmem:[%s19058_s14 + $0x158] sm:$0xff] %v12218_v17  ;;  %v14468_v4 = vadd.f32 %v14467_v60, %v14466_v35  ;;  %v14469_v2 = vpop.f32.mrb[46].mxu1 }
 0x587   : > { %12081 = vst [vmem:[%s19091_s23 + $0x70] sm:$0xff] %v12049_v9  ;;  %v12050_v26 = vadd.f32 %v19080_v16, %v11462_v36  ;;  %v11464_v47 = vpop.f32.mrb[31].mxu0  ;;  %v14470_v40 = vpop.f32.mrb[47].mxu1 }
 0x588   : > { %12267 = vst [vmem:[%s19058_s14 + $0xe0] sm:$0xff] %v12203_v27  ;;  %v12205_v45 = vadd.f32 %v19082_v38, %v11464_v47  ;;  %v11872_v57 = vadd.f32 %v14468_v4, %v19017_v3  ;;  %v14471_v52 = vadd.f32 %v14470_v40, %v14469_v2 }
 0x589   : > { %12082 = vst [vmem:[%s19091_s23 + $0x78] sm:$0xff] %v12050_v26 }
 0x58a   : > { %12269 = vst [vmem:[%s19058_s14 + $0xf0] sm:$0xff] %v12205_v45  ;;  %v12220_v14 = vadd.f32 %v19053_v13, %v11872_v57  ;;  %v11875_v49 = vadd.f32 %v14471_v52, %v19020_v12 }
 0x58c   : > { %v11468_v37 = vpop.f32.mrb[32].mxu0  ;;  %12284 = vst [vmem:[%s19058_s14 + $0x168] sm:$0xff] %v12220_v14  ;;  %v12222_v22 = vadd.f32 %v19053_v13, %v11875_v49  ;;  %v14472_v21 = vpop.f32.mrb[48].mxu1 }
 0x58d   : > { %v12051_v11 = vadd.f32 %v19080_v16, %v11468_v37  ;;  %v11470_v10 = vpop.f32.mrb[33].mxu0  ;;  %v14473_v23 = vpop.f32.mrb[49].mxu1 }
 0x58e   : > { %v12207_v3 = vadd.f32 %v19082_v38, %v11470_v10  ;;  %v11472_v7 = vpop.f32.mrb[34].mxu0  ;;  %12286 = vst [vmem:[%s19058_s14 + $0x178] sm:$0xff] %v12222_v22  ;;  %v14474_v43 = vadd.f32 %v14473_v23, %v14472_v21  ;;  %v14475_v39 = vpop.f32.mrb[50].mxu1 }
 0x58f   : > { %12083 = vst [vmem:[%s19091_s23 + $0x80] sm:$0xff] %v12051_v11  ;;  %v12052_v12 = vadd.f32 %v19080_v16, %v11472_v7  ;;  %v11474_v31 = vpop.f32.mrb[35].mxu0  ;;  %v14476_v8 = vpop.f32.mrb[51].mxu1 }
 0x590   : > { %12271 = vst [vmem:[%s19058_s14 + $0x100] sm:$0xff] %v12207_v3  ;;  %v12209_v19 = vadd.f32 %v19082_v38, %v11474_v31  ;;  %v11878_v51 = vadd.f32 %v14474_v43, %v19023_v29  ;;  %v14477_v55 = vadd.f32 %v14476_v8, %v14475_v39 }
 0x591   : > { %12084 = vst [vmem:[%s19091_s23 + $0x88] sm:$0xff] %v12052_v12 }
 0x592   : > { %12273 = vst [vmem:[%s19058_s14 + $0x110] sm:$0xff] %v12209_v19  ;;  %v12224_v6 = vadd.f32 %v19053_v13, %v11878_v51  ;;  %v11881_v48 = vadd.f32 %v14477_v55, %v19026_v1 }
 0x594   : > { %v11478_v46 = vpop.f32.mrb[36].mxu0  ;;  %12288 = vst [vmem:[%s19058_s14 + $0x188] sm:$0xff] %v12224_v6  ;;  %v12226_v53 = vadd.f32 %v19053_v13, %v11881_v48  ;;  %v14478_v63 = vpop.f32.mrb[52].mxu1 }
 0x595   : > { %v12053_v5 = vadd.f32 %v19080_v16, %v11478_v46  ;;  %v11480_v32 = vpop.f32.mrb[37].mxu0  ;;  %v14479_v41 = vpop.f32.mrb[53].mxu1 }
 0x596   : > { %v12211_v29 = vadd.f32 %v19082_v38, %v11480_v32  ;;  %v11482_v42 = vpop.f32.mrb[38].mxu0  ;;  %12290 = vst [vmem:[%s19058_s14 + $0x198] sm:$0xff] %v12226_v53  ;;  %v14480_v58 = vadd.f32 %v14479_v41, %v14478_v63  ;;  %v14481_v56 = vpop.f32.mrb[54].mxu1 }
 0x597   : > { %12085 = vst [vmem:[%s19091_s23 + $0x90] sm:$0xff] %v12053_v5  ;;  %v12054_v1 = vadd.f32 %v19080_v16, %v11482_v42  ;;  %v11484_v20 = vpop.f32.mrb[39].mxu0  ;;  %v14482_v44 = vpop.f32.mrb[55].mxu1 }
 0x598   : > { %12275 = vst [vmem:[%s19058_s14 + $0x120] sm:$0xff] %v12211_v29  ;;  %v12213_v30 = vadd.f32 %v19082_v38, %v11484_v20  ;;  %v11884_v33 = vadd.f32 %v14480_v58, %v19029_v24  ;;  %v14483_v34 = vadd.f32 %v14482_v44, %v14481_v56 }
 0x599   : > { %12086 = vst [vmem:[%s19091_s23 + $0x98] sm:$0xff] %v12054_v1 }
 0x59a   : > { %12277 = vst [vmem:[%s19058_s14 + $0x130] sm:$0xff] %v12213_v30  ;;  %v12228_v18 = vadd.f32 %v19053_v13, %v11884_v33  ;;  %v11887_v25 = vadd.f32 %v14483_v34, %v19032_v54 }
 0x59c   : > { %v11488_v0 = vpop.f32.mrb[40].mxu0  ;;  %12292 = vst [vmem:[%s19058_s14 + $0x1a8] sm:$0xff] %v12228_v18  ;;  %v12230_v50 = vadd.f32 %v19053_v13, %v11887_v25  ;;  %v14484_v9 = vpop.f32.mrb[56].mxu1 }
 0x59d   : > { %v12055_v17 = vadd.f32 %v19080_v16, %v11488_v0  ;;  %v11490_v35 = vpop.f32.mrb[41].mxu0  ;;  %v14485_v15 = vpop.f32.mrb[57].mxu1 }
 0x59e   : > { %v12215_v24 = vadd.f32 %v19082_v38, %v11490_v35  ;;  %v11492_v27 = vpop.f32.mrb[42].mxu0  ;;  %12294 = vst [vmem:[%s19058_s14 + $0x1b8] sm:$0xff] %v12230_v50  ;;  %v14486_v60 = vadd.f32 %v14485_v15, %v14484_v9  ;;  %v14487_v36 = vpop.f32.mrb[58].mxu1 }
 0x59f   : > { %12087 = vst [vmem:[%s19091_s23 + $0xa0] sm:$0xff] %v12055_v17  ;;  %v12056_v54 = vadd.f32 %v19080_v16, %v11492_v27  ;;  %v11494_v4 = vpop.f32.mrb[43].mxu0  ;;  %v14488_v2 = vpop.f32.mrb[59].mxu1 }
 0x5a0   : > { %12279 = vst [vmem:[%s19058_s14 + $0x140] sm:$0xff] %v12215_v24  ;;  %v12217_v26 = vadd.f32 %v19082_v38, %v11494_v4  ;;  %v11890_v47 = vadd.f32 %v14486_v60, %v19035_v61  ;;  %v14489_v45 = vadd.f32 %v14488_v2, %v14487_v36 }
 0x5a1   : > { %12088 = vst [vmem:[%s19091_s23 + $0xa8] sm:$0xff] %v12056_v54 }
 0x5a2   : > { %12281 = vst [vmem:[%s19058_s14 + $0x150] sm:$0xff] %v12217_v26  ;;  %v12232_v40 = vadd.f32 %v19053_v13, %v11890_v47  ;;  %v11893_v57 = vadd.f32 %v14489_v45, %v19038_v59 }
 0x5a4   : > { %v11498_v52 = vpop.f32.mrb[44].mxu0  ;;  %12296 = vst [vmem:[%s19058_s14 + $0x1c8] sm:$0xff] %v12232_v40  ;;  %v12234_v14 = vadd.f32 %v19053_v13, %v11893_v57  ;;  %v14490_v37 = vpop.f32.mrb[60].mxu1 }
 0x5a5   : > { %v12057_v49 = vadd.f32 %v19080_v16, %v11498_v52  ;;  %v11500_v22 = vpop.f32.mrb[45].mxu0  ;;  %v14491_v11 = vpop.f32.mrb[61].mxu1 }
 0x5a6   : > { %v12219_v61 = vadd.f32 %v19082_v38, %v11500_v22  ;;  %v11502_v21 = vpop.f32.mrb[46].mxu0  ;;  %12298 = vst [vmem:[%s19058_s14 + $0x1d8] sm:$0xff] %v12234_v14  ;;  %v14492_v10 = vadd.f32 %v14491_v11, %v14490_v37  ;;  %v14493_v3 = vpop.f32.mrb[62].mxu1 }
 0x5a7   : > { %12089 = vst [vmem:[%s19091_s23 + $0xb0] sm:$0xff] %v12057_v49  ;;  %v12058_v59 = vadd.f32 %v19080_v16, %v11502_v21  ;;  %v11504_v23 = vpop.f32.mrb[47].mxu0  ;;  %v14494_v43 = vpop.f32.mrb[63].mxu1 }
 0x5a8   : > { %12283 = vst [vmem:[%s19058_s14 + $0x160] sm:$0xff] %v12219_v61  ;;  %v12221_v7 = vadd.f32 %v19082_v38, %v11504_v23  ;;  %v11896_v12 = vadd.f32 %v14492_v10, %v19041_v28  ;;  %v14495_v39 = vadd.f32 %v14494_v43, %v14493_v3 }
 0x5a9   : > { %12090 = vst [vmem:[%s19091_s23 + $0xb8] sm:$0xff] %v12058_v59 }
 0x5aa   : > { %12285 = vst [vmem:[%s19058_s14 + $0x170] sm:$0xff] %v12221_v7  ;;  %v12236_v31 = vadd.f32 %v19053_v13, %v11896_v12  ;;  %v11899_v19 = vadd.f32 %v14495_v39, %v19044_v62 }
 0x5ac   : > { %v11508_v8 = vpop.f32.mrb[48].mxu0  ;;  %12300 = vst [vmem:[%s19058_s14 + $0x1e8] sm:$0xff] %v12236_v31  ;;  %v12238_v51 = vadd.f32 %v19053_v13, %v11899_v19 }
 0x5ad   : > { %v12059_v55 = vadd.f32 %v19080_v16, %v11508_v8  ;;  %v11510_v6 = vpop.f32.mrb[49].mxu0 }
 0x5ae   : > { %v12223_v28 = vadd.f32 %v19082_v38, %v11510_v6  ;;  %v11512_v48 = vpop.f32.mrb[50].mxu0  ;;  %12302 = vst [vmem:[%s19058_s14 + $0x1f8] sm:$0xff] %v12238_v51 }
 0x5af   : > { %12091 = vst [vmem:[%s19091_s23 + $0xc0] sm:$0xff] %v12059_v55  ;;  %v12060_v46 = vadd.f32 %v19080_v16, %v11512_v48  ;;  %v11514_v53 = vpop.f32.mrb[51].mxu0 }
 0x5b0   : > { %12287 = vst [vmem:[%s19058_s14 + $0x180] sm:$0xff] %v12223_v28  ;;  %v12225_v62 = vadd.f32 %v19082_v38, %v11514_v53 }
 0x5b1   : > { %12092 = vst [vmem:[%s19091_s23 + $0xc8] sm:$0xff] %v12060_v46 }
 0x5b2   : > { %12289 = vst [vmem:[%s19058_s14 + $0x190] sm:$0xff] %v12225_v62 }
 0x5b4   : > { %v11518_v13 = vpop.f32.mrb[52].mxu0 }
 0x5b5   : > { %v12061_v5 = vadd.f32 %v19080_v16, %v11518_v13  ;;  %v11520_v63 = vpop.f32.mrb[53].mxu0 }
 0x5b6   : > { %v12227_v32 = vadd.f32 %v19082_v38, %v11520_v63  ;;  %v11522_v29 = vpop.f32.mrb[54].mxu0 }
 0x5b7   : > { %12093 = vst [vmem:[%s19091_s23 + $0xd0] sm:$0xff] %v12061_v5  ;;  %v12062_v41 = vadd.f32 %v19080_v16, %v11522_v29  ;;  %v11524_v42 = vpop.f32.mrb[55].mxu0 }
 0x5b8   : > { %12291 = vst [vmem:[%s19058_s14 + $0x1a0] sm:$0xff] %v12227_v32  ;;  %v12229_v58 = vadd.f32 %v19082_v38, %v11524_v42 }
 0x5b9   : > { %12094 = vst [vmem:[%s19091_s23 + $0xd8] sm:$0xff] %v12062_v41 }
 0x5ba   : > { %12293 = vst [vmem:[%s19058_s14 + $0x1b0] sm:$0xff] %v12229_v58 }
 0x5bc   : > { %v11528_v1 = vpop.f32.mrb[56].mxu0 }
 0x5bd   : > { %v12063_v56 = vadd.f32 %v19080_v16, %v11528_v1  ;;  %v11530_v20 = vpop.f32.mrb[57].mxu0 }
 0x5be   : > { %v12231_v30 = vadd.f32 %v19082_v38, %v11530_v20  ;;  %v11532_v44 = vpop.f32.mrb[58].mxu0 }
 0x5bf   : > { %12095 = vst [vmem:[%s19091_s23 + $0xe0] sm:$0xff] %v12063_v56  ;;  %v12064_v33 = vadd.f32 %v19080_v16, %v11532_v44  ;;  %v11534_v34 = vpop.f32.mrb[59].mxu0 }
 0x5c0   : > { %12295 = vst [vmem:[%s19058_s14 + $0x1c0] sm:$0xff] %v12231_v30  ;;  %v12233_v18 = vadd.f32 %v19082_v38, %v11534_v34 }
 0x5c1   : > { %12096 = vst [vmem:[%s19091_s23 + $0xe8] sm:$0xff] %v12064_v33 }
 0x5c2   : > { %12297 = vst [vmem:[%s19058_s14 + $0x1d0] sm:$0xff] %v12233_v18 }
 0x5c4   : > { %v11538_v25 = vpop.f32.mrb[60].mxu0 }
 0x5c5   : > { %v12065_v0 = vadd.f32 %v19080_v16, %v11538_v25  ;;  %v11540_v50 = vpop.f32.mrb[61].mxu0 }
 0x5c6   : > { %v12235_v17 = vadd.f32 %v19082_v38, %v11540_v50  ;;  %v11542_v9 = vpop.f32.mrb[62].mxu0 }
 0x5c7   : > { %12097 = vst [vmem:[%s19091_s23 + $0xf0] sm:$0xff] %v12065_v0  ;;  %v12066_v35 = vadd.f32 %v19080_v16, %v11542_v9  ;;  %v11544_v24 = vpop.f32.mrb[63].mxu0 }
 0x5c8   : > { %12299 = vst [vmem:[%s19058_s14 + $0x1e0] sm:$0xff] %v12235_v17  ;;  %v12237_v15 = vadd.f32 %v19082_v38, %v11544_v24 }
 0x5c9   : > { %12098 = vst [vmem:[%s19091_s23 + $0xf8] sm:$0xff] %v12066_v35 }
 0x5ca   : > { %12301 = vst [vmem:[%s19058_s14 + $0x1f0] sm:$0xff] %v12237_v15 }
 0x5cb   : > { %15790 = shalt.err (!%p15787_p7)
}
 0x5cc   : > { %s15791_s14 = scalar_lea.hbm %s19291_s9, 4096  ;;  %s15795_s7 = scalar_lea.hbm %s19378_s4, 8192 }
 0x5cd   : > { %p15792_p8 = scmp.ne.s32.totalorder %s19291_s9, %s15791_s14  ;;  %p15796_p1 = scmp.lt.u32.totalorder %s19291_s9, %s19378_s4 }
 0x5ce   : > { %p15797_p0 = scmp.lt.u32.totalorder %s15795_s7, %s15791_s14  ;;  %p15799_p6 = scmp.lt.u32.totalorder %s15791_s14, %s19291_s9 }
 0x5cf   : > { %p15793_p11 = pnand %p15792_p8, %p19538_p9 }
 0x5d0   : > { %p15798_p5 = por %p15797_p0, %p15796_p1 }
 0x5d1   : > { %p15794_p13 = pneg %p15793_p11 }
 0x5d2   : > { %p15800_p10 = por %p15799_p6, %p15798_p5 }
 0x5d4   : > { %p15801_p12 = pnand %p15800_p10, %p15794_p13 }
 0x5d6   : > { %15804 = shalt.err (!%p15801_p12)
}
 0x5d7   : > { %s15881_s11 = smov 128   ;;  %s15882_s15 = smov 8  }
 0x5d8   : > { %15013 = dma.vmem_to_hbm [thread:$0]  (%p19538_p9), %s19293_s26, 4096, %s19291_s9, %s12304_s13, %s15881_s11, %s15881_s11, %s15882_s15  }
 0x5d9   : > { %s12309_s16 = scalar_lea.sflag [#allocation8], %s19047_s10  ;;  %s15805_s17 = scalar_lea.vmem %s19303_s6, 8192 }
 0x5da   : > { %p15806_p2 = scmp.ne.s32.totalorder %s19303_s6, %s15805_s17  ;;  %s15883_s25 = smov [#allocation7]  }
 0x5db   : > { %s15809_s14 = sshll.u32 %s15883_s25, 4  ;;  %s15810_s14 = int_to_ptr.vmem [resolvable:$false] %s15809_s14 }
 0x5dc   : > { %p15807_p3 = pnand %p15806_p2, %p19538_p9  ;;  %s15811_s23 = scalar_lea.vmem %s15810_s14, 16384 }
 0x5dd   : > { %p15812_p7 = scmp.lt.s32.totalorder %s19303_s6, %s15810_s14  ;;  %p15813_p8 = scmp.lt.s32.totalorder %s15811_s23, %s15805_s17 }
 0x5de   : > { %p15808_p4 = pneg %p15807_p3 }
 0x5df   : > { %p15814_p11 = por %p15813_p8, %p15812_p7 }
 0x5e1   : > { %p15815_p13 = pnand %p15814_p11, %p15808_p4 }
 0x5e3   : > { %15818 = shalt.err (!%p15815_p13)
}
 0x5e4   : > { %s15819_s26 = scalar_lea.hbm %s19301_s12, 8192  ;;  %s15823_s30 = scalar_lea.hbm %s19379_s5, 16384 }
 0x5e5   : > { %p15820_p1 = scmp.ne.s32.totalorder %s19301_s12, %s15819_s26  ;;  %p15824_p6 = scmp.lt.u32.totalorder %s19301_s12, %s19379_s5 }
 0x5e6   : > { %p15825_p10 = scmp.lt.u32.totalorder %s15823_s30, %s15819_s26  ;;  %p15827_p2 = scmp.lt.u32.totalorder %s15819_s26, %s19301_s12 }
 0x5e7   : > { %p15821_p0 = pnand %p15820_p1, %p19538_p9 }
 0x5e8   : > { %p15826_p12 = por %p15825_p10, %p15824_p6 }
 0x5e9   : > { %p15822_p5 = pneg %p15821_p0 }
 0x5ea   : > { %p15828_p3 = por %p15827_p2, %p15826_p12 }
 0x5ec   : > { %p15829_p4 = pnand %p15828_p3, %p15822_p5 }
 0x5ee   : > { %15832 = shalt.err (!%p15829_p4)
}
 0x5ef   : > { %s15884_s22 = smov 256   ;;  %s15885_s11 = smov 16  }
 0x5f0   : > { %15014 = dma.vmem_to_hbm [thread:$0]  (%p19538_p9), %s19303_s6, 8192, %s19301_s12, %s12309_s16, %s15884_s22, %s15884_s22, %s15885_s11  }
 0x5f1 PF: > { %p15030_p7 = scmp.ge.s32.totalorder %s15875_s21, 2  ;;  %s12353_s15 = sand.u32 1, %s15863_s18  }
 0x5f2   : > { %p19539_p8 = scmp.ne.s32.totalorder %s19424_s29, 0  ;;  %s12354_s17 = scalar_lea.sflag [#allocation5], %s12353_s15 }
 0x5f4   : > { %p15022_p11 = pnand %p15030_p7, %p19539_p8 }
 0x5f6   : > { %15854 = dma.done.wait (!%p15022_p11), %s12354_s17, 4096  }
 0x5f7   : > { %15856 = vsyncadd (!%p15022_p11), %s12354_s17, 4294963200  ;;  %s12363_s25 = scalar_lea.sflag [#allocation8], %s12353_s15 }
 0x5f8   : > { %15858 = dma.done.wait (!%p15022_p11), %s12363_s25, 8192  }
 0x5f9   : > { %15860 = vsyncadd (!%p15022_p11), %s12363_s25, 4294959104  ;;  %p20_p9 = scmp.ge.s32.totalorder %s15941_s24, 4   ;;  %s19540_s18 = smov %s15867_s19 }
 0x5fa   : > { %s19541_s19 = smov %s15871_s20  ;;  %s19542_s20 = smov %s15952_s27 }
 0x5fb   : > { %s19543_s21 = smov %s15941_s24  ;;  %22 = sbr.rel (!%p20_p9) target bundleno = 6 (0x6), region = 103 }
 0x602   :  { %12368 = vsyncpa [#allocation4], 1 }
 0x603   :  { %12370 = vsyncpa [#allocation4 + $0x1], 1 }
 0x604   :  { %12371 = vsyncpa [#allocation5], 1 }
 0x605   :  { %12373 = vsyncpa [#allocation5 + $0x1], 1 }
 0x606   :  { %12374 = vsyncpa [#allocation8], 1 }
 0x607   :  { %12376 = vsyncpa [#allocation8 + $0x1], 1 }

</bundles_post_ra>
